<compile_context>
chip_gen: v7x
topology: tpu7x:2x2x1
jax: 0.10.0
libtpu: 0.0.40
codegen_flags: <defaults>
</compile_context>

<pallas_src>
import numpy as np
import jax
import jax.numpy as jnp
from jax.experimental import pallas as pl
from jax.experimental.pallas import tpu as pltpu

VOCAB_SIZE = 76       # vocab_size
DESC_OUT = 512        # desc_output_size
HIDDEN = 256          # final_mlp_list[0]
NUM_CLASSES = 1
PI = 0.1
PRIOR = -float(np.log((1.0 - PI) / PI))   # bias init of last Linear in mlp_f

MAX_TM = 2048         # cap so intermediates (~12 MB at tm=2048) stay well inside VMEM
VMEM_LIMIT_BYTES = 32 * 1024 * 1024


def _round_up(x, m):
    return ((x + m - 1) // m) * m


def _num_tensorcores():
    """Best-effort query of TensorCores per chip (2 on v7x, 1 on v5e/v6e)."""
    try:
        info = pltpu.get_tpu_info()
        for attr in ("num_cores", "num_tensorcores", "tensorcores_per_chip",
                     "cores_per_chip", "core_count"):
            v = getattr(info, attr, None)
            if v:
                return int(v)
    except Exception:
        pass
    try:
        v = getattr(jax.devices()[0], "num_cores", None)
        if v:
            return int(v)
    except Exception:
        pass
    return 1


def _model_kernel(x_ref, wd_ref, bd_ref, w1_ref, b1_ref, w2_ref, b2_ref, o_ref):
    # x tile (TM, 76): use bf16 on the MXU; skip the cast if the input is already bf16.
    x = x_ref[...]
    if x.dtype != jnp.bfloat16:
        x = x.astype(jnp.bfloat16)

    # mlp_d: Linear(76->512) + ReLU.  (self.relu on an already-ReLU'd tensor is a no-op.)
    h = jnp.dot(x, wd_ref[...], preferred_element_type=jnp.float32) + bd_ref[...]
    h = jnp.maximum(h, 0.0).astype(jnp.bfloat16)

    # Scale_and_shift is pre-folded into (w1, b1) on the host (exact linear identity).
    # mlp_f hidden: Linear(512->256) -> ReLU; dropouts (p=0 / p=0.2) are identity in eval.
    h1 = jnp.dot(h, w1_ref[...], preferred_element_type=jnp.float32) + b1_ref[...]
    h1 = jnp.maximum(h1, 0.0)

    # Final 256->1 projection as VPU multiply + XLU row-reduction in f32.  A (tm,256)x(256,1)
    # MXU matmul would stream the whole LHS through the MXU for 0.07% of the FLOPs.
    out = jnp.sum(h1 * w2_ref[...], axis=-1, keepdims=True) + b2_ref[...]
    o_ref[...] = out.astype(o_ref.dtype)


def model_forward(x, prepared_params, *, tm=MAX_TM, num_cores=None):
    """x: (N, VOCAB_SIZE) float32 or bfloat16 -> (N, NUM_CLASSES) float32."""
    N = x.shape[0]
    wd, bd, w1, b1, w2_row, b2 = prepared_params
    if num_cores is None:
        num_cores = _num_tensorcores()

    # Tile sizing: single largest tile (capped at MAX_TM) -- this tiny network is
    # per-grid-step-overhead dominated.  Only when the chip has >= 2 TensorCores (v7x)
    # do we force at least 2 "parallel" tiles so both cores get work; on v5e/v6e a split
    # would just double the serial step overhead.
    n_pad = _round_up(max(N, 8), 8)
    tm_eff = min(_round_up(min(tm, MAX_TM), 8), n_pad)
    if num_cores >= 2 and pl.cdiv(n_pad, tm_eff) < 2 and n_pad >= 16:
        tm_eff = _round_up(pl.cdiv(n_pad, 2), 8)
    grid = (pl.cdiv(N, tm_eff),)

    def resident(arr):
        # Full array with a constant block index: DMA'd once, stays VMEM-resident.
        return pl.BlockSpec(arr.shape, lambda i: (0, 0))

    flops = 2 * N * (VOCAB_SIZE * DESC_OUT + DESC_OUT * HIDDEN) + 3 * N * HIDDEN
    weight_bytes = sum(int(np.prod(a.shape)) * a.dtype.itemsize
                       for a in (wd, bd, w1, b1, w2_row, b2))
    bytes_accessed = (N * VOCAB_SIZE * x.dtype.itemsize
                      + N * NUM_CLASSES * 4 + weight_bytes)

    return pl.pallas_call(
        _model_kernel,
        out_shape=jax.ShapeDtypeStruct((N, NUM_CLASSES), jnp.float32),
        grid_spec=pltpu.PrefetchScalarGridSpec(
            num_scalar_prefetch=0,
            grid=grid,
            in_specs=[
                pl.BlockSpec((tm_eff, VOCAB_SIZE), lambda i: (i, 0)),  # x tile
                resident(wd),      # (76, 512)  bf16
                resident(bd),      # (1, 512)   f32
                resident(w1),      # (512, 256) bf16  (scale folded in)
                resident(b1),      # (1, 256)   f32   (shift folded in)
                resident(w2_row),  # (1, 256)   f32   (final projection, VPU/XLU)
                resident(b2),      # (1, 1)     f32   (prior bias)
            ],
            out_specs=pl.BlockSpec((tm_eff, NUM_CLASSES), lambda i: (i, 0)),
        ),
        compiler_params=pltpu.CompilerParams(
            dimension_semantics=("parallel",),
            vmem_limit_bytes=VMEM_LIMIT_BYTES,
        ),
        cost_estimate=pl.CostEstimate(
            flops=flops, transcendentals=0, bytes_accessed=bytes_accessed),
    )(x, wd, bd, w1, b1, w2_row, b2)


def init_raw_params(key):
    """Parameters matching the PyTorch module's structure (f32, un-fused)."""
    k = jax.random.split(key, 6)
    wd = jax.random.normal(k[0], (VOCAB_SIZE, DESC_OUT), jnp.float32) * 0.05
    bd = jax.random.normal(k[1], (1, DESC_OUT), jnp.float32) * 0.05
    ss_w = jax.random.uniform(k[2], (), jnp.float32)        # Scale_and_shift.weight ~ rand(1)
    ss_b = jnp.zeros((), jnp.float32)                       # Scale_and_shift.bias = zeros(1)
    w1 = jax.random.normal(k[3], (DESC_OUT, HIDDEN), jnp.float32) * 0.05
    b1 = jax.random.normal(k[4], (1, HIDDEN), jnp.float32) * 0.05
    w2 = jax.random.normal(k[5], (HIDDEN, NUM_CLASSES), jnp.float32) * 0.05
    b2 = jnp.full((1, NUM_CLASSES), PRIOR, jnp.float32)     # nn.init.constant_(bias, prior)
    return (wd, bd, ss_w, ss_b, w1, b1, w2, b2)


def prepare_params(raw):
    """One-time host-side prep: fold Scale_and_shift into (w1, b1), cast the two large
    matmul weights to bf16 (f32 accumulation in-kernel), and transpose the final
    (256,1) projection into a (1,256) f32 row for the in-kernel VPU/XLU reduction."""
    wd, bd, ss_w, ss_b, w1, b1, w2, b2 = raw
    w1_f = ss_w * w1                                         # exact fold, no sign assumption
    b1_f = b1 + ss_b * jnp.sum(w1, axis=0, keepdims=True)
    w2_row = jnp.transpose(w2)                               # (1, HIDDEN) f32
    return (wd.astype(jnp.bfloat16), bd,
            w1_f.astype(jnp.bfloat16), b1_f,
            w2_row, b2)


def reference_forward(x, raw):
    """Pure-JAX f32 reference of the original (un-fused) forward pass."""
    wd, bd, ss_w, ss_b, w1, b1, w2, b2 = raw
    h = jnp.maximum(x @ wd + bd, 0.0)       # mlp_d (+ idempotent self.relu)
    h = ss_w * h + ss_b                     # Scale_and_shift
    h1 = jnp.maximum(h @ w1 + b1, 0.0)      # mlp_f hidden
    return h1 @ w2 + b2                     # mlp_f output (prior bias)


if __name__ == "__main__":
    key = jax.random.PRNGKey(0)
    kx, kp = jax.random.split(key)

    N = 1024
    x = jax.random.normal(kx, (N, VOCAB_SIZE), jnp.float32)
    raw = init_raw_params(kp)
    params = prepare_params(raw)

    out = jax.block_until_ready(model_forward(x, params))

    ref = reference_forward(x, raw)
    np.testing.assert_allclose(np.asarray(out), np.asarray(ref), rtol=2e-2, atol=2e-2)
    assert out.shape == (N, NUM_CLASSES)

    print("KERNEL_OK")
</pallas_src>

<mosaic_0001>
module attributes {stable_mosaic.version = 11 : i64} {
  func.func @_model_kernel(%arg0: i32, %arg1: memref<1024x76xf32, #tpu.memory_space<vmem>>, %arg2: memref<76x512xbf16, #tpu.memory_space<vmem>>, %arg3: memref<1x512xf32, #tpu.memory_space<vmem>>, %arg4: memref<512x256xbf16, #tpu.memory_space<vmem>>, %arg5: memref<1x256xf32, #tpu.memory_space<vmem>>, %arg6: memref<1x256xf32, #tpu.memory_space<vmem>>, %arg7: memref<1x1xf32, #tpu.memory_space<vmem>>, %arg8: memref<1024x1xf32, #tpu.memory_space<vmem>>) attributes {dimension_semantics = [#tpu.dimension_semantics<parallel>], iteration_bounds = array<i64: 1>, scalar_prefetch = 0 : i64, scratch_operands = 0 : i64, tpu.core_type = #tpu.core_type<tc>, window_params = [{transform_indices = @transform_0, window_bounds = array<i64: 1024, 76>}, {pipeline_mode = #tpu.pipeline_mode<synchronous>, transform_indices = @transform_1, window_bounds = array<i64: 76, 512>}, {pipeline_mode = #tpu.pipeline_mode<synchronous>, transform_indices = @transform_2, window_bounds = array<i64: 1, 512>}, {pipeline_mode = #tpu.pipeline_mode<synchronous>, transform_indices = @transform_3, window_bounds = array<i64: 512, 256>}, {pipeline_mode = #tpu.pipeline_mode<synchronous>, transform_indices = @transform_4, window_bounds = array<i64: 1, 256>}, {pipeline_mode = #tpu.pipeline_mode<synchronous>, transform_indices = @transform_5, window_bounds = array<i64: 1, 256>}, {pipeline_mode = #tpu.pipeline_mode<synchronous>, transform_indices = @transform_6, window_bounds = array<i64: 1, 1>}, {transform_indices = @transform_7, window_bounds = array<i64: 1024, 1>}]} {
    %c0 = arith.constant 0 : index
    %c0_0 = arith.constant 0 : index
    %0 = vector.load %arg1[%c0, %c0_0] : memref<1024x76xf32, #tpu.memory_space<vmem>>, vector<1024x76xf32>
    %1 = arith.truncf %0 : vector<1024x76xf32> to vector<1024x76xbf16>
    %c0_1 = arith.constant 0 : index
    %c0_2 = arith.constant 0 : index
    %2 = vector.load %arg2[%c0_1, %c0_2] : memref<76x512xbf16, #tpu.memory_space<vmem>>, vector<76x512xbf16>
    %cst = arith.constant dense<0.000000e+00> : vector<1024x512xf32>
    %3 = tpu.matmul %1, %2, %cst {dimension_numbers = #tpu.dot_dimension_numbers<[1], [0], [0], [1], [0, 0, 1, 1], [], []>} : vector<1024x76xbf16>, vector<76x512xbf16>, vector<1024x512xf32> -> vector<1024x512xf32>
    %c0_3 = arith.constant 0 : index
    %c0_4 = arith.constant 0 : index
    %4 = vector.load %arg3[%c0_3, %c0_4] : memref<1x512xf32, #tpu.memory_space<vmem>>, vector<1x512xf32>
    %5 = vector.broadcast %4 : vector<1x512xf32> to vector<1024x512xf32>
    %6 = arith.addf %3, %5 : vector<1024x512xf32>
    %cst_5 = arith.constant 0.000000e+00 : f32
    %7 = vector.broadcast %cst_5 : f32 to vector<1024x512xf32>
    %8 = arith.maximumf %6, %7 : vector<1024x512xf32>
    %9 = arith.truncf %8 : vector<1024x512xf32> to vector<1024x512xbf16>
    %c0_6 = arith.constant 0 : index
    %c0_7 = arith.constant 0 : index
    %10 = vector.load %arg4[%c0_6, %c0_7] : memref<512x256xbf16, #tpu.memory_space<vmem>>, vector<512x256xbf16>
    %cst_8 = arith.constant dense<0.000000e+00> : vector<1024x256xf32>
    %11 = tpu.matmul %9, %10, %cst_8 {dimension_numbers = #tpu.dot_dimension_numbers<[1], [0], [0], [1], [0, 0, 1, 1], [], []>} : vector<1024x512xbf16>, vector<512x256xbf16>, vector<1024x256xf32> -> vector<1024x256xf32>
    %c0_9 = arith.constant 0 : index
    %c0_10 = arith.constant 0 : index
    %12 = vector.load %arg5[%c0_9, %c0_10] : memref<1x256xf32, #tpu.memory_space<vmem>>, vector<1x256xf32>
    %13 = vector.broadcast %12 : vector<1x256xf32> to vector<1024x256xf32>
    %14 = arith.addf %11, %13 : vector<1024x256xf32>
    %cst_11 = arith.constant 0.000000e+00 : f32
    %15 = vector.broadcast %cst_11 : f32 to vector<1024x256xf32>
    %16 = arith.maximumf %14, %15 : vector<1024x256xf32>
    %c0_12 = arith.constant 0 : index
    %c0_13 = arith.constant 0 : index
    %17 = vector.load %arg6[%c0_12, %c0_13] : memref<1x256xf32, #tpu.memory_space<vmem>>, vector<1x256xf32>
    %18 = vector.broadcast %17 : vector<1x256xf32> to vector<1024x256xf32>
    %19 = arith.mulf %16, %18 : vector<1024x256xf32>
    %cst_14 = arith.constant dense<0.000000e+00> : vector<1024xf32>
    %20 = vector.multi_reduction <add>, %19, %cst_14 [1] : vector<1024x256xf32> to vector<1024xf32>
    %21 = vector.shape_cast %20 : vector<1024xf32> to vector<1024x1xf32>
    %c0_15 = arith.constant 0 : index
    %c0_16 = arith.constant 0 : index
    %22 = vector.load %arg7[%c0_15, %c0_16] : memref<1x1xf32, #tpu.memory_space<vmem>>, vector<1x1xf32>
    %23 = vector.broadcast %22 : vector<1x1xf32> to vector<1024x1xf32>
    %24 = arith.addf %21, %23 : vector<1024x1xf32>
    %c0_17 = arith.constant 0 : index
    %c0_18 = arith.constant 0 : index
    %25 = vector.load %arg8[%c0_17, %c0_18] : memref<1024x1xf32, #tpu.memory_space<vmem>>, vector<1024x1xf32>
    tpu.vector_store %arg8[%c0_17, %c0_18], %24 {strides = array<i32>} : memref<1024x1xf32, #tpu.memory_space<vmem>>, vector<1024x1xf32>,
    return
  }
  func.func @transform_0(%arg0: i32) -> (i32, i32) {
    %c0_i32 = arith.constant 0 : i32
    %c0_i32_0 = arith.constant 0 : i32
    return %arg0, %c0_i32 : i32, i32
  }
  func.func @transform_1(%arg0: i32) -> (i32, i32) {
    %c0_i32 = arith.constant 0 : i32
    %c0_i32_0 = arith.constant 0 : i32
    %c0_i32_1 = arith.constant 0 : i32
    return %c0_i32, %c0_i32_0 : i32, i32
  }
  func.func @transform_2(%arg0: i32) -> (i32, i32) {
    %c0_i32 = arith.constant 0 : i32
    %c0_i32_0 = arith.constant 0 : i32
    %c0_i32_1 = arith.constant 0 : i32
    return %c0_i32, %c0_i32_0 : i32, i32
  }
  func.func @transform_3(%arg0: i32) -> (i32, i32) {
    %c0_i32 = arith.constant 0 : i32
    %c0_i32_0 = arith.constant 0 : i32
    %c0_i32_1 = arith.constant 0 : i32
    return %c0_i32, %c0_i32_0 : i32, i32
  }
  func.func @transform_4(%arg0: i32) -> (i32, i32) {
    %c0_i32 = arith.constant 0 : i32
    %c0_i32_0 = arith.constant 0 : i32
    %c0_i32_1 = arith.constant 0 : i32
    return %c0_i32, %c0_i32_0 : i32, i32
  }
  func.func @transform_5(%arg0: i32) -> (i32, i32) {
    %c0_i32 = arith.constant 0 : i32
    %c0_i32_0 = arith.constant 0 : i32
    %c0_i32_1 = arith.constant 0 : i32
    return %c0_i32, %c0_i32_0 : i32, i32
  }
  func.func @transform_6(%arg0: i32) -> (i32, i32) {
    %c0_i32 = arith.constant 0 : i32
    %c0_i32_0 = arith.constant 0 : i32
    %c0_i32_1 = arith.constant 0 : i32
    return %c0_i32, %c0_i32_0 : i32, i32
  }
  func.func @transform_7(%arg0: i32) -> (i32, i32) {
    %c0_i32 = arith.constant 0 : i32
    %c0_i32_0 = arith.constant 0 : i32
    return %arg0, %c0_i32 : i32, i32
  }
}

</mosaic_0001>

<bundles_post_ra>
// kernel: tpu_custom_call.1
= control target key start
LH: loop header
LB: loop body
LE: loop exit
PB: predicated region body
PF: predicated region fallthrough
CT: control target
= control target key end

     0   :  { %v9873_v1 = vmov 0   ;;  %vm552_vm0 = vcmask 1045504   ;;  %vm359_vm1 = vcmask 621568   ;;  %vm5464_vm2 = vcmask 7168   ;;  %s9865_s1 = inlined_call_operand.vmem [shape: bf16[76,512], index: 1, kind: input, shape index: {}]   ;;  %s9866_s0 = inlined_call_operand.vmem [shape: f32[1024,76], index: 0, kind: input, shape index: {}]   ;;  %s9867_s3 = inlined_call_operand.vmem [shape: bf16[512,256], index: 3, kind: input, shape index: {}]   ;;  %s9868_s2 = inlined_call_operand.vmem [shape: f32[1,512], index: 2, kind: input, shape index: {}]   ;;  %s9869_s4 = inlined_call_operand.vmem [shape: f32[1,256], index: 4, kind: input, shape index: {}]   ;;  %s9870_s5 = inlined_call_operand.vmem [shape: f32[1,256], index: 5, kind: input, shape index: {}]   ;;  %s9871_s6 = inlined_call_operand.<no memory space> [shape: f32[1,1], index: 6, kind: input, shape index: {}]   ;;  %s9872_s7 = inlined_call_operand.vmem [shape: f32[1024,1], index: 7, kind: output, shape index: {}]  }
   0x1   :  { %v6325_v0 = vld [vmem:[%s9865_s1 + $0x4] ss:$16 sps:$4 sm:$0xff]   ;;  %597 = vmatprep.mubr.bf16.mxu0 %v9873_v1  ;;  %1270 = vmatprep.mubr.bf16.mxu1 %v9873_v1  ;;  %v6327_v2 = vld [vmem:[%s9865_s1 + $0xc] ss:$16 sps:$4 sm:$0xff]   ;;  %v6329_v3 = vld [vmem:[%s9865_s1] ss:$16 sps:$4 sm:$0xff]  }
   0x2   :  { %565 = vmatprep.subr.bf16.mxu0 %v6325_v0  ;;  %v6330_v4 = vld [vmem:[%s9865_s1 + $0x8] ss:$16 sps:$4 sm:$0xff]   ;;  %1238 = vmatprep.subr.bf16.mxu1 %v6327_v2  ;;  %v6331_v5 = vld [vmem:[%s9865_s1 + $0x24] ss:$16 sps:$4 sm:$0xff]   ;;  %v6333_v6 = vld [vmem:[%s9865_s1 + $0x2c] ss:$16 sps:$4 sm:$0xff]  }
   0x3   :  { %566 = vmatpush1.bf16.msra.mxu0 %v6329_v3  ;;  %1239 = vmatpush1.bf16.msra.mxu1 %v6330_v4  ;;  %v6335_v7 = vld [vmem:[%s9865_s1 + $0x20] ss:$16 sps:$4 sm:$0xff]   ;;  %v6336_v8 = vld [vmem:[%s9865_s1 + $0x28] ss:$16 sps:$4 sm:$0xff]   ;;  %v6337_v9 = vld [vmem:[%s9865_s1 + $0x44] ss:$16 sps:$4 sm:$0xff]  }
   0x4   :  { %567 = vmatprep.subr.bf16.mxu0 %v6331_v5  ;;  %1240 = vmatprep.subr.bf16.mxu1 %v6333_v6  ;;  %v6339_v10 = vld [vmem:[%s9865_s1 + $0x4c] ss:$16 sps:$4 sm:$0xff]   ;;  %v6341_v11 = vld [vmem:[%s9865_s1 + $0x40] ss:$16 sps:$4 sm:$0xff]   ;;  %v6342_v12 = vld [vmem:[%s9865_s1 + $0x48] ss:$16 sps:$4 sm:$0xff]  }
   0x5   :  { %v6343_v13 = vld [vmem:[%s9865_s1 + $0x64] ss:$16 sps:$4 sm:$0xff]   ;;  %v6345_v14 = vld [vmem:[%s9865_s1 + $0x6c] ss:$16 sps:$4 sm:$0xff]   ;;  %v6347_v15 = vld [vmem:[%s9865_s1 + $0x60] ss:$16 sps:$4 sm:$0xff]  }
   0x6   :  { %v6348_v16 = vld [vmem:[%s9865_s1 + $0x68] ss:$16 sps:$4 sm:$0xff]   ;;  %v6349_v17 = vld [vmem:[%s9865_s1 + $0x84] ss:$16 sps:$4 sm:$0x3f]  }
   0x7   :  { %568 = vmatpush1.bf16.msra.mxu0 %v6335_v7  ;;  %1241 = vmatpush1.bf16.msra.mxu1 %v6336_v8  ;;  %v6351_v18 = vld [vmem:[%s9865_s1 + $0x8c] ss:$16 sps:$4 sm:$0x3f]   ;;  %v6353_v19 = vld [vmem:[%s9865_s1 + $0x80] ss:$16 sps:$4 sm:$0x3f]  }
   0x8   :  { %569 = vmatprep.subr.bf16.mxu0 %v6337_v9  ;;  %1242 = vmatprep.subr.bf16.mxu1 %v6339_v10  ;;  %v6354_v20 = vld [vmem:[%s9865_s1 + $0x88] ss:$16 sps:$4 sm:$0x3f]   ;;  %v29_v21 = vld [vmem:[%s9866_s0] sm:$0xff]  ;;  %v554_v23 = vsel %vm552_vm0, %v6353_v19, 0  ;;  %v31_v32 = vld [vmem:[%s9866_s0 + $0x10] sm:$0xff] }
   0x9   :  { %v30_v22 = vld [vmem:[%s9866_s0 + $0x8] sm:$0xff]  ;;  %v560_v24 = vsel %vm552_vm0, %v6354_v20, 0  ;;  %v6363_v30 = vld [vmem:[%s9867_s3 + $0x14] ss:$8 sps:$4 sm:$0xff]   ;;  %v6361_v34 = vld [vmem:[%s9867_s3 + $0x10] ss:$8 sps:$4 sm:$0xff]  }
   0xa   :  { %v6357_v25 = vld [vmem:[%s9867_s3 + $0x4] ss:$8 sps:$4 sm:$0xff]   ;;  %v157_v27 = vpack.c.bf16 %v30_v22, %v29_v21  ;;  %v6355_v28 = vld [vmem:[%s9867_s3] ss:$8 sps:$4 sm:$0xff]   ;;  %v6366_v31 = vld [vmem:[%s9867_s3 + $0x114] ss:$8 sps:$4 sm:$0xff]  }
   0xb   :  { %570 = vmatpush1.bf16.msra.mxu0 %v6341_v11  ;;  %1243 = vmatpush1.bf16.msra.mxu1 %v6342_v12  ;;  %v6360_v26 = vld [vmem:[%s9867_s3 + $0x104] ss:$8 sps:$4 sm:$0xff]   ;;  %v6358_v29 = vld [vmem:[%s9867_s3 + $0x100] ss:$8 sps:$4 sm:$0xff]   ;;  %v32_v33 = vld [vmem:[%s9866_s0 + $0x18] sm:$0xff] }
   0xc   :  { %571 = vmatprep.subr.bf16.mxu0 %v6343_v13  ;;  %1244 = vmatprep.subr.bf16.mxu1 %v6345_v14  ;;  %v6364_v35 = vld [vmem:[%s9867_s3 + $0x110] ss:$8 sps:$4 sm:$0xff]   ;;  %v6369_v36 = vld [vmem:[%s9867_s3 + $0x24] ss:$8 sps:$4 sm:$0xff]   ;;  %v158_v37 = vpack.c.bf16 %v32_v33, %v31_v32  ;;  %v6367_v39 = vld [vmem:[%s9867_s3 + $0x20] ss:$8 sps:$4 sm:$0xff]  }
   0xd   :  { %v6372_v38 = vld [vmem:[%s9867_s3 + $0x124] ss:$8 sps:$4 sm:$0xff]   ;;  %v6370_v40 = vld [vmem:[%s9867_s3 + $0x120] ss:$8 sps:$4 sm:$0xff]   ;;  %v6375_v42 = vld [vmem:[%s9867_s3 + $0x34] ss:$8 sps:$4 sm:$0xff]  }
   0xe   :  { %v33_v41 = vld [vmem:[%s9866_s0 + $0x20] sm:$0xff]  ;;  %v34_v43 = vld [vmem:[%s9866_s0 + $0x28] sm:$0xff]  ;;  %v6373_v44 = vld [vmem:[%s9867_s3 + $0x30] ss:$8 sps:$4 sm:$0xff]  }
   0xf   :  { %572 = vmatpush1.bf16.msra.mxu0 %v6347_v15  ;;  %1245 = vmatpush1.bf16.msra.mxu1 %v6348_v16  ;;  %v6376_v45 = vld [vmem:[%s9867_s3 + $0x130] ss:$8 sps:$4 sm:$0xff]   ;;  %v6378_v46 = vld [vmem:[%s9867_s3 + $0x134] ss:$8 sps:$4 sm:$0xff]   ;;  %v159_v47 = vpack.c.bf16 %v34_v43, %v33_v41  ;;  %v6381_v48 = vld [vmem:[%s9867_s3 + $0x44] ss:$8 sps:$4 sm:$0xff]  }
  0x10   :  { %5617 = vmatprep.subr.msk.bf16.mxu0 %vm552_vm0, %v6349_v17  ;;  %5682 = vmatprep.subr.msk.bf16.mxu1 %vm552_vm0, %v6351_v18  ;;  %v6379_v49 = vld [vmem:[%s9867_s3 + $0x40] ss:$8 sps:$4 sm:$0xff]   ;;  %v6384_v51 = vld [vmem:[%s9867_s3 + $0x144] ss:$8 sps:$4 sm:$0xff]   ;;  %v35_v52 = vld [vmem:[%s9866_s0 + $0x30] sm:$0xff] }
  0x11   :  { %v6382_v50 = vld [vmem:[%s9867_s3 + $0x140] ss:$8 sps:$4 sm:$0xff]   ;;  %v36_v53 = vld [vmem:[%s9866_s0 + $0x38] sm:$0xff]  ;;  %v39_v61 = vld [vmem:[%s9866_s0 + $0x50] sm:$0xff] }
  0x12   :  { %v160_v54 = vpack.c.bf16 %v36_v53, %v35_v52  ;;  %v37_v55 = vld [vmem:[%s9866_s0 + $0x40] sm:$0xff]  ;;  %v38_v56 = vld [vmem:[%s9866_s0 + $0x48] sm:$0xff]  ;;  %v6385_v58 = vld [vmem:[%s9867_s3 + $0x50] ss:$8 sps:$4 sm:$0xff]  }
  0x13   :  { %574 = vmatpush1.bf16.msra.mxu0 %v554_v23  ;;  %1247 = vmatpush1.bf16.msra.mxu1 %v560_v24  ;;  %v161_v57 = vpack.c.bf16 %v38_v56, %v37_v55  ;;  %v6387_v59 = vld [vmem:[%s9867_s3 + $0x54] ss:$8 sps:$4 sm:$0xff]   ;;  %v6388_v60 = vld [vmem:[%s9867_s3 + $0x150] ss:$8 sps:$4 sm:$0xff]   ;;  %v41_v2 = vld [vmem:[%s9866_s0 + $0x60] sm:$0xff] }
  0x14   :  { %3075 = vmatprep.subr.bf16.mxu1 %v6357_v25  ;;  %3748 = vmatprep.subr.bf16.mxu0 %v6360_v26  ;;  %v40_v62 = vld [vmem:[%s9866_s0 + $0x58] sm:$0xff]  ;;  %v42_v3 = vld [vmem:[%s9866_s0 + $0x68] sm:$0xff]  ;;  %v43_v5 = vld [vmem:[%s9866_s0 + $0x70] sm:$0xff] }
  0x15   :  { %v6390_v63 = vld [vmem:[%s9867_s3 + $0x154] ss:$8 sps:$4 sm:$0xff]   ;;  %v162_v0 = vpack.c.bf16 %v40_v62, %v39_v61  ;;  %v163_v4 = vpack.c.bf16 %v42_v3, %v41_v2  ;;  %v45_v8 = vld [vmem:[%s9866_s0 + $0x80] sm:$0xff]  ;;  %v46_v9 = vld [vmem:[%s9866_s0 + $0x88] sm:$0xff] }
  0x16   :  { %5618 = vmatmul.mubr.msk.bf16.vlgmr.msra.gmra.mrb[0].mxu0 %vm359_vm1, %v157_v27  ;;  %5683 = vmatmul.mubr.msk.bf16.vlgmr.msra.gmra.mrb[0].mxu1 %vm359_vm1, %v157_v27  ;;  %v44_v6 = vld [vmem:[%s9866_s0 + $0x78] sm:$0xff]  ;;  %v165_v10 = vpack.c.bf16 %v46_v9, %v45_v8  ;;  %v6391_v11 = vld [vmem:[%s9867_s3 + $0x60] ss:$8 sps:$4 sm:$0xff]   ;;  %v6393_v12 = vld [vmem:[%s9867_s3 + $0x64] ss:$8 sps:$4 sm:$0xff]  }
  0x17   :  { %3076 = vmatpush1.bf16.msra.mxu1 %v6355_v28  ;;  %3749 = vmatpush1.bf16.msra.mxu0 %v6358_v29  ;;  %v164_v7 = vpack.c.bf16 %v44_v6, %v43_v5  ;;  %v6394_v13 = vld [vmem:[%s9867_s3 + $0x160] ss:$8 sps:$4 sm:$0xff]   ;;  %v47_v14 = vld [vmem:[%s9866_s0 + $0x90] sm:$0xff]  ;;  %v48_v15 = vld [vmem:[%s9866_s0 + $0x98] sm:$0xff] }
  0x18   :  { %607 = vmatprep.mubr.bf16.mxu0 %v9873_v1  ;;  %1280 = vmatprep.mubr.bf16.mxu1 %v9873_v1  ;;  %v6396_v16 = vld [vmem:[%s9867_s3 + $0x164] ss:$8 sps:$4 sm:$0xff]   ;;  %v166_v17 = vpack.c.bf16 %v48_v15, %v47_v14  ;;  %v51_v21 = vld [vmem:[%s9866_s0 + $0xb0] sm:$0xff]  ;;  %v52_v22 = vld [vmem:[%s9866_s0 + $0xb8] sm:$0xff] }
  0x19   :  { %3077 = vmatprep.subr.bf16.mxu1 %v6363_v30  ;;  %3750 = vmatprep.subr.bf16.mxu0 %v6366_v31  ;;  %v49_v18 = vld [vmem:[%s9866_s0 + $0xa0] sm:$0xff]  ;;  %v50_v19 = vld [vmem:[%s9866_s0 + $0xa8] sm:$0xff]  ;;  %v168_v23 = vpack.c.bf16 %v52_v22, %v51_v21  ;;  %v55_v27 = vld [vmem:[%s9866_s0 + $0xd0] sm:$0xff] }
  0x1a   :  { %v167_v20 = vpack.c.bf16 %v50_v19, %v49_v18  ;;  %v53_v24 = vld [vmem:[%s9866_s0 + $0xc0] sm:$0xff]  ;;  %v54_v25 = vld [vmem:[%s9866_s0 + $0xc8] sm:$0xff]  ;;  %v56_v28 = vld [vmem:[%s9866_s0 + $0xd8] sm:$0xff]  ;;  %v243_v19 = vlaneseq }
  0x1b   :  { %3078 = vmatpush1.bf16.msra.mxu1 %v6361_v34  ;;  %3751 = vmatpush1.bf16.msra.mxu0 %v6364_v35  ;;  %v169_v26 = vpack.c.bf16 %v54_v25, %v53_v24  ;;  %v6397_v29 = vld [vmem:[%s9867_s3 + $0x70] ss:$8 sps:$4 sm:$0xff]   ;;  %v6399_v30 = vld [vmem:[%s9867_s3 + $0x74] ss:$8 sps:$4 sm:$0xff]   ;;  %v170_v33 = vpack.c.bf16 %v56_v28, %v55_v27  ;;  %v57_v34 = vld [vmem:[%s9866_s0 + $0xe0] sm:$0xff] }
  0x1c   :  { %3079 = vmatprep.subr.bf16.mxu1 %v6369_v36  ;;  %3752 = vmatprep.subr.bf16.mxu0 %v6372_v38  ;;  %v6400_v31 = vld [vmem:[%s9867_s3 + $0x170] ss:$8 sps:$4 sm:$0xff]   ;;  %v6402_v32 = vld [vmem:[%s9867_s3 + $0x174] ss:$8 sps:$4 sm:$0xff]   ;;  %v58_v35 = vld [vmem:[%s9866_s0 + $0xe8] sm:$0xff] }
  0x1d   :  { %v171_v36 = vpack.c.bf16 %v58_v35, %v57_v34  ;;  %v60_v38 = vld [vmem:[%s9866_s0 + $0xf8] sm:$0xff]  ;;  %v62_v41 = vld [vmem:[%s9866_s0 + $0x108] sm:$0xff]  ;;  %v63_v43 = vld [vmem:[%s9866_s0 + $0x110] sm:$0xff] }
  0x1e   :  { %5619 = vmatmul.mubr.msk.bf16.gmra.mrb[4].mxu0 %vm359_vm1, %v158_v37  ;;  %5684 = vmatmul.mubr.msk.bf16.gmra.mrb[4].mxu1 %vm359_vm1, %v158_v37  ;;  %v59_v37 = vld [vmem:[%s9866_s0 + $0xf0] sm:$0xff]  ;;  %v69_v56 = vld [vmem:[%s9866_s0 + $0x140] sm:$0xff]  ;;  %v82_v22 = vld [vmem:[%s9866_s0 + $0x1a8] sm:$0xff] }
  0x1f   :  { %617 = vmatprep.mubr.bf16.mxu0 %v9873_v1  ;;  %1290 = vmatprep.mubr.bf16.mxu1 %v9873_v1  ;;  %v67_v53 = vld [vmem:[%s9866_s0 + $0x130] sm:$0xff]  ;;  %v73_v3 = vld [vmem:[%s9866_s0 + $0x160] sm:$0xff]  ;;  %v84_v34 = vld [vmem:[%s9866_s0 + $0x1b8] sm:$0xff] }
  0x20   :  { %3080 = vmatpush1.bf16.msra.mxu1 %v6367_v39  ;;  %3753 = vmatpush1.bf16.msra.mxu0 %v6370_v40  ;;  %v172_v39 = vpack.c.bf16 %v60_v38, %v59_v37  ;;  %v61_v40 = vld [vmem:[%s9866_s0 + $0x100] sm:$0xff]  ;;  %v6409_v61 = vld [vmem:[%s9867_s3 + $0x90] ss:$8 sps:$4 sm:$0xff]   ;;  %v6411_v62 = vld [vmem:[%s9867_s3 + $0x94] ss:$8 sps:$4 sm:$0xff]  }
  0x21   :  { %3081 = vmatprep.subr.bf16.mxu1 %v6375_v42  ;;  %3754 = vmatprep.subr.bf16.mxu0 %v6378_v46  ;;  %v173_v42 = vpack.c.bf16 %v62_v41, %v61_v40  ;;  %v6405_v46 = vld [vmem:[%s9867_s3 + $0x84] ss:$8 sps:$4 sm:$0xff]   ;;  %v75_v6 = vld [vmem:[%s9866_s0 + $0x170] sm:$0xff]  ;;  %v6415_v14 = vld [vmem:[%s9867_s3 + $0xa0] ss:$8 sps:$4 sm:$0xff]  }
  0x22   :  { %v77_v9 = vld [vmem:[%s9866_s0 + $0x180] sm:$0xff] }
  0x23   :  { %v6417_v15 = vld [vmem:[%s9867_s3 + $0xa4] ss:$8 sps:$4 sm:$0xff]  }
  0x24   :  { %3082 = vmatpush1.bf16.msra.mxu1 %v6373_v44  ;;  %3755 = vmatpush1.bf16.msra.mxu0 %v6376_v45  ;;  %v64_v44 = vld [vmem:[%s9866_s0 + $0x118] sm:$0xff]  ;;  %v6403_v45 = vld [vmem:[%s9867_s3 + $0x80] ss:$8 sps:$4 sm:$0xff]  }
  0x25   :  { %3083 = vmatprep.subr.bf16.mxu1 %v6381_v48  ;;  %3756 = vmatprep.subr.bf16.mxu0 %v6384_v51  ;;  %v6408_v48 = vld [vmem:[%s9867_s3 + $0x184] ss:$8 sps:$4 sm:$0xff]  }
  0x26   :  { %5620 = vmatmul.mubr.msk.bf16.gmra.mrb[8].mxu0 %vm359_vm1, %v159_v47  ;;  %5685 = vmatmul.mubr.msk.bf16.gmra.mrb[8].mxu1 %vm359_vm1, %v159_v47  ;;  %v6406_v47 = vld [vmem:[%s9867_s3 + $0x180] ss:$8 sps:$4 sm:$0xff]  }
  0x27   :  { %627 = vmatprep.mubr.bf16.mxu0 %v9873_v1  ;;  %1300 = vmatprep.mubr.bf16.mxu1 %v9873_v1  ;;  %v66_v51 = vld [vmem:[%s9866_s0 + $0x128] sm:$0xff]  ;;  %v81_v21 = vld [vmem:[%s9866_s0 + $0x1a0] sm:$0xff] }
  0x28   :  { %3084 = vmatpush1.bf16.msra.mxu1 %v6379_v49  ;;  %3757 = vmatpush1.bf16.msra.mxu0 %v6382_v50  ;;  %v174_v49 = vpack.c.bf16 %v64_v44, %v63_v43  ;;  %v65_v50 = vld [vmem:[%s9866_s0 + $0x120] sm:$0xff] }
  0x29   :  { %3085 = vmatprep.subr.bf16.mxu1 %v6387_v59  ;;  %3758 = vmatprep.subr.bf16.mxu0 %v6390_v63  ;;  %v175_v52 = vpack.c.bf16 %v66_v51, %v65_v50  ;;  %v71_v59 = vld [vmem:[%s9866_s0 + $0x150] sm:$0xff] }
  0x2a   :  { %v6412_v63 = vld [vmem:[%s9867_s3 + $0x190] ss:$8 sps:$4 sm:$0xff]  }
  0x2c   :  { %3086 = vmatpush1.bf16.msra.mxu1 %v6385_v58  ;;  %3759 = vmatpush1.bf16.msra.mxu0 %v6388_v60  ;;  %v72_v60 = vld [vmem:[%s9866_s0 + $0x158] sm:$0xff] }
  0x2d   :  { %3087 = vmatprep.subr.bf16.mxu1 %v6393_v12  ;;  %3760 = vmatprep.subr.bf16.mxu0 %v6396_v16  ;;  %v178_v2 = vpack.c.bf16 %v72_v60, %v71_v59  ;;  %v79_v12 = vld [vmem:[%s9866_s0 + $0x190] sm:$0xff]  ;;  %v6418_v16 = vld [vmem:[%s9867_s3 + $0x1a0] ss:$8 sps:$4 sm:$0xff]  }
  0x2e   :  { %5621 = vmatmul.mubr.msk.bf16.gmra.mrb[12].mxu0 %vm359_vm1, %v160_v54  ;;  %5686 = vmatmul.mubr.msk.bf16.gmra.mrb[12].mxu1 %vm359_vm1, %v160_v54  ;;  %v68_v54 = vld [vmem:[%s9866_s0 + $0x138] sm:$0xff]  ;;  %v85_v60 = vld [vmem:[%s9866_s0 + $0x1c0] sm:$0xff] }
  0x2f   :  { %637 = vmatprep.mubr.bf16.mxu0 %v9873_v1  ;;  %1310 = vmatprep.mubr.bf16.mxu1 %v9873_v1  ;;  %v176_v55 = vpack.c.bf16 %v68_v54, %v67_v53 }
  0x30   :  { %3088 = vmatpush1.bf16.msra.mxu1 %v6391_v11  ;;  %3761 = vmatpush1.bf16.msra.mxu0 %v6394_v13  ;;  %v80_v13 = vld [vmem:[%s9866_s0 + $0x198] sm:$0xff] }
  0x31   :  { %3089 = vmatprep.subr.bf16.mxu1 %v6399_v30  ;;  %3762 = vmatprep.subr.bf16.mxu0 %v6402_v32  ;;  %v182_v18 = vpack.c.bf16 %v80_v13, %v79_v12 }
  0x34   :  { %3090 = vmatpush1.bf16.msra.mxu1 %v6397_v29  ;;  %3763 = vmatpush1.bf16.msra.mxu0 %v6400_v31 }
  0x35   :  { %3091 = vmatprep.subr.bf16.mxu1 %v6405_v46  ;;  %3764 = vmatprep.subr.bf16.mxu0 %v6408_v48 }
  0x36   :  { %5622 = vmatmul.mubr.msk.bf16.gmra.mrb[16].mxu0 %vm359_vm1, %v161_v57  ;;  %5687 = vmatmul.mubr.msk.bf16.gmra.mrb[16].mxu1 %vm359_vm1, %v161_v57  ;;  %v70_v57 = vld [vmem:[%s9866_s0 + $0x148] sm:$0xff] }
  0x37   :  { %647 = vmatprep.mubr.bf16.mxu0 %v9873_v1  ;;  %1320 = vmatprep.mubr.bf16.mxu1 %v9873_v1  ;;  %v177_v58 = vpack.c.bf16 %v70_v57, %v69_v56 }
  0x38   :  { %3092 = vmatpush1.bf16.msra.mxu1 %v6403_v45  ;;  %3765 = vmatpush1.bf16.msra.mxu0 %v6406_v47 }
  0x39   :  { %3093 = vmatprep.subr.bf16.mxu1 %v6411_v62 }
  0x3c   :  { %3094 = vmatpush1.bf16.msra.mxu1 %v6409_v61  ;;  %v86_v61 = vld [vmem:[%s9866_s0 + $0x1c8] sm:$0xff] }
  0x3d   :  { %3095 = vmatprep.subr.bf16.mxu1 %v6417_v15 }
  0x3e   :  { %5623 = vmatmul.mubr.msk.bf16.gmra.mrb[20].mxu0 %vm359_vm1, %v162_v0  ;;  %5688 = vmatmul.mubr.msk.bf16.gmra.mrb[20].mxu1 %vm359_vm1, %v162_v0  ;;  %v6414_v0 = vld [vmem:[%s9867_s3 + $0x194] ss:$8 sps:$4 sm:$0xff]  }
  0x3f   :  { %657 = vmatprep.mubr.bf16.mxu0 %v9873_v1  ;;  %1330 = vmatprep.mubr.bf16.mxu1 %v9873_v1 }
  0x40   :  { %3766 = vmatprep.subr.bf16.mxu0 %v6414_v0  ;;  %3096 = vmatpush1.bf16.msra.mxu1 %v6415_v14 }
  0x41   :  { %3767 = vmatpush1.bf16.msra.mxu0 %v6412_v63 }
  0x46   :  { %5624 = vmatmul.mubr.msk.bf16.gmra.mrb[24].mxu0 %vm359_vm1, %v163_v4  ;;  %5689 = vmatmul.mubr.msk.bf16.gmra.mrb[24].mxu1 %vm359_vm1, %v163_v4  ;;  %v74_v4 = vld [vmem:[%s9866_s0 + $0x168] sm:$0xff] }
  0x47   :  { %667 = vmatprep.mubr.bf16.mxu0 %v9873_v1  ;;  %1340 = vmatprep.mubr.bf16.mxu1 %v9873_v1  ;;  %v179_v5 = vpack.c.bf16 %v74_v4, %v73_v3 }
  0x4e   :  { %5625 = vmatmul.mubr.msk.bf16.gmra.mrb[28].mxu0 %vm359_vm1, %v164_v7  ;;  %5690 = vmatmul.mubr.msk.bf16.gmra.mrb[28].mxu1 %vm359_vm1, %v164_v7  ;;  %v76_v7 = vld [vmem:[%s9866_s0 + $0x178] sm:$0xff] }
  0x4f   :  { %677 = vmatprep.mubr.bf16.mxu0 %v9873_v1  ;;  %1350 = vmatprep.mubr.bf16.mxu1 %v9873_v1  ;;  %v180_v8 = vpack.c.bf16 %v76_v7, %v75_v6 }
  0x56   :  { %5626 = vmatmul.mubr.msk.bf16.gmra.mrb[32].mxu0 %vm359_vm1, %v165_v10  ;;  %5691 = vmatmul.mubr.msk.bf16.gmra.mrb[32].mxu1 %vm359_vm1, %v165_v10  ;;  %v78_v10 = vld [vmem:[%s9866_s0 + $0x188] sm:$0xff] }
  0x57   :  { %687 = vmatprep.mubr.bf16.mxu0 %v9873_v1  ;;  %1360 = vmatprep.mubr.bf16.mxu1 %v9873_v1  ;;  %v181_v11 = vpack.c.bf16 %v78_v10, %v77_v9  ;;  %v185_v9 = vpack.c.bf16 %v86_v61, %v85_v60 }
  0x5e   :  { %5627 = vmatmul.mubr.msk.bf16.gmra.mrb[36].mxu0 %vm359_vm1, %v166_v17  ;;  %5692 = vmatmul.mubr.msk.bf16.gmra.mrb[36].mxu1 %vm359_vm1, %v166_v17  ;;  %v6420_v17 = vld [vmem:[%s9867_s3 + $0x1a4] ss:$8 sps:$4 sm:$0xff]  }
  0x5f   :  { %697 = vmatprep.mubr.bf16.mxu0 %v9873_v1  ;;  %1370 = vmatprep.mubr.bf16.mxu1 %v9873_v1 }
  0x60   :  { %3768 = vmatprep.subr.bf16.mxu0 %v6420_v17 }
  0x61   :  { %3769 = vmatpush1.bf16.msra.mxu0 %v6418_v16 }
  0x66   :  { %5628 = vmatmul.mubr.msk.bf16.gmra.mrb[40].mxu0 %vm359_vm1, %v167_v20  ;;  %5693 = vmatmul.mubr.msk.bf16.gmra.mrb[40].mxu1 %vm359_vm1, %v167_v20  ;;  %v244_v20 = vshrl.u32 %v243_v19, 7 }
  0x67   :  { %707 = vmatprep.mubr.bf16.mxu0 %v9873_v1  ;;  %1380 = vmatprep.mubr.bf16.mxu1 %v9873_v1 }
  0x68   :  { %v6955_v24 = vsub.s32 0, %v244_v20  ;;  %v253_v25 = vsub.s32 2, %v244_v20  ;;  %v6960_v27 = vsub.s32 1, %v244_v20  ;;  %v257_v28 = vsub.s32 3, %v244_v20 }
  0x6a   :  { %9879 = vst [vmem:[#allocation3_spill] sm:$0xff] %v6955_v24  ;;  %9880 = vst [vmem:[#allocation4_spill] sm:$0xff] %v6960_v27 }
  0x6e   :  { %5629 = vmatmul.mubr.msk.bf16.gmra.mrb[44].mxu0 %vm359_vm1, %v168_v23  ;;  %5694 = vmatmul.mubr.msk.bf16.gmra.mrb[44].mxu1 %vm359_vm1, %v168_v23  ;;  %v183_v23 = vpack.c.bf16 %v82_v22, %v81_v21 }
  0x6f   :  { %717 = vmatprep.mubr.bf16.mxu0 %v9873_v1  ;;  %1390 = vmatprep.mubr.bf16.mxu1 %v9873_v1 }
  0x76   :  { %5630 = vmatmul.mubr.msk.bf16.gmra.mrb[48].mxu0 %vm359_vm1, %v169_v26  ;;  %5695 = vmatmul.mubr.msk.bf16.gmra.mrb[48].mxu1 %vm359_vm1, %v169_v26  ;;  %v241_v26 = vld [vmem:[%s9868_s2] sm:$0xf] }
  0x77   :  { %727 = vmatprep.mubr.bf16.mxu0 %v9873_v1  ;;  %1400 = vmatprep.mubr.bf16.mxu1 %v9873_v1  ;;  %v6965_v29 = vrot.slane %v241_v26, %v6955_v24  ;;  %v6967_v30 = vrot.slane %v241_v26, %v253_v25  ;;  %v6970_v31 = vrot.slane %v241_v26, %v6960_v27 }
  0x78   :  { %v6972_v32 = vrot.slane %v241_v26, %v257_v28 }
  0x7e   :  { %5631 = vmatmul.mubr.msk.bf16.gmra.mrb[52].mxu0 %vm359_vm1, %v170_v33  ;;  %5696 = vmatmul.mubr.msk.bf16.gmra.mrb[52].mxu1 %vm359_vm1, %v170_v33  ;;  %v83_v33 = vld [vmem:[%s9866_s0 + $0x1b0] sm:$0xff] }
  0x7f   :  { %737 = vmatprep.mubr.bf16.mxu0 %v9873_v1  ;;  %1410 = vmatprep.mubr.bf16.mxu1 %v9873_v1  ;;  %v184_v41 = vpack.c.bf16 %v84_v34, %v83_v33  ;;  %v87_v34 = vld [vmem:[%s9866_s0 + $0x1d0] sm:$0xff] }
  0x86   :  { %5632 = vmatmul.mubr.msk.bf16.gmra.mrb[56].mxu0 %vm359_vm1, %v171_v36  ;;  %5697 = vmatmul.mubr.msk.bf16.gmra.mrb[56].mxu1 %vm359_vm1, %v171_v36 }
  0x87   :  { %747 = vmatprep.mubr.bf16.mxu0 %v9873_v1  ;;  %1420 = vmatprep.mubr.bf16.mxu1 %v9873_v1 }
  0x8e   :  { %5633 = vmatmul.mubr.msk.bf16.gmra.mrb[60].mxu0 %vm359_vm1, %v172_v39  ;;  %5698 = vmatmul.mubr.msk.bf16.gmra.mrb[60].mxu1 %vm359_vm1, %v172_v39 }
  0x8f   :  { %757 = vmatprep.mubr.bf16.mxu0 %v9873_v1  ;;  %1430 = vmatprep.mubr.bf16.mxu1 %v9873_v1 }
  0x96   :  { %5634 = vmatmul.mubr.msk.bf16.gmra.mrb[64].mxu0 %vm359_vm1, %v173_v42  ;;  %5699 = vmatmul.mubr.msk.bf16.gmra.mrb[64].mxu1 %vm359_vm1, %v173_v42 }
  0x97   :  { %767 = vmatprep.mubr.bf16.mxu0 %v9873_v1  ;;  %1440 = vmatprep.mubr.bf16.mxu1 %v9873_v1 }
  0x9e   :  { %5635 = vmatmul.mubr.msk.bf16.gmra.mrb[68].mxu0 %vm359_vm1, %v174_v49  ;;  %5700 = vmatmul.mubr.msk.bf16.gmra.mrb[68].mxu1 %vm359_vm1, %v174_v49 }
  0x9f   :  { %777 = vmatprep.mubr.bf16.mxu0 %v9873_v1  ;;  %1450 = vmatprep.mubr.bf16.mxu1 %v9873_v1 }
  0xa6   :  { %5636 = vmatmul.mubr.msk.bf16.gmra.mrb[72].mxu0 %vm359_vm1, %v175_v52  ;;  %5701 = vmatmul.mubr.msk.bf16.gmra.mrb[72].mxu1 %vm359_vm1, %v175_v52 }
  0xa7   :  { %787 = vmatprep.mubr.bf16.mxu0 %v9873_v1  ;;  %1460 = vmatprep.mubr.bf16.mxu1 %v9873_v1 }
  0xae   :  { %5637 = vmatmul.mubr.msk.bf16.gmra.mrb[76].mxu0 %vm359_vm1, %v176_v55  ;;  %5702 = vmatmul.mubr.msk.bf16.gmra.mrb[76].mxu1 %vm359_vm1, %v176_v55 }
  0xaf   :  { %797 = vmatprep.mubr.bf16.mxu0 %v9873_v1  ;;  %1470 = vmatprep.mubr.bf16.mxu1 %v9873_v1 }
  0xb6   :  { %5638 = vmatmul.mubr.msk.bf16.gmra.mrb[80].mxu0 %vm359_vm1, %v177_v58  ;;  %5703 = vmatmul.mubr.msk.bf16.gmra.mrb[80].mxu1 %vm359_vm1, %v177_v58 }
  0xb7   :  { %807 = vmatprep.mubr.bf16.mxu0 %v9873_v1  ;;  %1480 = vmatprep.mubr.bf16.mxu1 %v9873_v1 }
  0xbe   :  { %5639 = vmatmul.mubr.msk.bf16.gmra.mrb[84].mxu0 %vm359_vm1, %v178_v2  ;;  %5704 = vmatmul.mubr.msk.bf16.gmra.mrb[84].mxu1 %vm359_vm1, %v178_v2 }
  0xbf   :  { %817 = vmatprep.mubr.bf16.mxu0 %v9873_v1  ;;  %1490 = vmatprep.mubr.bf16.mxu1 %v9873_v1 }
  0xc6   :  { %5640 = vmatmul.mubr.msk.bf16.gmra.mrb[88].mxu0 %vm359_vm1, %v179_v5  ;;  %5705 = vmatmul.mubr.msk.bf16.gmra.mrb[88].mxu1 %vm359_vm1, %v179_v5 }
  0xc7   :  { %827 = vmatprep.mubr.bf16.mxu0 %v9873_v1  ;;  %1500 = vmatprep.mubr.bf16.mxu1 %v9873_v1 }
  0xce   :  { %5641 = vmatmul.mubr.msk.bf16.gmra.mrb[92].mxu0 %vm359_vm1, %v180_v8  ;;  %5706 = vmatmul.mubr.msk.bf16.gmra.mrb[92].mxu1 %vm359_vm1, %v180_v8 }
  0xcf   :  { %837 = vmatprep.mubr.bf16.mxu0 %v9873_v1  ;;  %1510 = vmatprep.mubr.bf16.mxu1 %v9873_v1 }
  0xd6   :  { %5642 = vmatmul.mubr.msk.bf16.gmra.mrb[96].mxu0 %vm359_vm1, %v181_v11  ;;  %5707 = vmatmul.mubr.msk.bf16.gmra.mrb[96].mxu1 %vm359_vm1, %v181_v11 }
  0xd7   :  { %847 = vmatprep.mubr.bf16.mxu0 %v9873_v1  ;;  %1520 = vmatprep.mubr.bf16.mxu1 %v9873_v1 }
  0xde   :  { %5643 = vmatmul.mubr.msk.bf16.gmra.mrb[100].mxu0 %vm359_vm1, %v182_v18  ;;  %5708 = vmatmul.mubr.msk.bf16.gmra.mrb[100].mxu1 %vm359_vm1, %v182_v18 }
  0xdf   :  { %857 = vmatprep.mubr.bf16.mxu0 %v9873_v1  ;;  %1530 = vmatprep.mubr.bf16.mxu1 %v9873_v1 }
  0xe6   :  { %5644 = vmatmul.mubr.msk.bf16.gmra.mrb[104].mxu0 %vm359_vm1, %v183_v23  ;;  %5709 = vmatmul.mubr.msk.bf16.gmra.mrb[104].mxu1 %vm359_vm1, %v183_v23 }
  0xe7   :  { %867 = vmatprep.mubr.bf16.mxu0 %v9873_v1  ;;  %1540 = vmatprep.mubr.bf16.mxu1 %v9873_v1 }
  0xe9   :  { %v599_v35 = vpop.f32.mrb[0].mxu0  ;;  %v1272_v36 = vpop.f32.mrb[0].mxu1 }
  0xea   :  { %v600_v37 = vadd.f32 %v599_v35, %v6965_v29  ;;  %v1273_v38 = vadd.f32 %v1272_v36, %v6967_v30  ;;  %v601_v39 = vpop.f32.mrb[1].mxu0  ;;  %v1274_v40 = vpop.f32.mrb[1].mxu1  ;;  %v88_v35 = vld [vmem:[%s9866_s0 + $0x1d8] sm:$0xff] }
  0xeb   :  { %v602_v42 = vadd.f32 %v601_v39, %v6970_v31  ;;  %v1275_v43 = vadd.f32 %v1274_v40, %v6972_v32  ;;  %v603_v44 = vpop.f32.mrb[2].mxu0  ;;  %v1276_v45 = vpop.f32.mrb[2].mxu1  ;;  %v6423_v39 = vld [vmem:[%s9867_s3 + $0xb4] ss:$8 sps:$4 sm:$0xff]   ;;  %v6424_v40 = vld [vmem:[%s9867_s3 + $0x1b0] ss:$8 sps:$4 sm:$0xff]  }
  0xec   :  { %v1911_v46 = vmax.f32 %v600_v37, 0.0  ;;  %v604_v47 = vadd.f32 %v603_v44, %v6965_v29  ;;  %v1277_v48 = vadd.f32 %v1276_v45, %v6967_v30  ;;  %v605_v49 = vpop.f32.mrb[3].mxu0  ;;  %v1278_v50 = vpop.f32.mrb[3].mxu1  ;;  %v1913_v54 = vmax.f32 %v1273_v38, 0.0  ;;  %v6421_v38 = vld [vmem:[%s9867_s3 + $0xb0] ss:$8 sps:$4 sm:$0xff]   ;;  %3097 = vmatprep.subr.bf16.mxu1 %v6423_v39 }
  0xed   :  { %v1912_v51 = vmax.f32 %v602_v42, 0.0  ;;  %v606_v52 = vadd.f32 %v605_v49, %v6970_v31  ;;  %v1279_v53 = vadd.f32 %v1278_v50, %v6972_v32  ;;  %v1914_v57 = vmax.f32 %v1275_v43, 0.0  ;;  %v6426_v43 = vld [vmem:[%s9867_s3 + $0x1b4] ss:$8 sps:$4 sm:$0xff]   ;;  %3098 = vmatpush1.bf16.msra.mxu1 %v6421_v38 }
  0xee   :  { %v1915_v55 = vmax.f32 %v604_v47, 0.0  ;;  %v1917_v56 = vmax.f32 %v1277_v48, 0.0  ;;  %5645 = vmatmul.mubr.msk.bf16.gmra.mrb[108].mxu0 %vm359_vm1, %v184_v41  ;;  %5710 = vmatmul.mubr.msk.bf16.gmra.mrb[108].mxu1 %vm359_vm1, %v184_v41  ;;  %v186_v50 = vpack.c.bf16 %v88_v35, %v87_v34 }
  0xef   :  { %v1916_v58 = vmax.f32 %v606_v52, 0.0  ;;  %v1918_v59 = vmax.f32 %v1279_v53, 0.0  ;;  %877 = vmatprep.mubr.bf16.mxu0 %v9873_v1  ;;  %1550 = vmatprep.mubr.bf16.mxu1 %v9873_v1 }
  0xf0   :  { %v7000_v62 = vpack.c.bf16 %v1915_v55, %v1911_v46  ;;  %v7002_v63 = vpack.c.bf16 %v1917_v56, %v1913_v54  ;;  %3770 = vmatprep.subr.bf16.mxu0 %v6426_v43 }
  0xf1   :  { %v609_v0 = vpop.f32.mrb[4].mxu0  ;;  %v1282_v2 = vpop.f32.mrb[4].mxu1  ;;  %v7004_v3 = vpack.c.bf16 %v1916_v58, %v1912_v51  ;;  %v7006_v4 = vpack.c.bf16 %v1918_v59, %v1914_v57  ;;  %3771 = vmatpush1.bf16.msra.mxu0 %v6424_v40 }
  0xf2   :  { %v610_v5 = vadd.f32 %v609_v0, %v6965_v29  ;;  %v1283_v6 = vadd.f32 %v1282_v2, %v6967_v30  ;;  %v611_v7 = vpop.f32.mrb[5].mxu0  ;;  %v1284_v8 = vpop.f32.mrb[5].mxu1 }
  0xf3   :  { %v612_v10 = vadd.f32 %v611_v7, %v6970_v31  ;;  %v1285_v11 = vadd.f32 %v1284_v8, %v6972_v32  ;;  %v613_v12 = vpop.f32.mrb[6].mxu0  ;;  %v1286_v13 = vpop.f32.mrb[6].mxu1 }
  0xf4   :  { %v1919_v14 = vmax.f32 %v610_v5, 0.0  ;;  %v614_v15 = vadd.f32 %v613_v12, %v6965_v29  ;;  %v1287_v16 = vadd.f32 %v1286_v13, %v6967_v30  ;;  %v615_v17 = vpop.f32.mrb[7].mxu0  ;;  %v1288_v18 = vpop.f32.mrb[7].mxu1  ;;  %v1921_v22 = vmax.f32 %v1283_v6, 0.0 }
  0xf5   :  { %v1920_v19 = vmax.f32 %v612_v10, 0.0  ;;  %v616_v20 = vadd.f32 %v615_v17, %v6970_v31  ;;  %v1289_v21 = vadd.f32 %v1288_v18, %v6972_v32  ;;  %v1922_v26 = vmax.f32 %v1285_v11, 0.0  ;;  %v89_v10 = vld [vmem:[%s9866_s0 + $0x1e0] sm:$0xff]  ;;  %v90_v11 = vld [vmem:[%s9866_s0 + $0x1e8] sm:$0xff] }
  0xf6   :  { %v1923_v23 = vmax.f32 %v614_v15, 0.0  ;;  %v1925_v25 = vmax.f32 %v1287_v16, 0.0  ;;  %5646 = vmatmul.mubr.msk.bf16.gmra.mrb[112].mxu0 %vm359_vm1, %v185_v9  ;;  %5711 = vmatmul.mubr.msk.bf16.gmra.mrb[112].mxu1 %vm359_vm1, %v185_v9 }
  0xf7   :  { %v1924_v28 = vmax.f32 %v616_v20, 0.0  ;;  %v1926_v33 = vmax.f32 %v1289_v21, 0.0  ;;  %887 = vmatprep.mubr.bf16.mxu0 %v9873_v1  ;;  %1560 = vmatprep.mubr.bf16.mxu1 %v9873_v1 }
  0xf8   :  { %v7026_v36 = vpack.c.bf16 %v1923_v23, %v1919_v14  ;;  %v7028_v37 = vpack.c.bf16 %v1925_v25, %v1921_v22  ;;  %v187_v22 = vpack.c.bf16 %v90_v11, %v89_v10 }
  0xf9   :  { %v619_v41 = vpop.f32.mrb[8].mxu0  ;;  %v1292_v42 = vpop.f32.mrb[8].mxu1  ;;  %v7042_v44 = vpack.c.bf16 %v1924_v28, %v1920_v19  ;;  %v7044_v45 = vpack.c.bf16 %v1926_v33, %v1922_v26 }
  0xfa   :  { %v620_v46 = vadd.f32 %v619_v41, %v6965_v29  ;;  %v1293_v47 = vadd.f32 %v1292_v42, %v6967_v30  ;;  %v621_v48 = vpop.f32.mrb[9].mxu0  ;;  %v1294_v49 = vpop.f32.mrb[9].mxu1 }
  0xfb   :  { %v622_v51 = vadd.f32 %v621_v48, %v6970_v31  ;;  %v1295_v52 = vadd.f32 %v1294_v49, %v6972_v32  ;;  %v623_v53 = vpop.f32.mrb[10].mxu0  ;;  %v1296_v54 = vpop.f32.mrb[10].mxu1 }
  0xfc   :  { %v1927_v55 = vmax.f32 %v620_v46, 0.0  ;;  %v624_v56 = vadd.f32 %v623_v53, %v6965_v29  ;;  %v1297_v57 = vadd.f32 %v1296_v54, %v6967_v30  ;;  %v625_v58 = vpop.f32.mrb[11].mxu0  ;;  %v1298_v59 = vpop.f32.mrb[11].mxu1  ;;  %v1929_v2 = vmax.f32 %v1293_v47, 0.0 }
  0xfd   :  { %v1928_v60 = vmax.f32 %v622_v51, 0.0  ;;  %v626_v61 = vadd.f32 %v625_v58, %v6970_v31  ;;  %v1299_v0 = vadd.f32 %v1298_v59, %v6972_v32  ;;  %v1930_v7 = vmax.f32 %v1295_v52, 0.0  ;;  %v91_v51 = vld [vmem:[%s9866_s0 + $0x1f0] sm:$0xff]  ;;  %v92_v52 = vld [vmem:[%s9866_s0 + $0x1f8] sm:$0xff] }
  0xfe   :  { %v1931_v5 = vmax.f32 %v624_v56, 0.0  ;;  %v1933_v6 = vmax.f32 %v1297_v57, 0.0  ;;  %5647 = vmatmul.mubr.msk.bf16.gmra.mrb[116].mxu0 %vm359_vm1, %v186_v50  ;;  %5712 = vmatmul.mubr.msk.bf16.gmra.mrb[116].mxu1 %vm359_vm1, %v186_v50 }
  0xff   :  { %v1932_v8 = vmax.f32 %v626_v61, 0.0  ;;  %v1934_v9 = vmax.f32 %v1299_v0, 0.0  ;;  %897 = vmatprep.mubr.bf16.mxu0 %v9873_v1  ;;  %1570 = vmatprep.mubr.bf16.mxu1 %v9873_v1 }
 0x100   :  { %v7064_v12 = vpack.c.bf16 %v1931_v5, %v1927_v55  ;;  %v7066_v13 = vpack.c.bf16 %v1933_v6, %v1929_v2  ;;  %v188_v2 = vpack.c.bf16 %v92_v52, %v91_v51 }
 0x101   :  { %v629_v14 = vpop.f32.mrb[12].mxu0  ;;  %v1302_v15 = vpop.f32.mrb[12].mxu1  ;;  %v7068_v16 = vpack.c.bf16 %v1932_v8, %v1928_v60  ;;  %v7070_v17 = vpack.c.bf16 %v1934_v9, %v1930_v7 }
 0x102   :  { %v630_v18 = vadd.f32 %v629_v14, %v6965_v29  ;;  %v1303_v19 = vadd.f32 %v1302_v15, %v6967_v30  ;;  %v631_v20 = vpop.f32.mrb[13].mxu0  ;;  %v1304_v21 = vpop.f32.mrb[13].mxu1 }
 0x103   :  { %v632_v23 = vadd.f32 %v631_v20, %v6970_v31  ;;  %v1305_v25 = vadd.f32 %v1304_v21, %v6972_v32  ;;  %v633_v26 = vpop.f32.mrb[14].mxu0  ;;  %v1306_v28 = vpop.f32.mrb[14].mxu1 }
 0x104   :  { %v1935_v33 = vmax.f32 %v630_v18, 0.0  ;;  %v634_v34 = vadd.f32 %v633_v26, %v6965_v29  ;;  %v1307_v35 = vadd.f32 %v1306_v28, %v6967_v30  ;;  %v635_v38 = vpop.f32.mrb[15].mxu0  ;;  %v1308_v39 = vpop.f32.mrb[15].mxu1  ;;  %v1937_v43 = vmax.f32 %v1303_v19, 0.0 }
 0x105   :  { %v1936_v40 = vmax.f32 %v632_v23, 0.0  ;;  %v636_v41 = vadd.f32 %v635_v38, %v6970_v31  ;;  %v1309_v42 = vadd.f32 %v1308_v39, %v6972_v32  ;;  %v1938_v48 = vmax.f32 %v1305_v25, 0.0 }
 0x106   :  { %v1939_v46 = vmax.f32 %v634_v34, 0.0  ;;  %v1941_v47 = vmax.f32 %v1307_v35, 0.0  ;;  %5648 = vmatmul.mubr.msk.bf16.gmra.mrb[120].mxu0 %vm359_vm1, %v187_v22  ;;  %5713 = vmatmul.mubr.msk.bf16.gmra.mrb[120].mxu1 %vm359_vm1, %v187_v22  ;;  %v94_v34 = vld [vmem:[%s9866_s0 + $0x208] sm:$0xff] }
 0x107   :  { %v1940_v49 = vmax.f32 %v636_v41, 0.0  ;;  %v1942_v50 = vmax.f32 %v1309_v42, 0.0  ;;  %907 = vmatprep.mubr.bf16.mxu0 %v9873_v1  ;;  %1580 = vmatprep.mubr.bf16.mxu1 %v9873_v1 }
 0x108   :  { %v7090_v53 = vpack.c.bf16 %v1939_v46, %v1935_v33  ;;  %v7092_v54 = vpack.c.bf16 %v1941_v47, %v1937_v43  ;;  %v93_v33 = vld [vmem:[%s9866_s0 + $0x200] sm:$0xff] }
 0x109   :  { %v639_v55 = vpop.f32.mrb[16].mxu0  ;;  %v1312_v56 = vpop.f32.mrb[16].mxu1  ;;  %v7094_v57 = vpack.c.bf16 %v1940_v49, %v1936_v40  ;;  %v7096_v58 = vpack.c.bf16 %v1942_v50, %v1938_v48  ;;  %v189_v49 = vpack.c.bf16 %v94_v34, %v93_v33 }
 0x10a   :  { %v640_v59 = vadd.f32 %v639_v55, %v6965_v29  ;;  %v1313_v60 = vadd.f32 %v1312_v56, %v6967_v30  ;;  %v641_v61 = vpop.f32.mrb[17].mxu0  ;;  %v1314_v0 = vpop.f32.mrb[17].mxu1 }
 0x10b   :  { %v642_v5 = vadd.f32 %v641_v61, %v6970_v31  ;;  %v1315_v6 = vadd.f32 %v1314_v0, %v6972_v32  ;;  %v643_v7 = vpop.f32.mrb[18].mxu0  ;;  %v1316_v8 = vpop.f32.mrb[18].mxu1 }
 0x10c   :  { %v1943_v9 = vmax.f32 %v640_v59, 0.0  ;;  %v644_v10 = vadd.f32 %v643_v7, %v6965_v29  ;;  %v1317_v11 = vadd.f32 %v1316_v8, %v6967_v30  ;;  %v645_v14 = vpop.f32.mrb[19].mxu0  ;;  %v1318_v15 = vpop.f32.mrb[19].mxu1  ;;  %v1945_v21 = vmax.f32 %v1313_v60, 0.0 }
 0x10d   :  { %v1944_v18 = vmax.f32 %v642_v5, 0.0  ;;  %v646_v19 = vadd.f32 %v645_v14, %v6970_v31  ;;  %v1319_v20 = vadd.f32 %v1318_v15, %v6972_v32  ;;  %v1946_v25 = vmax.f32 %v1315_v6, 0.0  ;;  %v95_v15 = vld [vmem:[%s9866_s0 + $0x210] sm:$0xff] }
 0x10e   :  { %v1947_v22 = vmax.f32 %v644_v10, 0.0  ;;  %v1949_v23 = vmax.f32 %v1317_v11, 0.0  ;;  %5649 = vmatmul.mubr.msk.bf16.gmra.mrb[124].mxu0 %vm359_vm1, %v188_v2  ;;  %5714 = vmatmul.mubr.msk.bf16.gmra.mrb[124].mxu1 %vm359_vm1, %v188_v2 }
 0x10f   :  { %v1948_v26 = vmax.f32 %v646_v19, 0.0  ;;  %v1950_v28 = vmax.f32 %v1319_v20, 0.0  ;;  %917 = vmatprep.mubr.bf16.mxu0 %v9873_v1  ;;  %1590 = vmatprep.mubr.bf16.mxu1 %v9873_v1 }
 0x110   :  { %v7116_v35 = vpack.c.bf16 %v1947_v22, %v1943_v9  ;;  %v7118_v38 = vpack.c.bf16 %v1949_v23, %v1945_v21  ;;  %v6427_v21 = vld [vmem:[%s9867_s3 + $0xc0] ss:$8 sps:$4 sm:$0xff]   ;;  %v6429_v22 = vld [vmem:[%s9867_s3 + $0xc4] ss:$8 sps:$4 sm:$0xff]  }
 0x111   :  { %v649_v39 = vpop.f32.mrb[20].mxu0  ;;  %v1322_v40 = vpop.f32.mrb[20].mxu1  ;;  %v7120_v41 = vpack.c.bf16 %v1948_v26, %v1944_v18  ;;  %v7122_v42 = vpack.c.bf16 %v1950_v28, %v1946_v25  ;;  %v96_v18 = vld [vmem:[%s9866_s0 + $0x218] sm:$0xff]  ;;  %v6430_v23 = vld [vmem:[%s9867_s3 + $0x1c0] ss:$8 sps:$4 sm:$0xff]   ;;  %3099 = vmatprep.subr.bf16.mxu1 %v6429_v22 }
 0x112   :  { %v650_v43 = vadd.f32 %v649_v39, %v6965_v29  ;;  %v1323_v46 = vadd.f32 %v1322_v40, %v6967_v30  ;;  %v651_v47 = vpop.f32.mrb[21].mxu0  ;;  %v1324_v48 = vpop.f32.mrb[21].mxu1  ;;  %v6432_v28 = vld [vmem:[%s9867_s3 + $0x1c4] ss:$8 sps:$4 sm:$0xff]   ;;  %3100 = vmatpush1.bf16.msra.mxu1 %v6427_v21 }
 0x113   :  { %v652_v50 = vadd.f32 %v651_v47, %v6970_v31  ;;  %v1325_v51 = vadd.f32 %v1324_v48, %v6972_v32  ;;  %v653_v52 = vpop.f32.mrb[22].mxu0  ;;  %v1326_v55 = vpop.f32.mrb[22].mxu1  ;;  %v190_v47 = vpack.c.bf16 %v96_v18, %v95_v15  ;;  %3772 = vmatprep.subr.bf16.mxu0 %v6432_v28 }
 0x114   :  { %v1951_v56 = vmax.f32 %v650_v43, 0.0  ;;  %v654_v59 = vadd.f32 %v653_v52, %v6965_v29  ;;  %v1327_v60 = vadd.f32 %v1326_v55, %v6967_v30  ;;  %v655_v61 = vpop.f32.mrb[23].mxu0  ;;  %v1328_v0 = vpop.f32.mrb[23].mxu1  ;;  %v1953_v7 = vmax.f32 %v1323_v46, 0.0  ;;  %3773 = vmatpush1.bf16.msra.mxu0 %v6430_v23 }
 0x115   :  { %v1952_v2 = vmax.f32 %v652_v50, 0.0  ;;  %v656_v5 = vadd.f32 %v655_v61, %v6970_v31  ;;  %v1329_v6 = vadd.f32 %v1328_v0, %v6972_v32  ;;  %v1954_v10 = vmax.f32 %v1325_v51, 0.0 }
 0x116   :  { %v1955_v8 = vmax.f32 %v654_v59, 0.0  ;;  %v1957_v9 = vmax.f32 %v1327_v60, 0.0  ;;  %5650 = vmatmul.mubr.msk.bf16.gmra.mrb[128].mxu0 %vm359_vm1, %v189_v49  ;;  %5715 = vmatmul.mubr.msk.bf16.gmra.mrb[128].mxu1 %vm359_vm1, %v189_v49 }
 0x117   :  { %v1956_v11 = vmax.f32 %v656_v5, 0.0  ;;  %v1958_v14 = vmax.f32 %v1329_v6, 0.0  ;;  %927 = vmatprep.mubr.bf16.mxu0 %v9873_v1  ;;  %1600 = vmatprep.mubr.bf16.mxu1 %v9873_v1 }
 0x118   :  { %v7142_v19 = vpack.c.bf16 %v1955_v8, %v1951_v56  ;;  %v7144_v20 = vpack.c.bf16 %v1957_v9, %v1953_v7 }
 0x119   :  { %v659_v25 = vpop.f32.mrb[24].mxu0  ;;  %v1332_v26 = vpop.f32.mrb[24].mxu1  ;;  %v7158_v33 = vpack.c.bf16 %v1956_v11, %v1952_v2  ;;  %v7160_v34 = vpack.c.bf16 %v1958_v14, %v1954_v10  ;;  %v97_v11 = vld [vmem:[%s9866_s0 + $0x220] sm:$0xff]  ;;  %v98_v14 = vld [vmem:[%s9866_s0 + $0x228] sm:$0xff] }
 0x11a   :  { %v660_v39 = vadd.f32 %v659_v25, %v6965_v29  ;;  %v1333_v40 = vadd.f32 %v1332_v26, %v6967_v30  ;;  %v661_v43 = vpop.f32.mrb[25].mxu0  ;;  %v1334_v46 = vpop.f32.mrb[25].mxu1 }
 0x11b   :  { %v662_v48 = vadd.f32 %v661_v43, %v6970_v31  ;;  %v1335_v49 = vadd.f32 %v1334_v46, %v6972_v32  ;;  %v663_v50 = vpop.f32.mrb[26].mxu0  ;;  %v1336_v51 = vpop.f32.mrb[26].mxu1  ;;  %v191_v43 = vpack.c.bf16 %v98_v14, %v97_v11 }
 0x11c   :  { %v1959_v52 = vmax.f32 %v660_v39, 0.0  ;;  %v664_v55 = vadd.f32 %v663_v50, %v6965_v29  ;;  %v1337_v56 = vadd.f32 %v1336_v51, %v6967_v30  ;;  %v665_v59 = vpop.f32.mrb[27].mxu0  ;;  %v1338_v60 = vpop.f32.mrb[27].mxu1  ;;  %v1961_v5 = vmax.f32 %v1333_v40, 0.0 }
 0x11d   :  { %v1960_v61 = vmax.f32 %v662_v48, 0.0  ;;  %v666_v0 = vadd.f32 %v665_v59, %v6970_v31  ;;  %v1339_v2 = vadd.f32 %v1338_v60, %v6972_v32  ;;  %v1962_v8 = vmax.f32 %v1335_v49, 0.0 }
 0x11e   :  { %v1963_v6 = vmax.f32 %v664_v55, 0.0  ;;  %v1965_v7 = vmax.f32 %v1337_v56, 0.0  ;;  %5651 = vmatmul.mubr.msk.bf16.gmra.mrb[132].mxu0 %vm359_vm1, %v190_v47  ;;  %5716 = vmatmul.mubr.msk.bf16.gmra.mrb[132].mxu1 %vm359_vm1, %v190_v47 }
 0x11f   :  { %v1964_v9 = vmax.f32 %v666_v0, 0.0  ;;  %v1966_v10 = vmax.f32 %v1339_v2, 0.0  ;;  %937 = vmatprep.mubr.bf16.mxu0 %v9873_v1  ;;  %1610 = vmatprep.mubr.bf16.mxu1 %v9873_v1 }
 0x120   :  { %v7180_v15 = vpack.c.bf16 %v1963_v6, %v1959_v52  ;;  %v7182_v18 = vpack.c.bf16 %v1965_v7, %v1961_v5 }
 0x121   :  { %v669_v21 = vpop.f32.mrb[28].mxu0  ;;  %v1342_v22 = vpop.f32.mrb[28].mxu1  ;;  %v7184_v23 = vpack.c.bf16 %v1964_v9, %v1960_v61  ;;  %v7186_v25 = vpack.c.bf16 %v1966_v10, %v1962_v8  ;;  %v99_v9 = vld [vmem:[%s9866_s0 + $0x230] sm:$0xff]  ;;  %v100_v10 = vld [vmem:[%s9866_s0 + $0x238] sm:$0xff] }
 0x122   :  { %v670_v26 = vadd.f32 %v669_v21, %v6965_v29  ;;  %v1343_v28 = vadd.f32 %v1342_v22, %v6967_v30  ;;  %v671_v39 = vpop.f32.mrb[29].mxu0  ;;  %v1344_v40 = vpop.f32.mrb[29].mxu1 }
 0x123   :  { %v672_v46 = vadd.f32 %v671_v39, %v6970_v31  ;;  %v1345_v47 = vadd.f32 %v1344_v40, %v6972_v32  ;;  %v673_v48 = vpop.f32.mrb[30].mxu0  ;;  %v1346_v49 = vpop.f32.mrb[30].mxu1 }
 0x124   :  { %v1967_v50 = vmax.f32 %v670_v26, 0.0  ;;  %v674_v51 = vadd.f32 %v673_v48, %v6965_v29  ;;  %v1347_v52 = vadd.f32 %v1346_v49, %v6967_v30  ;;  %v675_v55 = vpop.f32.mrb[31].mxu0  ;;  %v1348_v56 = vpop.f32.mrb[31].mxu1  ;;  %v1969_v0 = vmax.f32 %v1343_v28, 0.0 }
 0x125   :  { %v1968_v59 = vmax.f32 %v672_v46, 0.0  ;;  %v676_v60 = vadd.f32 %v675_v55, %v6970_v31  ;;  %v1349_v61 = vadd.f32 %v1348_v56, %v6972_v32  ;;  %v1970_v6 = vmax.f32 %v1345_v47, 0.0 }
 0x126   :  { %v1971_v2 = vmax.f32 %v674_v51, 0.0  ;;  %v1973_v5 = vmax.f32 %v1347_v52, 0.0  ;;  %5652 = vmatmul.mubr.msk.bf16.gmra.mrb[136].mxu0 %vm359_vm1, %v191_v43  ;;  %5717 = vmatmul.mubr.msk.bf16.gmra.mrb[136].mxu1 %vm359_vm1, %v191_v43  ;;  %v192_v47 = vpack.c.bf16 %v100_v10, %v99_v9 }
 0x127   :  { %v1972_v7 = vmax.f32 %v676_v60, 0.0  ;;  %v1974_v8 = vmax.f32 %v1349_v61, 0.0  ;;  %947 = vmatprep.mubr.bf16.mxu0 %v9873_v1  ;;  %1620 = vmatprep.mubr.bf16.mxu1 %v9873_v1 }
 0x128   :  { %v7206_v11 = vpack.c.bf16 %v1971_v2, %v1967_v50  ;;  %v7208_v14 = vpack.c.bf16 %v1973_v5, %v1969_v0 }
 0x129   :  { %v679_v21 = vpop.f32.mrb[32].mxu0  ;;  %v1352_v22 = vpop.f32.mrb[32].mxu1  ;;  %v7210_v26 = vpack.c.bf16 %v1972_v7, %v1968_v59  ;;  %v7212_v28 = vpack.c.bf16 %v1974_v8, %v1970_v6 }
 0x12a   :  { %v680_v39 = vadd.f32 %v679_v21, %v6965_v29  ;;  %v1353_v40 = vadd.f32 %v1352_v22, %v6967_v30  ;;  %v681_v43 = vpop.f32.mrb[33].mxu0  ;;  %v1354_v46 = vpop.f32.mrb[33].mxu1  ;;  %v101_v21 = vld [vmem:[%s9866_s0 + $0x240] sm:$0xff]  ;;  %v102_v22 = vld [vmem:[%s9866_s0 + $0x248] sm:$0xff] }
 0x12b   :  { %v682_v48 = vadd.f32 %v681_v43, %v6970_v31  ;;  %v1355_v49 = vadd.f32 %v1354_v46, %v6972_v32  ;;  %v683_v50 = vpop.f32.mrb[34].mxu0  ;;  %v1356_v51 = vpop.f32.mrb[34].mxu1 }
 0x12c   :  { %v1975_v52 = vmax.f32 %v680_v39, 0.0  ;;  %v684_v55 = vadd.f32 %v683_v50, %v6965_v29  ;;  %v1357_v56 = vadd.f32 %v1356_v51, %v6967_v30  ;;  %v685_v59 = vpop.f32.mrb[35].mxu0  ;;  %v1358_v60 = vpop.f32.mrb[35].mxu1  ;;  %v1977_v5 = vmax.f32 %v1353_v40, 0.0 }
 0x12d   :  { %v1976_v61 = vmax.f32 %v682_v48, 0.0  ;;  %v686_v0 = vadd.f32 %v685_v59, %v6970_v31  ;;  %v1359_v2 = vadd.f32 %v1358_v60, %v6972_v32  ;;  %v1978_v8 = vmax.f32 %v1355_v49, 0.0 }
 0x12e   :  { %v1979_v6 = vmax.f32 %v684_v55, 0.0  ;;  %v1981_v7 = vmax.f32 %v1357_v56, 0.0  ;;  %5653 = vmatmul.mubr.msk.bf16.gmra.mrb[140].mxu0 %vm359_vm1, %v192_v47  ;;  %5718 = vmatmul.mubr.msk.bf16.gmra.mrb[140].mxu1 %vm359_vm1, %v192_v47  ;;  %v193_v56 = vpack.c.bf16 %v102_v22, %v101_v21 }
 0x12f   :  { %v1980_v9 = vmax.f32 %v686_v0, 0.0  ;;  %v1982_v10 = vmax.f32 %v1359_v2, 0.0  ;;  %957 = vmatprep.mubr.bf16.mxu0 %v9873_v1  ;;  %1630 = vmatprep.mubr.bf16.mxu1 %v9873_v1 }
 0x130   :  { %v7232_v39 = vpack.c.bf16 %v1979_v6, %v1975_v52  ;;  %v7234_v40 = vpack.c.bf16 %v1981_v7, %v1977_v5 }
 0x131   :  { %v689_v43 = vpop.f32.mrb[36].mxu0  ;;  %v1362_v46 = vpop.f32.mrb[36].mxu1  ;;  %v7236_v47 = vpack.c.bf16 %v1980_v9, %v1976_v61  ;;  %v7238_v48 = vpack.c.bf16 %v1982_v10, %v1978_v8 }
 0x132   :  { %v690_v49 = vadd.f32 %v689_v43, %v6965_v29  ;;  %v1363_v50 = vadd.f32 %v1362_v46, %v6967_v30  ;;  %v691_v51 = vpop.f32.mrb[37].mxu0  ;;  %v1364_v55 = vpop.f32.mrb[37].mxu1 }
 0x133   :  { %v692_v59 = vadd.f32 %v691_v51, %v6970_v31  ;;  %v1365_v52 = vadd.f32 %v1364_v55, %v6972_v32  ;;  %v693_v60 = vpop.f32.mrb[38].mxu0  ;;  %v1366_v0 = vpop.f32.mrb[38].mxu1  ;;  %v103_v55 = vld [vmem:[%s9866_s0 + $0x250] sm:$0xff] }
 0x134   :  { %v1983_v2 = vmax.f32 %v690_v49, 0.0  ;;  %v694_v5 = vadd.f32 %v693_v60, %v6965_v29  ;;  %v1367_v61 = vadd.f32 %v1366_v0, %v6967_v30  ;;  %v695_v6 = vpop.f32.mrb[39].mxu0  ;;  %v1368_v7 = vpop.f32.mrb[39].mxu1  ;;  %v1985_v43 = vmax.f32 %v1363_v50, 0.0  ;;  %v104_v50 = vld [vmem:[%s9866_s0 + $0x258] sm:$0xff] }
 0x135   :  { %v1984_v8 = vmax.f32 %v692_v59, 0.0  ;;  %v696_v9 = vadd.f32 %v695_v6, %v6970_v31  ;;  %v1369_v10 = vadd.f32 %v1368_v7, %v6972_v32  ;;  %v1986_v46 = vmax.f32 %v1365_v52, 0.0  ;;  %v6435_v52 = vld [vmem:[%s9867_s3 + $0xd4] ss:$8 sps:$4 sm:$0xff]   ;;  %v6436_v0 = vld [vmem:[%s9867_s3 + $0x1d0] ss:$8 sps:$4 sm:$0xff]  }
 0x136   :  { %v1987_v21 = vmax.f32 %v694_v5, 0.0  ;;  %v1989_v22 = vmax.f32 %v1367_v61, 0.0  ;;  %5654 = vmatmul.mubr.msk.bf16.gmra.mrb[144].mxu0 %vm359_vm1, %v193_v56  ;;  %5719 = vmatmul.mubr.msk.bf16.gmra.mrb[144].mxu1 %vm359_vm1, %v193_v56  ;;  %v6433_v56 = vld [vmem:[%s9867_s3 + $0xd0] ss:$8 sps:$4 sm:$0xff]  }
 0x137   :  { %v1988_v49 = vmax.f32 %v696_v9, 0.0  ;;  %v1990_v51 = vmax.f32 %v1369_v10, 0.0  ;;  %967 = vmatprep.mubr.bf16.mxu0 %v9873_v1  ;;  %1640 = vmatprep.mubr.bf16.mxu1 %v9873_v1 }
 0x138   :  { %v7258_v59 = vpack.c.bf16 %v1987_v21, %v1983_v2  ;;  %v7260_v60 = vpack.c.bf16 %v1989_v22, %v1985_v43  ;;  %v6438_v2 = vld [vmem:[%s9867_s3 + $0x1d4] ss:$8 sps:$4 sm:$0xff]   ;;  %v194_v22 = vpack.c.bf16 %v104_v50, %v103_v55  ;;  %3101 = vmatprep.subr.bf16.mxu1 %v6435_v52 }
 0x139   :  { %v699_v5 = vpop.f32.mrb[40].mxu0  ;;  %v1372_v61 = vpop.f32.mrb[40].mxu1  ;;  %v7274_v6 = vpack.c.bf16 %v1988_v49, %v1984_v8  ;;  %v7276_v7 = vpack.c.bf16 %v1990_v51, %v1986_v46  ;;  %3102 = vmatpush1.bf16.msra.mxu1 %v6433_v56  ;;  %3774 = vmatprep.subr.bf16.mxu0 %v6438_v2 }
 0x13a   :  { %9881 = vst [vmem:[#allocation5_spill] sm:$0xff] %v7258_v59  ;;  %9882 = vst [vmem:[#allocation6_spill] sm:$0xff] %v7260_v60  ;;  %v700_v9 = vadd.f32 %v699_v5, %v6965_v29  ;;  %v1373_v10 = vadd.f32 %v1372_v61, %v6967_v30  ;;  %v701_v43 = vpop.f32.mrb[41].mxu0  ;;  %v1374_v21 = vpop.f32.mrb[41].mxu1  ;;  %3775 = vmatpush1.bf16.msra.mxu0 %v6436_v0 }
 0x13b   :  { %9883 = vst [vmem:[#allocation7_spill] sm:$0xff] %v7274_v6  ;;  %9884 = vst [vmem:[#allocation8_spill] sm:$0xff] %v7276_v7  ;;  %v702_v1 = vadd.f32 %v701_v43, %v6970_v31  ;;  %v1375_v27 = vadd.f32 %v1374_v21, %v6972_v32  ;;  %v703_v24 = vpop.f32.mrb[42].mxu0  ;;  %v1376_v60 = vpop.f32.mrb[42].mxu1 }
 0x13c   :  { %v1991_v8 = vmax.f32 %v700_v9, 0.0  ;;  %v704_v46 = vadd.f32 %v703_v24, %v6965_v29  ;;  %v1377_v49 = vadd.f32 %v1376_v60, %v6967_v30  ;;  %v705_v51 = vpop.f32.mrb[43].mxu0  ;;  %v1378_v5 = vpop.f32.mrb[43].mxu1  ;;  %v1993_v52 = vmax.f32 %v1373_v10, 0.0  ;;  %v106_v60 = vld [vmem:[%s9866_s0 + $0x268] sm:$0xff] }
 0x13d   :  { %v1992_v61 = vmax.f32 %v702_v1, 0.0  ;;  %v706_v55 = vadd.f32 %v705_v51, %v6970_v31  ;;  %v1379_v50 = vadd.f32 %v1378_v5, %v6972_v32  ;;  %v1994_v56 = vmax.f32 %v1375_v27, 0.0  ;;  %v105_v1 = vld [vmem:[%s9866_s0 + $0x260] sm:$0xff] }
 0x13e   :  { %v1995_v43 = vmax.f32 %v704_v46, 0.0  ;;  %v1997_v21 = vmax.f32 %v1377_v49, 0.0  ;;  %5655 = vmatmul.mubr.msk.bf16.gmra.mrb[148].mxu0 %vm359_vm1, %v194_v22  ;;  %5720 = vmatmul.mubr.msk.bf16.gmra.mrb[148].mxu1 %vm359_vm1, %v194_v22  ;;  %v9885_v9 = vmov 0   ;;  %v195_v59 = vpack.c.bf16 %v106_v60, %v105_v1 }
 0x13f   :  { %v1996_v2 = vmax.f32 %v706_v55, 0.0  ;;  %v1998_v24 = vmax.f32 %v1379_v50, 0.0  ;;  %977 = vmatprep.mubr.bf16.mxu0 %v9885_v9  ;;  %1650 = vmatprep.mubr.bf16.mxu1 %v9885_v9 }
 0x140   :  { %v7296_v0 = vpack.c.bf16 %v1995_v43, %v1991_v8  ;;  %v7298_v10 = vpack.c.bf16 %v1997_v21, %v1993_v52 }
 0x141   :  { %v709_v22 = vpop.f32.mrb[44].mxu0  ;;  %v1382_v27 = vpop.f32.mrb[44].mxu1  ;;  %v7300_v46 = vpack.c.bf16 %v1996_v2, %v1992_v61  ;;  %v7302_v49 = vpack.c.bf16 %v1998_v24, %v1994_v56 }
 0x142   :  { %9886 = vst [vmem:[#allocation9_spill] sm:$0xff] %v7296_v0  ;;  %9887 = vst [vmem:[#allocation10_spill] sm:$0xff] %v7298_v10  ;;  %v710_v51 = vadd.f32 %v709_v22, %v6965_v29  ;;  %v1383_v5 = vadd.f32 %v1382_v27, %v6967_v30  ;;  %v711_v55 = vpop.f32.mrb[45].mxu0  ;;  %v1384_v50 = vpop.f32.mrb[45].mxu1 }
 0x143   :  { %9888 = vst [vmem:[#allocation11_spill] sm:$0xff] %v7300_v46  ;;  %9889 = vst [vmem:[#allocation12_spill] sm:$0xff] %v7302_v49  ;;  %v712_v7 = vadd.f32 %v711_v55, %v6970_v31  ;;  %v1385_v8 = vadd.f32 %v1384_v50, %v6972_v32  ;;  %v713_v43 = vpop.f32.mrb[46].mxu0  ;;  %v1386_v52 = vpop.f32.mrb[46].mxu1 }
 0x144   :  { %v1999_v21 = vmax.f32 %v710_v51, 0.0  ;;  %v714_v10 = vadd.f32 %v713_v43, %v6965_v29  ;;  %v1387_v61 = vadd.f32 %v1386_v52, %v6967_v30  ;;  %v715_v56 = vpop.f32.mrb[47].mxu0  ;;  %v1388_v2 = vpop.f32.mrb[47].mxu1  ;;  %v2001_v0 = vmax.f32 %v1383_v5, 0.0 }
 0x145   :  { %v2000_v24 = vmax.f32 %v712_v7, 0.0  ;;  %v716_v22 = vadd.f32 %v715_v56, %v6970_v31  ;;  %v1389_v27 = vadd.f32 %v1388_v2, %v6972_v32  ;;  %v2002_v55 = vmax.f32 %v1385_v8, 0.0  ;;  %v107_v7 = vld [vmem:[%s9866_s0 + $0x270] sm:$0xff] }
 0x146   :  { %v2003_v1 = vmax.f32 %v714_v10, 0.0  ;;  %v2005_v60 = vmax.f32 %v1387_v61, 0.0  ;;  %5656 = vmatmul.mubr.msk.bf16.gmra.mrb[152].mxu0 %vm359_vm1, %v195_v59  ;;  %5721 = vmatmul.mubr.msk.bf16.gmra.mrb[152].mxu1 %vm359_vm1, %v195_v59  ;;  %v108_v10 = vld [vmem:[%s9866_s0 + $0x278] sm:$0xff] }
 0x147   :  { %v2004_v51 = vmax.f32 %v716_v22, 0.0  ;;  %v2006_v50 = vmax.f32 %v1389_v27, 0.0  ;;  %987 = vmatprep.mubr.bf16.mxu0 %v9885_v9  ;;  %1660 = vmatprep.mubr.bf16.mxu1 %v9885_v9  ;;  %v196_v49 = vpack.c.bf16 %v108_v10, %v107_v7 }
 0x148   :  { %v7322_v5 = vpack.c.bf16 %v2003_v1, %v1999_v21  ;;  %v7324_v43 = vpack.c.bf16 %v2005_v60, %v2001_v0 }
 0x149   :  { %v719_v59 = vpop.f32.mrb[48].mxu0  ;;  %v1392_v8 = vpop.f32.mrb[48].mxu1  ;;  %v7326_v52 = vpack.c.bf16 %v2004_v51, %v2000_v24  ;;  %v7328_v61 = vpack.c.bf16 %v2006_v50, %v2002_v55 }
 0x14a   :  { %9890 = vst [vmem:[#allocation13_spill] sm:$0xff] %v7322_v5  ;;  %9891 = vst [vmem:[#allocation14_spill] sm:$0xff] %v7324_v43  ;;  %v720_v56 = vadd.f32 %v719_v59, %v6965_v29  ;;  %v1393_v2 = vadd.f32 %v1392_v8, %v6967_v30  ;;  %v721_v22 = vpop.f32.mrb[49].mxu0  ;;  %v1394_v27 = vpop.f32.mrb[49].mxu1 }
 0x14b   :  { %9892 = vst [vmem:[#allocation15_spill] sm:$0xff] %v7326_v52  ;;  %9893 = vst [vmem:[#allocation16_spill] sm:$0xff] %v7328_v61  ;;  %v722_v46 = vadd.f32 %v721_v22, %v6970_v31  ;;  %v1395_v21 = vadd.f32 %v1394_v27, %v6972_v32  ;;  %v723_v1 = vpop.f32.mrb[50].mxu0  ;;  %v1396_v0 = vpop.f32.mrb[50].mxu1 }
 0x14c   :  { %v2007_v60 = vmax.f32 %v720_v56, 0.0  ;;  %v724_v43 = vadd.f32 %v723_v1, %v6965_v29  ;;  %v1397_v24 = vadd.f32 %v1396_v0, %v6967_v30  ;;  %v725_v55 = vpop.f32.mrb[51].mxu0  ;;  %v1398_v51 = vpop.f32.mrb[51].mxu1  ;;  %v2009_v5 = vmax.f32 %v1393_v2, 0.0 }
 0x14d   :  { %v2008_v50 = vmax.f32 %v722_v46, 0.0  ;;  %v726_v59 = vadd.f32 %v725_v55, %v6970_v31  ;;  %v1399_v8 = vadd.f32 %v1398_v51, %v6972_v32  ;;  %v2010_v22 = vmax.f32 %v1395_v21, 0.0  ;;  %v109_v46 = vld [vmem:[%s9866_s0 + $0x280] sm:$0xff] }
 0x14e   :  { %v2011_v7 = vmax.f32 %v724_v43, 0.0  ;;  %v2013_v10 = vmax.f32 %v1397_v24, 0.0  ;;  %5657 = vmatmul.mubr.msk.bf16.gmra.mrb[156].mxu0 %vm359_vm1, %v196_v49  ;;  %5722 = vmatmul.mubr.msk.bf16.gmra.mrb[156].mxu1 %vm359_vm1, %v196_v49  ;;  %v110_v43 = vld [vmem:[%s9866_s0 + $0x288] sm:$0xff] }
 0x14f   :  { %v2012_v56 = vmax.f32 %v726_v59, 0.0  ;;  %v2014_v27 = vmax.f32 %v1399_v8, 0.0  ;;  %997 = vmatprep.mubr.bf16.mxu0 %v9885_v9  ;;  %1670 = vmatprep.mubr.bf16.mxu1 %v9885_v9  ;;  %v197_v61 = vpack.c.bf16 %v110_v43, %v109_v46 }
 0x150   :  { %v7348_v2 = vpack.c.bf16 %v2011_v7, %v2007_v60  ;;  %v7350_v1 = vpack.c.bf16 %v2013_v10, %v2009_v5 }
 0x151   :  { %v729_v49 = vpop.f32.mrb[52].mxu0  ;;  %v1402_v21 = vpop.f32.mrb[52].mxu1  ;;  %v7352_v0 = vpack.c.bf16 %v2012_v56, %v2008_v50  ;;  %v7354_v24 = vpack.c.bf16 %v2014_v27, %v2010_v22 }
 0x152   :  { %9894 = vst [vmem:[#allocation17_spill] sm:$0xff] %v7348_v2  ;;  %9895 = vst [vmem:[#allocation18_spill] sm:$0xff] %v7350_v1  ;;  %v730_v55 = vadd.f32 %v729_v49, %v6965_v29  ;;  %v1403_v51 = vadd.f32 %v1402_v21, %v6967_v30  ;;  %v731_v59 = vpop.f32.mrb[53].mxu0  ;;  %v1404_v8 = vpop.f32.mrb[53].mxu1 }
 0x153   :  { %9896 = vst [vmem:[#allocation19_spill] sm:$0xff] %v7352_v0  ;;  %9897 = vst [vmem:[#allocation20_spill] sm:$0xff] %v7354_v24  ;;  %v732_v52 = vadd.f32 %v731_v59, %v6970_v31  ;;  %v1405_v60 = vadd.f32 %v1404_v8, %v6972_v32  ;;  %v733_v7 = vpop.f32.mrb[54].mxu0  ;;  %v1406_v5 = vpop.f32.mrb[54].mxu1 }
 0x154   :  { %v2015_v10 = vmax.f32 %v730_v55, 0.0  ;;  %v734_v1 = vadd.f32 %v733_v7, %v6965_v29  ;;  %v1407_v50 = vadd.f32 %v1406_v5, %v6967_v30  ;;  %v735_v22 = vpop.f32.mrb[55].mxu0  ;;  %v1408_v56 = vpop.f32.mrb[55].mxu1  ;;  %v2017_v2 = vmax.f32 %v1403_v51, 0.0  ;;  %v6442_v5 = vld [vmem:[%s9867_s3 + $0x1e0] ss:$8 sps:$4 sm:$0xff]  }
 0x155   :  { %v2016_v27 = vmax.f32 %v732_v52, 0.0  ;;  %v736_v49 = vadd.f32 %v735_v22, %v6970_v31  ;;  %v1409_v21 = vadd.f32 %v1408_v56, %v6972_v32  ;;  %v2018_v59 = vmax.f32 %v1405_v60, 0.0  ;;  %v111_v52 = vld [vmem:[%s9866_s0 + $0x290] sm:$0xff]  ;;  %v6441_v60 = vld [vmem:[%s9867_s3 + $0xe4] ss:$8 sps:$4 sm:$0xff]  }
 0x156   :  { %v2019_v46 = vmax.f32 %v734_v1, 0.0  ;;  %v2021_v43 = vmax.f32 %v1407_v50, 0.0  ;;  %5658 = vmatmul.mubr.msk.bf16.gmra.mrb[160].mxu0 %vm359_vm1, %v197_v61  ;;  %5723 = vmatmul.mubr.msk.bf16.gmra.mrb[160].mxu1 %vm359_vm1, %v197_v61  ;;  %v112_v1 = vld [vmem:[%s9866_s0 + $0x298] sm:$0xff]  ;;  %v6439_v61 = vld [vmem:[%s9867_s3 + $0xe0] ss:$8 sps:$4 sm:$0xff]  }
 0x157   :  { %v2020_v55 = vmax.f32 %v736_v49, 0.0  ;;  %v2022_v8 = vmax.f32 %v1409_v21, 0.0  ;;  %1007 = vmatprep.mubr.bf16.mxu0 %v9885_v9  ;;  %1680 = vmatprep.mubr.bf16.mxu1 %v9885_v9 }
 0x158   :  { %v7374_v51 = vpack.c.bf16 %v2019_v46, %v2015_v10  ;;  %v7376_v7 = vpack.c.bf16 %v2021_v43, %v2017_v2  ;;  %v6444_v10 = vld [vmem:[%s9867_s3 + $0x1e4] ss:$8 sps:$4 sm:$0xff]   ;;  %3103 = vmatprep.subr.bf16.mxu1 %v6441_v60 }
 0x159   :  { %v739_v50 = vpop.f32.mrb[56].mxu0  ;;  %v1412_v22 = vpop.f32.mrb[56].mxu1  ;;  %v7390_v2 = vpack.c.bf16 %v2020_v55, %v2016_v27  ;;  %v7392_v56 = vpack.c.bf16 %v2022_v8, %v2018_v59  ;;  %3104 = vmatpush1.bf16.msra.mxu1 %v6439_v61  ;;  %3776 = vmatprep.subr.bf16.mxu0 %v6444_v10 }
 0x15a   :  { %9898 = vst [vmem:[#allocation21_spill] sm:$0xff] %v7374_v51  ;;  %9899 = vst [vmem:[#allocation22_spill] sm:$0xff] %v7376_v7  ;;  %v740_v49 = vadd.f32 %v739_v50, %v6965_v29  ;;  %v1413_v21 = vadd.f32 %v1412_v22, %v6967_v30  ;;  %v741_v46 = vpop.f32.mrb[57].mxu0  ;;  %v1414_v43 = vpop.f32.mrb[57].mxu1  ;;  %v198_v7 = vpack.c.bf16 %v112_v1, %v111_v52  ;;  %3777 = vmatpush1.bf16.msra.mxu0 %v6442_v5 }
 0x15b   :  { %9900 = vst [vmem:[#allocation23_spill] sm:$0xff] %v7390_v2  ;;  %9901 = vst [vmem:[#allocation24_spill] sm:$0xff] %v7392_v56  ;;  %v742_v51 = vadd.f32 %v741_v46, %v6970_v31  ;;  %v1415_v24 = vadd.f32 %v1414_v43, %v6972_v32  ;;  %v743_v0 = vpop.f32.mrb[58].mxu0  ;;  %v1416_v6 = vpop.f32.mrb[58].mxu1 }
 0x15c   :  { %v2023_v27 = vmax.f32 %v740_v49, 0.0  ;;  %v744_v59 = vadd.f32 %v743_v0, %v6965_v29  ;;  %v1417_v55 = vadd.f32 %v1416_v6, %v6967_v30  ;;  %v745_v8 = vpop.f32.mrb[59].mxu0  ;;  %v1418_v50 = vpop.f32.mrb[59].mxu1  ;;  %v2025_v60 = vmax.f32 %v1413_v21, 0.0  ;;  %v113_v6 = vld [vmem:[%s9866_s0 + $0x2a0] sm:$0xff] }
 0x15d   :  { %v2024_v22 = vmax.f32 %v742_v51, 0.0  ;;  %v746_v52 = vadd.f32 %v745_v8, %v6970_v31  ;;  %v1419_v1 = vadd.f32 %v1418_v50, %v6972_v32  ;;  %v2026_v61 = vmax.f32 %v1415_v24, 0.0  ;;  %v114_v51 = vld [vmem:[%s9866_s0 + $0x2a8] sm:$0xff] }
 0x15e   :  { %v2027_v46 = vmax.f32 %v744_v59, 0.0  ;;  %v2029_v43 = vmax.f32 %v1417_v55, 0.0  ;;  %5659 = vmatmul.mubr.msk.bf16.gmra.mrb[164].mxu0 %vm359_vm1, %v198_v7  ;;  %5724 = vmatmul.mubr.msk.bf16.gmra.mrb[164].mxu1 %vm359_vm1, %v198_v7 }
 0x15f   :  { %v2028_v10 = vmax.f32 %v746_v52, 0.0  ;;  %v2030_v0 = vmax.f32 %v1419_v1, 0.0  ;;  %1017 = vmatprep.mubr.bf16.mxu0 %v9885_v9  ;;  %1690 = vmatprep.mubr.bf16.mxu1 %v9885_v9  ;;  %v199_v1 = vpack.c.bf16 %v114_v51, %v113_v6 }
 0x160   :  { %v7412_v5 = vpack.c.bf16 %v2027_v46, %v2023_v27  ;;  %v7414_v49 = vpack.c.bf16 %v2029_v43, %v2025_v60 }
 0x161   :  { %v749_v7 = vpop.f32.mrb[60].mxu0  ;;  %v1422_v24 = vpop.f32.mrb[60].mxu1  ;;  %v7416_v21 = vpack.c.bf16 %v2028_v10, %v2024_v22  ;;  %v7418_v59 = vpack.c.bf16 %v2030_v0, %v2026_v61 }
 0x162   :  { %9902 = vst [vmem:[#allocation25_spill] sm:$0xff] %v7412_v5  ;;  %9903 = vst [vmem:[#allocation26_spill] sm:$0xff] %v7414_v49  ;;  %v750_v55 = vadd.f32 %v749_v7, %v6965_v29  ;;  %v1423_v8 = vadd.f32 %v1422_v24, %v6967_v30  ;;  %v751_v50 = vpop.f32.mrb[61].mxu0  ;;  %v1424_v52 = vpop.f32.mrb[61].mxu1 }
 0x163   :  { %9904 = vst [vmem:[#allocation27_spill] sm:$0xff] %v7416_v21  ;;  %9905 = vst [vmem:[#allocation28_spill] sm:$0xff] %v7418_v59  ;;  %v752_v56 = vadd.f32 %v751_v50, %v6970_v31  ;;  %v1425_v27 = vadd.f32 %v1424_v52, %v6972_v32  ;;  %v753_v46 = vpop.f32.mrb[62].mxu0  ;;  %v1426_v60 = vpop.f32.mrb[62].mxu1 }
 0x164   :  { %v2031_v43 = vmax.f32 %v750_v55, 0.0  ;;  %v754_v49 = vadd.f32 %v753_v46, %v6965_v29  ;;  %v1427_v22 = vadd.f32 %v1426_v60, %v6967_v30  ;;  %v755_v61 = vpop.f32.mrb[63].mxu0  ;;  %v1428_v10 = vpop.f32.mrb[63].mxu1  ;;  %v2033_v5 = vmax.f32 %v1423_v8, 0.0 }
 0x165   :  { %v2032_v0 = vmax.f32 %v752_v56, 0.0  ;;  %v756_v7 = vadd.f32 %v755_v61, %v6970_v31  ;;  %v1429_v24 = vadd.f32 %v1428_v10, %v6972_v32  ;;  %v2034_v50 = vmax.f32 %v1425_v27, 0.0  ;;  %v115_v56 = vld [vmem:[%s9866_s0 + $0x2b0] sm:$0xff] }
 0x166   :  { %v2035_v6 = vmax.f32 %v754_v49, 0.0  ;;  %v2037_v51 = vmax.f32 %v1427_v22, 0.0  ;;  %5660 = vmatmul.mubr.msk.bf16.gmra.mrb[168].mxu0 %vm359_vm1, %v199_v1  ;;  %5725 = vmatmul.mubr.msk.bf16.gmra.mrb[168].mxu1 %vm359_vm1, %v199_v1  ;;  %v116_v49 = vld [vmem:[%s9866_s0 + $0x2b8] sm:$0xff] }
 0x167   :  { %v2036_v55 = vmax.f32 %v756_v7, 0.0  ;;  %v2038_v52 = vmax.f32 %v1429_v24, 0.0  ;;  %1027 = vmatprep.mubr.bf16.mxu0 %v9885_v9  ;;  %1700 = vmatprep.mubr.bf16.mxu1 %v9885_v9  ;;  %v200_v59 = vpack.c.bf16 %v116_v49, %v115_v56 }
 0x168   :  { %v7438_v8 = vpack.c.bf16 %v2035_v6, %v2031_v43  ;;  %v7440_v46 = vpack.c.bf16 %v2037_v51, %v2033_v5 }
 0x169   :  { %v759_v1 = vpop.f32.mrb[64].mxu0  ;;  %v1432_v27 = vpop.f32.mrb[64].mxu1  ;;  %v7442_v60 = vpack.c.bf16 %v2036_v55, %v2032_v0  ;;  %v7444_v22 = vpack.c.bf16 %v2038_v52, %v2034_v50 }
 0x16a   :  { %9906 = vst [vmem:[#allocation29_spill] sm:$0xff] %v7438_v8  ;;  %9907 = vst [vmem:[#allocation30_spill] sm:$0xff] %v7440_v46  ;;  %v760_v61 = vadd.f32 %v759_v1, %v6965_v29  ;;  %v1433_v10 = vadd.f32 %v1432_v27, %v6967_v30  ;;  %v761_v7 = vpop.f32.mrb[65].mxu0  ;;  %v1434_v24 = vpop.f32.mrb[65].mxu1 }
 0x16b   :  { %9908 = vst [vmem:[#allocation31_spill] sm:$0xff] %v7442_v60  ;;  %9909 = vst [vmem:[#allocation32_spill] sm:$0xff] %v7444_v22  ;;  %v762_v21 = vadd.f32 %v761_v7, %v6970_v31  ;;  %v1435_v43 = vadd.f32 %v1434_v24, %v6972_v32  ;;  %v763_v6 = vpop.f32.mrb[66].mxu0  ;;  %v1436_v5 = vpop.f32.mrb[66].mxu1 }
 0x16c   :  { %v2039_v51 = vmax.f32 %v760_v61, 0.0  ;;  %v764_v46 = vadd.f32 %v763_v6, %v6965_v29  ;;  %v1437_v0 = vadd.f32 %v1436_v5, %v6967_v30  ;;  %v765_v50 = vpop.f32.mrb[67].mxu0  ;;  %v1438_v55 = vpop.f32.mrb[67].mxu1  ;;  %v2041_v8 = vmax.f32 %v1433_v10, 0.0 }
 0x16d   :  { %v2040_v52 = vmax.f32 %v762_v21, 0.0  ;;  %v766_v1 = vadd.f32 %v765_v50, %v6970_v31  ;;  %v1439_v27 = vadd.f32 %v1438_v55, %v6972_v32  ;;  %v2042_v7 = vmax.f32 %v1435_v43, 0.0  ;;  %v117_v21 = vld [vmem:[%s9866_s0 + $0x2c0] sm:$0xff] }
 0x16e   :  { %v2043_v56 = vmax.f32 %v764_v46, 0.0  ;;  %v2045_v49 = vmax.f32 %v1437_v0, 0.0  ;;  %5661 = vmatmul.mubr.msk.bf16.gmra.mrb[172].mxu0 %vm359_vm1, %v200_v59  ;;  %5726 = vmatmul.mubr.msk.bf16.gmra.mrb[172].mxu1 %vm359_vm1, %v200_v59  ;;  %v118_v46 = vld [vmem:[%s9866_s0 + $0x2c8] sm:$0xff] }
 0x16f   :  { %v2044_v61 = vmax.f32 %v766_v1, 0.0  ;;  %v2046_v24 = vmax.f32 %v1439_v27, 0.0  ;;  %1037 = vmatprep.mubr.bf16.mxu0 %v9885_v9  ;;  %1710 = vmatprep.mubr.bf16.mxu1 %v9885_v9  ;;  %v201_v22 = vpack.c.bf16 %v118_v46, %v117_v21 }
 0x170   :  { %v7464_v10 = vpack.c.bf16 %v2043_v56, %v2039_v51  ;;  %v7466_v6 = vpack.c.bf16 %v2045_v49, %v2041_v8 }
 0x171   :  { %v769_v59 = vpop.f32.mrb[68].mxu0  ;;  %v1442_v43 = vpop.f32.mrb[68].mxu1  ;;  %v7468_v5 = vpack.c.bf16 %v2044_v61, %v2040_v52  ;;  %v7470_v0 = vpack.c.bf16 %v2046_v24, %v2042_v7 }
 0x172   :  { %9910 = vst [vmem:[#allocation33_spill] sm:$0xff] %v7464_v10  ;;  %9911 = vst [vmem:[#allocation34_spill] sm:$0xff] %v7466_v6  ;;  %v770_v50 = vadd.f32 %v769_v59, %v6965_v29  ;;  %v1443_v55 = vadd.f32 %v1442_v43, %v6967_v30  ;;  %v771_v1 = vpop.f32.mrb[69].mxu0  ;;  %v1444_v27 = vpop.f32.mrb[69].mxu1 }
 0x173   :  { %9912 = vst [vmem:[#allocation35_spill] sm:$0xff] %v7468_v5  ;;  %9913 = vst [vmem:[#allocation36_spill] sm:$0xff] %v7470_v0  ;;  %v772_v60 = vadd.f32 %v771_v1, %v6970_v31  ;;  %v1445_v51 = vadd.f32 %v1444_v27, %v6972_v32  ;;  %v773_v56 = vpop.f32.mrb[70].mxu0  ;;  %v1446_v8 = vpop.f32.mrb[70].mxu1 }
 0x174   :  { %v2047_v49 = vmax.f32 %v770_v50, 0.0  ;;  %v774_v6 = vadd.f32 %v773_v56, %v6965_v29  ;;  %v1447_v52 = vadd.f32 %v1446_v8, %v6967_v30  ;;  %v775_v7 = vpop.f32.mrb[71].mxu0  ;;  %v1448_v61 = vpop.f32.mrb[71].mxu1  ;;  %v2049_v10 = vmax.f32 %v1443_v55, 0.0  ;;  %v6448_v8 = vld [vmem:[%s9867_s3 + $0x1f0] ss:$8 sps:$4 sm:$0xff]  }
 0x175   :  { %v2048_v24 = vmax.f32 %v772_v60, 0.0  ;;  %v776_v59 = vadd.f32 %v775_v7, %v6970_v31  ;;  %v1449_v43 = vadd.f32 %v1448_v61, %v6972_v32  ;;  %v2050_v1 = vmax.f32 %v1445_v51, 0.0  ;;  %v119_v60 = vld [vmem:[%s9866_s0 + $0x2d0] sm:$0xff] }
 0x176   :  { %v2051_v21 = vmax.f32 %v774_v6, 0.0  ;;  %v2053_v46 = vmax.f32 %v1447_v52, 0.0  ;;  %5662 = vmatmul.mubr.msk.bf16.gmra.mrb[176].mxu0 %vm359_vm1, %v201_v22  ;;  %5727 = vmatmul.mubr.msk.bf16.gmra.mrb[176].mxu1 %vm359_vm1, %v201_v22  ;;  %v120_v6 = vld [vmem:[%s9866_s0 + $0x2d8] sm:$0xff] }
 0x177   :  { %v2052_v50 = vmax.f32 %v776_v59, 0.0  ;;  %v2054_v27 = vmax.f32 %v1449_v43, 0.0  ;;  %1047 = vmatprep.mubr.bf16.mxu0 %v9885_v9  ;;  %1720 = vmatprep.mubr.bf16.mxu1 %v9885_v9  ;;  %v6445_v22 = vld [vmem:[%s9867_s3 + $0xf0] ss:$8 sps:$4 sm:$0xff]   ;;  %v6447_v51 = vld [vmem:[%s9867_s3 + $0xf4] ss:$8 sps:$4 sm:$0xff]  }
 0x178   :  { %v7490_v55 = vpack.c.bf16 %v2051_v21, %v2047_v49  ;;  %v7492_v56 = vpack.c.bf16 %v2053_v46, %v2049_v10  ;;  %v6450_v49 = vld [vmem:[%s9867_s3 + $0x1f4] ss:$8 sps:$4 sm:$0xff]   ;;  %3105 = vmatprep.subr.bf16.mxu1 %v6447_v51 }
 0x179   :  { %v779_v52 = vpop.f32.mrb[72].mxu0  ;;  %v1452_v7 = vpop.f32.mrb[72].mxu1  ;;  %v7506_v10 = vpack.c.bf16 %v2052_v50, %v2048_v24  ;;  %v7508_v61 = vpack.c.bf16 %v2054_v27, %v2050_v1  ;;  %3106 = vmatpush1.bf16.msra.mxu1 %v6445_v22  ;;  %3778 = vmatprep.subr.bf16.mxu0 %v6450_v49 }
 0x17a   :  { %9914 = vst [vmem:[#allocation37_spill] sm:$0xff] %v7490_v55  ;;  %9915 = vst [vmem:[#allocation38_spill] sm:$0xff] %v7492_v56  ;;  %v780_v59 = vadd.f32 %v779_v52, %v6965_v29  ;;  %v1453_v43 = vadd.f32 %v1452_v7, %v6967_v30  ;;  %v781_v21 = vpop.f32.mrb[73].mxu0  ;;  %v1454_v46 = vpop.f32.mrb[73].mxu1  ;;  %v202_v56 = vpack.c.bf16 %v120_v6, %v119_v60  ;;  %3779 = vmatpush1.bf16.msra.mxu0 %v6448_v8 }
 0x17b   :  { %9916 = vst [vmem:[#allocation39_spill] sm:$0xff] %v7508_v61  ;;  %v782_v55 = vadd.f32 %v781_v21, %v6970_v31  ;;  %v1455_v0 = vadd.f32 %v1454_v46, %v6972_v32  ;;  %v783_v5 = vpop.f32.mrb[74].mxu0  ;;  %v1456_v2 = vpop.f32.mrb[74].mxu1 }
 0x17c   :  { %v2055_v24 = vmax.f32 %v780_v59, 0.0  ;;  %v784_v1 = vadd.f32 %v783_v5, %v6965_v29  ;;  %v1457_v50 = vadd.f32 %v1456_v2, %v6967_v30  ;;  %v785_v27 = vpop.f32.mrb[75].mxu0  ;;  %v1458_v52 = vpop.f32.mrb[75].mxu1  ;;  %v2057_v51 = vmax.f32 %v1453_v43, 0.0  ;;  %v121_v2 = vld [vmem:[%s9866_s0 + $0x2e0] sm:$0xff] }
 0x17d   :  { %v2056_v7 = vmax.f32 %v782_v55, 0.0  ;;  %v786_v60 = vadd.f32 %v785_v27, %v6970_v31  ;;  %v1459_v6 = vadd.f32 %v1458_v52, %v6972_v32  ;;  %v2058_v22 = vmax.f32 %v1455_v0, 0.0  ;;  %v122_v55 = vld [vmem:[%s9866_s0 + $0x2e8] sm:$0xff] }
 0x17e   :  { %v2059_v21 = vmax.f32 %v784_v1, 0.0  ;;  %v2061_v46 = vmax.f32 %v1457_v50, 0.0  ;;  %5663 = vmatmul.mubr.msk.bf16.gmra.mrb[180].mxu0 %vm359_vm1, %v202_v56  ;;  %5728 = vmatmul.mubr.msk.bf16.gmra.mrb[180].mxu1 %vm359_vm1, %v202_v56 }
 0x17f   :  { %v2060_v49 = vmax.f32 %v786_v60, 0.0  ;;  %v2062_v5 = vmax.f32 %v1459_v6, 0.0  ;;  %1057 = vmatprep.mubr.bf16.mxu0 %v9885_v9  ;;  %1730 = vmatprep.mubr.bf16.mxu1 %v9885_v9  ;;  %v203_v6 = vpack.c.bf16 %v122_v55, %v121_v2 }
 0x180   :  { %v7528_v8 = vpack.c.bf16 %v2059_v21, %v2055_v24  ;;  %v7530_v59 = vpack.c.bf16 %v2061_v46, %v2057_v51 }
 0x181   :  { %v789_v56 = vpop.f32.mrb[76].mxu0  ;;  %v1462_v0 = vpop.f32.mrb[76].mxu1  ;;  %v7532_v43 = vpack.c.bf16 %v2060_v49, %v2056_v7  ;;  %v7534_v1 = vpack.c.bf16 %v2062_v5, %v2058_v22 }
 0x182   :  { %9917 = vst [vmem:[#allocation40_spill] sm:$0xff] %v7528_v8  ;;  %9918 = vst [vmem:[#allocation41_spill] sm:$0xff] %v7530_v59  ;;  %v790_v50 = vadd.f32 %v789_v56, %v6965_v29  ;;  %v1463_v27 = vadd.f32 %v1462_v0, %v6967_v30  ;;  %v791_v52 = vpop.f32.mrb[77].mxu0  ;;  %v1464_v60 = vpop.f32.mrb[77].mxu1 }
 0x183   :  { %9919 = vst [vmem:[#allocation42_spill] sm:$0xff] %v7532_v43  ;;  %9920 = vst [vmem:[#allocation43_spill] sm:$0xff] %v7534_v1  ;;  %v792_v61 = vadd.f32 %v791_v52, %v6970_v31  ;;  %v1465_v24 = vadd.f32 %v1464_v60, %v6972_v32  ;;  %v793_v21 = vpop.f32.mrb[78].mxu0  ;;  %v1466_v51 = vpop.f32.mrb[78].mxu1 }
 0x184   :  { %v2063_v46 = vmax.f32 %v790_v50, 0.0  ;;  %v794_v59 = vadd.f32 %v793_v21, %v6965_v29  ;;  %v1467_v7 = vadd.f32 %v1466_v51, %v6967_v30  ;;  %v795_v22 = vpop.f32.mrb[79].mxu0  ;;  %v1468_v49 = vpop.f32.mrb[79].mxu1  ;;  %v2065_v8 = vmax.f32 %v1463_v27, 0.0 }
 0x185   :  { %v2064_v5 = vmax.f32 %v792_v61, 0.0  ;;  %v796_v56 = vadd.f32 %v795_v22, %v6970_v31  ;;  %v1469_v0 = vadd.f32 %v1468_v49, %v6972_v32  ;;  %v2066_v52 = vmax.f32 %v1465_v24, 0.0  ;;  %v123_v61 = vld [vmem:[%s9866_s0 + $0x2f0] sm:$0xff] }
 0x186   :  { %v2067_v2 = vmax.f32 %v794_v59, 0.0  ;;  %v2069_v55 = vmax.f32 %v1467_v7, 0.0  ;;  %5664 = vmatmul.mubr.msk.bf16.gmra.mrb[184].mxu0 %vm359_vm1, %v203_v6  ;;  %5729 = vmatmul.mubr.msk.bf16.gmra.mrb[184].mxu1 %vm359_vm1, %v203_v6  ;;  %v124_v59 = vld [vmem:[%s9866_s0 + $0x2f8] sm:$0xff] }
 0x187   :  { %v2068_v50 = vmax.f32 %v796_v56, 0.0  ;;  %v2070_v60 = vmax.f32 %v1469_v0, 0.0  ;;  %1067 = vmatprep.mubr.bf16.mxu0 %v9885_v9  ;;  %1740 = vmatprep.mubr.bf16.mxu1 %v9885_v9  ;;  %v204_v1 = vpack.c.bf16 %v124_v59, %v123_v61 }
 0x188   :  { %v7554_v27 = vpack.c.bf16 %v2067_v2, %v2063_v46  ;;  %v7556_v21 = vpack.c.bf16 %v2069_v55, %v2065_v8 }
 0x189   :  { %v799_v6 = vpop.f32.mrb[80].mxu0  ;;  %v1472_v24 = vpop.f32.mrb[80].mxu1  ;;  %v7558_v51 = vpack.c.bf16 %v2068_v50, %v2064_v5  ;;  %v7560_v7 = vpack.c.bf16 %v2070_v60, %v2066_v52 }
 0x18a   :  { %9921 = vst [vmem:[#allocation44_spill] sm:$0xff] %v7554_v27  ;;  %9922 = vst [vmem:[#allocation45_spill] sm:$0xff] %v7556_v21  ;;  %v800_v22 = vadd.f32 %v799_v6, %v6965_v29  ;;  %v1473_v49 = vadd.f32 %v1472_v24, %v6967_v30  ;;  %v801_v56 = vpop.f32.mrb[81].mxu0  ;;  %v1474_v0 = vpop.f32.mrb[81].mxu1 }
 0x18b   :  { %9923 = vst [vmem:[#allocation46_spill] sm:$0xff] %v7558_v51  ;;  %9924 = vst [vmem:[#allocation47_spill] sm:$0xff] %v7560_v7  ;;  %v802_v43 = vadd.f32 %v801_v56, %v6970_v31  ;;  %v1475_v46 = vadd.f32 %v1474_v0, %v6972_v32  ;;  %v803_v2 = vpop.f32.mrb[82].mxu0  ;;  %v1476_v8 = vpop.f32.mrb[82].mxu1 }
 0x18c   :  { %v2071_v55 = vmax.f32 %v800_v22, 0.0  ;;  %v804_v21 = vadd.f32 %v803_v2, %v6965_v29  ;;  %v1477_v5 = vadd.f32 %v1476_v8, %v6967_v30  ;;  %v805_v52 = vpop.f32.mrb[83].mxu0  ;;  %v1478_v50 = vpop.f32.mrb[83].mxu1  ;;  %v2073_v27 = vmax.f32 %v1473_v49, 0.0 }
 0x18d   :  { %v2072_v60 = vmax.f32 %v802_v43, 0.0  ;;  %v806_v6 = vadd.f32 %v805_v52, %v6970_v31  ;;  %v1479_v24 = vadd.f32 %v1478_v50, %v6972_v32  ;;  %v2074_v56 = vmax.f32 %v1475_v46, 0.0  ;;  %v125_v43 = vld [vmem:[%s9866_s0 + $0x300] sm:$0xff] }
 0x18e   :  { %v2075_v61 = vmax.f32 %v804_v21, 0.0  ;;  %v2077_v59 = vmax.f32 %v1477_v5, 0.0  ;;  %5665 = vmatmul.mubr.msk.bf16.gmra.mrb[188].mxu0 %vm359_vm1, %v204_v1  ;;  %5730 = vmatmul.mubr.msk.bf16.gmra.mrb[188].mxu1 %vm359_vm1, %v204_v1  ;;  %v126_v21 = vld [vmem:[%s9866_s0 + $0x308] sm:$0xff] }
 0x18f   :  { %v2076_v22 = vmax.f32 %v806_v6, 0.0  ;;  %v2078_v0 = vmax.f32 %v1479_v24, 0.0  ;;  %1077 = vmatprep.mubr.bf16.mxu0 %v9885_v9  ;;  %1750 = vmatprep.mubr.bf16.mxu1 %v9885_v9  ;;  %v205_v7 = vpack.c.bf16 %v126_v21, %v125_v43 }
 0x190   :  { %v7580_v49 = vpack.c.bf16 %v2075_v61, %v2071_v55  ;;  %v7582_v2 = vpack.c.bf16 %v2077_v59, %v2073_v27 }
 0x191   :  { %v809_v1 = vpop.f32.mrb[84].mxu0  ;;  %v1482_v46 = vpop.f32.mrb[84].mxu1  ;;  %v7584_v8 = vpack.c.bf16 %v2076_v22, %v2072_v60  ;;  %v7586_v5 = vpack.c.bf16 %v2078_v0, %v2074_v56 }
 0x192   :  { %9925 = vst [vmem:[#allocation48_spill] sm:$0xff] %v7580_v49  ;;  %9926 = vst [vmem:[#allocation49_spill] sm:$0xff] %v7582_v2  ;;  %v810_v52 = vadd.f32 %v809_v1, %v6965_v29  ;;  %v1483_v50 = vadd.f32 %v1482_v46, %v6967_v30  ;;  %v811_v6 = vpop.f32.mrb[85].mxu0  ;;  %v1484_v24 = vpop.f32.mrb[85].mxu1 }
 0x193   :  { %9927 = vst [vmem:[#allocation50_spill] sm:$0xff] %v7584_v8  ;;  %9928 = vst [vmem:[#allocation51_spill] sm:$0xff] %v7586_v5  ;;  %v812_v51 = vadd.f32 %v811_v6, %v6970_v31  ;;  %v1485_v55 = vadd.f32 %v1484_v24, %v6972_v32  ;;  %v813_v61 = vpop.f32.mrb[86].mxu0  ;;  %v1486_v27 = vpop.f32.mrb[86].mxu1 }
 0x194   :  { %v2079_v59 = vmax.f32 %v810_v52, 0.0  ;;  %v814_v2 = vadd.f32 %v813_v61, %v6965_v29  ;;  %v1487_v60 = vadd.f32 %v1486_v27, %v6967_v30  ;;  %v815_v56 = vpop.f32.mrb[87].mxu0  ;;  %v1488_v22 = vpop.f32.mrb[87].mxu1  ;;  %v2081_v49 = vmax.f32 %v1483_v50, 0.0 }
 0x195   :  { %v2080_v0 = vmax.f32 %v812_v51, 0.0  ;;  %v816_v1 = vadd.f32 %v815_v56, %v6970_v31  ;;  %v1489_v46 = vadd.f32 %v1488_v22, %v6972_v32  ;;  %v2082_v6 = vmax.f32 %v1485_v55, 0.0  ;;  %v127_v51 = vld [vmem:[%s9866_s0 + $0x310] sm:$0xff] }
 0x196   :  { %v2083_v43 = vmax.f32 %v814_v2, 0.0  ;;  %v2085_v21 = vmax.f32 %v1487_v60, 0.0  ;;  %5666 = vmatmul.mubr.msk.bf16.gmra.mrb[192].mxu0 %vm359_vm1, %v205_v7  ;;  %5731 = vmatmul.mubr.msk.bf16.gmra.mrb[192].mxu1 %vm359_vm1, %v205_v7  ;;  %v128_v2 = vld [vmem:[%s9866_s0 + $0x318] sm:$0xff] }
 0x197   :  { %v2084_v52 = vmax.f32 %v816_v1, 0.0  ;;  %v2086_v24 = vmax.f32 %v1489_v46, 0.0  ;;  %1087 = vmatprep.mubr.bf16.mxu0 %v9885_v9  ;;  %1760 = vmatprep.mubr.bf16.mxu1 %v9885_v9  ;;  %v206_v5 = vpack.c.bf16 %v128_v2, %v127_v51 }
 0x198   :  { %v7606_v50 = vpack.c.bf16 %v2083_v43, %v2079_v59  ;;  %v7608_v61 = vpack.c.bf16 %v2085_v21, %v2081_v49 }
 0x199   :  { %v819_v7 = vpop.f32.mrb[88].mxu0  ;;  %v1492_v55 = vpop.f32.mrb[88].mxu1  ;;  %v7610_v27 = vpack.c.bf16 %v2084_v52, %v2080_v0  ;;  %v7612_v60 = vpack.c.bf16 %v2086_v24, %v2082_v6 }
 0x19a   :  { %9929 = vst [vmem:[#allocation52_spill] sm:$0xff] %v7606_v50  ;;  %9930 = vst [vmem:[#allocation53_spill] sm:$0xff] %v7608_v61  ;;  %v820_v56 = vadd.f32 %v819_v7, %v6965_v29  ;;  %v1493_v22 = vadd.f32 %v1492_v55, %v6967_v30  ;;  %v821_v1 = vpop.f32.mrb[89].mxu0  ;;  %v1494_v46 = vpop.f32.mrb[89].mxu1 }
 0x19b   :  { %9931 = vst [vmem:[#allocation54_spill] sm:$0xff] %v7610_v27  ;;  %9932 = vst [vmem:[#allocation55_spill] sm:$0xff] %v7612_v60  ;;  %v822_v8 = vadd.f32 %v821_v1, %v6970_v31  ;;  %v1495_v59 = vadd.f32 %v1494_v46, %v6972_v32  ;;  %v823_v43 = vpop.f32.mrb[90].mxu0  ;;  %v1496_v49 = vpop.f32.mrb[90].mxu1 }
 0x19c   :  { %v2087_v21 = vmax.f32 %v820_v56, 0.0  ;;  %v824_v61 = vadd.f32 %v823_v43, %v6965_v29  ;;  %v1497_v0 = vadd.f32 %v1496_v49, %v6967_v30  ;;  %v825_v6 = vpop.f32.mrb[91].mxu0  ;;  %v1498_v52 = vpop.f32.mrb[91].mxu1  ;;  %v2089_v50 = vmax.f32 %v1493_v22, 0.0 }
 0x19d   :  { %v2088_v24 = vmax.f32 %v822_v8, 0.0  ;;  %v826_v7 = vadd.f32 %v825_v6, %v6970_v31  ;;  %v1499_v55 = vadd.f32 %v1498_v52, %v6972_v32  ;;  %v2090_v1 = vmax.f32 %v1495_v59, 0.0  ;;  %v129_v8 = vld [vmem:[%s9866_s0 + $0x320] sm:$0xff] }
 0x19e   :  { %v2091_v51 = vmax.f32 %v824_v61, 0.0  ;;  %v2093_v2 = vmax.f32 %v1497_v0, 0.0  ;;  %5667 = vmatmul.mubr.msk.bf16.gmra.mrb[196].mxu0 %vm359_vm1, %v206_v5  ;;  %5732 = vmatmul.mubr.msk.bf16.gmra.mrb[196].mxu1 %vm359_vm1, %v206_v5  ;;  %v130_v61 = vld [vmem:[%s9866_s0 + $0x328] sm:$0xff] }
 0x19f   :  { %v2092_v56 = vmax.f32 %v826_v7, 0.0  ;;  %v2094_v46 = vmax.f32 %v1499_v55, 0.0  ;;  %1097 = vmatprep.mubr.bf16.mxu0 %v9885_v9  ;;  %1770 = vmatprep.mubr.bf16.mxu1 %v9885_v9  ;;  %v207_v60 = vpack.c.bf16 %v130_v61, %v129_v8 }
 0x1a0   :  { %v7632_v22 = vpack.c.bf16 %v2091_v51, %v2087_v21  ;;  %v7634_v43 = vpack.c.bf16 %v2093_v2, %v2089_v50 }
 0x1a1   :  { %v829_v5 = vpop.f32.mrb[92].mxu0  ;;  %v1502_v59 = vpop.f32.mrb[92].mxu1  ;;  %v7636_v49 = vpack.c.bf16 %v2092_v56, %v2088_v24  ;;  %v7638_v0 = vpack.c.bf16 %v2094_v46, %v2090_v1 }
 0x1a2   :  { %9933 = vst [vmem:[#allocation56_spill] sm:$0xff] %v7632_v22  ;;  %9934 = vst [vmem:[#allocation57_spill] sm:$0xff] %v7634_v43  ;;  %v830_v6 = vadd.f32 %v829_v5, %v6965_v29  ;;  %v1503_v52 = vadd.f32 %v1502_v59, %v6967_v30  ;;  %v831_v7 = vpop.f32.mrb[93].mxu0  ;;  %v1504_v55 = vpop.f32.mrb[93].mxu1 }
 0x1a3   :  { %9935 = vst [vmem:[#allocation58_spill] sm:$0xff] %v7636_v49  ;;  %9936 = vst [vmem:[#allocation59_spill] sm:$0xff] %v7638_v0  ;;  %v832_v27 = vadd.f32 %v831_v7, %v6970_v31  ;;  %v1505_v21 = vadd.f32 %v1504_v55, %v6972_v32  ;;  %v833_v51 = vpop.f32.mrb[94].mxu0  ;;  %v1506_v50 = vpop.f32.mrb[94].mxu1 }
 0x1a4   :  { %v2095_v2 = vmax.f32 %v830_v6, 0.0  ;;  %v834_v43 = vadd.f32 %v833_v51, %v6965_v29  ;;  %v1507_v24 = vadd.f32 %v1506_v50, %v6967_v30  ;;  %v835_v1 = vpop.f32.mrb[95].mxu0  ;;  %v1508_v56 = vpop.f32.mrb[95].mxu1  ;;  %v2097_v22 = vmax.f32 %v1503_v52, 0.0 }
 0x1a5   :  { %v2096_v46 = vmax.f32 %v832_v27, 0.0  ;;  %v836_v5 = vadd.f32 %v835_v1, %v6970_v31  ;;  %v1509_v59 = vadd.f32 %v1508_v56, %v6972_v32  ;;  %v2098_v7 = vmax.f32 %v1505_v21, 0.0  ;;  %v131_v27 = vld [vmem:[%s9866_s0 + $0x330] sm:$0xff] }
 0x1a6   :  { %v2099_v8 = vmax.f32 %v834_v43, 0.0  ;;  %v2101_v61 = vmax.f32 %v1507_v24, 0.0  ;;  %5668 = vmatmul.mubr.msk.bf16.gmra.mrb[200].mxu0 %vm359_vm1, %v207_v60  ;;  %5733 = vmatmul.mubr.msk.bf16.gmra.mrb[200].mxu1 %vm359_vm1, %v207_v60  ;;  %v132_v43 = vld [vmem:[%s9866_s0 + $0x338] sm:$0xff] }
 0x1a7   :  { %v2100_v6 = vmax.f32 %v836_v5, 0.0  ;;  %v2102_v55 = vmax.f32 %v1509_v59, 0.0  ;;  %1107 = vmatprep.mubr.bf16.mxu0 %v9885_v9  ;;  %1780 = vmatprep.mubr.bf16.mxu1 %v9885_v9  ;;  %v208_v0 = vpack.c.bf16 %v132_v43, %v131_v27 }
 0x1a8   :  { %v7658_v52 = vpack.c.bf16 %v2099_v8, %v2095_v2  ;;  %v7660_v51 = vpack.c.bf16 %v2101_v61, %v2097_v22 }
 0x1a9   :  { %v839_v60 = vpop.f32.mrb[96].mxu0  ;;  %v1512_v21 = vpop.f32.mrb[96].mxu1  ;;  %v7662_v50 = vpack.c.bf16 %v2100_v6, %v2096_v46  ;;  %v7664_v24 = vpack.c.bf16 %v2102_v55, %v2098_v7 }
 0x1aa   :  { %9937 = vst [vmem:[#allocation60_spill] sm:$0xff] %v7658_v52  ;;  %9938 = vst [vmem:[#allocation61_spill] sm:$0xff] %v7660_v51  ;;  %v840_v1 = vadd.f32 %v839_v60, %v6965_v29  ;;  %v1513_v56 = vadd.f32 %v1512_v21, %v6967_v30  ;;  %v841_v5 = vpop.f32.mrb[97].mxu0  ;;  %v1514_v59 = vpop.f32.mrb[97].mxu1 }
 0x1ab   :  { %9939 = vst [vmem:[#allocation62_spill] sm:$0xff] %v7662_v50  ;;  %9940 = vst [vmem:[#allocation63_spill] sm:$0xff] %v7664_v24  ;;  %v842_v49 = vadd.f32 %v841_v5, %v6970_v31  ;;  %v1515_v2 = vadd.f32 %v1514_v59, %v6972_v32  ;;  %v843_v8 = vpop.f32.mrb[98].mxu0  ;;  %v1516_v22 = vpop.f32.mrb[98].mxu1 }
 0x1ac   :  { %v2103_v61 = vmax.f32 %v840_v1, 0.0  ;;  %v844_v51 = vadd.f32 %v843_v8, %v6965_v29  ;;  %v1517_v46 = vadd.f32 %v1516_v22, %v6967_v30  ;;  %v845_v7 = vpop.f32.mrb[99].mxu0  ;;  %v1518_v6 = vpop.f32.mrb[99].mxu1  ;;  %v2105_v52 = vmax.f32 %v1513_v56, 0.0 }
 0x1ad   :  { %v2104_v55 = vmax.f32 %v842_v49, 0.0  ;;  %v846_v60 = vadd.f32 %v845_v7, %v6970_v31  ;;  %v1519_v21 = vadd.f32 %v1518_v6, %v6972_v32  ;;  %v2106_v5 = vmax.f32 %v1515_v2, 0.0  ;;  %v133_v49 = vld [vmem:[%s9866_s0 + $0x340] sm:$0xff] }
 0x1ae   :  { %v2107_v27 = vmax.f32 %v844_v51, 0.0  ;;  %v2109_v43 = vmax.f32 %v1517_v46, 0.0  ;;  %5669 = vmatmul.mubr.msk.bf16.gmra.mrb[204].mxu0 %vm359_vm1, %v208_v0  ;;  %5734 = vmatmul.mubr.msk.bf16.gmra.mrb[204].mxu1 %vm359_vm1, %v208_v0  ;;  %v134_v51 = vld [vmem:[%s9866_s0 + $0x348] sm:$0xff] }
 0x1af   :  { %v2108_v1 = vmax.f32 %v846_v60, 0.0  ;;  %v2110_v59 = vmax.f32 %v1519_v21, 0.0  ;;  %1117 = vmatprep.mubr.bf16.mxu0 %v9885_v9  ;;  %1790 = vmatprep.mubr.bf16.mxu1 %v9885_v9  ;;  %v209_v24 = vpack.c.bf16 %v134_v51, %v133_v49 }
 0x1b0   :  { %v7684_v56 = vpack.c.bf16 %v2107_v27, %v2103_v61  ;;  %v7686_v8 = vpack.c.bf16 %v2109_v43, %v2105_v52 }
 0x1b1   :  { %v849_v0 = vpop.f32.mrb[100].mxu0  ;;  %v1522_v2 = vpop.f32.mrb[100].mxu1  ;;  %v7688_v22 = vpack.c.bf16 %v2108_v1, %v2104_v55  ;;  %v7690_v46 = vpack.c.bf16 %v2110_v59, %v2106_v5 }
 0x1b2   :  { %9941 = vst [vmem:[#allocation64_spill] sm:$0xff] %v7684_v56  ;;  %9942 = vst [vmem:[#allocation65_spill] sm:$0xff] %v7686_v8  ;;  %v850_v7 = vadd.f32 %v849_v0, %v6965_v29  ;;  %v1523_v6 = vadd.f32 %v1522_v2, %v6967_v30  ;;  %v851_v60 = vpop.f32.mrb[101].mxu0  ;;  %v1524_v21 = vpop.f32.mrb[101].mxu1 }
 0x1b3   :  { %9943 = vst [vmem:[#allocation66_spill] sm:$0xff] %v7688_v22  ;;  %9944 = vst [vmem:[#allocation67_spill] sm:$0xff] %v7690_v46  ;;  %v852_v50 = vadd.f32 %v851_v60, %v6970_v31  ;;  %v1525_v61 = vadd.f32 %v1524_v21, %v6972_v32  ;;  %v853_v27 = vpop.f32.mrb[102].mxu0  ;;  %v1526_v52 = vpop.f32.mrb[102].mxu1 }
 0x1b4   :  { %v2111_v43 = vmax.f32 %v850_v7, 0.0  ;;  %v854_v8 = vadd.f32 %v853_v27, %v6965_v29  ;;  %v1527_v55 = vadd.f32 %v1526_v52, %v6967_v30  ;;  %v855_v5 = vpop.f32.mrb[103].mxu0  ;;  %v1528_v1 = vpop.f32.mrb[103].mxu1  ;;  %v2113_v56 = vmax.f32 %v1523_v6, 0.0 }
 0x1b5   :  { %v2112_v59 = vmax.f32 %v852_v50, 0.0  ;;  %v856_v0 = vadd.f32 %v855_v5, %v6970_v31  ;;  %v1529_v2 = vadd.f32 %v1528_v1, %v6972_v32  ;;  %v2114_v60 = vmax.f32 %v1525_v61, 0.0  ;;  %v135_v50 = vld [vmem:[%s9866_s0 + $0x350] sm:$0xff] }
 0x1b6   :  { %v2115_v49 = vmax.f32 %v854_v8, 0.0  ;;  %v2117_v51 = vmax.f32 %v1527_v55, 0.0  ;;  %5670 = vmatmul.mubr.msk.bf16.gmra.mrb[208].mxu0 %vm359_vm1, %v209_v24  ;;  %5735 = vmatmul.mubr.msk.bf16.gmra.mrb[208].mxu1 %vm359_vm1, %v209_v24  ;;  %v136_v8 = vld [vmem:[%s9866_s0 + $0x358] sm:$0xff] }
 0x1b7   :  { %v2116_v7 = vmax.f32 %v856_v0, 0.0  ;;  %v2118_v21 = vmax.f32 %v1529_v2, 0.0  ;;  %1127 = vmatprep.mubr.bf16.mxu0 %v9885_v9  ;;  %1800 = vmatprep.mubr.bf16.mxu1 %v9885_v9  ;;  %v210_v46 = vpack.c.bf16 %v136_v8, %v135_v50 }
 0x1b8   :  { %v7710_v6 = vpack.c.bf16 %v2115_v49, %v2111_v43  ;;  %v7712_v27 = vpack.c.bf16 %v2117_v51, %v2113_v56 }
 0x1b9   :  { %v859_v24 = vpop.f32.mrb[104].mxu0  ;;  %v1532_v61 = vpop.f32.mrb[104].mxu1  ;;  %v7714_v52 = vpack.c.bf16 %v2116_v7, %v2112_v59  ;;  %v7716_v55 = vpack.c.bf16 %v2118_v21, %v2114_v60 }
 0x1ba   :  { %9945 = vst [vmem:[#allocation68_spill] sm:$0xff] %v7710_v6  ;;  %9946 = vst [vmem:[#allocation69_spill] sm:$0xff] %v7712_v27  ;;  %v860_v5 = vadd.f32 %v859_v24, %v6965_v29  ;;  %v1533_v1 = vadd.f32 %v1532_v61, %v6967_v30  ;;  %v861_v0 = vpop.f32.mrb[105].mxu0  ;;  %v1534_v2 = vpop.f32.mrb[105].mxu1 }
 0x1bb   :  { %9947 = vst [vmem:[#allocation70_spill] sm:$0xff] %v7714_v52  ;;  %9948 = vst [vmem:[#allocation71_spill] sm:$0xff] %v7716_v55  ;;  %v862_v22 = vadd.f32 %v861_v0, %v6970_v31  ;;  %v1535_v43 = vadd.f32 %v1534_v2, %v6972_v32  ;;  %v863_v49 = vpop.f32.mrb[106].mxu0  ;;  %v1536_v56 = vpop.f32.mrb[106].mxu1 }
 0x1bc   :  { %v2119_v51 = vmax.f32 %v860_v5, 0.0  ;;  %v864_v27 = vadd.f32 %v863_v49, %v6965_v29  ;;  %v1537_v59 = vadd.f32 %v1536_v56, %v6967_v30  ;;  %v865_v60 = vpop.f32.mrb[107].mxu0  ;;  %v1538_v7 = vpop.f32.mrb[107].mxu1  ;;  %v2121_v6 = vmax.f32 %v1533_v1, 0.0 }
 0x1bd   :  { %v2120_v21 = vmax.f32 %v862_v22, 0.0  ;;  %v866_v24 = vadd.f32 %v865_v60, %v6970_v31  ;;  %v1539_v61 = vadd.f32 %v1538_v7, %v6972_v32  ;;  %v2122_v0 = vmax.f32 %v1535_v43, 0.0  ;;  %v137_v22 = vld [vmem:[%s9866_s0 + $0x360] sm:$0xff] }
 0x1be   :  { %v2123_v50 = vmax.f32 %v864_v27, 0.0  ;;  %v2125_v8 = vmax.f32 %v1537_v59, 0.0  ;;  %5671 = vmatmul.mubr.msk.bf16.gmra.mrb[212].mxu0 %vm359_vm1, %v210_v46  ;;  %5736 = vmatmul.mubr.msk.bf16.gmra.mrb[212].mxu1 %vm359_vm1, %v210_v46  ;;  %v138_v27 = vld [vmem:[%s9866_s0 + $0x368] sm:$0xff] }
 0x1bf   :  { %v2124_v5 = vmax.f32 %v866_v24, 0.0  ;;  %v2126_v2 = vmax.f32 %v1539_v61, 0.0  ;;  %1137 = vmatprep.mubr.bf16.mxu0 %v9885_v9  ;;  %1810 = vmatprep.mubr.bf16.mxu1 %v9885_v9  ;;  %v211_v55 = vpack.c.bf16 %v138_v27, %v137_v22 }
 0x1c0   :  { %v7736_v1 = vpack.c.bf16 %v2123_v50, %v2119_v51  ;;  %v7738_v49 = vpack.c.bf16 %v2125_v8, %v2121_v6 }
 0x1c1   :  { %v869_v46 = vpop.f32.mrb[108].mxu0  ;;  %v1542_v43 = vpop.f32.mrb[108].mxu1  ;;  %v7740_v56 = vpack.c.bf16 %v2124_v5, %v2120_v21  ;;  %v7742_v59 = vpack.c.bf16 %v2126_v2, %v2122_v0 }
 0x1c2   :  { %9949 = vst [vmem:[#allocation72_spill] sm:$0xff] %v7736_v1  ;;  %9950 = vst [vmem:[#allocation73_spill] sm:$0xff] %v7738_v49  ;;  %v870_v60 = vadd.f32 %v869_v46, %v6965_v29  ;;  %v1543_v7 = vadd.f32 %v1542_v43, %v6967_v30  ;;  %v871_v24 = vpop.f32.mrb[109].mxu0  ;;  %v1544_v61 = vpop.f32.mrb[109].mxu1 }
 0x1c3   :  { %9951 = vst [vmem:[#allocation74_spill] sm:$0xff] %v7740_v56  ;;  %9952 = vst [vmem:[#allocation75_spill] sm:$0xff] %v7742_v59  ;;  %v872_v52 = vadd.f32 %v871_v24, %v6970_v31  ;;  %v1545_v51 = vadd.f32 %v1544_v61, %v6972_v32  ;;  %v873_v50 = vpop.f32.mrb[110].mxu0  ;;  %v1546_v6 = vpop.f32.mrb[110].mxu1 }
 0x1c4   :  { %v2127_v8 = vmax.f32 %v870_v60, 0.0  ;;  %v874_v49 = vadd.f32 %v873_v50, %v6965_v29  ;;  %v1547_v21 = vadd.f32 %v1546_v6, %v6967_v30  ;;  %v875_v0 = vpop.f32.mrb[111].mxu0  ;;  %v1548_v5 = vpop.f32.mrb[111].mxu1  ;;  %v2129_v1 = vmax.f32 %v1543_v7, 0.0 }
 0x1c5   :  { %v2128_v2 = vmax.f32 %v872_v52, 0.0  ;;  %v876_v46 = vadd.f32 %v875_v0, %v6970_v31  ;;  %v1549_v43 = vadd.f32 %v1548_v5, %v6972_v32  ;;  %v2130_v24 = vmax.f32 %v1545_v51, 0.0  ;;  %v139_v52 = vld [vmem:[%s9866_s0 + $0x370] sm:$0xff] }
 0x1c6   :  { %v2131_v22 = vmax.f32 %v874_v49, 0.0  ;;  %v2133_v27 = vmax.f32 %v1547_v21, 0.0  ;;  %5672 = vmatmul.mubr.msk.bf16.gmra.mrb[216].mxu0 %vm359_vm1, %v211_v55  ;;  %5737 = vmatmul.mubr.msk.bf16.gmra.mrb[216].mxu1 %vm359_vm1, %v211_v55  ;;  %v140_v49 = vld [vmem:[%s9866_s0 + $0x378] sm:$0xff] }
 0x1c7   :  { %v2132_v60 = vmax.f32 %v876_v46, 0.0  ;;  %v2134_v61 = vmax.f32 %v1549_v43, 0.0  ;;  %1147 = vmatprep.mubr.bf16.mxu0 %v9885_v9  ;;  %1820 = vmatprep.mubr.bf16.mxu1 %v9885_v9  ;;  %v212_v59 = vpack.c.bf16 %v140_v49, %v139_v52 }
 0x1c8   :  { %v7762_v7 = vpack.c.bf16 %v2131_v22, %v2127_v8  ;;  %v7764_v50 = vpack.c.bf16 %v2133_v27, %v2129_v1 }
 0x1c9   :  { %v879_v55 = vpop.f32.mrb[112].mxu0  ;;  %v1552_v51 = vpop.f32.mrb[112].mxu1  ;;  %v7766_v6 = vpack.c.bf16 %v2132_v60, %v2128_v2  ;;  %v7768_v21 = vpack.c.bf16 %v2134_v61, %v2130_v24 }
 0x1ca   :  { %9953 = vst [vmem:[#allocation76_spill] sm:$0xff] %v7762_v7  ;;  %9954 = vst [vmem:[#allocation77_spill] sm:$0xff] %v7764_v50  ;;  %v880_v0 = vadd.f32 %v879_v55, %v6965_v29  ;;  %v1553_v5 = vadd.f32 %v1552_v51, %v6967_v30  ;;  %v881_v46 = vpop.f32.mrb[113].mxu0  ;;  %v1554_v43 = vpop.f32.mrb[113].mxu1 }
 0x1cb   :  { %9955 = vst [vmem:[#allocation78_spill] sm:$0xff] %v7766_v6  ;;  %9956 = vst [vmem:[#allocation79_spill] sm:$0xff] %v7768_v21  ;;  %v882_v56 = vadd.f32 %v881_v46, %v6970_v31  ;;  %v1555_v8 = vadd.f32 %v1554_v43, %v6972_v32  ;;  %v883_v22 = vpop.f32.mrb[114].mxu0  ;;  %v1556_v1 = vpop.f32.mrb[114].mxu1 }
 0x1cc   :  { %v2135_v27 = vmax.f32 %v880_v0, 0.0  ;;  %v884_v50 = vadd.f32 %v883_v22, %v6965_v29  ;;  %v1557_v2 = vadd.f32 %v1556_v1, %v6967_v30  ;;  %v885_v24 = vpop.f32.mrb[115].mxu0  ;;  %v1558_v60 = vpop.f32.mrb[115].mxu1  ;;  %v2137_v7 = vmax.f32 %v1553_v5, 0.0 }
 0x1cd   :  { %v2136_v61 = vmax.f32 %v882_v56, 0.0  ;;  %v886_v55 = vadd.f32 %v885_v24, %v6970_v31  ;;  %v1559_v51 = vadd.f32 %v1558_v60, %v6972_v32  ;;  %v2138_v46 = vmax.f32 %v1555_v8, 0.0  ;;  %v141_v56 = vld [vmem:[%s9866_s0 + $0x380] sm:$0xff] }
 0x1ce   :  { %v2139_v52 = vmax.f32 %v884_v50, 0.0  ;;  %v2141_v49 = vmax.f32 %v1557_v2, 0.0  ;;  %5673 = vmatmul.mubr.msk.bf16.gmra.mrb[220].mxu0 %vm359_vm1, %v212_v59  ;;  %5738 = vmatmul.mubr.msk.bf16.gmra.mrb[220].mxu1 %vm359_vm1, %v212_v59  ;;  %v142_v50 = vld [vmem:[%s9866_s0 + $0x388] sm:$0xff] }
 0x1cf   :  { %v2140_v0 = vmax.f32 %v886_v55, 0.0  ;;  %v2142_v43 = vmax.f32 %v1559_v51, 0.0  ;;  %1157 = vmatprep.mubr.bf16.mxu0 %v9885_v9  ;;  %1830 = vmatprep.mubr.bf16.mxu1 %v9885_v9  ;;  %v213_v21 = vpack.c.bf16 %v142_v50, %v141_v56 }
 0x1d0   :  { %v7788_v5 = vpack.c.bf16 %v2139_v52, %v2135_v27  ;;  %v7790_v22 = vpack.c.bf16 %v2141_v49, %v2137_v7 }
 0x1d1   :  { %v889_v59 = vpop.f32.mrb[116].mxu0  ;;  %v1562_v8 = vpop.f32.mrb[116].mxu1  ;;  %v7792_v1 = vpack.c.bf16 %v2140_v0, %v2136_v61  ;;  %v7794_v2 = vpack.c.bf16 %v2142_v43, %v2138_v46 }
 0x1d2   :  { %9957 = vst [vmem:[#allocation80_spill] sm:$0xff] %v7788_v5  ;;  %9958 = vst [vmem:[#allocation81_spill] sm:$0xff] %v7790_v22  ;;  %v890_v24 = vadd.f32 %v889_v59, %v6965_v29  ;;  %v1563_v60 = vadd.f32 %v1562_v8, %v6967_v30  ;;  %v891_v55 = vpop.f32.mrb[117].mxu0  ;;  %v1564_v51 = vpop.f32.mrb[117].mxu1 }
 0x1d3   :  { %9959 = vst [vmem:[#allocation82_spill] sm:$0xff] %v7792_v1  ;;  %9960 = vst [vmem:[#allocation83_spill] sm:$0xff] %v7794_v2  ;;  %v892_v6 = vadd.f32 %v891_v55, %v6970_v31  ;;  %v1565_v27 = vadd.f32 %v1564_v51, %v6972_v32  ;;  %v893_v52 = vpop.f32.mrb[118].mxu0  ;;  %v1566_v7 = vpop.f32.mrb[118].mxu1 }
 0x1d4   :  { %v2143_v49 = vmax.f32 %v890_v24, 0.0  ;;  %v894_v22 = vadd.f32 %v893_v52, %v6965_v29  ;;  %v1567_v61 = vadd.f32 %v1566_v7, %v6967_v30  ;;  %v895_v46 = vpop.f32.mrb[119].mxu0  ;;  %v1568_v0 = vpop.f32.mrb[119].mxu1  ;;  %v2145_v5 = vmax.f32 %v1563_v60, 0.0 }
 0x1d5   :  { %v2144_v43 = vmax.f32 %v892_v6, 0.0  ;;  %v896_v59 = vadd.f32 %v895_v46, %v6970_v31  ;;  %v1569_v8 = vadd.f32 %v1568_v0, %v6972_v32  ;;  %v2146_v55 = vmax.f32 %v1565_v27, 0.0  ;;  %v143_v6 = vld [vmem:[%s9866_s0 + $0x390] sm:$0xff] }
 0x1d6   :  { %v2147_v56 = vmax.f32 %v894_v22, 0.0  ;;  %v2149_v50 = vmax.f32 %v1567_v61, 0.0  ;;  %5674 = vmatmul.mubr.msk.bf16.gmra.mrb[224].mxu0 %vm359_vm1, %v213_v21  ;;  %5739 = vmatmul.mubr.msk.bf16.gmra.mrb[224].mxu1 %vm359_vm1, %v213_v21  ;;  %v144_v22 = vld [vmem:[%s9866_s0 + $0x398] sm:$0xff] }
 0x1d7   :  { %v2148_v24 = vmax.f32 %v896_v59, 0.0  ;;  %v2150_v51 = vmax.f32 %v1569_v8, 0.0  ;;  %1167 = vmatprep.mubr.bf16.mxu0 %v9885_v9  ;;  %1840 = vmatprep.mubr.bf16.mxu1 %v9885_v9  ;;  %v214_v2 = vpack.c.bf16 %v144_v22, %v143_v6 }
 0x1d8   :  { %v7814_v60 = vpack.c.bf16 %v2147_v56, %v2143_v49  ;;  %v7816_v52 = vpack.c.bf16 %v2149_v50, %v2145_v5 }
 0x1d9   :  { %v899_v21 = vpop.f32.mrb[120].mxu0  ;;  %v1572_v27 = vpop.f32.mrb[120].mxu1  ;;  %v7818_v7 = vpack.c.bf16 %v2148_v24, %v2144_v43  ;;  %v7820_v61 = vpack.c.bf16 %v2150_v51, %v2146_v55 }
 0x1da   :  { %9961 = vst [vmem:[#allocation84_spill] sm:$0xff] %v7814_v60  ;;  %9962 = vst [vmem:[#allocation85_spill] sm:$0xff] %v7816_v52  ;;  %v900_v46 = vadd.f32 %v899_v21, %v6965_v29  ;;  %v1573_v0 = vadd.f32 %v1572_v27, %v6967_v30  ;;  %v901_v59 = vpop.f32.mrb[121].mxu0  ;;  %v1574_v8 = vpop.f32.mrb[121].mxu1 }
 0x1db   :  { %9963 = vst [vmem:[#allocation86_spill] sm:$0xff] %v7818_v7  ;;  %9964 = vst [vmem:[#allocation87_spill] sm:$0xff] %v7820_v61  ;;  %v902_v1 = vadd.f32 %v901_v59, %v6970_v31  ;;  %v1575_v49 = vadd.f32 %v1574_v8, %v6972_v32  ;;  %v903_v56 = vpop.f32.mrb[122].mxu0  ;;  %v1576_v5 = vpop.f32.mrb[122].mxu1 }
 0x1dc   :  { %v2151_v50 = vmax.f32 %v900_v46, 0.0  ;;  %v904_v52 = vadd.f32 %v903_v56, %v6965_v29  ;;  %v1577_v43 = vadd.f32 %v1576_v5, %v6967_v30  ;;  %v905_v55 = vpop.f32.mrb[123].mxu0  ;;  %v1578_v24 = vpop.f32.mrb[123].mxu1  ;;  %v2153_v60 = vmax.f32 %v1573_v0, 0.0 }
 0x1dd   :  { %v2152_v51 = vmax.f32 %v902_v1, 0.0  ;;  %v906_v21 = vadd.f32 %v905_v55, %v6970_v31  ;;  %v1579_v27 = vadd.f32 %v1578_v24, %v6972_v32  ;;  %v2154_v59 = vmax.f32 %v1575_v49, 0.0  ;;  %v145_v1 = vld [vmem:[%s9866_s0 + $0x3a0] sm:$0xff] }
 0x1de   :  { %v2155_v6 = vmax.f32 %v904_v52, 0.0  ;;  %v2157_v22 = vmax.f32 %v1577_v43, 0.0  ;;  %5675 = vmatmul.mubr.msk.bf16.gmra.mrb[228].mxu0 %vm359_vm1, %v214_v2  ;;  %5740 = vmatmul.mubr.msk.bf16.gmra.mrb[228].mxu1 %vm359_vm1, %v214_v2  ;;  %v146_v52 = vld [vmem:[%s9866_s0 + $0x3a8] sm:$0xff] }
 0x1df   :  { %v2156_v46 = vmax.f32 %v906_v21, 0.0  ;;  %v2158_v8 = vmax.f32 %v1579_v27, 0.0  ;;  %1177 = vmatprep.mubr.bf16.mxu0 %v9885_v9  ;;  %1850 = vmatprep.mubr.bf16.mxu1 %v9885_v9  ;;  %v215_v61 = vpack.c.bf16 %v146_v52, %v145_v1 }
 0x1e0   :  { %v7840_v0 = vpack.c.bf16 %v2155_v6, %v2151_v50  ;;  %v7842_v56 = vpack.c.bf16 %v2157_v22, %v2153_v60 }
 0x1e1   :  { %v909_v2 = vpop.f32.mrb[124].mxu0  ;;  %v1582_v49 = vpop.f32.mrb[124].mxu1  ;;  %v7844_v5 = vpack.c.bf16 %v2156_v46, %v2152_v51  ;;  %v7846_v43 = vpack.c.bf16 %v2158_v8, %v2154_v59 }
 0x1e2   :  { %9965 = vst [vmem:[#allocation88_spill] sm:$0xff] %v7840_v0  ;;  %9966 = vst [vmem:[#allocation89_spill] sm:$0xff] %v7842_v56  ;;  %v910_v55 = vadd.f32 %v909_v2, %v6965_v29  ;;  %v1583_v24 = vadd.f32 %v1582_v49, %v6967_v30  ;;  %v911_v21 = vpop.f32.mrb[125].mxu0  ;;  %v1584_v27 = vpop.f32.mrb[125].mxu1 }
 0x1e3   :  { %9967 = vst [vmem:[#allocation90_spill] sm:$0xff] %v7844_v5  ;;  %9968 = vst [vmem:[#allocation91_spill] sm:$0xff] %v7846_v43  ;;  %v912_v7 = vadd.f32 %v911_v21, %v6970_v31  ;;  %v1585_v50 = vadd.f32 %v1584_v27, %v6972_v32  ;;  %v913_v6 = vpop.f32.mrb[126].mxu0  ;;  %v1586_v60 = vpop.f32.mrb[126].mxu1 }
 0x1e4   :  { %v2159_v22 = vmax.f32 %v910_v55, 0.0  ;;  %v914_v56 = vadd.f32 %v913_v6, %v6965_v29  ;;  %v1587_v51 = vadd.f32 %v1586_v60, %v6967_v30  ;;  %v915_v59 = vpop.f32.mrb[127].mxu0  ;;  %v1588_v46 = vpop.f32.mrb[127].mxu1  ;;  %v2161_v0 = vmax.f32 %v1583_v24, 0.0 }
 0x1e5   :  { %v2160_v8 = vmax.f32 %v912_v7, 0.0  ;;  %v916_v2 = vadd.f32 %v915_v59, %v6970_v31  ;;  %v1589_v49 = vadd.f32 %v1588_v46, %v6972_v32  ;;  %v2162_v21 = vmax.f32 %v1585_v50, 0.0  ;;  %v147_v7 = vld [vmem:[%s9866_s0 + $0x3b0] sm:$0xff] }
 0x1e6   :  { %v2163_v1 = vmax.f32 %v914_v56, 0.0  ;;  %v2165_v52 = vmax.f32 %v1587_v51, 0.0  ;;  %5676 = vmatmul.mubr.msk.bf16.gmra.mrb[232].mxu0 %vm359_vm1, %v215_v61  ;;  %5741 = vmatmul.mubr.msk.bf16.gmra.mrb[232].mxu1 %vm359_vm1, %v215_v61  ;;  %v148_v56 = vld [vmem:[%s9866_s0 + $0x3b8] sm:$0xff] }
 0x1e7   :  { %v2164_v55 = vmax.f32 %v916_v2, 0.0  ;;  %v2166_v27 = vmax.f32 %v1589_v49, 0.0  ;;  %1187 = vmatprep.mubr.bf16.mxu0 %v9885_v9  ;;  %1860 = vmatprep.mubr.bf16.mxu1 %v9885_v9  ;;  %v216_v43 = vpack.c.bf16 %v148_v56, %v147_v7 }
 0x1e8   :  { %v7866_v24 = vpack.c.bf16 %v2163_v1, %v2159_v22  ;;  %v7868_v6 = vpack.c.bf16 %v2165_v52, %v2161_v0 }
 0x1e9   :  { %v919_v61 = vpop.f32.mrb[128].mxu0  ;;  %v1592_v50 = vpop.f32.mrb[128].mxu1  ;;  %v7870_v60 = vpack.c.bf16 %v2164_v55, %v2160_v8  ;;  %v7872_v51 = vpack.c.bf16 %v2166_v27, %v2162_v21 }
 0x1ea   :  { %9969 = vst [vmem:[#allocation92_spill] sm:$0xff] %v7866_v24  ;;  %9970 = vst [vmem:[#allocation93_spill] sm:$0xff] %v7868_v6  ;;  %v920_v59 = vadd.f32 %v919_v61, %v6965_v29  ;;  %v1593_v46 = vadd.f32 %v1592_v50, %v6967_v30  ;;  %v921_v2 = vpop.f32.mrb[129].mxu0  ;;  %v1594_v49 = vpop.f32.mrb[129].mxu1 }
 0x1eb   :  { %9971 = vst [vmem:[#allocation94_spill] sm:$0xff] %v7870_v60  ;;  %9972 = vst [vmem:[#allocation95_spill] sm:$0xff] %v7872_v51  ;;  %v922_v5 = vadd.f32 %v921_v2, %v6970_v31  ;;  %v1595_v22 = vadd.f32 %v1594_v49, %v6972_v32  ;;  %v923_v1 = vpop.f32.mrb[130].mxu0  ;;  %v1596_v0 = vpop.f32.mrb[130].mxu1 }
 0x1ec   :  { %v2167_v52 = vmax.f32 %v920_v59, 0.0  ;;  %v924_v6 = vadd.f32 %v923_v1, %v6965_v29  ;;  %v1597_v8 = vadd.f32 %v1596_v0, %v6967_v30  ;;  %v925_v21 = vpop.f32.mrb[131].mxu0  ;;  %v1598_v55 = vpop.f32.mrb[131].mxu1  ;;  %v2169_v24 = vmax.f32 %v1593_v46, 0.0 }
 0x1ed   :  { %v2168_v27 = vmax.f32 %v922_v5, 0.0  ;;  %v926_v61 = vadd.f32 %v925_v21, %v6970_v31  ;;  %v1599_v50 = vadd.f32 %v1598_v55, %v6972_v32  ;;  %v2170_v2 = vmax.f32 %v1595_v22, 0.0  ;;  %v149_v5 = vld [vmem:[%s9866_s0 + $0x3c0] sm:$0xff] }
 0x1ee   :  { %v2171_v7 = vmax.f32 %v924_v6, 0.0  ;;  %v2173_v56 = vmax.f32 %v1597_v8, 0.0  ;;  %5677 = vmatmul.mubr.msk.bf16.gmra.mrb[236].mxu0 %vm359_vm1, %v216_v43  ;;  %5742 = vmatmul.mubr.msk.bf16.gmra.mrb[236].mxu1 %vm359_vm1, %v216_v43  ;;  %v150_v6 = vld [vmem:[%s9866_s0 + $0x3c8] sm:$0xff] }
 0x1ef   :  { %v2172_v59 = vmax.f32 %v926_v61, 0.0  ;;  %v2174_v49 = vmax.f32 %v1599_v50, 0.0  ;;  %1197 = vmatprep.mubr.bf16.mxu0 %v9885_v9  ;;  %1870 = vmatprep.mubr.bf16.mxu1 %v9885_v9  ;;  %v217_v51 = vpack.c.bf16 %v150_v6, %v149_v5 }
 0x1f0   :  { %v7892_v46 = vpack.c.bf16 %v2171_v7, %v2167_v52  ;;  %v7894_v1 = vpack.c.bf16 %v2173_v56, %v2169_v24 }
 0x1f1   :  { %v929_v43 = vpop.f32.mrb[132].mxu0  ;;  %v1602_v22 = vpop.f32.mrb[132].mxu1  ;;  %v7896_v0 = vpack.c.bf16 %v2172_v59, %v2168_v27  ;;  %v7898_v8 = vpack.c.bf16 %v2174_v49, %v2170_v2 }
 0x1f2   :  { %9973 = vst [vmem:[#allocation96_spill] sm:$0xff] %v7892_v46  ;;  %9974 = vst [vmem:[#allocation97_spill] sm:$0xff] %v7894_v1  ;;  %v930_v21 = vadd.f32 %v929_v43, %v6965_v29  ;;  %v1603_v55 = vadd.f32 %v1602_v22, %v6967_v30  ;;  %v931_v61 = vpop.f32.mrb[133].mxu0  ;;  %v1604_v50 = vpop.f32.mrb[133].mxu1 }
 0x1f3   :  { %9975 = vst [vmem:[#allocation98_spill] sm:$0xff] %v7896_v0  ;;  %9976 = vst [vmem:[#allocation99_spill] sm:$0xff] %v7898_v8  ;;  %v932_v60 = vadd.f32 %v931_v61, %v6970_v31  ;;  %v1605_v52 = vadd.f32 %v1604_v50, %v6972_v32  ;;  %v933_v7 = vpop.f32.mrb[134].mxu0  ;;  %v1606_v24 = vpop.f32.mrb[134].mxu1 }
 0x1f4   :  { %v2175_v56 = vmax.f32 %v930_v21, 0.0  ;;  %v934_v1 = vadd.f32 %v933_v7, %v6965_v29  ;;  %v1607_v27 = vadd.f32 %v1606_v24, %v6967_v30  ;;  %v935_v2 = vpop.f32.mrb[135].mxu0  ;;  %v1608_v59 = vpop.f32.mrb[135].mxu1  ;;  %v2177_v46 = vmax.f32 %v1603_v55, 0.0 }
 0x1f5   :  { %v2176_v49 = vmax.f32 %v932_v60, 0.0  ;;  %v936_v43 = vadd.f32 %v935_v2, %v6970_v31  ;;  %v1609_v22 = vadd.f32 %v1608_v59, %v6972_v32  ;;  %v2178_v61 = vmax.f32 %v1605_v52, 0.0  ;;  %v151_v60 = vld [vmem:[%s9866_s0 + $0x3d0] sm:$0xff] }
 0x1f6   :  { %v2179_v5 = vmax.f32 %v934_v1, 0.0  ;;  %v2181_v6 = vmax.f32 %v1607_v27, 0.0  ;;  %5678 = vmatmul.mubr.msk.bf16.gmra.mrb[240].mxu0 %vm359_vm1, %v217_v51  ;;  %5743 = vmatmul.mubr.msk.bf16.gmra.mrb[240].mxu1 %vm359_vm1, %v217_v51  ;;  %v152_v1 = vld [vmem:[%s9866_s0 + $0x3d8] sm:$0xff] }
 0x1f7   :  { %v2180_v21 = vmax.f32 %v936_v43, 0.0  ;;  %v2182_v50 = vmax.f32 %v1609_v22, 0.0  ;;  %1207 = vmatprep.mubr.bf16.mxu0 %v9885_v9  ;;  %1880 = vmatprep.mubr.bf16.mxu1 %v9885_v9  ;;  %v218_v8 = vpack.c.bf16 %v152_v1, %v151_v60 }
 0x1f8   :  { %v7918_v55 = vpack.c.bf16 %v2179_v5, %v2175_v56  ;;  %v7920_v7 = vpack.c.bf16 %v2181_v6, %v2177_v46 }
 0x1f9   :  { %v939_v51 = vpop.f32.mrb[136].mxu0  ;;  %v1612_v52 = vpop.f32.mrb[136].mxu1  ;;  %v7922_v24 = vpack.c.bf16 %v2180_v21, %v2176_v49  ;;  %v7924_v27 = vpack.c.bf16 %v2182_v50, %v2178_v61 }
 0x1fa   :  { %9977 = vst [vmem:[#allocation100_spill] sm:$0xff] %v7918_v55  ;;  %9978 = vst [vmem:[#allocation101_spill] sm:$0xff] %v7920_v7  ;;  %v940_v2 = vadd.f32 %v939_v51, %v6965_v29  ;;  %v1613_v59 = vadd.f32 %v1612_v52, %v6967_v30  ;;  %v941_v43 = vpop.f32.mrb[137].mxu0  ;;  %v1614_v22 = vpop.f32.mrb[137].mxu1 }
 0x1fb   :  { %9979 = vst [vmem:[#allocation102_spill] sm:$0xff] %v7922_v24  ;;  %9980 = vst [vmem:[#allocation103_spill] sm:$0xff] %v7924_v27  ;;  %v942_v0 = vadd.f32 %v941_v43, %v6970_v31  ;;  %v1615_v56 = vadd.f32 %v1614_v22, %v6972_v32  ;;  %v943_v5 = vpop.f32.mrb[138].mxu0  ;;  %v1616_v46 = vpop.f32.mrb[138].mxu1 }
 0x1fc   :  { %v2183_v6 = vmax.f32 %v940_v2, 0.0  ;;  %v944_v7 = vadd.f32 %v943_v5, %v6965_v29  ;;  %v1617_v49 = vadd.f32 %v1616_v46, %v6967_v30  ;;  %v945_v61 = vpop.f32.mrb[139].mxu0  ;;  %v1618_v21 = vpop.f32.mrb[139].mxu1  ;;  %v2185_v55 = vmax.f32 %v1613_v59, 0.0 }
 0x1fd   :  { %v2184_v50 = vmax.f32 %v942_v0, 0.0  ;;  %v946_v51 = vadd.f32 %v945_v61, %v6970_v31  ;;  %v1619_v52 = vadd.f32 %v1618_v21, %v6972_v32  ;;  %v2186_v43 = vmax.f32 %v1615_v56, 0.0  ;;  %v153_v0 = vld [vmem:[%s9866_s0 + $0x3e0] sm:$0xff] }
 0x1fe   :  { %v2187_v60 = vmax.f32 %v944_v7, 0.0  ;;  %v2189_v1 = vmax.f32 %v1617_v49, 0.0  ;;  %5679 = vmatmul.mubr.msk.bf16.gmra.mrb[244].mxu0 %vm359_vm1, %v218_v8  ;;  %5744 = vmatmul.mubr.msk.bf16.gmra.mrb[244].mxu1 %vm359_vm1, %v218_v8  ;;  %v154_v7 = vld [vmem:[%s9866_s0 + $0x3e8] sm:$0xff] }
 0x1ff   :  { %v2188_v2 = vmax.f32 %v946_v51, 0.0  ;;  %v2190_v22 = vmax.f32 %v1619_v52, 0.0  ;;  %1217 = vmatprep.mubr.bf16.mxu0 %v9885_v9  ;;  %1890 = vmatprep.mubr.bf16.mxu1 %v9885_v9  ;;  %v219_v27 = vpack.c.bf16 %v154_v7, %v153_v0 }
 0x200   :  { %v7944_v59 = vpack.c.bf16 %v2187_v60, %v2183_v6  ;;  %v7946_v5 = vpack.c.bf16 %v2189_v1, %v2185_v55 }
 0x201   :  { %v949_v8 = vpop.f32.mrb[140].mxu0  ;;  %v1622_v56 = vpop.f32.mrb[140].mxu1  ;;  %v7948_v46 = vpack.c.bf16 %v2188_v2, %v2184_v50  ;;  %v7950_v49 = vpack.c.bf16 %v2190_v22, %v2186_v43 }
 0x202   :  { %9981 = vst [vmem:[#allocation104_spill] sm:$0xff] %v7944_v59  ;;  %9982 = vst [vmem:[#allocation105_spill] sm:$0xff] %v7946_v5  ;;  %v950_v61 = vadd.f32 %v949_v8, %v6965_v29  ;;  %v1623_v21 = vadd.f32 %v1622_v56, %v6967_v30  ;;  %v951_v51 = vpop.f32.mrb[141].mxu0  ;;  %v1624_v52 = vpop.f32.mrb[141].mxu1 }
 0x203   :  { %9983 = vst [vmem:[#allocation106_spill] sm:$0xff] %v7950_v49  ;;  %v952_v24 = vadd.f32 %v951_v51, %v6970_v31  ;;  %v1625_v6 = vadd.f32 %v1624_v52, %v6972_v32  ;;  %v953_v60 = vpop.f32.mrb[142].mxu0  ;;  %v1626_v55 = vpop.f32.mrb[142].mxu1 }
 0x204   :  { %v2191_v1 = vmax.f32 %v950_v61, 0.0  ;;  %v954_v5 = vadd.f32 %v953_v60, %v6965_v29  ;;  %v1627_v50 = vadd.f32 %v1626_v55, %v6967_v30  ;;  %v955_v43 = vpop.f32.mrb[143].mxu0  ;;  %v1628_v2 = vpop.f32.mrb[143].mxu1  ;;  %v2193_v59 = vmax.f32 %v1623_v21, 0.0 }
 0x205   :  { %v2192_v22 = vmax.f32 %v952_v24, 0.0  ;;  %v956_v8 = vadd.f32 %v955_v43, %v6970_v31  ;;  %v1629_v56 = vadd.f32 %v1628_v2, %v6972_v32  ;;  %v2194_v51 = vmax.f32 %v1625_v6, 0.0  ;;  %v155_v24 = vld [vmem:[%s9866_s0 + $0x3f0] sm:$0xff] }
 0x206   :  { %v2195_v0 = vmax.f32 %v954_v5, 0.0  ;;  %v2197_v7 = vmax.f32 %v1627_v50, 0.0  ;;  %5680 = vmatmul.mubr.msk.bf16.gmra.mrb[248].mxu0 %vm359_vm1, %v219_v27  ;;  %5745 = vmatmul.mubr.msk.bf16.gmra.mrb[248].mxu1 %vm359_vm1, %v219_v27  ;;  %v156_v5 = vld [vmem:[%s9866_s0 + $0x3f8] sm:$0xff] }
 0x207   :  { %v2196_v61 = vmax.f32 %v956_v8, 0.0  ;;  %v2198_v52 = vmax.f32 %v1629_v56, 0.0  ;;  %1227 = vmatprep.mubr.bf16.mxu0 %v9885_v9  ;;  %1900 = vmatprep.mubr.bf16.mxu1 %v9885_v9  ;;  %v220_v56 = vpack.c.bf16 %v156_v5, %v155_v24 }
 0x208   :  { %v7970_v21 = vpack.c.bf16 %v2195_v0, %v2191_v1  ;;  %v7972_v60 = vpack.c.bf16 %v2197_v7, %v2193_v59 }
 0x209   :  { %v959_v27 = vpop.f32.mrb[144].mxu0  ;;  %v1632_v6 = vpop.f32.mrb[144].mxu1  ;;  %v7974_v55 = vpack.c.bf16 %v2196_v61, %v2192_v22  ;;  %v7976_v50 = vpack.c.bf16 %v2198_v52, %v2194_v51 }
 0x20a   :  { %9984 = vst [vmem:[#allocation107_spill] sm:$0xff] %v7970_v21  ;;  %9985 = vst [vmem:[#allocation108_spill] sm:$0xff] %v7972_v60  ;;  %v960_v9 = vadd.f32 %v959_v27, %v6965_v29  ;;  %v1633_v43 = vadd.f32 %v1632_v6, %v6967_v30  ;;  %v961_v2 = vpop.f32.mrb[145].mxu0  ;;  %v1634_v8 = vpop.f32.mrb[145].mxu1 }
 0x20b   :  { %v962_v49 = vadd.f32 %v961_v2, %v6970_v31  ;;  %v1635_v1 = vadd.f32 %v1634_v8, %v6972_v32  ;;  %v963_v0 = vpop.f32.mrb[146].mxu0  ;;  %v1636_v59 = vpop.f32.mrb[146].mxu1 }
 0x20c   :  { %v2199_v7 = vmax.f32 %v960_v9, 0.0  ;;  %v964_v60 = vadd.f32 %v963_v0, %v6965_v29  ;;  %v1637_v22 = vadd.f32 %v1636_v59, %v6967_v30  ;;  %v965_v51 = vpop.f32.mrb[147].mxu0  ;;  %v1638_v61 = vpop.f32.mrb[147].mxu1  ;;  %v2201_v21 = vmax.f32 %v1633_v43, 0.0 }
 0x20d   :  { %v2200_v52 = vmax.f32 %v962_v49, 0.0  ;;  %v966_v27 = vadd.f32 %v965_v51, %v6970_v31  ;;  %v1639_v6 = vadd.f32 %v1638_v61, %v6972_v32  ;;  %v2202_v2 = vmax.f32 %v1635_v1, 0.0 }
 0x20e   :  { %v2203_v24 = vmax.f32 %v964_v60, 0.0  ;;  %v2205_v5 = vmax.f32 %v1637_v22, 0.0  ;;  %5681 = vmatmul.mubr.msk.bf16.gmra.mrb[252].mxu0 %vm359_vm1, %v220_v56  ;;  %5746 = vmatmul.mubr.msk.bf16.gmra.mrb[252].mxu1 %vm359_vm1, %v220_v56 }
 0x20f   :  { %v2204_v9 = vmax.f32 %v966_v27, 0.0  ;;  %v2206_v8 = vmax.f32 %v1639_v6, 0.0  ;;  %3107 = vmatprep.mubr.bf16.mxu1 %v7004_v3  ;;  %3780 = vmatprep.mubr.bf16.mxu0 %v7006_v4 }
 0x210   :  { %v7990_v0 = vpack.c.bf16 %v2203_v24, %v2199_v7  ;;  %v7992_v49 = vpack.c.bf16 %v2205_v5, %v2201_v21 }
 0x211   :  { %v969_v59 = vpop.f32.mrb[148].mxu0  ;;  %v1642_v51 = vpop.f32.mrb[148].mxu1  ;;  %v7994_v43 = vpack.c.bf16 %v2204_v9, %v2200_v52  ;;  %v7996_v60 = vpack.c.bf16 %v2206_v8, %v2202_v2 }
 0x212   :  { %9986 = vst [vmem:[#allocation109_spill] sm:$0xff] %v7992_v49  ;;  %v970_v22 = vadd.f32 %v969_v59, %v6965_v29  ;;  %v1643_v56 = vadd.f32 %v1642_v51, %v6967_v30  ;;  %v971_v1 = vpop.f32.mrb[149].mxu0  ;;  %v1644_v61 = vpop.f32.mrb[149].mxu1 }
 0x213   :  { %v972_v3 = vadd.f32 %v971_v1, %v6970_v31  ;;  %v1645_v4 = vadd.f32 %v1644_v61, %v6972_v32  ;;  %v973_v7 = vpop.f32.mrb[150].mxu0  ;;  %v1646_v27 = vpop.f32.mrb[150].mxu1 }
 0x214   :  { %v2207_v21 = vmax.f32 %v970_v22, 0.0  ;;  %v974_v6 = vadd.f32 %v973_v7, %v6965_v29  ;;  %v1647_v52 = vadd.f32 %v1646_v27, %v6967_v30  ;;  %v975_v24 = vpop.f32.mrb[151].mxu0  ;;  %v1648_v5 = vpop.f32.mrb[151].mxu1  ;;  %v2209_v59 = vmax.f32 %v1643_v56, 0.0 }
 0x215   :  { %v2208_v2 = vmax.f32 %v972_v3, 0.0  ;;  %v976_v9 = vadd.f32 %v975_v24, %v6970_v31  ;;  %v1649_v8 = vadd.f32 %v1648_v5, %v6972_v32  ;;  %v2210_v1 = vmax.f32 %v1645_v4, 0.0 }
 0x216   :  { %v2211_v51 = vmax.f32 %v974_v6, 0.0  ;;  %v2213_v49 = vmax.f32 %v1647_v52, 0.0  ;;  %3108 = vmatmul.mubr.bf16.vlgmr.msra.gmra.mrb[0].mxu1 %v7000_v62  ;;  %3781 = vmatmul.mubr.bf16.vlgmr.msra.gmra.mrb[0].mxu0 %v7002_v63 }
 0x217   :  { %v2212_v22 = vmax.f32 %v976_v9, 0.0  ;;  %v2214_v61 = vmax.f32 %v1649_v8, 0.0  ;;  %3117 = vmatprep.mubr.bf16.mxu1 %v7042_v44  ;;  %3790 = vmatprep.mubr.bf16.mxu0 %v7044_v45 }
 0x218   :  { %v8010_v7 = vpack.c.bf16 %v2211_v51, %v2207_v21  ;;  %v8012_v3 = vpack.c.bf16 %v2213_v49, %v2209_v59 }
 0x219   :  { %v979_v27 = vpop.f32.mrb[152].mxu0  ;;  %v1652_v24 = vpop.f32.mrb[152].mxu1  ;;  %v8014_v56 = vpack.c.bf16 %v2212_v22, %v2208_v2  ;;  %v8016_v6 = vpack.c.bf16 %v2214_v61, %v2210_v1 }
 0x21a   :  { %v980_v62 = vadd.f32 %v979_v27, %v6965_v29  ;;  %v1653_v63 = vadd.f32 %v1652_v24, %v6967_v30  ;;  %v981_v4 = vpop.f32.mrb[153].mxu0  ;;  %v1654_v52 = vpop.f32.mrb[153].mxu1 }
 0x21b   :  { %v982_v44 = vadd.f32 %v981_v4, %v6970_v31  ;;  %v1655_v45 = vadd.f32 %v1654_v52, %v6972_v32  ;;  %v983_v21 = vpop.f32.mrb[154].mxu0  ;;  %v1656_v5 = vpop.f32.mrb[154].mxu1 }
 0x21c   :  { %v2215_v49 = vmax.f32 %v980_v62, 0.0  ;;  %v984_v9 = vadd.f32 %v983_v21, %v6965_v29  ;;  %v1657_v2 = vadd.f32 %v1656_v5, %v6967_v30  ;;  %v985_v8 = vpop.f32.mrb[155].mxu0  ;;  %v1658_v59 = vpop.f32.mrb[155].mxu1  ;;  %v2217_v61 = vmax.f32 %v1653_v63, 0.0 }
 0x21d   :  { %v2216_v51 = vmax.f32 %v982_v44, 0.0  ;;  %v986_v1 = vadd.f32 %v985_v8, %v6970_v31  ;;  %v1659_v22 = vadd.f32 %v1658_v59, %v6972_v32  ;;  %v2218_v4 = vmax.f32 %v1655_v45, 0.0 }
 0x21e   :  { %v2219_v27 = vmax.f32 %v984_v9, 0.0  ;;  %v2221_v24 = vmax.f32 %v1657_v2, 0.0  ;;  %3118 = vmatmul.mubr.bf16.gmra.mrb[4].mxu1 %v7026_v36  ;;  %3791 = vmatmul.mubr.bf16.gmra.mrb[4].mxu0 %v7028_v37 }
 0x21f   :  { %v2220_v62 = vmax.f32 %v986_v1, 0.0  ;;  %v2222_v52 = vmax.f32 %v1659_v22, 0.0  ;;  %3127 = vmatprep.mubr.bf16.mxu1 %v7068_v16  ;;  %3800 = vmatprep.mubr.bf16.mxu0 %v7070_v17 }
 0x220   :  { %v8030_v21 = vpack.c.bf16 %v2219_v27, %v2215_v49  ;;  %v8032_v44 = vpack.c.bf16 %v2221_v24, %v2217_v61 }
 0x221   :  { %v989_v5 = vpop.f32.mrb[156].mxu0  ;;  %v1662_v8 = vpop.f32.mrb[156].mxu1  ;;  %v8034_v63 = vpack.c.bf16 %v2220_v62, %v2216_v51  ;;  %v8036_v9 = vpack.c.bf16 %v2222_v52, %v2218_v4 }
 0x222   :  { %v990_v36 = vadd.f32 %v989_v5, %v6965_v29  ;;  %v1663_v37 = vadd.f32 %v1662_v8, %v6967_v30  ;;  %v991_v45 = vpop.f32.mrb[157].mxu0  ;;  %v1664_v2 = vpop.f32.mrb[157].mxu1 }
 0x223   :  { %v992_v16 = vadd.f32 %v991_v45, %v6970_v31  ;;  %v1665_v17 = vadd.f32 %v1664_v2, %v6972_v32  ;;  %v993_v49 = vpop.f32.mrb[158].mxu0  ;;  %v1666_v59 = vpop.f32.mrb[158].mxu1 }
 0x224   :  { %v2223_v1 = vmax.f32 %v990_v36, 0.0  ;;  %v994_v22 = vadd.f32 %v993_v49, %v6965_v29  ;;  %v1667_v51 = vadd.f32 %v1666_v59, %v6967_v30  ;;  %v995_v61 = vpop.f32.mrb[159].mxu0  ;;  %v1668_v27 = vpop.f32.mrb[159].mxu1  ;;  %v2225_v52 = vmax.f32 %v1663_v37, 0.0 }
 0x225   :  { %v2224_v24 = vmax.f32 %v992_v16, 0.0  ;;  %v996_v4 = vadd.f32 %v995_v61, %v6970_v31  ;;  %v1669_v62 = vadd.f32 %v1668_v27, %v6972_v32  ;;  %v2226_v45 = vmax.f32 %v1665_v17, 0.0 }
 0x226   :  { %v2227_v5 = vmax.f32 %v994_v22, 0.0  ;;  %v2229_v8 = vmax.f32 %v1667_v51, 0.0  ;;  %3128 = vmatmul.mubr.bf16.gmra.mrb[8].mxu1 %v7064_v12  ;;  %3801 = vmatmul.mubr.bf16.gmra.mrb[8].mxu0 %v7066_v13 }
 0x227   :  { %v2228_v36 = vmax.f32 %v996_v4, 0.0  ;;  %v2230_v2 = vmax.f32 %v1669_v62, 0.0  ;;  %3137 = vmatprep.mubr.bf16.mxu1 %v7094_v57  ;;  %3810 = vmatprep.mubr.bf16.mxu0 %v7096_v58 }
 0x228   :  { %v8050_v49 = vpack.c.bf16 %v2227_v5, %v2223_v1  ;;  %v8052_v16 = vpack.c.bf16 %v2229_v8, %v2225_v52 }
 0x229   :  { %v999_v59 = vpop.f32.mrb[160].mxu0  ;;  %v1672_v61 = vpop.f32.mrb[160].mxu1  ;;  %v8054_v37 = vpack.c.bf16 %v2228_v36, %v2224_v24  ;;  %v8056_v22 = vpack.c.bf16 %v2230_v2, %v2226_v45 }
 0x22a   :  { %v1000_v12 = vadd.f32 %v999_v59, %v6965_v29  ;;  %v1673_v13 = vadd.f32 %v1672_v61, %v6967_v30  ;;  %v1001_v17 = vpop.f32.mrb[161].mxu0  ;;  %v1674_v51 = vpop.f32.mrb[161].mxu1 }
 0x22b   :  { %v1002_v57 = vadd.f32 %v1001_v17, %v6970_v31  ;;  %v1675_v58 = vadd.f32 %v1674_v51, %v6972_v32  ;;  %v1003_v1 = vpop.f32.mrb[162].mxu0  ;;  %v1676_v27 = vpop.f32.mrb[162].mxu1 }
 0x22c   :  { %v2231_v4 = vmax.f32 %v1000_v12, 0.0  ;;  %v1004_v62 = vadd.f32 %v1003_v1, %v6965_v29  ;;  %v1677_v24 = vadd.f32 %v1676_v27, %v6967_v30  ;;  %v1005_v52 = vpop.f32.mrb[163].mxu0  ;;  %v1678_v5 = vpop.f32.mrb[163].mxu1  ;;  %v2233_v2 = vmax.f32 %v1673_v13, 0.0 }
 0x22d   :  { %v2232_v8 = vmax.f32 %v1002_v57, 0.0  ;;  %v1006_v45 = vadd.f32 %v1005_v52, %v6970_v31  ;;  %v1679_v36 = vadd.f32 %v1678_v5, %v6972_v32  ;;  %v2234_v17 = vmax.f32 %v1675_v58, 0.0 }
 0x22e   :  { %v2235_v59 = vmax.f32 %v1004_v62, 0.0  ;;  %v2237_v61 = vmax.f32 %v1677_v24, 0.0  ;;  %3138 = vmatmul.mubr.bf16.gmra.mrb[12].mxu1 %v7090_v53  ;;  %3811 = vmatmul.mubr.bf16.gmra.mrb[12].mxu0 %v7092_v54 }
 0x22f   :  { %v2236_v12 = vmax.f32 %v1006_v45, 0.0  ;;  %v2238_v51 = vmax.f32 %v1679_v36, 0.0  ;;  %3147 = vmatprep.mubr.bf16.mxu1 %v7120_v41  ;;  %3820 = vmatprep.mubr.bf16.mxu0 %v7122_v42 }
 0x230   :  { %v8070_v1 = vpack.c.bf16 %v2235_v59, %v2231_v4  ;;  %v8072_v57 = vpack.c.bf16 %v2237_v61, %v2233_v2 }
 0x231   :  { %v1009_v27 = vpop.f32.mrb[164].mxu0  ;;  %v1682_v52 = vpop.f32.mrb[164].mxu1  ;;  %v8074_v13 = vpack.c.bf16 %v2236_v12, %v2232_v8  ;;  %v8076_v62 = vpack.c.bf16 %v2238_v51, %v2234_v17 }
 0x232   :  { %v1010_v53 = vadd.f32 %v1009_v27, %v6965_v29  ;;  %v1683_v54 = vadd.f32 %v1682_v52, %v6967_v30  ;;  %v1011_v58 = vpop.f32.mrb[165].mxu0  ;;  %v1684_v24 = vpop.f32.mrb[165].mxu1 }
 0x233   :  { %v1012_v41 = vadd.f32 %v1011_v58, %v6970_v31  ;;  %v1685_v42 = vadd.f32 %v1684_v24, %v6972_v32  ;;  %v1013_v4 = vpop.f32.mrb[166].mxu0  ;;  %v1686_v5 = vpop.f32.mrb[166].mxu1 }
 0x234   :  { %v2239_v45 = vmax.f32 %v1010_v53, 0.0  ;;  %v1014_v36 = vadd.f32 %v1013_v4, %v6965_v29  ;;  %v1687_v8 = vadd.f32 %v1686_v5, %v6967_v30  ;;  %v1015_v2 = vpop.f32.mrb[167].mxu0  ;;  %v1688_v59 = vpop.f32.mrb[167].mxu1  ;;  %v2241_v51 = vmax.f32 %v1683_v54, 0.0 }
 0x235   :  { %v2240_v61 = vmax.f32 %v1012_v41, 0.0  ;;  %v1016_v17 = vadd.f32 %v1015_v2, %v6970_v31  ;;  %v1689_v12 = vadd.f32 %v1688_v59, %v6972_v32  ;;  %v2242_v58 = vmax.f32 %v1685_v42, 0.0 }
 0x236   :  { %v2243_v27 = vmax.f32 %v1014_v36, 0.0  ;;  %v2245_v52 = vmax.f32 %v1687_v8, 0.0  ;;  %3148 = vmatmul.mubr.bf16.gmra.mrb[16].mxu1 %v7116_v35  ;;  %3821 = vmatmul.mubr.bf16.gmra.mrb[16].mxu0 %v7118_v38 }
 0x237   :  { %v2244_v53 = vmax.f32 %v1016_v17, 0.0  ;;  %v2246_v24 = vmax.f32 %v1689_v12, 0.0  ;;  %3157 = vmatprep.mubr.bf16.mxu1 %v7158_v33  ;;  %3830 = vmatprep.mubr.bf16.mxu0 %v7160_v34 }
 0x238   :  { %v8090_v4 = vpack.c.bf16 %v2243_v27, %v2239_v45  ;;  %v8092_v41 = vpack.c.bf16 %v2245_v52, %v2241_v51 }
 0x239   :  { %v1019_v5 = vpop.f32.mrb[168].mxu0  ;;  %v1692_v2 = vpop.f32.mrb[168].mxu1  ;;  %v8094_v54 = vpack.c.bf16 %v2244_v53, %v2240_v61  ;;  %v8096_v36 = vpack.c.bf16 %v2246_v24, %v2242_v58 }
 0x23a   :  { %v1020_v35 = vadd.f32 %v1019_v5, %v6965_v29  ;;  %v1693_v38 = vadd.f32 %v1692_v2, %v6967_v30  ;;  %v1021_v42 = vpop.f32.mrb[169].mxu0  ;;  %v1694_v8 = vpop.f32.mrb[169].mxu1 }
 0x23b   :  { %v1022_v33 = vadd.f32 %v1021_v42, %v6970_v31  ;;  %v1695_v34 = vadd.f32 %v1694_v8, %v6972_v32  ;;  %v1023_v45 = vpop.f32.mrb[170].mxu0  ;;  %v1696_v59 = vpop.f32.mrb[170].mxu1 }
 0x23c   :  { %v2247_v17 = vmax.f32 %v1020_v35, 0.0  ;;  %v1024_v12 = vadd.f32 %v1023_v45, %v6965_v29  ;;  %v1697_v61 = vadd.f32 %v1696_v59, %v6967_v30  ;;  %v1025_v51 = vpop.f32.mrb[171].mxu0  ;;  %v1698_v27 = vpop.f32.mrb[171].mxu1  ;;  %v2249_v24 = vmax.f32 %v1693_v38, 0.0 }
 0x23d   :  { %v2248_v52 = vmax.f32 %v1022_v33, 0.0  ;;  %v1026_v58 = vadd.f32 %v1025_v51, %v6970_v31  ;;  %v1699_v53 = vadd.f32 %v1698_v27, %v6972_v32  ;;  %v2250_v42 = vmax.f32 %v1695_v34, 0.0 }
 0x23e   :  { %v2251_v5 = vmax.f32 %v1024_v12, 0.0  ;;  %v2253_v2 = vmax.f32 %v1697_v61, 0.0  ;;  %3158 = vmatmul.mubr.bf16.gmra.mrb[20].mxu1 %v7142_v19  ;;  %3831 = vmatmul.mubr.bf16.gmra.mrb[20].mxu0 %v7144_v20 }
 0x23f   :  { %v2252_v35 = vmax.f32 %v1026_v58, 0.0  ;;  %v2254_v8 = vmax.f32 %v1699_v53, 0.0  ;;  %3167 = vmatprep.mubr.bf16.mxu1 %v7184_v23  ;;  %3840 = vmatprep.mubr.bf16.mxu0 %v7186_v25 }
 0x240   :  { %v8110_v45 = vpack.c.bf16 %v2251_v5, %v2247_v17  ;;  %v8112_v33 = vpack.c.bf16 %v2253_v2, %v2249_v24 }
 0x241   :  { %v1029_v59 = vpop.f32.mrb[172].mxu0  ;;  %v1702_v51 = vpop.f32.mrb[172].mxu1  ;;  %v8114_v38 = vpack.c.bf16 %v2252_v35, %v2248_v52  ;;  %v8116_v12 = vpack.c.bf16 %v2254_v8, %v2250_v42 }
 0x242   :  { %v1030_v19 = vadd.f32 %v1029_v59, %v6965_v29  ;;  %v1703_v20 = vadd.f32 %v1702_v51, %v6967_v30  ;;  %v1031_v34 = vpop.f32.mrb[173].mxu0  ;;  %v1704_v61 = vpop.f32.mrb[173].mxu1 }
 0x243   :  { %v1032_v23 = vadd.f32 %v1031_v34, %v6970_v31  ;;  %v1705_v25 = vadd.f32 %v1704_v61, %v6972_v32  ;;  %v1033_v17 = vpop.f32.mrb[174].mxu0  ;;  %v1706_v27 = vpop.f32.mrb[174].mxu1 }
 0x244   :  { %v2255_v58 = vmax.f32 %v1030_v19, 0.0  ;;  %v1034_v53 = vadd.f32 %v1033_v17, %v6965_v29  ;;  %v1707_v52 = vadd.f32 %v1706_v27, %v6967_v30  ;;  %v1035_v24 = vpop.f32.mrb[175].mxu0  ;;  %v1708_v5 = vpop.f32.mrb[175].mxu1  ;;  %v2257_v8 = vmax.f32 %v1703_v20, 0.0 }
 0x245   :  { %v2256_v2 = vmax.f32 %v1032_v23, 0.0  ;;  %v1036_v42 = vadd.f32 %v1035_v24, %v6970_v31  ;;  %v1709_v35 = vadd.f32 %v1708_v5, %v6972_v32  ;;  %v2258_v34 = vmax.f32 %v1705_v25, 0.0 }
 0x246   :  { %v2259_v59 = vmax.f32 %v1034_v53, 0.0  ;;  %v2261_v51 = vmax.f32 %v1707_v52, 0.0  ;;  %3168 = vmatmul.mubr.bf16.gmra.mrb[24].mxu1 %v7180_v15  ;;  %3841 = vmatmul.mubr.bf16.gmra.mrb[24].mxu0 %v7182_v18 }
 0x247   :  { %v2260_v19 = vmax.f32 %v1036_v42, 0.0  ;;  %v2262_v61 = vmax.f32 %v1709_v35, 0.0  ;;  %3177 = vmatprep.mubr.bf16.mxu1 %v7210_v26  ;;  %3850 = vmatprep.mubr.bf16.mxu0 %v7212_v28 }
 0x248   :  { %v8130_v17 = vpack.c.bf16 %v2259_v59, %v2255_v58  ;;  %v8132_v23 = vpack.c.bf16 %v2261_v51, %v2257_v8 }
 0x249   :  { %v1039_v27 = vpop.f32.mrb[176].mxu0  ;;  %v1712_v24 = vpop.f32.mrb[176].mxu1  ;;  %v8134_v20 = vpack.c.bf16 %v2260_v19, %v2256_v2  ;;  %v8136_v53 = vpack.c.bf16 %v2262_v61, %v2258_v34 }
 0x24a   :  { %v1040_v15 = vadd.f32 %v1039_v27, %v6965_v29  ;;  %v1713_v18 = vadd.f32 %v1712_v24, %v6967_v30  ;;  %v1041_v25 = vpop.f32.mrb[177].mxu0  ;;  %v1714_v52 = vpop.f32.mrb[177].mxu1 }
 0x24b   :  { %v1042_v26 = vadd.f32 %v1041_v25, %v6970_v31  ;;  %v1715_v28 = vadd.f32 %v1714_v52, %v6972_v32  ;;  %v1043_v58 = vpop.f32.mrb[178].mxu0  ;;  %v1716_v5 = vpop.f32.mrb[178].mxu1 }
 0x24c   :  { %v2263_v42 = vmax.f32 %v1040_v15, 0.0  ;;  %v1044_v35 = vadd.f32 %v1043_v58, %v6965_v29  ;;  %v1717_v2 = vadd.f32 %v1716_v5, %v6967_v30  ;;  %v1045_v8 = vpop.f32.mrb[179].mxu0  ;;  %v1718_v59 = vpop.f32.mrb[179].mxu1  ;;  %v2265_v61 = vmax.f32 %v1713_v18, 0.0 }
 0x24d   :  { %v2264_v51 = vmax.f32 %v1042_v26, 0.0  ;;  %v1046_v34 = vadd.f32 %v1045_v8, %v6970_v31  ;;  %v1719_v19 = vadd.f32 %v1718_v59, %v6972_v32  ;;  %v2266_v25 = vmax.f32 %v1715_v28, 0.0 }
 0x24e   :  { %v2267_v27 = vmax.f32 %v1044_v35, 0.0  ;;  %v2269_v24 = vmax.f32 %v1717_v2, 0.0  ;;  %3178 = vmatmul.mubr.bf16.gmra.mrb[28].mxu1 %v7206_v11  ;;  %3851 = vmatmul.mubr.bf16.gmra.mrb[28].mxu0 %v7208_v14 }
 0x24f   :  { %v2268_v15 = vmax.f32 %v1046_v34, 0.0  ;;  %v2270_v52 = vmax.f32 %v1719_v19, 0.0  ;;  %3187 = vmatprep.mubr.bf16.mxu1 %v7236_v47  ;;  %3860 = vmatprep.mubr.bf16.mxu0 %v7238_v48 }
 0x250   :  { %v8150_v58 = vpack.c.bf16 %v2267_v27, %v2263_v42  ;;  %v8152_v26 = vpack.c.bf16 %v2269_v24, %v2265_v61 }
 0x251   :  { %v1049_v5 = vpop.f32.mrb[180].mxu0  ;;  %v1722_v8 = vpop.f32.mrb[180].mxu1  ;;  %v8154_v18 = vpack.c.bf16 %v2268_v15, %v2264_v51  ;;  %v8156_v35 = vpack.c.bf16 %v2270_v52, %v2266_v25 }
 0x252   :  { %9987 = vst [vmem:[#allocation110_spill] sm:$0xff] %v8150_v58  ;;  %9988 = vst [vmem:[#allocation111_spill] sm:$0xff] %v8152_v26  ;;  %v1050_v11 = vadd.f32 %v1049_v5, %v6965_v29  ;;  %v1723_v14 = vadd.f32 %v1722_v8, %v6967_v30  ;;  %v1051_v28 = vpop.f32.mrb[181].mxu0  ;;  %v1724_v2 = vpop.f32.mrb[181].mxu1 }
 0x253   :  { %9989 = vst [vmem:[#allocation112_spill] sm:$0xff] %v8156_v35  ;;  %v1052_v47 = vadd.f32 %v1051_v28, %v6970_v31  ;;  %v1725_v48 = vadd.f32 %v1724_v2, %v6972_v32  ;;  %v1053_v42 = vpop.f32.mrb[182].mxu0  ;;  %v1726_v59 = vpop.f32.mrb[182].mxu1  ;;  %v10147_v35 = vld [vmem:[#allocation86_spill] sm:$0xff] }
 0x254   :  { %v2271_v34 = vmax.f32 %v1050_v11, 0.0  ;;  %v1054_v19 = vadd.f32 %v1053_v42, %v6965_v29  ;;  %v1727_v51 = vadd.f32 %v1726_v59, %v6967_v30  ;;  %v1055_v61 = vpop.f32.mrb[183].mxu0  ;;  %v1728_v27 = vpop.f32.mrb[183].mxu1  ;;  %v2273_v52 = vmax.f32 %v1723_v14, 0.0  ;;  %v9990_v42 = vld [vmem:[#allocation7_spill] sm:$0xff]  ;;  %v9991_v59 = vld [vmem:[#allocation8_spill] sm:$0xff] }
 0x255   :  { %v2272_v24 = vmax.f32 %v1052_v47, 0.0  ;;  %v1056_v25 = vadd.f32 %v1055_v61, %v6970_v31  ;;  %v1729_v15 = vadd.f32 %v1728_v27, %v6972_v32  ;;  %v2274_v28 = vmax.f32 %v1725_v48, 0.0 }
 0x256   :  { %v2275_v5 = vmax.f32 %v1054_v19, 0.0  ;;  %v2277_v8 = vmax.f32 %v1727_v51, 0.0  ;;  %3188 = vmatmul.mubr.bf16.gmra.mrb[32].mxu1 %v7232_v39  ;;  %3861 = vmatmul.mubr.bf16.gmra.mrb[32].mxu0 %v7234_v40 }
 0x257   :  { %v2276_v11 = vmax.f32 %v1056_v25, 0.0  ;;  %v2278_v2 = vmax.f32 %v1729_v15, 0.0  ;;  %3197 = vmatprep.mubr.bf16.mxu1 %v9990_v42  ;;  %3870 = vmatprep.mubr.bf16.mxu0 %v9991_v59 }
 0x258   :  { %v8170_v26 = vpack.c.bf16 %v2275_v5, %v2271_v34  ;;  %v8172_v47 = vpack.c.bf16 %v2277_v8, %v2273_v52 }
 0x259   :  { %v1059_v61 = vpop.f32.mrb[184].mxu0  ;;  %v1732_v27 = vpop.f32.mrb[184].mxu1  ;;  %v8174_v14 = vpack.c.bf16 %v2276_v11, %v2272_v24  ;;  %v8176_v19 = vpack.c.bf16 %v2278_v2, %v2274_v28 }
 0x25a   :  { %9992 = vst [vmem:[#allocation7_spill] sm:$0xff] %v8170_v26  ;;  %9993 = vst [vmem:[#allocation8_spill] sm:$0xff] %v8172_v47  ;;  %v1060_v39 = vadd.f32 %v1059_v61, %v6965_v29  ;;  %v1733_v40 = vadd.f32 %v1732_v27, %v6967_v30  ;;  %v1061_v48 = vpop.f32.mrb[185].mxu0  ;;  %v1734_v51 = vpop.f32.mrb[185].mxu1 }
 0x25b   :  { %9994 = vst [vmem:[#allocation113_spill] sm:$0xff] %v8174_v14  ;;  %9995 = vst [vmem:[#allocation114_spill] sm:$0xff] %v8176_v19  ;;  %v1062_v25 = vadd.f32 %v1061_v48, %v6970_v31  ;;  %v1735_v15 = vadd.f32 %v1734_v51, %v6972_v32  ;;  %v1063_v34 = vpop.f32.mrb[186].mxu0  ;;  %v1736_v5 = vpop.f32.mrb[186].mxu1  ;;  %v9996_v48 = vld [vmem:[#allocation5_spill] sm:$0xff]  ;;  %v9997_v51 = vld [vmem:[#allocation6_spill] sm:$0xff] }
 0x25c   :  { %v2279_v52 = vmax.f32 %v1060_v39, 0.0  ;;  %v1064_v8 = vadd.f32 %v1063_v34, %v6965_v29  ;;  %v1737_v24 = vadd.f32 %v1736_v5, %v6967_v30  ;;  %v1065_v11 = vpop.f32.mrb[187].mxu0  ;;  %v1738_v28 = vpop.f32.mrb[187].mxu1  ;;  %v2281_v61 = vmax.f32 %v1733_v40, 0.0  ;;  %v9998_v34 = vld [vmem:[#allocation11_spill] sm:$0xff]  ;;  %v9999_v5 = vld [vmem:[#allocation12_spill] sm:$0xff] }
 0x25d   :  { %v2280_v2 = vmax.f32 %v1062_v25, 0.0  ;;  %v1066_v42 = vadd.f32 %v1065_v11, %v6970_v31  ;;  %v1739_v59 = vadd.f32 %v1738_v28, %v6972_v32  ;;  %v2282_v26 = vmax.f32 %v1735_v15, 0.0 }
 0x25e   :  { %v2283_v27 = vmax.f32 %v1064_v8, 0.0  ;;  %v2285_v47 = vmax.f32 %v1737_v24, 0.0  ;;  %3198 = vmatmul.mubr.bf16.gmra.mrb[36].mxu1 %v9996_v48  ;;  %3871 = vmatmul.mubr.bf16.gmra.mrb[36].mxu0 %v9997_v51 }
 0x25f   :  { %v2284_v39 = vmax.f32 %v1066_v42, 0.0  ;;  %v2286_v19 = vmax.f32 %v1739_v59, 0.0  ;;  %3207 = vmatprep.mubr.bf16.mxu1 %v9998_v34  ;;  %3880 = vmatprep.mubr.bf16.mxu0 %v9999_v5 }
 0x260   :  { %v8190_v14 = vpack.c.bf16 %v2283_v27, %v2279_v52  ;;  %v8192_v25 = vpack.c.bf16 %v2285_v47, %v2281_v61 }
 0x261   :  { %v1069_v11 = vpop.f32.mrb[188].mxu0  ;;  %v1742_v28 = vpop.f32.mrb[188].mxu1  ;;  %v8194_v40 = vpack.c.bf16 %v2284_v39, %v2280_v2  ;;  %v8196_v8 = vpack.c.bf16 %v2286_v19, %v2282_v26 }
 0x262   :  { %10000 = vst [vmem:[#allocation5_spill] sm:$0xff] %v8190_v14  ;;  %10001 = vst [vmem:[#allocation6_spill] sm:$0xff] %v8192_v25  ;;  %v1070_v24 = vadd.f32 %v1069_v11, %v6965_v29  ;;  %v1743_v15 = vadd.f32 %v1742_v28, %v6967_v30  ;;  %v1071_v42 = vpop.f32.mrb[189].mxu0  ;;  %v1744_v59 = vpop.f32.mrb[189].mxu1 }
 0x263   :  { %10002 = vst [vmem:[#allocation11_spill] sm:$0xff] %v8194_v40  ;;  %10003 = vst [vmem:[#allocation12_spill] sm:$0xff] %v8196_v8  ;;  %v1072_v48 = vadd.f32 %v1071_v42, %v6970_v31  ;;  %v1745_v51 = vadd.f32 %v1744_v59, %v6972_v32  ;;  %v1073_v52 = vpop.f32.mrb[190].mxu0  ;;  %v1746_v27 = vpop.f32.mrb[190].mxu1  ;;  %v10004_v42 = vld [vmem:[#allocation9_spill] sm:$0xff]  ;;  %v10005_v59 = vld [vmem:[#allocation10_spill] sm:$0xff] }
 0x264   :  { %v2287_v47 = vmax.f32 %v1070_v24, 0.0  ;;  %v1074_v61 = vadd.f32 %v1073_v52, %v6965_v29  ;;  %v1747_v2 = vadd.f32 %v1746_v27, %v6967_v30  ;;  %v1075_v39 = vpop.f32.mrb[191].mxu0  ;;  %v1748_v26 = vpop.f32.mrb[191].mxu1  ;;  %v2289_v11 = vmax.f32 %v1743_v15, 0.0  ;;  %v10006_v52 = vld [vmem:[#allocation15_spill] sm:$0xff]  ;;  %v10007_v27 = vld [vmem:[#allocation16_spill] sm:$0xff] }
 0x265   :  { %v2288_v19 = vmax.f32 %v1072_v48, 0.0  ;;  %v1076_v34 = vadd.f32 %v1075_v39, %v6970_v31  ;;  %v1749_v5 = vadd.f32 %v1748_v26, %v6972_v32  ;;  %v2290_v14 = vmax.f32 %v1745_v51, 0.0 }
 0x266   :  { %v2291_v28 = vmax.f32 %v1074_v61, 0.0  ;;  %v2293_v25 = vmax.f32 %v1747_v2, 0.0  ;;  %3208 = vmatmul.mubr.bf16.gmra.mrb[40].mxu1 %v10004_v42  ;;  %3881 = vmatmul.mubr.bf16.gmra.mrb[40].mxu0 %v10005_v59 }
 0x267   :  { %v2292_v24 = vmax.f32 %v1076_v34, 0.0  ;;  %v2294_v8 = vmax.f32 %v1749_v5, 0.0  ;;  %3217 = vmatprep.mubr.bf16.mxu1 %v10006_v52  ;;  %3890 = vmatprep.mubr.bf16.mxu0 %v10007_v27 }
 0x268   :  { %v8210_v40 = vpack.c.bf16 %v2291_v28, %v2287_v47  ;;  %v8212_v48 = vpack.c.bf16 %v2293_v25, %v2289_v11 }
 0x269   :  { %v1079_v39 = vpop.f32.mrb[192].mxu0  ;;  %v1752_v26 = vpop.f32.mrb[192].mxu1  ;;  %v8214_v15 = vpack.c.bf16 %v2292_v24, %v2288_v19  ;;  %v8216_v61 = vpack.c.bf16 %v2294_v8, %v2290_v14 }
 0x26a   :  { %10008 = vst [vmem:[#allocation9_spill] sm:$0xff] %v8210_v40  ;;  %10009 = vst [vmem:[#allocation10_spill] sm:$0xff] %v8212_v48  ;;  %v1080_v2 = vadd.f32 %v1079_v39, %v6965_v29  ;;  %v1753_v51 = vadd.f32 %v1752_v26, %v6967_v30  ;;  %v1081_v34 = vpop.f32.mrb[193].mxu0  ;;  %v1754_v5 = vpop.f32.mrb[193].mxu1 }
 0x26b   :  { %10010 = vst [vmem:[#allocation15_spill] sm:$0xff] %v8214_v15  ;;  %10011 = vst [vmem:[#allocation16_spill] sm:$0xff] %v8216_v61  ;;  %v1082_v42 = vadd.f32 %v1081_v34, %v6970_v31  ;;  %v1755_v59 = vadd.f32 %v1754_v5, %v6972_v32  ;;  %v1083_v47 = vpop.f32.mrb[194].mxu0  ;;  %v1756_v28 = vpop.f32.mrb[194].mxu1  ;;  %v10012_v34 = vld [vmem:[#allocation13_spill] sm:$0xff]  ;;  %v10013_v5 = vld [vmem:[#allocation14_spill] sm:$0xff] }
 0x26c   :  { %v2295_v25 = vmax.f32 %v1080_v2, 0.0  ;;  %v1084_v11 = vadd.f32 %v1083_v47, %v6965_v29  ;;  %v1757_v19 = vadd.f32 %v1756_v28, %v6967_v30  ;;  %v1085_v24 = vpop.f32.mrb[195].mxu0  ;;  %v1758_v14 = vpop.f32.mrb[195].mxu1  ;;  %v2297_v39 = vmax.f32 %v1753_v51, 0.0  ;;  %v10014_v47 = vld [vmem:[#allocation19_spill] sm:$0xff]  ;;  %v10015_v28 = vld [vmem:[#allocation20_spill] sm:$0xff] }
 0x26d   :  { %v2296_v8 = vmax.f32 %v1082_v42, 0.0  ;;  %v1086_v52 = vadd.f32 %v1085_v24, %v6970_v31  ;;  %v1759_v27 = vadd.f32 %v1758_v14, %v6972_v32  ;;  %v2298_v40 = vmax.f32 %v1755_v59, 0.0 }
 0x26e   :  { %v2299_v26 = vmax.f32 %v1084_v11, 0.0  ;;  %v2301_v48 = vmax.f32 %v1757_v19, 0.0  ;;  %3218 = vmatmul.mubr.bf16.gmra.mrb[44].mxu1 %v10012_v34  ;;  %3891 = vmatmul.mubr.bf16.gmra.mrb[44].mxu0 %v10013_v5 }
 0x26f   :  { %v2300_v2 = vmax.f32 %v1086_v52, 0.0  ;;  %v2302_v61 = vmax.f32 %v1759_v27, 0.0  ;;  %3227 = vmatprep.mubr.bf16.mxu1 %v10014_v47  ;;  %3900 = vmatprep.mubr.bf16.mxu0 %v10015_v28 }
 0x270   :  { %v8230_v15 = vpack.c.bf16 %v2299_v26, %v2295_v25  ;;  %v8232_v42 = vpack.c.bf16 %v2301_v48, %v2297_v39 }
 0x271   :  { %v1089_v24 = vpop.f32.mrb[196].mxu0  ;;  %v1762_v14 = vpop.f32.mrb[196].mxu1  ;;  %v8234_v51 = vpack.c.bf16 %v2300_v2, %v2296_v8  ;;  %v8236_v11 = vpack.c.bf16 %v2302_v61, %v2298_v40 }
 0x272   :  { %10016 = vst [vmem:[#allocation13_spill] sm:$0xff] %v8230_v15  ;;  %10017 = vst [vmem:[#allocation14_spill] sm:$0xff] %v8232_v42  ;;  %v1090_v19 = vadd.f32 %v1089_v24, %v6965_v29  ;;  %v1763_v59 = vadd.f32 %v1762_v14, %v6967_v30  ;;  %v1091_v52 = vpop.f32.mrb[197].mxu0  ;;  %v1764_v27 = vpop.f32.mrb[197].mxu1 }
 0x273   :  { %10018 = vst [vmem:[#allocation19_spill] sm:$0xff] %v8234_v51  ;;  %10019 = vst [vmem:[#allocation20_spill] sm:$0xff] %v8236_v11  ;;  %v1092_v34 = vadd.f32 %v1091_v52, %v6970_v31  ;;  %v1765_v5 = vadd.f32 %v1764_v27, %v6972_v32  ;;  %v1093_v25 = vpop.f32.mrb[198].mxu0  ;;  %v1766_v26 = vpop.f32.mrb[198].mxu1  ;;  %v10020_v52 = vld [vmem:[#allocation17_spill] sm:$0xff]  ;;  %v10021_v27 = vld [vmem:[#allocation18_spill] sm:$0xff] }
 0x274   :  { %v2303_v48 = vmax.f32 %v1090_v19, 0.0  ;;  %v1094_v39 = vadd.f32 %v1093_v25, %v6965_v29  ;;  %v1767_v8 = vadd.f32 %v1766_v26, %v6967_v30  ;;  %v1095_v2 = vpop.f32.mrb[199].mxu0  ;;  %v1768_v40 = vpop.f32.mrb[199].mxu1  ;;  %v2305_v24 = vmax.f32 %v1763_v59, 0.0  ;;  %v10022_v25 = vld [vmem:[#allocation23_spill] sm:$0xff]  ;;  %v10023_v26 = vld [vmem:[#allocation24_spill] sm:$0xff] }
 0x275   :  { %v2304_v61 = vmax.f32 %v1092_v34, 0.0  ;;  %v1096_v47 = vadd.f32 %v1095_v2, %v6970_v31  ;;  %v1769_v28 = vadd.f32 %v1768_v40, %v6972_v32  ;;  %v2306_v15 = vmax.f32 %v1765_v5, 0.0 }
 0x276   :  { %v2307_v14 = vmax.f32 %v1094_v39, 0.0  ;;  %v2309_v42 = vmax.f32 %v1767_v8, 0.0  ;;  %3228 = vmatmul.mubr.bf16.gmra.mrb[48].mxu1 %v10020_v52  ;;  %3901 = vmatmul.mubr.bf16.gmra.mrb[48].mxu0 %v10021_v27 }
 0x277   :  { %v2308_v19 = vmax.f32 %v1096_v47, 0.0  ;;  %v2310_v11 = vmax.f32 %v1769_v28, 0.0  ;;  %3237 = vmatprep.mubr.bf16.mxu1 %v10022_v25  ;;  %3910 = vmatprep.mubr.bf16.mxu0 %v10023_v26 }
 0x278   :  { %v8250_v51 = vpack.c.bf16 %v2307_v14, %v2303_v48  ;;  %v8252_v34 = vpack.c.bf16 %v2309_v42, %v2305_v24 }
 0x279   :  { %v1099_v2 = vpop.f32.mrb[200].mxu0  ;;  %v1772_v40 = vpop.f32.mrb[200].mxu1  ;;  %v8254_v59 = vpack.c.bf16 %v2308_v19, %v2304_v61  ;;  %v8256_v39 = vpack.c.bf16 %v2310_v11, %v2306_v15 }
 0x27a   :  { %10024 = vst [vmem:[#allocation17_spill] sm:$0xff] %v8250_v51  ;;  %10025 = vst [vmem:[#allocation18_spill] sm:$0xff] %v8252_v34  ;;  %v1100_v8 = vadd.f32 %v1099_v2, %v6965_v29  ;;  %v1773_v5 = vadd.f32 %v1772_v40, %v6967_v30  ;;  %v1101_v47 = vpop.f32.mrb[201].mxu0  ;;  %v1774_v28 = vpop.f32.mrb[201].mxu1 }
 0x27b   :  { %10026 = vst [vmem:[#allocation23_spill] sm:$0xff] %v8254_v59  ;;  %10027 = vst [vmem:[#allocation24_spill] sm:$0xff] %v8256_v39  ;;  %v1102_v52 = vadd.f32 %v1101_v47, %v6970_v31  ;;  %v1775_v27 = vadd.f32 %v1774_v28, %v6972_v32  ;;  %v1103_v48 = vpop.f32.mrb[202].mxu0  ;;  %v1776_v14 = vpop.f32.mrb[202].mxu1  ;;  %v10028_v47 = vld [vmem:[#allocation21_spill] sm:$0xff]  ;;  %v10029_v28 = vld [vmem:[#allocation22_spill] sm:$0xff] }
 0x27c   :  { %v2311_v42 = vmax.f32 %v1100_v8, 0.0  ;;  %v1104_v24 = vadd.f32 %v1103_v48, %v6965_v29  ;;  %v1777_v61 = vadd.f32 %v1776_v14, %v6967_v30  ;;  %v1105_v19 = vpop.f32.mrb[203].mxu0  ;;  %v1778_v15 = vpop.f32.mrb[203].mxu1  ;;  %v2313_v2 = vmax.f32 %v1773_v5, 0.0  ;;  %v10030_v48 = vld [vmem:[#allocation27_spill] sm:$0xff]  ;;  %v10031_v14 = vld [vmem:[#allocation28_spill] sm:$0xff] }
 0x27d   :  { %v2312_v11 = vmax.f32 %v1102_v52, 0.0  ;;  %v1106_v25 = vadd.f32 %v1105_v19, %v6970_v31  ;;  %v1779_v26 = vadd.f32 %v1778_v15, %v6972_v32  ;;  %v2314_v51 = vmax.f32 %v1775_v27, 0.0 }
 0x27e   :  { %v2315_v40 = vmax.f32 %v1104_v24, 0.0  ;;  %v2317_v34 = vmax.f32 %v1777_v61, 0.0  ;;  %3238 = vmatmul.mubr.bf16.gmra.mrb[52].mxu1 %v10028_v47  ;;  %3911 = vmatmul.mubr.bf16.gmra.mrb[52].mxu0 %v10029_v28 }
 0x27f   :  { %v2316_v8 = vmax.f32 %v1106_v25, 0.0  ;;  %v2318_v39 = vmax.f32 %v1779_v26, 0.0  ;;  %3247 = vmatprep.mubr.bf16.mxu1 %v10030_v48  ;;  %3920 = vmatprep.mubr.bf16.mxu0 %v10031_v14 }
 0x280   :  { %v8270_v59 = vpack.c.bf16 %v2315_v40, %v2311_v42  ;;  %v8272_v52 = vpack.c.bf16 %v2317_v34, %v2313_v2 }
 0x281   :  { %v1109_v19 = vpop.f32.mrb[204].mxu0  ;;  %v1782_v15 = vpop.f32.mrb[204].mxu1  ;;  %v8274_v5 = vpack.c.bf16 %v2316_v8, %v2312_v11  ;;  %v8276_v24 = vpack.c.bf16 %v2318_v39, %v2314_v51 }
 0x282   :  { %10032 = vst [vmem:[#allocation21_spill] sm:$0xff] %v8270_v59  ;;  %10033 = vst [vmem:[#allocation22_spill] sm:$0xff] %v8272_v52  ;;  %v1110_v61 = vadd.f32 %v1109_v19, %v6965_v29  ;;  %v1783_v27 = vadd.f32 %v1782_v15, %v6967_v30  ;;  %v1111_v25 = vpop.f32.mrb[205].mxu0  ;;  %v1784_v26 = vpop.f32.mrb[205].mxu1 }
 0x283   :  { %10034 = vst [vmem:[#allocation27_spill] sm:$0xff] %v8274_v5  ;;  %10035 = vst [vmem:[#allocation28_spill] sm:$0xff] %v8276_v24  ;;  %v1112_v47 = vadd.f32 %v1111_v25, %v6970_v31  ;;  %v1785_v28 = vadd.f32 %v1784_v26, %v6972_v32  ;;  %v1113_v42 = vpop.f32.mrb[206].mxu0  ;;  %v1786_v40 = vpop.f32.mrb[206].mxu1  ;;  %v10036_v25 = vld [vmem:[#allocation25_spill] sm:$0xff]  ;;  %v10037_v26 = vld [vmem:[#allocation26_spill] sm:$0xff] }
 0x284   :  { %v2319_v34 = vmax.f32 %v1110_v61, 0.0  ;;  %v1114_v2 = vadd.f32 %v1113_v42, %v6965_v29  ;;  %v1787_v11 = vadd.f32 %v1786_v40, %v6967_v30  ;;  %v1115_v8 = vpop.f32.mrb[207].mxu0  ;;  %v1788_v51 = vpop.f32.mrb[207].mxu1  ;;  %v2321_v19 = vmax.f32 %v1783_v27, 0.0  ;;  %v10038_v42 = vld [vmem:[#allocation31_spill] sm:$0xff]  ;;  %v10039_v40 = vld [vmem:[#allocation32_spill] sm:$0xff] }
 0x285   :  { %v2320_v39 = vmax.f32 %v1112_v47, 0.0  ;;  %v1116_v48 = vadd.f32 %v1115_v8, %v6970_v31  ;;  %v1789_v14 = vadd.f32 %v1788_v51, %v6972_v32  ;;  %v2322_v59 = vmax.f32 %v1785_v28, 0.0 }
 0x286   :  { %v2323_v15 = vmax.f32 %v1114_v2, 0.0  ;;  %v2325_v52 = vmax.f32 %v1787_v11, 0.0  ;;  %3248 = vmatmul.mubr.bf16.gmra.mrb[56].mxu1 %v10036_v25  ;;  %3921 = vmatmul.mubr.bf16.gmra.mrb[56].mxu0 %v10037_v26 }
 0x287   :  { %v2324_v61 = vmax.f32 %v1116_v48, 0.0  ;;  %v2326_v24 = vmax.f32 %v1789_v14, 0.0  ;;  %3257 = vmatprep.mubr.bf16.mxu1 %v10038_v42  ;;  %3930 = vmatprep.mubr.bf16.mxu0 %v10039_v40 }
 0x288   :  { %v8290_v5 = vpack.c.bf16 %v2323_v15, %v2319_v34  ;;  %v8292_v47 = vpack.c.bf16 %v2325_v52, %v2321_v19 }
 0x289   :  { %v1119_v8 = vpop.f32.mrb[208].mxu0  ;;  %v1792_v51 = vpop.f32.mrb[208].mxu1  ;;  %v8294_v27 = vpack.c.bf16 %v2324_v61, %v2320_v39  ;;  %v8296_v2 = vpack.c.bf16 %v2326_v24, %v2322_v59 }
 0x28a   :  { %10040 = vst [vmem:[#allocation25_spill] sm:$0xff] %v8290_v5  ;;  %10041 = vst [vmem:[#allocation26_spill] sm:$0xff] %v8292_v47  ;;  %v1120_v11 = vadd.f32 %v1119_v8, %v6965_v29  ;;  %v1793_v28 = vadd.f32 %v1792_v51, %v6967_v30  ;;  %v1121_v48 = vpop.f32.mrb[209].mxu0  ;;  %v1794_v14 = vpop.f32.mrb[209].mxu1 }
 0x28b   :  { %10042 = vst [vmem:[#allocation31_spill] sm:$0xff] %v8294_v27  ;;  %10043 = vst [vmem:[#allocation32_spill] sm:$0xff] %v8296_v2  ;;  %v1122_v25 = vadd.f32 %v1121_v48, %v6970_v31  ;;  %v1795_v26 = vadd.f32 %v1794_v14, %v6972_v32  ;;  %v1123_v34 = vpop.f32.mrb[210].mxu0  ;;  %v1796_v15 = vpop.f32.mrb[210].mxu1  ;;  %v10044_v48 = vld [vmem:[#allocation29_spill] sm:$0xff]  ;;  %v10045_v14 = vld [vmem:[#allocation30_spill] sm:$0xff] }
 0x28c   :  { %v2327_v52 = vmax.f32 %v1120_v11, 0.0  ;;  %v1124_v19 = vadd.f32 %v1123_v34, %v6965_v29  ;;  %v1797_v39 = vadd.f32 %v1796_v15, %v6967_v30  ;;  %v1125_v61 = vpop.f32.mrb[211].mxu0  ;;  %v1798_v59 = vpop.f32.mrb[211].mxu1  ;;  %v2329_v8 = vmax.f32 %v1793_v28, 0.0  ;;  %v10046_v34 = vld [vmem:[#allocation35_spill] sm:$0xff]  ;;  %v10047_v15 = vld [vmem:[#allocation36_spill] sm:$0xff] }
 0x28d   :  { %v2328_v24 = vmax.f32 %v1122_v25, 0.0  ;;  %v1126_v42 = vadd.f32 %v1125_v61, %v6970_v31  ;;  %v1799_v40 = vadd.f32 %v1798_v59, %v6972_v32  ;;  %v2330_v5 = vmax.f32 %v1795_v26, 0.0 }
 0x28e   :  { %v2331_v51 = vmax.f32 %v1124_v19, 0.0  ;;  %v2333_v47 = vmax.f32 %v1797_v39, 0.0  ;;  %3258 = vmatmul.mubr.bf16.gmra.mrb[60].mxu1 %v10044_v48  ;;  %3931 = vmatmul.mubr.bf16.gmra.mrb[60].mxu0 %v10045_v14 }
 0x28f   :  { %v2332_v11 = vmax.f32 %v1126_v42, 0.0  ;;  %v2334_v2 = vmax.f32 %v1799_v40, 0.0  ;;  %3267 = vmatprep.mubr.bf16.mxu1 %v10046_v34  ;;  %3940 = vmatprep.mubr.bf16.mxu0 %v10047_v15 }
 0x290   :  { %v8310_v27 = vpack.c.bf16 %v2331_v51, %v2327_v52  ;;  %v8312_v25 = vpack.c.bf16 %v2333_v47, %v2329_v8 }
 0x291   :  { %v1129_v61 = vpop.f32.mrb[212].mxu0  ;;  %v1802_v59 = vpop.f32.mrb[212].mxu1  ;;  %v8314_v28 = vpack.c.bf16 %v2332_v11, %v2328_v24  ;;  %v8316_v19 = vpack.c.bf16 %v2334_v2, %v2330_v5 }
 0x292   :  { %10048 = vst [vmem:[#allocation29_spill] sm:$0xff] %v8310_v27  ;;  %10049 = vst [vmem:[#allocation30_spill] sm:$0xff] %v8312_v25  ;;  %v1130_v39 = vadd.f32 %v1129_v61, %v6965_v29  ;;  %v1803_v26 = vadd.f32 %v1802_v59, %v6967_v30  ;;  %v1131_v42 = vpop.f32.mrb[213].mxu0  ;;  %v1804_v40 = vpop.f32.mrb[213].mxu1 }
 0x293   :  { %10050 = vst [vmem:[#allocation35_spill] sm:$0xff] %v8314_v28  ;;  %10051 = vst [vmem:[#allocation36_spill] sm:$0xff] %v8316_v19  ;;  %v1132_v48 = vadd.f32 %v1131_v42, %v6970_v31  ;;  %v1805_v14 = vadd.f32 %v1804_v40, %v6972_v32  ;;  %v1133_v52 = vpop.f32.mrb[214].mxu0  ;;  %v1806_v51 = vpop.f32.mrb[214].mxu1  ;;  %v10052_v42 = vld [vmem:[#allocation33_spill] sm:$0xff]  ;;  %v10053_v40 = vld [vmem:[#allocation34_spill] sm:$0xff] }
 0x294   :  { %v2335_v47 = vmax.f32 %v1130_v39, 0.0  ;;  %v1134_v8 = vadd.f32 %v1133_v52, %v6965_v29  ;;  %v1807_v24 = vadd.f32 %v1806_v51, %v6967_v30  ;;  %v1135_v11 = vpop.f32.mrb[215].mxu0  ;;  %v1808_v5 = vpop.f32.mrb[215].mxu1  ;;  %v2337_v61 = vmax.f32 %v1803_v26, 0.0  ;;  %v10054_v52 = vld [vmem:[#allocation39_spill] sm:$0xff]  ;;  %v10145_v28 = vld [vmem:[#allocation80_spill] sm:$0xff] }
 0x295   :  { %v2336_v2 = vmax.f32 %v1132_v48, 0.0  ;;  %v1136_v34 = vadd.f32 %v1135_v11, %v6970_v31  ;;  %v1809_v15 = vadd.f32 %v1808_v5, %v6972_v32  ;;  %v2338_v27 = vmax.f32 %v1805_v14, 0.0 }
 0x296   :  { %v2339_v59 = vmax.f32 %v1134_v8, 0.0  ;;  %v2341_v25 = vmax.f32 %v1807_v24, 0.0  ;;  %3268 = vmatmul.mubr.bf16.gmra.mrb[64].mxu1 %v10052_v42  ;;  %3941 = vmatmul.mubr.bf16.gmra.mrb[64].mxu0 %v10053_v40 }
 0x297   :  { %v2340_v39 = vmax.f32 %v1136_v34, 0.0  ;;  %v2342_v19 = vmax.f32 %v1809_v15, 0.0  ;;  %3277 = vmatprep.mubr.bf16.mxu1 %v7506_v10  ;;  %3950 = vmatprep.mubr.bf16.mxu0 %v10054_v52 }
 0x298   :  { %v8330_v51 = vpack.c.bf16 %v2339_v59, %v2335_v47  ;;  %v8332_v48 = vpack.c.bf16 %v2341_v25, %v2337_v61 }
 0x299   :  { %v1139_v11 = vpop.f32.mrb[216].mxu0  ;;  %v1812_v5 = vpop.f32.mrb[216].mxu1  ;;  %v8334_v26 = vpack.c.bf16 %v2340_v39, %v2336_v2  ;;  %v8336_v8 = vpack.c.bf16 %v2342_v19, %v2338_v27 }
 0x29a   :  { %10055 = vst [vmem:[#allocation33_spill] sm:$0xff] %v8330_v51  ;;  %10056 = vst [vmem:[#allocation34_spill] sm:$0xff] %v8332_v48  ;;  %v1140_v24 = vadd.f32 %v1139_v11, %v6965_v29  ;;  %v1813_v14 = vadd.f32 %v1812_v5, %v6967_v30  ;;  %v1141_v34 = vpop.f32.mrb[217].mxu0  ;;  %v1814_v15 = vpop.f32.mrb[217].mxu1 }
 0x29b   :  { %10057 = vst [vmem:[#allocation39_spill] sm:$0xff] %v8334_v26  ;;  %10058 = vst [vmem:[#allocation115_spill] sm:$0xff] %v8336_v8  ;;  %v1142_v10 = vadd.f32 %v1141_v34, %v6970_v31  ;;  %v1815_v42 = vadd.f32 %v1814_v15, %v6972_v32  ;;  %v1143_v47 = vpop.f32.mrb[218].mxu0  ;;  %v1816_v59 = vpop.f32.mrb[218].mxu1  ;;  %v10059_v34 = vld [vmem:[#allocation37_spill] sm:$0xff]  ;;  %v10060_v15 = vld [vmem:[#allocation38_spill] sm:$0xff] }
 0x29c   :  { %v2343_v25 = vmax.f32 %v1140_v24, 0.0  ;;  %v1144_v61 = vadd.f32 %v1143_v47, %v6965_v29  ;;  %v1817_v2 = vadd.f32 %v1816_v59, %v6967_v30  ;;  %v1145_v40 = vpop.f32.mrb[219].mxu0  ;;  %v1818_v27 = vpop.f32.mrb[219].mxu1  ;;  %v2345_v11 = vmax.f32 %v1813_v14, 0.0  ;;  %v10061_v47 = vld [vmem:[#allocation42_spill] sm:$0xff]  ;;  %v10062_v59 = vld [vmem:[#allocation43_spill] sm:$0xff] }
 0x29d   :  { %v2344_v19 = vmax.f32 %v1142_v10, 0.0  ;;  %v1146_v39 = vadd.f32 %v1145_v40, %v6970_v31  ;;  %v1819_v52 = vadd.f32 %v1818_v27, %v6972_v32  ;;  %v2346_v51 = vmax.f32 %v1815_v42, 0.0 }
 0x29e   :  { %v2347_v5 = vmax.f32 %v1144_v61, 0.0  ;;  %v2349_v48 = vmax.f32 %v1817_v2, 0.0  ;;  %3278 = vmatmul.mubr.bf16.gmra.mrb[68].mxu1 %v10059_v34  ;;  %3951 = vmatmul.mubr.bf16.gmra.mrb[68].mxu0 %v10060_v15 }
 0x29f   :  { %v2348_v24 = vmax.f32 %v1146_v39, 0.0  ;;  %v2350_v8 = vmax.f32 %v1819_v52, 0.0  ;;  %3287 = vmatprep.mubr.bf16.mxu1 %v10061_v47  ;;  %3960 = vmatprep.mubr.bf16.mxu0 %v10062_v59 }
 0x2a0   :  { %v8350_v26 = vpack.c.bf16 %v2347_v5, %v2343_v25  ;;  %v8352_v10 = vpack.c.bf16 %v2349_v48, %v2345_v11 }
 0x2a1   :  { %v1149_v40 = vpop.f32.mrb[220].mxu0  ;;  %v1822_v27 = vpop.f32.mrb[220].mxu1  ;;  %v8354_v14 = vpack.c.bf16 %v2348_v24, %v2344_v19  ;;  %v8356_v61 = vpack.c.bf16 %v2350_v8, %v2346_v51 }
 0x2a2   :  { %10063 = vst [vmem:[#allocation37_spill] sm:$0xff] %v8350_v26  ;;  %10064 = vst [vmem:[#allocation38_spill] sm:$0xff] %v8352_v10  ;;  %v1150_v2 = vadd.f32 %v1149_v40, %v6965_v29  ;;  %v1823_v42 = vadd.f32 %v1822_v27, %v6967_v30  ;;  %v1151_v39 = vpop.f32.mrb[221].mxu0  ;;  %v1824_v52 = vpop.f32.mrb[221].mxu1 }
 0x2a3   :  { %10065 = vst [vmem:[#allocation42_spill] sm:$0xff] %v8354_v14  ;;  %10066 = vst [vmem:[#allocation43_spill] sm:$0xff] %v8356_v61  ;;  %v1152_v34 = vadd.f32 %v1151_v39, %v6970_v31  ;;  %v1825_v15 = vadd.f32 %v1824_v52, %v6972_v32  ;;  %v1153_v25 = vpop.f32.mrb[222].mxu0  ;;  %v1826_v5 = vpop.f32.mrb[222].mxu1  ;;  %v10067_v39 = vld [vmem:[#allocation40_spill] sm:$0xff]  ;;  %v10068_v52 = vld [vmem:[#allocation41_spill] sm:$0xff] }
 0x2a4   :  { %v2351_v48 = vmax.f32 %v1150_v2, 0.0  ;;  %v1154_v11 = vadd.f32 %v1153_v25, %v6965_v29  ;;  %v1827_v19 = vadd.f32 %v1826_v5, %v6967_v30  ;;  %v1155_v24 = vpop.f32.mrb[223].mxu0  ;;  %v1828_v51 = vpop.f32.mrb[223].mxu1  ;;  %v2353_v40 = vmax.f32 %v1823_v42, 0.0  ;;  %v10069_v25 = vld [vmem:[#allocation46_spill] sm:$0xff]  ;;  %v10070_v5 = vld [vmem:[#allocation47_spill] sm:$0xff] }
 0x2a5   :  { %v2352_v8 = vmax.f32 %v1152_v34, 0.0  ;;  %v1156_v47 = vadd.f32 %v1155_v24, %v6970_v31  ;;  %v1829_v59 = vadd.f32 %v1828_v51, %v6972_v32  ;;  %v2354_v26 = vmax.f32 %v1825_v15, 0.0 }
 0x2a6   :  { %v2355_v27 = vmax.f32 %v1154_v11, 0.0  ;;  %v2357_v10 = vmax.f32 %v1827_v19, 0.0  ;;  %3288 = vmatmul.mubr.bf16.gmra.mrb[72].mxu1 %v10067_v39  ;;  %3961 = vmatmul.mubr.bf16.gmra.mrb[72].mxu0 %v10068_v52 }
 0x2a7   :  { %v2356_v2 = vmax.f32 %v1156_v47, 0.0  ;;  %v2358_v61 = vmax.f32 %v1829_v59, 0.0  ;;  %3297 = vmatprep.mubr.bf16.mxu1 %v10069_v25  ;;  %3970 = vmatprep.mubr.bf16.mxu0 %v10070_v5 }
 0x2a8   :  { %v8370_v14 = vpack.c.bf16 %v2355_v27, %v2351_v48  ;;  %v8372_v34 = vpack.c.bf16 %v2357_v10, %v2353_v40 }
 0x2a9   :  { %v1159_v24 = vpop.f32.mrb[224].mxu0  ;;  %v1832_v51 = vpop.f32.mrb[224].mxu1  ;;  %v8374_v42 = vpack.c.bf16 %v2356_v2, %v2352_v8  ;;  %v8376_v11 = vpack.c.bf16 %v2358_v61, %v2354_v26 }
 0x2aa   :  { %10071 = vst [vmem:[#allocation40_spill] sm:$0xff] %v8370_v14  ;;  %10072 = vst [vmem:[#allocation41_spill] sm:$0xff] %v8372_v34  ;;  %v1160_v19 = vadd.f32 %v1159_v24, %v6965_v29  ;;  %v1833_v15 = vadd.f32 %v1832_v51, %v6967_v30  ;;  %v1161_v47 = vpop.f32.mrb[225].mxu0  ;;  %v1834_v59 = vpop.f32.mrb[225].mxu1 }
 0x2ab   :  { %10073 = vst [vmem:[#allocation46_spill] sm:$0xff] %v8374_v42  ;;  %10074 = vst [vmem:[#allocation47_spill] sm:$0xff] %v8376_v11  ;;  %v1162_v39 = vadd.f32 %v1161_v47, %v6970_v31  ;;  %v1835_v52 = vadd.f32 %v1834_v59, %v6972_v32  ;;  %v1163_v48 = vpop.f32.mrb[226].mxu0  ;;  %v1836_v27 = vpop.f32.mrb[226].mxu1  ;;  %v10075_v47 = vld [vmem:[#allocation44_spill] sm:$0xff]  ;;  %v10076_v59 = vld [vmem:[#allocation45_spill] sm:$0xff] }
 0x2ac   :  { %v2359_v10 = vmax.f32 %v1160_v19, 0.0  ;;  %v1164_v40 = vadd.f32 %v1163_v48, %v6965_v29  ;;  %v1837_v8 = vadd.f32 %v1836_v27, %v6967_v30  ;;  %v1165_v2 = vpop.f32.mrb[227].mxu0  ;;  %v1838_v26 = vpop.f32.mrb[227].mxu1  ;;  %v2361_v24 = vmax.f32 %v1833_v15, 0.0  ;;  %v10077_v48 = vld [vmem:[#allocation50_spill] sm:$0xff]  ;;  %v10078_v27 = vld [vmem:[#allocation51_spill] sm:$0xff] }
 0x2ad   :  { %v2360_v61 = vmax.f32 %v1162_v39, 0.0  ;;  %v1166_v25 = vadd.f32 %v1165_v2, %v6970_v31  ;;  %v1839_v5 = vadd.f32 %v1838_v26, %v6972_v32  ;;  %v2362_v14 = vmax.f32 %v1835_v52, 0.0 }
 0x2ae   :  { %v2363_v51 = vmax.f32 %v1164_v40, 0.0  ;;  %v2365_v34 = vmax.f32 %v1837_v8, 0.0  ;;  %3298 = vmatmul.mubr.bf16.gmra.mrb[76].mxu1 %v10075_v47  ;;  %3971 = vmatmul.mubr.bf16.gmra.mrb[76].mxu0 %v10076_v59 }
 0x2af   :  { %v2364_v19 = vmax.f32 %v1166_v25, 0.0  ;;  %v2366_v11 = vmax.f32 %v1839_v5, 0.0  ;;  %3307 = vmatprep.mubr.bf16.mxu1 %v10077_v48  ;;  %3980 = vmatprep.mubr.bf16.mxu0 %v10078_v27 }
 0x2b0   :  { %v8390_v42 = vpack.c.bf16 %v2363_v51, %v2359_v10  ;;  %v8392_v39 = vpack.c.bf16 %v2365_v34, %v2361_v24 }
 0x2b1   :  { %v1169_v2 = vpop.f32.mrb[228].mxu0  ;;  %v1842_v26 = vpop.f32.mrb[228].mxu1  ;;  %v8394_v15 = vpack.c.bf16 %v2364_v19, %v2360_v61  ;;  %v8396_v40 = vpack.c.bf16 %v2366_v11, %v2362_v14 }
 0x2b2   :  { %10079 = vst [vmem:[#allocation44_spill] sm:$0xff] %v8390_v42  ;;  %10080 = vst [vmem:[#allocation45_spill] sm:$0xff] %v8392_v39  ;;  %v1170_v8 = vadd.f32 %v1169_v2, %v6965_v29  ;;  %v1843_v52 = vadd.f32 %v1842_v26, %v6967_v30  ;;  %v1171_v25 = vpop.f32.mrb[229].mxu0  ;;  %v1844_v5 = vpop.f32.mrb[229].mxu1 }
 0x2b3   :  { %10081 = vst [vmem:[#allocation50_spill] sm:$0xff] %v8394_v15  ;;  %10082 = vst [vmem:[#allocation51_spill] sm:$0xff] %v8396_v40  ;;  %v1172_v47 = vadd.f32 %v1171_v25, %v6970_v31  ;;  %v1845_v59 = vadd.f32 %v1844_v5, %v6972_v32  ;;  %v1173_v10 = vpop.f32.mrb[230].mxu0  ;;  %v1846_v51 = vpop.f32.mrb[230].mxu1  ;;  %v10083_v25 = vld [vmem:[#allocation48_spill] sm:$0xff]  ;;  %v10084_v5 = vld [vmem:[#allocation49_spill] sm:$0xff] }
 0x2b4   :  { %v2367_v34 = vmax.f32 %v1170_v8, 0.0  ;;  %v1174_v24 = vadd.f32 %v1173_v10, %v6965_v29  ;;  %v1847_v61 = vadd.f32 %v1846_v51, %v6967_v30  ;;  %v1175_v19 = vpop.f32.mrb[231].mxu0  ;;  %v1848_v14 = vpop.f32.mrb[231].mxu1  ;;  %v2369_v2 = vmax.f32 %v1843_v52, 0.0  ;;  %v10085_v10 = vld [vmem:[#allocation54_spill] sm:$0xff]  ;;  %v10086_v51 = vld [vmem:[#allocation55_spill] sm:$0xff] }
 0x2b5   :  { %v2368_v11 = vmax.f32 %v1172_v47, 0.0  ;;  %v1176_v48 = vadd.f32 %v1175_v19, %v6970_v31  ;;  %v1849_v27 = vadd.f32 %v1848_v14, %v6972_v32  ;;  %v2370_v42 = vmax.f32 %v1845_v59, 0.0 }
 0x2b6   :  { %v2371_v26 = vmax.f32 %v1174_v24, 0.0  ;;  %v2373_v39 = vmax.f32 %v1847_v61, 0.0  ;;  %3308 = vmatmul.mubr.bf16.gmra.mrb[80].mxu1 %v10083_v25  ;;  %3981 = vmatmul.mubr.bf16.gmra.mrb[80].mxu0 %v10084_v5 }
 0x2b7   :  { %v2372_v8 = vmax.f32 %v1176_v48, 0.0  ;;  %v2374_v40 = vmax.f32 %v1849_v27, 0.0  ;;  %3317 = vmatprep.mubr.bf16.mxu1 %v10085_v10  ;;  %3990 = vmatprep.mubr.bf16.mxu0 %v10086_v51 }
 0x2b8   :  { %v8410_v15 = vpack.c.bf16 %v2371_v26, %v2367_v34  ;;  %v8412_v47 = vpack.c.bf16 %v2373_v39, %v2369_v2 }
 0x2b9   :  { %v1179_v19 = vpop.f32.mrb[232].mxu0  ;;  %v1852_v14 = vpop.f32.mrb[232].mxu1  ;;  %v8414_v52 = vpack.c.bf16 %v2372_v8, %v2368_v11  ;;  %v8416_v24 = vpack.c.bf16 %v2374_v40, %v2370_v42 }
 0x2ba   :  { %10087 = vst [vmem:[#allocation48_spill] sm:$0xff] %v8410_v15  ;;  %10088 = vst [vmem:[#allocation49_spill] sm:$0xff] %v8412_v47  ;;  %v1180_v61 = vadd.f32 %v1179_v19, %v6965_v29  ;;  %v1853_v59 = vadd.f32 %v1852_v14, %v6967_v30  ;;  %v1181_v48 = vpop.f32.mrb[233].mxu0  ;;  %v1854_v27 = vpop.f32.mrb[233].mxu1 }
 0x2bb   :  { %10089 = vst [vmem:[#allocation54_spill] sm:$0xff] %v8414_v52  ;;  %10090 = vst [vmem:[#allocation55_spill] sm:$0xff] %v8416_v24  ;;  %v1182_v25 = vadd.f32 %v1181_v48, %v6970_v31  ;;  %v1855_v5 = vadd.f32 %v1854_v27, %v6972_v32  ;;  %v1183_v34 = vpop.f32.mrb[234].mxu0  ;;  %v1856_v26 = vpop.f32.mrb[234].mxu1  ;;  %v10091_v48 = vld [vmem:[#allocation52_spill] sm:$0xff]  ;;  %v10092_v27 = vld [vmem:[#allocation53_spill] sm:$0xff] }
 0x2bc   :  { %v2375_v39 = vmax.f32 %v1180_v61, 0.0  ;;  %v1184_v2 = vadd.f32 %v1183_v34, %v6965_v29  ;;  %v1857_v11 = vadd.f32 %v1856_v26, %v6967_v30  ;;  %v1185_v8 = vpop.f32.mrb[235].mxu0  ;;  %v1858_v42 = vpop.f32.mrb[235].mxu1  ;;  %v2377_v19 = vmax.f32 %v1853_v59, 0.0  ;;  %v10093_v34 = vld [vmem:[#allocation58_spill] sm:$0xff]  ;;  %v10094_v26 = vld [vmem:[#allocation59_spill] sm:$0xff] }
 0x2bd   :  { %v2376_v40 = vmax.f32 %v1182_v25, 0.0  ;;  %v1186_v10 = vadd.f32 %v1185_v8, %v6970_v31  ;;  %v1859_v51 = vadd.f32 %v1858_v42, %v6972_v32  ;;  %v2378_v15 = vmax.f32 %v1855_v5, 0.0 }
 0x2be   :  { %v2379_v14 = vmax.f32 %v1184_v2, 0.0  ;;  %v2381_v47 = vmax.f32 %v1857_v11, 0.0  ;;  %3318 = vmatmul.mubr.bf16.gmra.mrb[84].mxu1 %v10091_v48  ;;  %3991 = vmatmul.mubr.bf16.gmra.mrb[84].mxu0 %v10092_v27 }
 0x2bf   :  { %v2380_v61 = vmax.f32 %v1186_v10, 0.0  ;;  %v2382_v24 = vmax.f32 %v1859_v51, 0.0  ;;  %3327 = vmatprep.mubr.bf16.mxu1 %v10093_v34  ;;  %4000 = vmatprep.mubr.bf16.mxu0 %v10094_v26 }
 0x2c0   :  { %v8430_v52 = vpack.c.bf16 %v2379_v14, %v2375_v39  ;;  %v8432_v25 = vpack.c.bf16 %v2381_v47, %v2377_v19 }
 0x2c1   :  { %v1189_v8 = vpop.f32.mrb[236].mxu0  ;;  %v1862_v42 = vpop.f32.mrb[236].mxu1  ;;  %v8434_v59 = vpack.c.bf16 %v2380_v61, %v2376_v40  ;;  %v8436_v2 = vpack.c.bf16 %v2382_v24, %v2378_v15 }
 0x2c2   :  { %10095 = vst [vmem:[#allocation52_spill] sm:$0xff] %v8430_v52  ;;  %10096 = vst [vmem:[#allocation53_spill] sm:$0xff] %v8432_v25  ;;  %v1190_v11 = vadd.f32 %v1189_v8, %v6965_v29  ;;  %v1863_v5 = vadd.f32 %v1862_v42, %v6967_v30  ;;  %v1191_v10 = vpop.f32.mrb[237].mxu0  ;;  %v1864_v51 = vpop.f32.mrb[237].mxu1 }
 0x2c3   :  { %10097 = vst [vmem:[#allocation58_spill] sm:$0xff] %v8434_v59  ;;  %10098 = vst [vmem:[#allocation59_spill] sm:$0xff] %v8436_v2  ;;  %v1192_v48 = vadd.f32 %v1191_v10, %v6970_v31  ;;  %v1865_v27 = vadd.f32 %v1864_v51, %v6972_v32  ;;  %v1193_v39 = vpop.f32.mrb[238].mxu0  ;;  %v1866_v14 = vpop.f32.mrb[238].mxu1  ;;  %v10099_v10 = vld [vmem:[#allocation56_spill] sm:$0xff]  ;;  %v10100_v51 = vld [vmem:[#allocation57_spill] sm:$0xff] }
 0x2c4   :  { %v2383_v47 = vmax.f32 %v1190_v11, 0.0  ;;  %v1194_v19 = vadd.f32 %v1193_v39, %v6965_v29  ;;  %v1867_v40 = vadd.f32 %v1866_v14, %v6967_v30  ;;  %v1195_v61 = vpop.f32.mrb[239].mxu0  ;;  %v1868_v15 = vpop.f32.mrb[239].mxu1  ;;  %v2385_v8 = vmax.f32 %v1863_v5, 0.0  ;;  %v10101_v39 = vld [vmem:[#allocation62_spill] sm:$0xff]  ;;  %v10102_v14 = vld [vmem:[#allocation63_spill] sm:$0xff] }
 0x2c5   :  { %v2384_v24 = vmax.f32 %v1192_v48, 0.0  ;;  %v1196_v34 = vadd.f32 %v1195_v61, %v6970_v31  ;;  %v1869_v26 = vadd.f32 %v1868_v15, %v6972_v32  ;;  %v2386_v52 = vmax.f32 %v1865_v27, 0.0 }
 0x2c6   :  { %v2387_v42 = vmax.f32 %v1194_v19, 0.0  ;;  %v2389_v25 = vmax.f32 %v1867_v40, 0.0  ;;  %3328 = vmatmul.mubr.bf16.gmra.mrb[88].mxu1 %v10099_v10  ;;  %4001 = vmatmul.mubr.bf16.gmra.mrb[88].mxu0 %v10100_v51 }
 0x2c7   :  { %v2388_v11 = vmax.f32 %v1196_v34, 0.0  ;;  %v2390_v2 = vmax.f32 %v1869_v26, 0.0  ;;  %3337 = vmatprep.mubr.bf16.mxu1 %v10101_v39  ;;  %4010 = vmatprep.mubr.bf16.mxu0 %v10102_v14 }
 0x2c8   :  { %v8450_v59 = vpack.c.bf16 %v2387_v42, %v2383_v47  ;;  %v8452_v48 = vpack.c.bf16 %v2389_v25, %v2385_v8 }
 0x2c9   :  { %v1199_v61 = vpop.f32.mrb[240].mxu0  ;;  %v1872_v15 = vpop.f32.mrb[240].mxu1  ;;  %v8454_v5 = vpack.c.bf16 %v2388_v11, %v2384_v24  ;;  %v8456_v19 = vpack.c.bf16 %v2390_v2, %v2386_v52 }
 0x2ca   :  { %10103 = vst [vmem:[#allocation56_spill] sm:$0xff] %v8450_v59  ;;  %10104 = vst [vmem:[#allocation57_spill] sm:$0xff] %v8452_v48  ;;  %v1200_v40 = vadd.f32 %v1199_v61, %v6965_v29  ;;  %v1873_v27 = vadd.f32 %v1872_v15, %v6967_v30  ;;  %v1201_v34 = vpop.f32.mrb[241].mxu0  ;;  %v1874_v26 = vpop.f32.mrb[241].mxu1 }
 0x2cb   :  { %10105 = vst [vmem:[#allocation62_spill] sm:$0xff] %v8454_v5  ;;  %10106 = vst [vmem:[#allocation63_spill] sm:$0xff] %v8456_v19  ;;  %v1202_v10 = vadd.f32 %v1201_v34, %v6970_v31  ;;  %v1875_v51 = vadd.f32 %v1874_v26, %v6972_v32  ;;  %v1203_v47 = vpop.f32.mrb[242].mxu0  ;;  %v1876_v42 = vpop.f32.mrb[242].mxu1  ;;  %v10107_v34 = vld [vmem:[#allocation60_spill] sm:$0xff]  ;;  %v10108_v26 = vld [vmem:[#allocation61_spill] sm:$0xff] }
 0x2cc   :  { %v2391_v25 = vmax.f32 %v1200_v40, 0.0  ;;  %v1204_v8 = vadd.f32 %v1203_v47, %v6965_v29  ;;  %v1877_v24 = vadd.f32 %v1876_v42, %v6967_v30  ;;  %v1205_v11 = vpop.f32.mrb[243].mxu0  ;;  %v1878_v52 = vpop.f32.mrb[243].mxu1  ;;  %v2393_v61 = vmax.f32 %v1873_v27, 0.0  ;;  %v10109_v47 = vld [vmem:[#allocation66_spill] sm:$0xff]  ;;  %v10110_v42 = vld [vmem:[#allocation67_spill] sm:$0xff] }
 0x2cd   :  { %v2392_v2 = vmax.f32 %v1202_v10, 0.0  ;;  %v1206_v39 = vadd.f32 %v1205_v11, %v6970_v31  ;;  %v1879_v14 = vadd.f32 %v1878_v52, %v6972_v32  ;;  %v2394_v59 = vmax.f32 %v1875_v51, 0.0 }
 0x2ce   :  { %v2395_v15 = vmax.f32 %v1204_v8, 0.0  ;;  %v2397_v48 = vmax.f32 %v1877_v24, 0.0  ;;  %3338 = vmatmul.mubr.bf16.gmra.mrb[92].mxu1 %v10107_v34  ;;  %4011 = vmatmul.mubr.bf16.gmra.mrb[92].mxu0 %v10108_v26 }
 0x2cf   :  { %v2396_v40 = vmax.f32 %v1206_v39, 0.0  ;;  %v2398_v19 = vmax.f32 %v1879_v14, 0.0  ;;  %3347 = vmatprep.mubr.bf16.mxu1 %v10109_v47  ;;  %4020 = vmatprep.mubr.bf16.mxu0 %v10110_v42 }
 0x2d0   :  { %v8470_v5 = vpack.c.bf16 %v2395_v15, %v2391_v25  ;;  %v8472_v10 = vpack.c.bf16 %v2397_v48, %v2393_v61 }
 0x2d1   :  { %v1209_v11 = vpop.f32.mrb[244].mxu0  ;;  %v1882_v52 = vpop.f32.mrb[244].mxu1  ;;  %v8474_v27 = vpack.c.bf16 %v2396_v40, %v2392_v2  ;;  %v8476_v8 = vpack.c.bf16 %v2398_v19, %v2394_v59 }
 0x2d2   :  { %10111 = vst [vmem:[#allocation60_spill] sm:$0xff] %v8470_v5  ;;  %10112 = vst [vmem:[#allocation61_spill] sm:$0xff] %v8472_v10  ;;  %v1210_v24 = vadd.f32 %v1209_v11, %v6965_v29  ;;  %v1883_v51 = vadd.f32 %v1882_v52, %v6967_v30  ;;  %v1211_v39 = vpop.f32.mrb[245].mxu0  ;;  %v1884_v14 = vpop.f32.mrb[245].mxu1 }
 0x2d3   :  { %10113 = vst [vmem:[#allocation66_spill] sm:$0xff] %v8474_v27  ;;  %10114 = vst [vmem:[#allocation67_spill] sm:$0xff] %v8476_v8  ;;  %v1212_v34 = vadd.f32 %v1211_v39, %v6970_v31  ;;  %v1885_v26 = vadd.f32 %v1884_v14, %v6972_v32  ;;  %v1213_v25 = vpop.f32.mrb[246].mxu0  ;;  %v1886_v15 = vpop.f32.mrb[246].mxu1  ;;  %v10115_v39 = vld [vmem:[#allocation64_spill] sm:$0xff]  ;;  %v10116_v14 = vld [vmem:[#allocation65_spill] sm:$0xff] }
 0x2d4   :  { %v2399_v48 = vmax.f32 %v1210_v24, 0.0  ;;  %v1214_v61 = vadd.f32 %v1213_v25, %v6965_v29  ;;  %v1887_v2 = vadd.f32 %v1886_v15, %v6967_v30  ;;  %v1215_v40 = vpop.f32.mrb[247].mxu0  ;;  %v1888_v59 = vpop.f32.mrb[247].mxu1  ;;  %v2401_v11 = vmax.f32 %v1883_v51, 0.0  ;;  %v10117_v25 = vld [vmem:[#allocation70_spill] sm:$0xff]  ;;  %v10118_v15 = vld [vmem:[#allocation71_spill] sm:$0xff] }
 0x2d5   :  { %v2400_v19 = vmax.f32 %v1212_v34, 0.0  ;;  %v1216_v47 = vadd.f32 %v1215_v40, %v6970_v31  ;;  %v1889_v42 = vadd.f32 %v1888_v59, %v6972_v32  ;;  %v2402_v5 = vmax.f32 %v1885_v26, 0.0 }
 0x2d6   :  { %v2403_v52 = vmax.f32 %v1214_v61, 0.0  ;;  %v2405_v10 = vmax.f32 %v1887_v2, 0.0  ;;  %3348 = vmatmul.mubr.bf16.gmra.mrb[96].mxu1 %v10115_v39  ;;  %4021 = vmatmul.mubr.bf16.gmra.mrb[96].mxu0 %v10116_v14 }
 0x2d7   :  { %v2404_v24 = vmax.f32 %v1216_v47, 0.0  ;;  %v2406_v8 = vmax.f32 %v1889_v42, 0.0  ;;  %3357 = vmatprep.mubr.bf16.mxu1 %v10117_v25  ;;  %4030 = vmatprep.mubr.bf16.mxu0 %v10118_v15 }
 0x2d8   :  { %v8490_v27 = vpack.c.bf16 %v2403_v52, %v2399_v48  ;;  %v8492_v34 = vpack.c.bf16 %v2405_v10, %v2401_v11 }
 0x2d9   :  { %v1219_v40 = vpop.f32.mrb[248].mxu0  ;;  %v1892_v59 = vpop.f32.mrb[248].mxu1  ;;  %v8494_v51 = vpack.c.bf16 %v2404_v24, %v2400_v19  ;;  %v8496_v61 = vpack.c.bf16 %v2406_v8, %v2402_v5 }
 0x2da   :  { %10119 = vst [vmem:[#allocation64_spill] sm:$0xff] %v8490_v27  ;;  %10120 = vst [vmem:[#allocation65_spill] sm:$0xff] %v8492_v34  ;;  %v1220_v2 = vadd.f32 %v1219_v40, %v6965_v29  ;;  %v1893_v26 = vadd.f32 %v1892_v59, %v6967_v30  ;;  %v1221_v47 = vpop.f32.mrb[249].mxu0  ;;  %v1894_v42 = vpop.f32.mrb[249].mxu1 }
 0x2db   :  { %10121 = vst [vmem:[#allocation70_spill] sm:$0xff] %v8494_v51  ;;  %10122 = vst [vmem:[#allocation71_spill] sm:$0xff] %v8496_v61  ;;  %v1222_v39 = vadd.f32 %v1221_v47, %v6970_v31  ;;  %v1895_v14 = vadd.f32 %v1894_v42, %v6972_v32  ;;  %v1223_v48 = vpop.f32.mrb[250].mxu0  ;;  %v1896_v52 = vpop.f32.mrb[250].mxu1  ;;  %v10123_v47 = vld [vmem:[#allocation68_spill] sm:$0xff]  ;;  %v10124_v42 = vld [vmem:[#allocation69_spill] sm:$0xff] }
 0x2dc   :  { %v2407_v10 = vmax.f32 %v1220_v2, 0.0  ;;  %v1224_v11 = vadd.f32 %v1223_v48, %v6965_v29  ;;  %v1897_v19 = vadd.f32 %v1896_v52, %v6967_v30  ;;  %v1225_v24 = vpop.f32.mrb[251].mxu0  ;;  %v1898_v5 = vpop.f32.mrb[251].mxu1  ;;  %v2409_v40 = vmax.f32 %v1893_v26, 0.0  ;;  %v10125_v48 = vld [vmem:[#allocation74_spill] sm:$0xff]  ;;  %v10126_v52 = vld [vmem:[#allocation75_spill] sm:$0xff] }
 0x2dd   :  { %v2408_v8 = vmax.f32 %v1222_v39, 0.0  ;;  %v1226_v25 = vadd.f32 %v1225_v24, %v6970_v31  ;;  %v1899_v15 = vadd.f32 %v1898_v5, %v6972_v32  ;;  %v2410_v27 = vmax.f32 %v1895_v14, 0.0 }
 0x2de   :  { %v2411_v59 = vmax.f32 %v1224_v11, 0.0  ;;  %v2413_v34 = vmax.f32 %v1897_v19, 0.0  ;;  %3358 = vmatmul.mubr.bf16.gmra.mrb[100].mxu1 %v10123_v47  ;;  %4031 = vmatmul.mubr.bf16.gmra.mrb[100].mxu0 %v10124_v42 }
 0x2df   :  { %v2412_v2 = vmax.f32 %v1226_v25, 0.0  ;;  %v2414_v61 = vmax.f32 %v1899_v15, 0.0  ;;  %3367 = vmatprep.mubr.bf16.mxu1 %v10125_v48  ;;  %4040 = vmatprep.mubr.bf16.mxu0 %v10126_v52 }
 0x2e0   :  { %v8510_v51 = vpack.c.bf16 %v2411_v59, %v2407_v10  ;;  %v8512_v39 = vpack.c.bf16 %v2413_v34, %v2409_v40  ;;  %v2743_v34 = vld [vmem:[%s9869_s4] sm:$0x3] }
 0x2e1   :  { %v1229_v24 = vpop.f32.mrb[252].mxu0  ;;  %v1902_v5 = vpop.f32.mrb[252].mxu1  ;;  %v8514_v26 = vpack.c.bf16 %v2412_v2, %v2408_v8  ;;  %v8516_v11 = vpack.c.bf16 %v2414_v61, %v2410_v27 }
 0x2e2   :  { %10127 = vst [vmem:[#allocation68_spill] sm:$0xff] %v8510_v51  ;;  %10128 = vst [vmem:[#allocation69_spill] sm:$0xff] %v8512_v39  ;;  %v1230_v19 = vadd.f32 %v1229_v24, %v6965_v29  ;;  %v1903_v14 = vadd.f32 %v1902_v5, %v6967_v30  ;;  %v1231_v25 = vpop.f32.mrb[253].mxu0  ;;  %v1904_v15 = vpop.f32.mrb[253].mxu1  ;;  %v10131_v39 = vld [vmem:[#allocation72_spill] sm:$0xff]  ;;  %v10132_v51 = vld [vmem:[#allocation73_spill] sm:$0xff] }
 0x2e3   :  { %10129 = vst [vmem:[#allocation74_spill] sm:$0xff] %v8514_v26  ;;  %10130 = vst [vmem:[#allocation75_spill] sm:$0xff] %v8516_v11  ;;  %v1232_v47 = vadd.f32 %v1231_v25, %v6970_v31  ;;  %v1905_v42 = vadd.f32 %v1904_v15, %v6972_v32  ;;  %v1233_v10 = vpop.f32.mrb[254].mxu0  ;;  %v1906_v59 = vpop.f32.mrb[254].mxu1  ;;  %v10133_v11 = vld [vmem:[#allocation3_spill] sm:$0xff] }
 0x2e4   :  { %v2415_v8 = vmax.f32 %v1230_v19, 0.0  ;;  %v1234_v27 = vadd.f32 %v1233_v10, %v6965_v29  ;;  %v1907_v61 = vadd.f32 %v1906_v59, %v6967_v30  ;;  %v1235_v40 = vpop.f32.mrb[255].mxu0  ;;  %v1908_v2 = vpop.f32.mrb[255].mxu1  ;;  %v2417_v5 = vmax.f32 %v1903_v14, 0.0  ;;  %v10134_v59 = vld [vmem:[#allocation78_spill] sm:$0xff] }
 0x2e5   :  { %v2416_v48 = vmax.f32 %v1232_v47, 0.0  ;;  %v1236_v52 = vadd.f32 %v1235_v40, %v6970_v31  ;;  %v1909_v24 = vadd.f32 %v1908_v2, %v6972_v32  ;;  %v8532_v19 = vrot.slane %v2743_v34, %v10133_v11  ;;  %v10135_v47 = vld [vmem:[#allocation79_spill] sm:$0xff]  ;;  %v10136_v31 = vld [vmem:[#allocation4_spill] sm:$0xff] }
 0x2e6   :  { %v2419_v25 = vmax.f32 %v1234_v27, 0.0  ;;  %v2421_v15 = vmax.f32 %v1907_v61, 0.0  ;;  %3368 = vmatmul.mubr.bf16.gmra.mrb[104].mxu1 %v10131_v39  ;;  %4041 = vmatmul.mubr.bf16.gmra.mrb[104].mxu0 %v10132_v51  ;;  %v2418_v29 = vmax.f32 %v1905_v42, 0.0  ;;  %v8537_v40 = vrot.slane %v2743_v34, %v10136_v31  ;;  %v4677_v51 = vld [vmem:[%s9870_s5] sm:$0x3] }
 0x2e7   :  { %v2420_v10 = vmax.f32 %v1236_v52, 0.0  ;;  %v2422_v30 = vmax.f32 %v1909_v24, 0.0  ;;  %3377 = vmatprep.mubr.bf16.mxu1 %v10134_v59  ;;  %4050 = vmatprep.mubr.bf16.mxu0 %v10135_v47  ;;  %v8554_v59 = vrot.slane %v4677_v51, %v10133_v11  ;;  %v10144_v11 = vld [vmem:[#allocation83_spill] sm:$0xff] }
 0x2e8   :  { %v8539_v32 = vpack.c.bf16 %v2419_v25, %v2415_v8  ;;  %v8541_v14 = vpack.c.bf16 %v2421_v15, %v2417_v5 }
 0x2e9   :  { %v3109_v39 = vpop.f32.mrb[0].mxu1  ;;  %v3782_v27 = vpop.f32.mrb[0].mxu0  ;;  %v8546_v42 = vpack.c.bf16 %v2420_v10, %v2416_v48  ;;  %v8548_v61 = vpack.c.bf16 %v2422_v30, %v2418_v29  ;;  %v8558_v10 = vrot.slane %v4677_v51, %v10136_v31 }
 0x2ea   :  { %10137 = vst [vmem:[#allocation72_spill] sm:$0xff] %v8539_v32  ;;  %10138 = vst [vmem:[#allocation73_spill] sm:$0xff] %v8541_v14  ;;  %v3110_v2 = vadd.f32 %v3109_v39, %v8532_v19  ;;  %v3111_v52 = vpop.f32.mrb[1].mxu1  ;;  %v3784_v24 = vpop.f32.mrb[1].mxu0  ;;  %v10141_v32 = vld [vmem:[#allocation76_spill] sm:$0xff] }
 0x2eb   :  { %10139 = vst [vmem:[#allocation3_spill] sm:$0xff] %v8546_v42  ;;  %10140 = vst [vmem:[#allocation78_spill] sm:$0xff] %v8548_v61  ;;  %v3112_v34 = vadd.f32 %v3111_v52, %v8537_v40  ;;  %v3113_v8 = vpop.f32.mrb[2].mxu1  ;;  %v3786_v25 = vpop.f32.mrb[2].mxu0  ;;  %v10142_v52 = vld [vmem:[#allocation77_spill] sm:$0xff] }
 0x2ec   :  { %v3783_v5 = vadd.f32 %v3782_v27, %v3110_v2  ;;  %v3114_v15 = vadd.f32 %v3113_v8, %v8532_v19  ;;  %v3115_v47 = vpop.f32.mrb[3].mxu1  ;;  %v3788_v14 = vpop.f32.mrb[3].mxu0  ;;  %v10143_v8 = vld [vmem:[#allocation82_spill] sm:$0xff] }
 0x2ed   :  { %v3785_v48 = vadd.f32 %v3784_v24, %v3112_v34  ;;  %v3116_v29 = vadd.f32 %v3115_v47, %v8537_v40 }
 0x2ee   :  { %v4421_v30 = vmax.f32 %v3783_v5, 0.0  ;;  %v3787_v39 = vadd.f32 %v3786_v25, %v3114_v15  ;;  %3378 = vmatmul.mubr.bf16.gmra.mrb[108].mxu1 %v10141_v32  ;;  %4051 = vmatmul.mubr.bf16.gmra.mrb[108].mxu0 %v10142_v52 }
 0x2ef   :  { %v4422_v27 = vmax.f32 %v3785_v48, 0.0  ;;  %v3789_v2 = vadd.f32 %v3788_v14, %v3116_v29  ;;  %3387 = vmatprep.mubr.bf16.mxu1 %v10143_v8  ;;  %4060 = vmatprep.mubr.bf16.mxu0 %v10144_v11 }
 0x2f0   :  { %v4423_v61 = vmax.f32 %v3787_v39, 0.0  ;;  %v4689_v24 = vmul.f32 %v8554_v59, %v4421_v30 }
 0x2f1   :  { %v4424_v34 = vmax.f32 %v3789_v2, 0.0  ;;  %v3119_v47 = vpop.f32.mrb[4].mxu1  ;;  %v3792_v42 = vpop.f32.mrb[4].mxu0  ;;  %v4690_v31 = vmul.f32 %v8558_v10, %v4422_v27 }
 0x2f2   :  { %v4691_v51 = vmul.f32 %v8554_v59, %v4423_v61  ;;  %v3120_v32 = vadd.f32 %v3119_v47, %v8532_v19  ;;  %v3121_v25 = vpop.f32.mrb[5].mxu1  ;;  %v3794_v5 = vpop.f32.mrb[5].mxu0 }
 0x2f3   :  { %v4692_v14 = vmul.f32 %v8558_v10, %v4424_v34  ;;  %v3122_v15 = vadd.f32 %v3121_v25, %v8537_v40  ;;  %v3123_v48 = vpop.f32.mrb[6].mxu1  ;;  %v3796_v29 = vpop.f32.mrb[6].mxu0  ;;  %v4945_v39 = vadd.f32 %v4690_v31, %v4689_v24  ;;  %v10146_v34 = vld [vmem:[#allocation81_spill] sm:$0xff] }
 0x2f4   :  { %v3793_v52 = vadd.f32 %v3792_v42, %v3120_v32  ;;  %v3124_v30 = vadd.f32 %v3123_v48, %v8532_v19  ;;  %v3125_v2 = vpop.f32.mrb[7].mxu1  ;;  %v3798_v8 = vpop.f32.mrb[7].mxu0  ;;  %v10148_v42 = vld [vmem:[#allocation87_spill] sm:$0xff] }
 0x2f5   :  { %v3795_v11 = vadd.f32 %v3794_v5, %v3122_v15  ;;  %v3126_v27 = vadd.f32 %v3125_v2, %v8537_v40  ;;  %4946 = vadd.xlane.f32.xlu0 %v4945_v39  ;;  %v4948_v61 = vadd.f32 %v4692_v14, %v4691_v51 }
 0x2f6   :  { %v4425_v47 = vmax.f32 %v3793_v52, 0.0  ;;  %v3797_v26 = vadd.f32 %v3796_v29, %v3124_v30  ;;  %3388 = vmatmul.mubr.bf16.gmra.mrb[112].mxu1 %v10145_v28  ;;  %4061 = vmatmul.mubr.bf16.gmra.mrb[112].mxu0 %v10146_v34 }
 0x2f7   :  { %v4426_v25 = vmax.f32 %v3795_v11, 0.0  ;;  %v3799_v58 = vadd.f32 %v3798_v8, %v3126_v27  ;;  %3397 = vmatprep.mubr.bf16.mxu1 %v10147_v35  ;;  %4070 = vmatprep.mubr.bf16.mxu0 %v10148_v42 }
 0x2f8   :  { %v4427_v24 = vmax.f32 %v3797_v26, 0.0  ;;  %v4693_v31 = vmul.f32 %v8554_v59, %v4425_v47 }
 0x2f9   :  { %v4428_v32 = vmax.f32 %v3799_v58, 0.0  ;;  %v3129_v5 = vpop.f32.mrb[8].mxu1  ;;  %v3802_v15 = vpop.f32.mrb[8].mxu0  ;;  %4949 = vadd.xlane.f32.xlu0 %v4948_v61  ;;  %v4694_v51 = vmul.f32 %v8558_v10, %v4426_v25  ;;  %v12_v58 = vstv %s9871_s6 }
 0x2fa   :  { %v4695_v14 = vmul.f32 %v8554_v59, %v4427_v24  ;;  %v3130_v28 = vadd.f32 %v3129_v5, %v8532_v19  ;;  %v3131_v48 = vpop.f32.mrb[9].mxu1  ;;  %v3804_v29 = vpop.f32.mrb[9].mxu0  ;;  %13 = vst [vmem:[#allocation2] sm:$0x1] %v12_v58  ;;  %v10149_v24 = vld [vmem:[#allocation84_spill] sm:$0xff] }
 0x2fb   :  { %v4696_v39 = vmul.f32 %v8558_v10, %v4428_v32  ;;  %v3132_v35 = vadd.f32 %v3131_v48, %v8537_v40  ;;  %v3133_v52 = vpop.f32.mrb[10].mxu1  ;;  %v3806_v26 = vpop.f32.mrb[10].mxu0  ;;  %v4951_v30 = vadd.f32 %v4694_v51, %v4693_v31  ;;  %v10150_v31 = vld [vmem:[#allocation85_spill] sm:$0xff]  ;;  %v10151_v51 = vld [vmem:[#allocation90_spill] sm:$0xff] }
 0x2fc   :  { %v3803_v2 = vadd.f32 %v3802_v15, %v3130_v28  ;;  %v3134_v8 = vadd.f32 %v3133_v52, %v8532_v19  ;;  %v3135_v11 = vpop.f32.mrb[11].mxu1  ;;  %v3808_v27 = vpop.f32.mrb[11].mxu0  ;;  %v10152_v15 = vld [vmem:[#allocation91_spill] sm:$0xff] }
 0x2fd   :  { %v3805_v61 = vadd.f32 %v3804_v29, %v3132_v35  ;;  %v3136_v47 = vadd.f32 %v3135_v11, %v8537_v40  ;;  %4952 = vadd.xlane.f32.xlu1 %v4951_v30  ;;  %v4954_v34 = vadd.f32 %v4696_v39, %v4695_v14 }
 0x2fe   :  { %v4429_v25 = vmax.f32 %v3803_v2, 0.0  ;;  %v3807_v42 = vadd.f32 %v3806_v26, %v3134_v8  ;;  %3398 = vmatmul.mubr.bf16.gmra.mrb[116].mxu1 %v10149_v24  ;;  %4071 = vmatmul.mubr.bf16.gmra.mrb[116].mxu0 %v10150_v31 }
 0x2ff   :  { %v4430_v32 = vmax.f32 %v3805_v61, 0.0  ;;  %v3809_v5 = vadd.f32 %v3808_v27, %v3136_v47  ;;  %3407 = vmatprep.mubr.bf16.mxu1 %v10151_v51  ;;  %4080 = vmatprep.mubr.bf16.mxu0 %v10152_v15  ;;  %v10153_v15 = vld [vmem:[#allocation88_spill] sm:$0xff] }
 0x300   :  { %v4697_v28 = vmul.f32 %v8554_v59, %v4429_v25  ;;  %v4431_v48 = vmax.f32 %v3807_v42, 0.0 }
 0x301   :  { %v4698_v29 = vmul.f32 %v8558_v10, %v4430_v32  ;;  %v4432_v35 = vmax.f32 %v3809_v5, 0.0  ;;  %v3139_v52 = vpop.f32.mrb[12].mxu1  ;;  %v3812_v14 = vpop.f32.mrb[12].mxu0  ;;  %4955 = vadd.xlane.f32.xlu1 %v4954_v34 }
 0x302   :  { %v4699_v39 = vmul.f32 %v8554_v59, %v4431_v48  ;;  %v3140_v26 = vadd.f32 %v3139_v52, %v8532_v19  ;;  %v3141_v30 = vpop.f32.mrb[13].mxu1  ;;  %v3814_v58 = vpop.f32.mrb[13].mxu0  ;;  %v10154_v48 = vld [vmem:[#allocation89_spill] sm:$0xff] }
 0x303   :  { %v4700_v2 = vmul.f32 %v8558_v10, %v4432_v35  ;;  %v3142_v8 = vadd.f32 %v3141_v30, %v8537_v40  ;;  %v3143_v11 = vpop.f32.mrb[14].mxu1  ;;  %v3816_v27 = vpop.f32.mrb[14].mxu0  ;;  %v4957_v61 = vadd.f32 %v4698_v29, %v4697_v28  ;;  %v10155_v30 = vld [vmem:[#allocation94_spill] sm:$0xff]  ;;  %v10156_v28 = vld [vmem:[#allocation95_spill] sm:$0xff] }
 0x304   :  { %v3813_v47 = vadd.f32 %v3812_v14, %v3140_v26  ;;  %v3144_v25 = vadd.f32 %v3143_v11, %v8532_v19  ;;  %v3145_v42 = vpop.f32.mrb[15].mxu1  ;;  %v3818_v24 = vpop.f32.mrb[15].mxu0 }
 0x305   :  { %v3815_v31 = vadd.f32 %v3814_v58, %v3142_v8  ;;  %v3146_v34 = vadd.f32 %v3145_v42, %v8537_v40  ;;  %4958 = vadd.xlane.f32.xlu0 %v4957_v61  ;;  %v4960_v32 = vadd.f32 %v4700_v2, %v4699_v39 }
 0x306   :  { %v4433_v5 = vmax.f32 %v3813_v47, 0.0  ;;  %v3817_v51 = vadd.f32 %v3816_v27, %v3144_v25  ;;  %3408 = vmatmul.mubr.bf16.gmra.mrb[120].mxu1 %v10153_v15  ;;  %4081 = vmatmul.mubr.bf16.gmra.mrb[120].mxu0 %v10154_v48 }
 0x307   :  { %v4434_v35 = vmax.f32 %v3815_v31, 0.0  ;;  %v3819_v52 = vadd.f32 %v3818_v24, %v3146_v34  ;;  %3417 = vmatprep.mubr.bf16.mxu1 %v10155_v30  ;;  %4090 = vmatprep.mubr.bf16.mxu0 %v10156_v28  ;;  %v10157_v28 = vld [vmem:[#allocation92_spill] sm:$0xff] }
 0x308   :  { %v4701_v29 = vmul.f32 %v8554_v59, %v4433_v5  ;;  %v4435_v14 = vmax.f32 %v3817_v51, 0.0  ;;  %4961 = vadd.xlane.f32.xlu1 %v4960_v32 }
 0x309   :  { %v4702_v26 = vmul.f32 %v8558_v10, %v4434_v35  ;;  %v4436_v58 = vmax.f32 %v3819_v52, 0.0  ;;  %v3149_v39 = vpop.f32.mrb[16].mxu1  ;;  %v3822_v2 = vpop.f32.mrb[16].mxu0 }
 0x30a   :  { %v4703_v8 = vmul.f32 %v8554_v59, %v4435_v14  ;;  %v3150_v11 = vadd.f32 %v3149_v39, %v8532_v19  ;;  %v3151_v27 = vpop.f32.mrb[17].mxu1  ;;  %v3824_v61 = vpop.f32.mrb[17].mxu0  ;;  %v10158_v14 = vld [vmem:[#allocation93_spill] sm:$0xff] }
 0x30b   :  { %v4704_v47 = vmul.f32 %v8558_v10, %v4436_v58  ;;  %v3152_v25 = vadd.f32 %v3151_v27, %v8537_v40  ;;  %v3153_v42 = vpop.f32.mrb[18].mxu1  ;;  %v3826_v24 = vpop.f32.mrb[18].mxu0  ;;  %v4963_v31 = vadd.f32 %v4702_v26, %v4701_v29  ;;  %v10159_v27 = vld [vmem:[#allocation98_spill] sm:$0xff]  ;;  %v10160_v29 = vld [vmem:[#allocation99_spill] sm:$0xff] }
 0x30c   :  { %v3823_v34 = vadd.f32 %v3822_v2, %v3150_v11  ;;  %v3154_v32 = vadd.f32 %v3153_v42, %v8532_v19  ;;  %v3155_v5 = vpop.f32.mrb[19].mxu1  ;;  %v3828_v51 = vpop.f32.mrb[19].mxu0 }
 0x30d   :  { %v3825_v15 = vadd.f32 %v3824_v61, %v3152_v25  ;;  %v3156_v48 = vadd.f32 %v3155_v5, %v8537_v40  ;;  %4964 = vadd.xlane.f32.xlu0 %v4963_v31  ;;  %v4966_v35 = vadd.f32 %v4704_v47, %v4703_v8 }
 0x30e   :  { %v4437_v52 = vmax.f32 %v3823_v34, 0.0  ;;  %v3827_v30 = vadd.f32 %v3826_v24, %v3154_v32  ;;  %3418 = vmatmul.mubr.bf16.gmra.mrb[124].mxu1 %v10157_v28  ;;  %4091 = vmatmul.mubr.bf16.gmra.mrb[124].mxu0 %v10158_v14 }
 0x30f   :  { %v4438_v58 = vmax.f32 %v3825_v15, 0.0  ;;  %v3829_v39 = vadd.f32 %v3828_v51, %v3156_v48  ;;  %3427 = vmatprep.mubr.bf16.mxu1 %v10159_v27  ;;  %4100 = vmatprep.mubr.bf16.mxu0 %v10160_v29  ;;  %v10161_v29 = vld [vmem:[#allocation96_spill] sm:$0xff] }
 0x310   :  { %v4705_v26 = vmul.f32 %v8554_v59, %v4437_v52  ;;  %v4439_v2 = vmax.f32 %v3827_v30, 0.0  ;;  %4967 = vadd.xlane.f32.xlu1 %v4966_v35 }
 0x311   :  { %v4706_v11 = vmul.f32 %v8558_v10, %v4438_v58  ;;  %v4440_v61 = vmax.f32 %v3829_v39, 0.0  ;;  %v3159_v8 = vpop.f32.mrb[20].mxu1  ;;  %v3832_v47 = vpop.f32.mrb[20].mxu0 }
 0x312   :  { %v4707_v25 = vmul.f32 %v8554_v59, %v4439_v2  ;;  %v3160_v42 = vadd.f32 %v3159_v8, %v8532_v19  ;;  %v3161_v24 = vpop.f32.mrb[21].mxu1  ;;  %v3834_v31 = vpop.f32.mrb[21].mxu0  ;;  %v10162_v2 = vld [vmem:[#allocation97_spill] sm:$0xff] }
 0x313   :  { %v4708_v34 = vmul.f32 %v8558_v10, %v4440_v61  ;;  %v3162_v32 = vadd.f32 %v3161_v24, %v8537_v40  ;;  %v3163_v5 = vpop.f32.mrb[22].mxu1  ;;  %v3836_v51 = vpop.f32.mrb[22].mxu0  ;;  %v4969_v15 = vadd.f32 %v4706_v11, %v4705_v26  ;;  %v10163_v24 = vld [vmem:[#allocation102_spill] sm:$0xff]  ;;  %v10164_v26 = vld [vmem:[#allocation103_spill] sm:$0xff] }
 0x314   :  { %v3833_v48 = vadd.f32 %v3832_v47, %v3160_v42  ;;  %v3164_v35 = vadd.f32 %v3163_v5, %v8532_v19  ;;  %v3165_v52 = vpop.f32.mrb[23].mxu1  ;;  %v3838_v30 = vpop.f32.mrb[23].mxu0 }
 0x315   :  { %v3835_v28 = vadd.f32 %v3834_v31, %v3162_v32  ;;  %v3166_v14 = vadd.f32 %v3165_v52, %v8537_v40  ;;  %4970 = vadd.xlane.f32.xlu0 %v4969_v15  ;;  %v4972_v58 = vadd.f32 %v4708_v34, %v4707_v25 }
 0x316   :  { %v4441_v39 = vmax.f32 %v3833_v48, 0.0  ;;  %v3837_v27 = vadd.f32 %v3836_v51, %v3164_v35  ;;  %3428 = vmatmul.mubr.bf16.gmra.mrb[128].mxu1 %v10161_v29  ;;  %4101 = vmatmul.mubr.bf16.gmra.mrb[128].mxu0 %v10162_v2 }
 0x317   :  { %v4442_v61 = vmax.f32 %v3835_v28, 0.0  ;;  %v3839_v8 = vadd.f32 %v3838_v30, %v3166_v14  ;;  %3437 = vmatprep.mubr.bf16.mxu1 %v10163_v24  ;;  %4110 = vmatprep.mubr.bf16.mxu0 %v10164_v26  ;;  %v10165_v26 = vld [vmem:[#allocation100_spill] sm:$0xff] }
 0x318   :  { %v4709_v11 = vmul.f32 %v8554_v59, %v4441_v39  ;;  %v4443_v47 = vmax.f32 %v3837_v27, 0.0  ;;  %4973 = vadd.xlane.f32.xlu1 %v4972_v58 }
 0x319   :  { %v4710_v42 = vmul.f32 %v8558_v10, %v4442_v61  ;;  %v4444_v31 = vmax.f32 %v3839_v8, 0.0  ;;  %v3169_v25 = vpop.f32.mrb[24].mxu1  ;;  %v3842_v34 = vpop.f32.mrb[24].mxu0 }
 0x31a   :  { %v4711_v32 = vmul.f32 %v8554_v59, %v4443_v47  ;;  %v3170_v5 = vadd.f32 %v3169_v25, %v8532_v19  ;;  %v3171_v51 = vpop.f32.mrb[25].mxu1  ;;  %v3844_v15 = vpop.f32.mrb[25].mxu0  ;;  %v10166_v47 = vld [vmem:[#allocation101_spill] sm:$0xff] }
 0x31b   :  { %v4712_v48 = vmul.f32 %v8558_v10, %v4444_v31  ;;  %v3172_v35 = vadd.f32 %v3171_v51, %v8537_v40  ;;  %v3173_v52 = vpop.f32.mrb[26].mxu1  ;;  %v3846_v30 = vpop.f32.mrb[26].mxu0  ;;  %v4975_v28 = vadd.f32 %v4710_v42, %v4709_v11  ;;  %v10167_v11 = vld [vmem:[#allocation106_spill] sm:$0xff] }
 0x31c   :  { %v3843_v14 = vadd.f32 %v3842_v34, %v3170_v5  ;;  %v3174_v58 = vadd.f32 %v3173_v52, %v8532_v19  ;;  %v3175_v39 = vpop.f32.mrb[27].mxu1  ;;  %v3848_v27 = vpop.f32.mrb[27].mxu0 }
 0x31d   :  { %v3845_v29 = vadd.f32 %v3844_v15, %v3172_v35  ;;  %v3176_v2 = vadd.f32 %v3175_v39, %v8537_v40  ;;  %4976 = vadd.xlane.f32.xlu0 %v4975_v28  ;;  %v4978_v61 = vadd.f32 %v4712_v48, %v4711_v32 }
 0x31e   :  { %v4445_v8 = vmax.f32 %v3843_v14, 0.0  ;;  %v3847_v24 = vadd.f32 %v3846_v30, %v3174_v58  ;;  %3438 = vmatmul.mubr.bf16.gmra.mrb[132].mxu1 %v10165_v26  ;;  %4111 = vmatmul.mubr.bf16.gmra.mrb[132].mxu0 %v10166_v47 }
 0x31f   :  { %v4446_v31 = vmax.f32 %v3845_v29, 0.0  ;;  %v3849_v25 = vadd.f32 %v3848_v27, %v3176_v2  ;;  %3447 = vmatprep.mubr.bf16.mxu1 %v7948_v46  ;;  %4120 = vmatprep.mubr.bf16.mxu0 %v10167_v11  ;;  %v10169_v11 = vld [vmem:[#allocation105_spill] sm:$0xff] }
 0x320   :  { %v4713_v42 = vmul.f32 %v8554_v59, %v4445_v8  ;;  %v4447_v34 = vmax.f32 %v3847_v24, 0.0  ;;  %4979 = vadd.xlane.f32.xlu1 %v4978_v61 }
 0x321   :  { %v4714_v5 = vmul.f32 %v8558_v10, %v4446_v31  ;;  %v4448_v51 = vmax.f32 %v3849_v25, 0.0  ;;  %v3179_v32 = vpop.f32.mrb[28].mxu1  ;;  %v3852_v15 = vpop.f32.mrb[28].mxu0  ;;  %v10168_v25 = vld [vmem:[#allocation104_spill] sm:$0xff] }
 0x322   :  { %v4715_v48 = vmul.f32 %v8554_v59, %v4447_v34  ;;  %v3180_v35 = vadd.f32 %v3179_v32, %v8532_v19  ;;  %v3181_v52 = vpop.f32.mrb[29].mxu1  ;;  %v3854_v30 = vpop.f32.mrb[29].mxu0 }
 0x323   :  { %v4716_v28 = vmul.f32 %v8558_v10, %v4448_v51  ;;  %v3182_v46 = vadd.f32 %v3181_v52, %v8537_v40  ;;  %v3183_v14 = vpop.f32.mrb[30].mxu1  ;;  %v3856_v58 = vpop.f32.mrb[30].mxu0  ;;  %v4981_v39 = vadd.f32 %v4714_v5, %v4713_v42 }
 0x324   :  { %v3853_v27 = vadd.f32 %v3852_v15, %v3180_v35  ;;  %v3184_v29 = vadd.f32 %v3183_v14, %v8532_v19  ;;  %v3185_v2 = vpop.f32.mrb[31].mxu1  ;;  %v3858_v61 = vpop.f32.mrb[31].mxu0 }
 0x325   :  { %v3855_v8 = vadd.f32 %v3854_v30, %v3182_v46  ;;  %v3186_v24 = vadd.f32 %v3185_v2, %v8537_v40  ;;  %4982 = vadd.xlane.f32.xlu0 %v4981_v39  ;;  %v4984_v26 = vadd.f32 %v4716_v28, %v4715_v48 }
 0x326   :  { %v4449_v47 = vmax.f32 %v3853_v27, 0.0  ;;  %v3857_v31 = vadd.f32 %v3856_v58, %v3184_v29  ;;  %3448 = vmatmul.mubr.bf16.gmra.mrb[136].mxu1 %v10168_v25  ;;  %4121 = vmatmul.mubr.bf16.gmra.mrb[136].mxu0 %v10169_v11  ;;  %v10170_v25 = vld [vmem:[#allocation107_spill] sm:$0xff]  ;;  %v10171_v11 = vld [vmem:[#allocation108_spill] sm:$0xff] }
 0x327   :  { %v4450_v34 = vmax.f32 %v3855_v8, 0.0  ;;  %v3859_v51 = vadd.f32 %v3858_v61, %v3186_v24  ;;  %3457 = vmatprep.mubr.bf16.mxu1 %v7974_v55  ;;  %4130 = vmatprep.mubr.bf16.mxu0 %v7976_v50 }
 0x328   :  { %v4717_v42 = vmul.f32 %v8554_v59, %v4449_v47  ;;  %v4451_v5 = vmax.f32 %v3857_v31, 0.0  ;;  %4985 = vadd.xlane.f32.xlu1 %v4984_v26 }
 0x329   :  { %v4718_v32 = vmul.f32 %v8558_v10, %v4450_v34  ;;  %v4452_v15 = vmax.f32 %v3859_v51, 0.0  ;;  %v3189_v48 = vpop.f32.mrb[32].mxu1  ;;  %v3862_v35 = vpop.f32.mrb[32].mxu0 }
 0x32a   :  { %v4719_v52 = vmul.f32 %v8554_v59, %v4451_v5  ;;  %v3190_v30 = vadd.f32 %v3189_v48, %v8532_v19  ;;  %v3191_v28 = vpop.f32.mrb[33].mxu1  ;;  %v3864_v46 = vpop.f32.mrb[33].mxu0 }
 0x32b   :  { %v4720_v14 = vmul.f32 %v8558_v10, %v4452_v15  ;;  %v3192_v55 = vadd.f32 %v3191_v28, %v8537_v40  ;;  %v3193_v50 = vpop.f32.mrb[34].mxu1  ;;  %v3866_v58 = vpop.f32.mrb[34].mxu0  ;;  %v4987_v39 = vadd.f32 %v4718_v32, %v4717_v42 }
 0x32c   :  { %v3863_v27 = vadd.f32 %v3862_v35, %v3190_v30  ;;  %v3194_v29 = vadd.f32 %v3193_v50, %v8532_v19  ;;  %v3195_v2 = vpop.f32.mrb[35].mxu1  ;;  %v3868_v61 = vpop.f32.mrb[35].mxu0 }
 0x32d   :  { %v3865_v8 = vadd.f32 %v3864_v46, %v3192_v55  ;;  %v3196_v24 = vadd.f32 %v3195_v2, %v8537_v40  ;;  %4988 = vadd.xlane.f32.xlu0 %v4987_v39  ;;  %v4990_v26 = vadd.f32 %v4720_v14, %v4719_v52 }
 0x32e   :  { %v4453_v47 = vmax.f32 %v3863_v27, 0.0  ;;  %v3867_v31 = vadd.f32 %v3866_v58, %v3194_v29  ;;  %3458 = vmatmul.mubr.bf16.gmra.mrb[140].mxu1 %v10170_v25  ;;  %4131 = vmatmul.mubr.bf16.gmra.mrb[140].mxu0 %v10171_v11 }
 0x32f   :  { %v4454_v34 = vmax.f32 %v3865_v8, 0.0  ;;  %v3869_v51 = vadd.f32 %v3868_v61, %v3196_v24  ;;  %3467 = vmatprep.mubr.bf16.mxu1 %v7994_v43  ;;  %4140 = vmatprep.mubr.bf16.mxu0 %v7996_v60 }
 0x330   :  { %v4721_v42 = vmul.f32 %v8554_v59, %v4453_v47  ;;  %v4455_v5 = vmax.f32 %v3867_v31, 0.0  ;;  %4991 = vadd.xlane.f32.xlu1 %v4990_v26  ;;  %v10172_v47 = vld [vmem:[#allocation109_spill] sm:$0xff] }
 0x331   :  { %v4722_v32 = vmul.f32 %v8558_v10, %v4454_v34  ;;  %v4456_v15 = vmax.f32 %v3869_v51, 0.0  ;;  %v3199_v48 = vpop.f32.mrb[36].mxu1  ;;  %v3872_v35 = vpop.f32.mrb[36].mxu0 }
 0x332   :  { %v4723_v52 = vmul.f32 %v8554_v59, %v4455_v5  ;;  %v3200_v30 = vadd.f32 %v3199_v48, %v8532_v19  ;;  %v3201_v28 = vpop.f32.mrb[37].mxu1  ;;  %v3874_v46 = vpop.f32.mrb[37].mxu0 }
 0x333   :  { %v4724_v14 = vmul.f32 %v8558_v10, %v4456_v15  ;;  %v3202_v43 = vadd.f32 %v3201_v28, %v8537_v40  ;;  %v3203_v60 = vpop.f32.mrb[38].mxu1  ;;  %v3876_v55 = vpop.f32.mrb[38].mxu0  ;;  %v4993_v50 = vadd.f32 %v4722_v32, %v4721_v42 }
 0x334   :  { %v3873_v58 = vadd.f32 %v3872_v35, %v3200_v30  ;;  %v3204_v39 = vadd.f32 %v3203_v60, %v8532_v19  ;;  %v3205_v27 = vpop.f32.mrb[39].mxu1  ;;  %v3878_v29 = vpop.f32.mrb[39].mxu0 }
 0x335   :  { %v3875_v2 = vadd.f32 %v3874_v46, %v3202_v43  ;;  %v3206_v61 = vadd.f32 %v3205_v27, %v8537_v40  ;;  %4994 = vadd.xlane.f32.xlu0 %v4993_v50  ;;  %v4996_v8 = vadd.f32 %v4724_v14, %v4723_v52 }
 0x336   :  { %v4457_v24 = vmax.f32 %v3873_v58, 0.0  ;;  %v3877_v26 = vadd.f32 %v3876_v55, %v3204_v39  ;;  %3468 = vmatmul.mubr.bf16.gmra.mrb[144].mxu1 %v7990_v0  ;;  %4141 = vmatmul.mubr.bf16.gmra.mrb[144].mxu0 %v10172_v47 }
 0x337   :  { %v4458_v31 = vmax.f32 %v3875_v2, 0.0  ;;  %v3879_v25 = vadd.f32 %v3878_v29, %v3206_v61  ;;  %3477 = vmatprep.mubr.bf16.mxu1 %v8014_v56  ;;  %4150 = vmatprep.mubr.bf16.mxu0 %v8016_v6 }
 0x338   :  { %v4725_v11 = vmul.f32 %v8554_v59, %v4457_v24  ;;  %v4459_v34 = vmax.f32 %v3877_v26, 0.0  ;;  %4997 = vadd.xlane.f32.xlu1 %v4996_v8 }
 0x339   :  { %v4726_v51 = vmul.f32 %v8558_v10, %v4458_v31  ;;  %v4460_v42 = vmax.f32 %v3879_v25, 0.0  ;;  %v3209_v5 = vpop.f32.mrb[40].mxu1  ;;  %v3882_v32 = vpop.f32.mrb[40].mxu0 }
 0x33a   :  { %v4727_v15 = vmul.f32 %v8554_v59, %v4459_v34  ;;  %v3210_v0 = vadd.f32 %v3209_v5, %v8532_v19  ;;  %v3211_v48 = vpop.f32.mrb[41].mxu1  ;;  %v3884_v35 = vpop.f32.mrb[41].mxu0 }
 0x33b   :  { %v4728_v52 = vmul.f32 %v8558_v10, %v4460_v42  ;;  %v3212_v56 = vadd.f32 %v3211_v48, %v8537_v40  ;;  %v3213_v6 = vpop.f32.mrb[42].mxu1  ;;  %v3886_v30 = vpop.f32.mrb[42].mxu0  ;;  %v4999_v28 = vadd.f32 %v4726_v51, %v4725_v11 }
 0x33c   :  { %v3883_v46 = vadd.f32 %v3882_v32, %v3210_v0  ;;  %v3214_v14 = vadd.f32 %v3213_v6, %v8532_v19  ;;  %v3215_v43 = vpop.f32.mrb[43].mxu1  ;;  %v3888_v60 = vpop.f32.mrb[43].mxu0 }
 0x33d   :  { %v3885_v55 = vadd.f32 %v3884_v35, %v3212_v56  ;;  %v3216_v50 = vadd.f32 %v3215_v43, %v8537_v40  ;;  %5000 = vadd.xlane.f32.xlu0 %v4999_v28  ;;  %v5002_v58 = vadd.f32 %v4728_v52, %v4727_v15 }
 0x33e   :  { %v4461_v39 = vmax.f32 %v3883_v46, 0.0  ;;  %v3887_v27 = vadd.f32 %v3886_v30, %v3214_v14  ;;  %3478 = vmatmul.mubr.bf16.gmra.mrb[148].mxu1 %v8010_v7  ;;  %4151 = vmatmul.mubr.bf16.gmra.mrb[148].mxu0 %v8012_v3 }
 0x33f   :  { %v4462_v29 = vmax.f32 %v3885_v55, 0.0  ;;  %v3889_v2 = vadd.f32 %v3888_v60, %v3216_v50  ;;  %3487 = vmatprep.mubr.bf16.mxu1 %v8034_v63  ;;  %4160 = vmatprep.mubr.bf16.mxu0 %v8036_v9 }
 0x340   :  { %v4729_v61 = vmul.f32 %v8554_v59, %v4461_v39  ;;  %v4463_v8 = vmax.f32 %v3887_v27, 0.0  ;;  %5003 = vadd.xlane.f32.xlu1 %v5002_v58 }
 0x341   :  { %v4730_v24 = vmul.f32 %v8558_v10, %v4462_v29  ;;  %v4464_v26 = vmax.f32 %v3889_v2, 0.0  ;;  %v3219_v47 = vpop.f32.mrb[44].mxu1  ;;  %v3892_v31 = vpop.f32.mrb[44].mxu0 }
 0x342   :  { %v4731_v25 = vmul.f32 %v8554_v59, %v4463_v8  ;;  %v3220_v7 = vadd.f32 %v3219_v47, %v8532_v19  ;;  %v3221_v3 = vpop.f32.mrb[45].mxu1  ;;  %v3894_v11 = vpop.f32.mrb[45].mxu0 }
 0x343   :  { %v4732_v34 = vmul.f32 %v8558_v10, %v4464_v26  ;;  %v3222_v63 = vadd.f32 %v3221_v3, %v8537_v40  ;;  %v3223_v9 = vpop.f32.mrb[46].mxu1  ;;  %v3896_v51 = vpop.f32.mrb[46].mxu0  ;;  %v5005_v42 = vadd.f32 %v4730_v24, %v4729_v61 }
 0x344   :  { %v3893_v5 = vadd.f32 %v3892_v31, %v3220_v7  ;;  %v3224_v32 = vadd.f32 %v3223_v9, %v8532_v19  ;;  %v3225_v15 = vpop.f32.mrb[47].mxu1  ;;  %v3898_v0 = vpop.f32.mrb[47].mxu0 }
 0x345   :  { %v3895_v48 = vadd.f32 %v3894_v11, %v3222_v63  ;;  %v3226_v35 = vadd.f32 %v3225_v15, %v8537_v40  ;;  %5006 = vadd.xlane.f32.xlu0 %v5005_v42  ;;  %v5008_v52 = vadd.f32 %v4732_v34, %v4731_v25 }
 0x346   :  { %v4465_v56 = vmax.f32 %v3893_v5, 0.0  ;;  %v3897_v6 = vadd.f32 %v3896_v51, %v3224_v32  ;;  %3488 = vmatmul.mubr.bf16.gmra.mrb[152].mxu1 %v8030_v21  ;;  %4161 = vmatmul.mubr.bf16.gmra.mrb[152].mxu0 %v8032_v44 }
 0x347   :  { %v4466_v30 = vmax.f32 %v3895_v48, 0.0  ;;  %v3899_v28 = vadd.f32 %v3898_v0, %v3226_v35  ;;  %3497 = vmatprep.mubr.bf16.mxu1 %v8054_v37  ;;  %4170 = vmatprep.mubr.bf16.mxu0 %v8056_v22 }
 0x348   :  { %v4733_v46 = vmul.f32 %v8554_v59, %v4465_v56  ;;  %v4467_v14 = vmax.f32 %v3897_v6, 0.0  ;;  %5009 = vadd.xlane.f32.xlu1 %v5008_v52 }
 0x349   :  { %v4734_v43 = vmul.f32 %v8558_v10, %v4466_v30  ;;  %v4468_v60 = vmax.f32 %v3899_v28, 0.0  ;;  %v3229_v55 = vpop.f32.mrb[48].mxu1  ;;  %v3902_v50 = vpop.f32.mrb[48].mxu0 }
 0x34a   :  { %v4735_v58 = vmul.f32 %v8554_v59, %v4467_v14  ;;  %v3230_v21 = vadd.f32 %v3229_v55, %v8532_v19  ;;  %v3231_v44 = vpop.f32.mrb[49].mxu1  ;;  %v3904_v39 = vpop.f32.mrb[49].mxu0 }
 0x34b   :  { %v4736_v27 = vmul.f32 %v8558_v10, %v4468_v60  ;;  %v3232_v37 = vadd.f32 %v3231_v44, %v8537_v40  ;;  %v3233_v22 = vpop.f32.mrb[50].mxu1  ;;  %v3906_v29 = vpop.f32.mrb[50].mxu0  ;;  %v5011_v2 = vadd.f32 %v4734_v43, %v4733_v46 }
 0x34c   :  { %v3903_v61 = vadd.f32 %v3902_v50, %v3230_v21  ;;  %v3234_v8 = vadd.f32 %v3233_v22, %v8532_v19  ;;  %v3235_v24 = vpop.f32.mrb[51].mxu1  ;;  %v3908_v26 = vpop.f32.mrb[51].mxu0 }
 0x34d   :  { %v3905_v47 = vadd.f32 %v3904_v39, %v3232_v37  ;;  %v3236_v31 = vadd.f32 %v3235_v24, %v8537_v40  ;;  %5012 = vadd.xlane.f32.xlu0 %v5011_v2  ;;  %v5014_v25 = vadd.f32 %v4736_v27, %v4735_v58 }
 0x34e   :  { %v4469_v7 = vmax.f32 %v3903_v61, 0.0  ;;  %v3907_v3 = vadd.f32 %v3906_v29, %v3234_v8  ;;  %3498 = vmatmul.mubr.bf16.gmra.mrb[156].mxu1 %v8050_v49  ;;  %4171 = vmatmul.mubr.bf16.gmra.mrb[156].mxu0 %v8052_v16 }
 0x34f   :  { %v4470_v11 = vmax.f32 %v3905_v47, 0.0  ;;  %v3909_v34 = vadd.f32 %v3908_v26, %v3236_v31  ;;  %3507 = vmatprep.mubr.bf16.mxu1 %v8074_v13  ;;  %4180 = vmatprep.mubr.bf16.mxu0 %v8076_v62 }
 0x350   :  { %v4737_v63 = vmul.f32 %v8554_v59, %v4469_v7  ;;  %v4471_v9 = vmax.f32 %v3907_v3, 0.0  ;;  %5015 = vadd.xlane.f32.xlu1 %v5014_v25 }
 0x351   :  { %v4738_v51 = vmul.f32 %v8558_v10, %v4470_v11  ;;  %v4472_v42 = vmax.f32 %v3909_v34, 0.0  ;;  %v3239_v5 = vpop.f32.mrb[52].mxu1  ;;  %v3912_v32 = vpop.f32.mrb[52].mxu0 }
 0x352   :  { %v4739_v15 = vmul.f32 %v8554_v59, %v4471_v9  ;;  %v3240_v49 = vadd.f32 %v3239_v5, %v8532_v19  ;;  %v3241_v16 = vpop.f32.mrb[53].mxu1  ;;  %v3914_v0 = vpop.f32.mrb[53].mxu0 }
 0x353   :  { %v4740_v48 = vmul.f32 %v8558_v10, %v4472_v42  ;;  %v3242_v13 = vadd.f32 %v3241_v16, %v8537_v40  ;;  %v3243_v62 = vpop.f32.mrb[54].mxu1  ;;  %v3916_v35 = vpop.f32.mrb[54].mxu0  ;;  %v5017_v52 = vadd.f32 %v4738_v51, %v4737_v63 }
 0x354   :  { %v3913_v56 = vadd.f32 %v3912_v32, %v3240_v49  ;;  %v3244_v6 = vadd.f32 %v3243_v62, %v8532_v19  ;;  %v3245_v30 = vpop.f32.mrb[55].mxu1  ;;  %v3918_v28 = vpop.f32.mrb[55].mxu0 }
 0x355   :  { %v3915_v46 = vadd.f32 %v3914_v0, %v3242_v13  ;;  %v3246_v14 = vadd.f32 %v3245_v30, %v8537_v40  ;;  %5018 = vadd.xlane.f32.xlu0 %v5017_v52  ;;  %v5020_v43 = vadd.f32 %v4740_v48, %v4739_v15 }
 0x356   :  { %v4473_v60 = vmax.f32 %v3913_v56, 0.0  ;;  %v3917_v55 = vadd.f32 %v3916_v35, %v3244_v6  ;;  %3508 = vmatmul.mubr.bf16.gmra.mrb[160].mxu1 %v8070_v1  ;;  %4181 = vmatmul.mubr.bf16.gmra.mrb[160].mxu0 %v8072_v57 }
 0x357   :  { %v4474_v50 = vmax.f32 %v3915_v46, 0.0  ;;  %v3919_v58 = vadd.f32 %v3918_v28, %v3246_v14  ;;  %3517 = vmatprep.mubr.bf16.mxu1 %v8094_v54  ;;  %4190 = vmatprep.mubr.bf16.mxu0 %v8096_v36 }
 0x358   :  { %v4741_v21 = vmul.f32 %v8554_v59, %v4473_v60  ;;  %v4475_v44 = vmax.f32 %v3917_v55, 0.0  ;;  %5021 = vadd.xlane.f32.xlu1 %v5020_v43 }
 0x359   :  { %v4742_v39 = vmul.f32 %v8558_v10, %v4474_v50  ;;  %v4476_v27 = vmax.f32 %v3919_v58, 0.0  ;;  %v3249_v37 = vpop.f32.mrb[56].mxu1  ;;  %v3922_v22 = vpop.f32.mrb[56].mxu0 }
 0x35a   :  { %v4743_v29 = vmul.f32 %v8554_v59, %v4475_v44  ;;  %v3250_v1 = vadd.f32 %v3249_v37, %v8532_v19  ;;  %v3251_v57 = vpop.f32.mrb[57].mxu1  ;;  %v3924_v2 = vpop.f32.mrb[57].mxu0 }
 0x35b   :  { %v4744_v61 = vmul.f32 %v8558_v10, %v4476_v27  ;;  %v3252_v54 = vadd.f32 %v3251_v57, %v8537_v40  ;;  %v3253_v36 = vpop.f32.mrb[58].mxu1  ;;  %v3926_v8 = vpop.f32.mrb[58].mxu0  ;;  %v5023_v24 = vadd.f32 %v4742_v39, %v4741_v21 }
 0x35c   :  { %v3923_v26 = vadd.f32 %v3922_v22, %v3250_v1  ;;  %v3254_v47 = vadd.f32 %v3253_v36, %v8532_v19  ;;  %v3255_v31 = vpop.f32.mrb[59].mxu1  ;;  %v3928_v25 = vpop.f32.mrb[59].mxu0 }
 0x35d   :  { %v3925_v7 = vadd.f32 %v3924_v2, %v3252_v54  ;;  %v3256_v3 = vadd.f32 %v3255_v31, %v8537_v40  ;;  %5024 = vadd.xlane.f32.xlu0 %v5023_v24  ;;  %v5026_v11 = vadd.f32 %v4744_v61, %v4743_v29 }
 0x35e   :  { %v4477_v34 = vmax.f32 %v3923_v26, 0.0  ;;  %v3927_v63 = vadd.f32 %v3926_v8, %v3254_v47  ;;  %3518 = vmatmul.mubr.bf16.gmra.mrb[164].mxu1 %v8090_v4  ;;  %4191 = vmatmul.mubr.bf16.gmra.mrb[164].mxu0 %v8092_v41 }
 0x35f   :  { %v4478_v9 = vmax.f32 %v3925_v7, 0.0  ;;  %v3929_v51 = vadd.f32 %v3928_v25, %v3256_v3  ;;  %3527 = vmatprep.mubr.bf16.mxu1 %v8114_v38  ;;  %4200 = vmatprep.mubr.bf16.mxu0 %v8116_v12 }
 0x360   :  { %v4745_v42 = vmul.f32 %v8554_v59, %v4477_v34  ;;  %v4479_v5 = vmax.f32 %v3927_v63, 0.0  ;;  %5027 = vadd.xlane.f32.xlu1 %v5026_v11  ;;  %v10173_v11 = vld [vmem:[#allocation112_spill] sm:$0xff] }
 0x361   :  { %v4746_v32 = vmul.f32 %v8558_v10, %v4478_v9  ;;  %v4480_v15 = vmax.f32 %v3929_v51, 0.0  ;;  %v3259_v49 = vpop.f32.mrb[60].mxu1  ;;  %v3932_v16 = vpop.f32.mrb[60].mxu0 }
 0x362   :  { %v4747_v0 = vmul.f32 %v8554_v59, %v4479_v5  ;;  %v3260_v4 = vadd.f32 %v3259_v49, %v8532_v19  ;;  %v3261_v41 = vpop.f32.mrb[61].mxu1  ;;  %v3934_v48 = vpop.f32.mrb[61].mxu0 }
 0x363   :  { %v4748_v13 = vmul.f32 %v8558_v10, %v4480_v15  ;;  %v3262_v38 = vadd.f32 %v3261_v41, %v8537_v40  ;;  %v3263_v12 = vpop.f32.mrb[62].mxu1  ;;  %v3936_v62 = vpop.f32.mrb[62].mxu0  ;;  %v5029_v35 = vadd.f32 %v4746_v32, %v4745_v42 }
 0x364   :  { %v3933_v52 = vadd.f32 %v3932_v16, %v3260_v4  ;;  %v3264_v56 = vadd.f32 %v3263_v12, %v8532_v19  ;;  %v3265_v6 = vpop.f32.mrb[63].mxu1  ;;  %v3938_v30 = vpop.f32.mrb[63].mxu0 }
 0x365   :  { %v3935_v28 = vadd.f32 %v3934_v48, %v3262_v38  ;;  %v3266_v46 = vadd.f32 %v3265_v6, %v8537_v40  ;;  %5030 = vadd.xlane.f32.xlu0 %v5029_v35  ;;  %v5032_v14 = vadd.f32 %v4748_v13, %v4747_v0  ;;  %v10174_v6 = vld [vmem:[#allocation110_spill] sm:$0xff] }
 0x366   :  { %v4481_v43 = vmax.f32 %v3933_v52, 0.0  ;;  %v3937_v60 = vadd.f32 %v3936_v62, %v3264_v56  ;;  %3528 = vmatmul.mubr.bf16.gmra.mrb[168].mxu1 %v8110_v45  ;;  %4201 = vmatmul.mubr.bf16.gmra.mrb[168].mxu0 %v8112_v33 }
 0x367   :  { %v4482_v55 = vmax.f32 %v3935_v28, 0.0  ;;  %v3939_v50 = vadd.f32 %v3938_v30, %v3266_v46  ;;  %3537 = vmatprep.mubr.bf16.mxu1 %v8134_v20  ;;  %4210 = vmatprep.mubr.bf16.mxu0 %v8136_v53  ;;  %v10175_v30 = vld [vmem:[#allocation111_spill] sm:$0xff] }
 0x368   :  { %v4749_v58 = vmul.f32 %v8554_v59, %v4481_v43  ;;  %v4483_v21 = vmax.f32 %v3937_v60, 0.0  ;;  %5033 = vadd.xlane.f32.xlu1 %v5032_v14  ;;  %v10176_v14 = vld [vmem:[#allocation113_spill] sm:$0xff]  ;;  %v10177_v43 = vld [vmem:[#allocation114_spill] sm:$0xff] }
 0x369   :  { %v4750_v44 = vmul.f32 %v8558_v10, %v4482_v55  ;;  %v4484_v39 = vmax.f32 %v3939_v50, 0.0  ;;  %v3269_v27 = vpop.f32.mrb[64].mxu1  ;;  %v3942_v37 = vpop.f32.mrb[64].mxu0 }
 0x36a   :  { %v4751_v22 = vmul.f32 %v8554_v59, %v4483_v21  ;;  %v3270_v45 = vadd.f32 %v3269_v27, %v8532_v19  ;;  %v3271_v33 = vpop.f32.mrb[65].mxu1  ;;  %v3944_v29 = vpop.f32.mrb[65].mxu0 }
 0x36b   :  { %v4752_v1 = vmul.f32 %v8558_v10, %v4484_v39  ;;  %v3272_v20 = vadd.f32 %v3271_v33, %v8537_v40  ;;  %v3273_v53 = vpop.f32.mrb[66].mxu1  ;;  %v3946_v57 = vpop.f32.mrb[66].mxu0  ;;  %v5035_v2 = vadd.f32 %v4750_v44, %v4749_v58 }
 0x36c   :  { %v3943_v61 = vadd.f32 %v3942_v37, %v3270_v45  ;;  %v3274_v54 = vadd.f32 %v3273_v53, %v8532_v19  ;;  %v3275_v36 = vpop.f32.mrb[67].mxu1  ;;  %v3948_v8 = vpop.f32.mrb[67].mxu0 }
 0x36d   :  { %v3945_v24 = vadd.f32 %v3944_v29, %v3272_v20  ;;  %v3276_v26 = vadd.f32 %v3275_v36, %v8537_v40  ;;  %5036 = vadd.xlane.f32.xlu0 %v5035_v2  ;;  %v5038_v47 = vadd.f32 %v4752_v1, %v4751_v22 }
 0x36e   :  { %v4485_v31 = vmax.f32 %v3943_v61, 0.0  ;;  %v3947_v25 = vadd.f32 %v3946_v57, %v3274_v54  ;;  %3538 = vmatmul.mubr.bf16.gmra.mrb[172].mxu1 %v8130_v17  ;;  %4211 = vmatmul.mubr.bf16.gmra.mrb[172].mxu0 %v8132_v23 }
 0x36f   :  { %v4486_v7 = vmax.f32 %v3945_v24, 0.0  ;;  %v3949_v3 = vadd.f32 %v3948_v8, %v3276_v26  ;;  %3547 = vmatprep.mubr.bf16.mxu1 %v8154_v18  ;;  %4220 = vmatprep.mubr.bf16.mxu0 %v10173_v11  ;;  %v10181_v11 = vld [vmem:[#allocation12_spill] sm:$0xff] }
 0x370   :  { %v4753_v34 = vmul.f32 %v8554_v59, %v4485_v31  ;;  %v4487_v63 = vmax.f32 %v3947_v25, 0.0  ;;  %5039 = vadd.xlane.f32.xlu1 %v5038_v47  ;;  %v10178_v47 = vld [vmem:[#allocation7_spill] sm:$0xff]  ;;  %v10179_v31 = vld [vmem:[#allocation8_spill] sm:$0xff] }
 0x371   :  { %v4754_v9 = vmul.f32 %v8558_v10, %v4486_v7  ;;  %v4488_v51 = vmax.f32 %v3949_v3, 0.0  ;;  %v3279_v42 = vpop.f32.mrb[68].mxu1  ;;  %v3952_v5 = vpop.f32.mrb[68].mxu0  ;;  %v10180_v3 = vld [vmem:[#allocation11_spill] sm:$0xff] }
 0x372   :  { %v4755_v32 = vmul.f32 %v8554_v59, %v4487_v63  ;;  %v3280_v17 = vadd.f32 %v3279_v42, %v8532_v19  ;;  %v3281_v23 = vpop.f32.mrb[69].mxu1  ;;  %v3954_v15 = vpop.f32.mrb[69].mxu0 }
 0x373   :  { %v4756_v49 = vmul.f32 %v8558_v10, %v4488_v51  ;;  %v3282_v18 = vadd.f32 %v3281_v23, %v8537_v40  ;;  %v3283_v16 = vpop.f32.mrb[70].mxu1  ;;  %v3956_v0 = vpop.f32.mrb[70].mxu0  ;;  %v5041_v4 = vadd.f32 %v4754_v9, %v4753_v34 }
 0x374   :  { %v3953_v41 = vadd.f32 %v3952_v5, %v3280_v17  ;;  %v3284_v48 = vadd.f32 %v3283_v16, %v8532_v19  ;;  %v3285_v13 = vpop.f32.mrb[71].mxu1  ;;  %v3958_v38 = vpop.f32.mrb[71].mxu0 }
 0x375   :  { %v3955_v12 = vadd.f32 %v3954_v15, %v3282_v18  ;;  %v3286_v62 = vadd.f32 %v3285_v13, %v8537_v40  ;;  %5042 = vadd.xlane.f32.xlu0 %v5041_v4  ;;  %v5044_v35 = vadd.f32 %v4756_v49, %v4755_v32  ;;  %v8785_v32 = vld [vmem:[#allocation2] ss:$0 sm:$0xff] }
 0x376   :  { %v4489_v52 = vmax.f32 %v3953_v41, 0.0  ;;  %v3957_v56 = vadd.f32 %v3956_v0, %v3284_v48  ;;  %3548 = vmatmul.mubr.bf16.gmra.mrb[176].mxu1 %v10174_v6  ;;  %4221 = vmatmul.mubr.bf16.gmra.mrb[176].mxu0 %v10175_v30 }
 0x377   :  { %v4490_v28 = vmax.f32 %v3955_v12, 0.0  ;;  %v3959_v46 = vadd.f32 %v3958_v38, %v3286_v62  ;;  %3557 = vmatprep.mubr.bf16.mxu1 %v10176_v14  ;;  %4230 = vmatprep.mubr.bf16.mxu0 %v10177_v43  ;;  %v10183_v14 = vld [vmem:[#allocation6_spill] sm:$0xff] }
 0x378   :  { %v4757_v60 = vmul.f32 %v8554_v59, %v4489_v52  ;;  %v4491_v55 = vmax.f32 %v3957_v56, 0.0  ;;  %5045 = vadd.xlane.f32.xlu1 %v5044_v35 }
 0x379   :  { %v4758_v50 = vmul.f32 %v8558_v10, %v4490_v28  ;;  %v4492_v58 = vmax.f32 %v3959_v46, 0.0  ;;  %v3289_v21 = vpop.f32.mrb[72].mxu1  ;;  %v3962_v44 = vpop.f32.mrb[72].mxu0  ;;  %v10182_v46 = vld [vmem:[#allocation5_spill] sm:$0xff] }
 0x37a   :  { %v4759_v39 = vmul.f32 %v8554_v59, %v4491_v55  ;;  %v3290_v27 = vadd.f32 %v3289_v21, %v8532_v19  ;;  %v3291_v37 = vpop.f32.mrb[73].mxu1  ;;  %v3964_v22 = vpop.f32.mrb[73].mxu0 }
 0x37b   :  { %v4760_v45 = vmul.f32 %v8558_v10, %v4492_v58  ;;  %v3292_v33 = vadd.f32 %v3291_v37, %v8537_v40  ;;  %v3293_v29 = vpop.f32.mrb[74].mxu1  ;;  %v3966_v1 = vpop.f32.mrb[74].mxu0  ;;  %v5047_v20 = vadd.f32 %v4758_v50, %v4757_v60  ;;  %v10184_v50 = vld [vmem:[#allocation15_spill] sm:$0xff]  ;;  %v10185_v58 = vld [vmem:[#allocation16_spill] sm:$0xff] }
 0x37c   :  { %v3963_v53 = vadd.f32 %v3962_v44, %v3290_v27  ;;  %v3294_v57 = vadd.f32 %v3293_v29, %v8532_v19  ;;  %v3295_v2 = vpop.f32.mrb[75].mxu1  ;;  %v3968_v61 = vpop.f32.mrb[75].mxu0 }
 0x37d   :  { %v3965_v54 = vadd.f32 %v3964_v22, %v3292_v33  ;;  %v3296_v36 = vadd.f32 %v3295_v2, %v8537_v40  ;;  %5048 = vadd.xlane.f32.xlu0 %v5047_v20  ;;  %v5050_v8 = vadd.f32 %v4760_v45, %v4759_v39 }
 0x37e   :  { %v4493_v24 = vmax.f32 %v3963_v53, 0.0  ;;  %v3967_v26 = vadd.f32 %v3966_v1, %v3294_v57  ;;  %3558 = vmatmul.mubr.bf16.gmra.mrb[180].mxu1 %v10178_v47  ;;  %4231 = vmatmul.mubr.bf16.gmra.mrb[180].mxu0 %v10179_v31 }
 0x37f   :  { %v4494_v25 = vmax.f32 %v3965_v54, 0.0  ;;  %v3969_v7 = vadd.f32 %v3968_v61, %v3296_v36  ;;  %3567 = vmatprep.mubr.bf16.mxu1 %v10180_v3  ;;  %4240 = vmatprep.mubr.bf16.mxu0 %v10181_v11 }
 0x380   :  { %v4761_v34 = vmul.f32 %v8554_v59, %v4493_v24  ;;  %v4495_v63 = vmax.f32 %v3967_v26, 0.0  ;;  %5051 = vadd.xlane.f32.xlu1 %v5050_v8 }
 0x381   :  { %v4762_v9 = vmul.f32 %v8558_v10, %v4494_v25  ;;  %v4496_v51 = vmax.f32 %v3969_v7, 0.0  ;;  %v3299_v42 = vpop.f32.mrb[76].mxu1  ;;  %v3972_v5 = vpop.f32.mrb[76].mxu0 }
 0x382   :  { %v4763_v17 = vmul.f32 %v8554_v59, %v4495_v63  ;;  %v3300_v23 = vadd.f32 %v3299_v42, %v8532_v19  ;;  %v3301_v15 = vpop.f32.mrb[77].mxu1  ;;  %v3974_v49 = vpop.f32.mrb[77].mxu0  ;;  %v10186_v63 = vld [vmem:[#allocation9_spill] sm:$0xff] }
 0x383   :  { %v4764_v18 = vmul.f32 %v8558_v10, %v4496_v51  ;;  %v3302_v16 = vadd.f32 %v3301_v15, %v8537_v40  ;;  %v4947_v0 = vpop.xlane.xlu0 %4946  ;;  %v3303_v4 = vpop.f32.mrb[78].mxu1  ;;  %v5053_v41 = vadd.f32 %v4762_v9, %v4761_v34  ;;  %v10187_v9 = vld [vmem:[#allocation10_spill] sm:$0xff] }
 0x384   :  { %v3973_v48 = vadd.f32 %v3972_v5, %v3300_v23  ;;  %v5336_v13 = vadd.f32 %v8785_v32, %v4947_v0  ;;  %v3304_v38 = vadd.f32 %v3303_v4, %v8532_v19  ;;  %v3976_v12 = vpop.f32.mrb[78].mxu0  ;;  %v3305_v62 = vpop.f32.mrb[79].mxu1  ;;  %v10189_v23 = vld [vmem:[#allocation20_spill] sm:$0xff] }
 0x385   :  { %v3975_v35 = vadd.f32 %v3974_v49, %v3302_v16  ;;  %v3306_v52 = vadd.f32 %v3305_v62, %v8537_v40  ;;  %v3978_v56 = vpop.f32.mrb[79].mxu0  ;;  %5054 = vadd.xlane.f32.xlu0 %v5053_v41  ;;  %v5056_v6 = vadd.f32 %v4764_v18, %v4763_v17  ;;  %v10188_v17 = vld [vmem:[#allocation19_spill] sm:$0xff] }
 0x386   :  { %v4497_v30 = vmax.f32 %v3973_v48, 0.0  ;;  %5465 = vst.msk [vmem:[%s9872_s7] sm:$0xff] %vm5464_vm2, %v5336_v13  ;;  %v3977_v28 = vadd.f32 %v3976_v12, %v3304_v38  ;;  %3568 = vmatmul.mubr.bf16.gmra.mrb[184].mxu1 %v10182_v46  ;;  %4241 = vmatmul.mubr.bf16.gmra.mrb[184].mxu0 %v10183_v14 }
 0x387   :  { %v4498_v43 = vmax.f32 %v3975_v35, 0.0  ;;  %v3979_v60 = vadd.f32 %v3978_v56, %v3306_v52  ;;  %v4950_v55 = vpop.xlane.xlu0 %4949  ;;  %3577 = vmatprep.mubr.bf16.mxu1 %v10184_v50  ;;  %4250 = vmatprep.mubr.bf16.mxu0 %v10185_v58 }
 0x388   :  { %v4765_v21 = vmul.f32 %v8554_v59, %v4497_v30  ;;  %v4499_v44 = vmax.f32 %v3977_v28, 0.0  ;;  %v5337_v39 = vadd.f32 %v8785_v32, %v4950_v55  ;;  %5057 = vadd.xlane.f32.xlu1 %v5056_v6 }
 0x389   :  { %v4766_v27 = vmul.f32 %v8558_v10, %v4498_v43  ;;  %v4500_v37 = vmax.f32 %v3979_v60, 0.0  ;;  %v3309_v22 = vpop.f32.mrb[80].mxu1  ;;  %v3982_v45 = vpop.f32.mrb[80].mxu0 }
 0x38a   :  { %v4767_v33 = vmul.f32 %v8554_v59, %v4499_v44  ;;  %5466 = vst.msk [vmem:[%s9872_s7 + $0x8] sm:$0xff] %vm5464_vm2, %v5337_v39  ;;  %v3310_v29 = vadd.f32 %v3309_v22, %v8532_v19  ;;  %v3311_v1 = vpop.f32.mrb[81].mxu1  ;;  %v3984_v20 = vpop.f32.mrb[81].mxu0  ;;  %v10191_v22 = vld [vmem:[#allocation14_spill] sm:$0xff] }
 0x38b   :  { %v4768_v53 = vmul.f32 %v8558_v10, %v4500_v37  ;;  %v3312_v57 = vadd.f32 %v3311_v1, %v8537_v40  ;;  %v4953_v2 = vpop.xlane.xlu1 %4952  ;;  %v3313_v61 = vpop.f32.mrb[82].mxu1  ;;  %v5059_v54 = vadd.f32 %v4766_v27, %v4765_v21  ;;  %v10190_v37 = vld [vmem:[#allocation13_spill] sm:$0xff]  ;;  %v10193_v1 = vld [vmem:[#allocation24_spill] sm:$0xff] }
 0x38c   :  { %v3983_v36 = vadd.f32 %v3982_v45, %v3310_v29  ;;  %v5338_v8 = vadd.f32 %v8785_v32, %v4953_v2  ;;  %v3314_v24 = vadd.f32 %v3313_v61, %v8532_v19  ;;  %v3986_v26 = vpop.f32.mrb[82].mxu0  ;;  %v3315_v47 = vpop.f32.mrb[83].mxu1  ;;  %v10192_v29 = vld [vmem:[#allocation23_spill] sm:$0xff] }
 0x38d   :  { %v3985_v31 = vadd.f32 %v3984_v20, %v3312_v57  ;;  %v3316_v25 = vadd.f32 %v3315_v47, %v8537_v40  ;;  %v3988_v7 = vpop.f32.mrb[83].mxu0  ;;  %5060 = vadd.xlane.f32.xlu0 %v5059_v54  ;;  %v5062_v3 = vadd.f32 %v4768_v53, %v4767_v33 }
 0x38e   :  { %v4501_v11 = vmax.f32 %v3983_v36, 0.0  ;;  %5467 = vst.msk [vmem:[%s9872_s7 + $0x10] sm:$0xff] %vm5464_vm2, %v5338_v8  ;;  %v3987_v34 = vadd.f32 %v3986_v26, %v3314_v24  ;;  %3578 = vmatmul.mubr.bf16.gmra.mrb[188].mxu1 %v10186_v63  ;;  %4251 = vmatmul.mubr.bf16.gmra.mrb[188].mxu0 %v10187_v9 }
 0x38f   :  { %v4502_v51 = vmax.f32 %v3985_v31, 0.0  ;;  %v3989_v42 = vadd.f32 %v3988_v7, %v3316_v25  ;;  %v4956_v5 = vpop.xlane.xlu1 %4955  ;;  %3587 = vmatprep.mubr.bf16.mxu1 %v10188_v17  ;;  %4260 = vmatprep.mubr.bf16.mxu0 %v10189_v23 }
 0x390   :  { %v4769_v15 = vmul.f32 %v8554_v59, %v4501_v11  ;;  %v4503_v49 = vmax.f32 %v3987_v34, 0.0  ;;  %v5339_v18 = vadd.f32 %v8785_v32, %v4956_v5  ;;  %5063 = vadd.xlane.f32.xlu1 %v5062_v3 }
 0x391   :  { %v4770_v16 = vmul.f32 %v8558_v10, %v4502_v51  ;;  %v4504_v0 = vmax.f32 %v3989_v42, 0.0  ;;  %v3319_v4 = vpop.f32.mrb[84].mxu1  ;;  %v3992_v41 = vpop.f32.mrb[84].mxu0 }
 0x392   :  { %v4771_v48 = vmul.f32 %v8554_v59, %v4503_v49  ;;  %5468 = vst.msk [vmem:[%s9872_s7 + $0x18] sm:$0xff] %vm5464_vm2, %v5339_v18  ;;  %v3320_v13 = vadd.f32 %v3319_v4, %v8532_v19  ;;  %v3321_v38 = vpop.f32.mrb[85].mxu1  ;;  %v3994_v12 = vpop.f32.mrb[85].mxu0  ;;  %v10195_v4 = vld [vmem:[#allocation18_spill] sm:$0xff] }
 0x393   :  { %v4772_v62 = vmul.f32 %v8558_v10, %v4504_v0  ;;  %v3322_v35 = vadd.f32 %v3321_v38, %v8537_v40  ;;  %v4959_v52 = vpop.xlane.xlu0 %4958  ;;  %v3323_v56 = vpop.f32.mrb[86].mxu1  ;;  %v5065_v6 = vadd.f32 %v4770_v16, %v4769_v15  ;;  %v10194_v0 = vld [vmem:[#allocation17_spill] sm:$0xff]  ;;  %v10197_v38 = vld [vmem:[#allocation28_spill] sm:$0xff] }
 0x394   :  { %v3993_v30 = vadd.f32 %v3992_v41, %v3320_v13  ;;  %v5340_v28 = vadd.f32 %v8785_v32, %v4959_v52  ;;  %v3324_v46 = vadd.f32 %v3323_v56, %v8532_v19  ;;  %v3996_v14 = vpop.f32.mrb[86].mxu0  ;;  %v3325_v43 = vpop.f32.mrb[87].mxu1  ;;  %v10196_v13 = vld [vmem:[#allocation27_spill] sm:$0xff] }
 0x395   :  { %v3995_v60 = vadd.f32 %v3994_v12, %v3322_v35  ;;  %v3326_v55 = vadd.f32 %v3325_v43, %v8537_v40  ;;  %v3998_v50 = vpop.f32.mrb[87].mxu0  ;;  %v4962_v58 = vpop.xlane.xlu1 %4961  ;;  %5066 = vadd.xlane.f32.xlu0 %v5065_v6  ;;  %v5068_v21 = vadd.f32 %v4772_v62, %v4771_v48 }
 0x396   :  { %v4505_v44 = vmax.f32 %v3993_v30, 0.0  ;;  %5469 = vst.msk [vmem:[%s9872_s7 + $0x20] sm:$0xff] %vm5464_vm2, %v5340_v28  ;;  %v3997_v39 = vadd.f32 %v3996_v14, %v3324_v46  ;;  %v5341_v27 = vadd.f32 %v8785_v32, %v4962_v58  ;;  %3588 = vmatmul.mubr.bf16.gmra.mrb[192].mxu1 %v10190_v37  ;;  %4261 = vmatmul.mubr.bf16.gmra.mrb[192].mxu0 %v10191_v22 }
 0x397   :  { %v4506_v45 = vmax.f32 %v3995_v60, 0.0  ;;  %v3999_v33 = vadd.f32 %v3998_v50, %v3326_v55  ;;  %3597 = vmatprep.mubr.bf16.mxu1 %v10192_v29  ;;  %4270 = vmatprep.mubr.bf16.mxu0 %v10193_v1 }
 0x398   :  { %v4773_v20 = vmul.f32 %v8554_v59, %v4505_v44  ;;  %v4507_v53 = vmax.f32 %v3997_v39, 0.0  ;;  %5470 = vst.msk [vmem:[%s9872_s7 + $0x28] sm:$0xff] %vm5464_vm2, %v5341_v27  ;;  %5069 = vadd.xlane.f32.xlu1 %v5068_v21 }
 0x399   :  { %v4774_v57 = vmul.f32 %v8558_v10, %v4506_v45  ;;  %v4508_v2 = vmax.f32 %v3999_v33, 0.0  ;;  %v3329_v61 = vpop.f32.mrb[88].mxu1  ;;  %v4002_v54 = vpop.f32.mrb[88].mxu0 }
 0x39a   :  { %v4775_v36 = vmul.f32 %v8554_v59, %v4507_v53  ;;  %v3330_v8 = vadd.f32 %v3329_v61, %v8532_v19  ;;  %v3331_v24 = vpop.f32.mrb[89].mxu1  ;;  %v4004_v26 = vpop.f32.mrb[89].mxu0  ;;  %v10199_v61 = vld [vmem:[#allocation22_spill] sm:$0xff] }
 0x39b   :  { %v4776_v47 = vmul.f32 %v8558_v10, %v4508_v2  ;;  %v3332_v31 = vadd.f32 %v3331_v24, %v8537_v40  ;;  %v4965_v25 = vpop.xlane.xlu0 %4964  ;;  %v3333_v7 = vpop.f32.mrb[90].mxu1  ;;  %v5071_v3 = vadd.f32 %v4774_v57, %v4773_v20  ;;  %v10198_v2 = vld [vmem:[#allocation21_spill] sm:$0xff]  ;;  %v10201_v24 = vld [vmem:[#allocation32_spill] sm:$0xff] }
 0x39c   :  { %v4003_v11 = vadd.f32 %v4002_v54, %v3330_v8  ;;  %v5342_v34 = vadd.f32 %v8785_v32, %v4965_v25  ;;  %v3334_v63 = vadd.f32 %v3333_v7, %v8532_v19  ;;  %v4006_v9 = vpop.f32.mrb[90].mxu0  ;;  %v3335_v51 = vpop.f32.mrb[91].mxu1  ;;  %v10200_v8 = vld [vmem:[#allocation31_spill] sm:$0xff] }
 0x39d   :  { %v4005_v42 = vadd.f32 %v4004_v26, %v3332_v31  ;;  %v3336_v5 = vadd.f32 %v3335_v51, %v8537_v40  ;;  %v4008_v17 = vpop.f32.mrb[91].mxu0  ;;  %v4968_v23 = vpop.xlane.xlu1 %4967  ;;  %5072 = vadd.xlane.f32.xlu0 %v5071_v3  ;;  %v5074_v15 = vadd.f32 %v4776_v47, %v4775_v36 }
 0x39e   :  { %v4509_v49 = vmax.f32 %v4003_v11, 0.0  ;;  %5471 = vst.msk [vmem:[%s9872_s7 + $0x30] sm:$0xff] %vm5464_vm2, %v5342_v34  ;;  %v4007_v18 = vadd.f32 %v4006_v9, %v3334_v63  ;;  %v5343_v16 = vadd.f32 %v8785_v32, %v4968_v23  ;;  %3598 = vmatmul.mubr.bf16.gmra.mrb[196].mxu1 %v10194_v0  ;;  %4271 = vmatmul.mubr.bf16.gmra.mrb[196].mxu0 %v10195_v4 }
 0x39f   :  { %v4510_v41 = vmax.f32 %v4005_v42, 0.0  ;;  %v4009_v48 = vadd.f32 %v4008_v17, %v3336_v5  ;;  %3607 = vmatprep.mubr.bf16.mxu1 %v10196_v13  ;;  %4280 = vmatprep.mubr.bf16.mxu0 %v10197_v38 }
 0x3a0   :  { %v4777_v12 = vmul.f32 %v8554_v59, %v4509_v49  ;;  %v4511_v62 = vmax.f32 %v4007_v18, 0.0  ;;  %5472 = vst.msk [vmem:[%s9872_s7 + $0x38] sm:$0xff] %vm5464_vm2, %v5343_v16  ;;  %5075 = vadd.xlane.f32.xlu1 %v5074_v15 }
 0x3a1   :  { %v4778_v35 = vmul.f32 %v8558_v10, %v4510_v41  ;;  %v4512_v52 = vmax.f32 %v4009_v48, 0.0  ;;  %v3339_v56 = vpop.f32.mrb[92].mxu1  ;;  %v4012_v6 = vpop.f32.mrb[92].mxu0 }
 0x3a2   :  { %v4779_v30 = vmul.f32 %v8554_v59, %v4511_v62  ;;  %v3340_v28 = vadd.f32 %v3339_v56, %v8532_v19  ;;  %v3341_v46 = vpop.f32.mrb[93].mxu1  ;;  %v4014_v14 = vpop.f32.mrb[93].mxu0  ;;  %v10203_v56 = vld [vmem:[#allocation26_spill] sm:$0xff] }
 0x3a3   :  { %v4780_v43 = vmul.f32 %v8558_v10, %v4512_v52  ;;  %v3342_v60 = vadd.f32 %v3341_v46, %v8537_v40  ;;  %v4971_v55 = vpop.xlane.xlu0 %4970  ;;  %v3343_v50 = vpop.f32.mrb[94].mxu1  ;;  %v5077_v58 = vadd.f32 %v4778_v35, %v4777_v12  ;;  %v10202_v52 = vld [vmem:[#allocation25_spill] sm:$0xff]  ;;  %v10205_v46 = vld [vmem:[#allocation36_spill] sm:$0xff] }
 0x3a4   :  { %v4013_v21 = vadd.f32 %v4012_v6, %v3340_v28  ;;  %v5344_v44 = vadd.f32 %v8785_v32, %v4971_v55  ;;  %v3344_v39 = vadd.f32 %v3343_v50, %v8532_v19  ;;  %v4016_v27 = vpop.f32.mrb[94].mxu0  ;;  %v3345_v37 = vpop.f32.mrb[95].mxu1  ;;  %v10204_v28 = vld [vmem:[#allocation35_spill] sm:$0xff] }
 0x3a5   :  { %v4015_v22 = vadd.f32 %v4014_v14, %v3342_v60  ;;  %v3346_v45 = vadd.f32 %v3345_v37, %v8537_v40  ;;  %v4018_v33 = vpop.f32.mrb[95].mxu0  ;;  %v4974_v29 = vpop.xlane.xlu1 %4973  ;;  %5078 = vadd.xlane.f32.xlu0 %v5077_v58  ;;  %v5080_v1 = vadd.f32 %v4780_v43, %v4779_v30 }
 0x3a6   :  { %v4513_v20 = vmax.f32 %v4013_v21, 0.0  ;;  %5473 = vst.msk [vmem:[%s9872_s7 + $0x40] sm:$0xff] %vm5464_vm2, %v5344_v44  ;;  %v4017_v53 = vadd.f32 %v4016_v27, %v3344_v39  ;;  %v5345_v57 = vadd.f32 %v8785_v32, %v4974_v29  ;;  %3608 = vmatmul.mubr.bf16.gmra.mrb[200].mxu1 %v10198_v2  ;;  %4281 = vmatmul.mubr.bf16.gmra.mrb[200].mxu0 %v10199_v61 }
 0x3a7   :  { %v4514_v54 = vmax.f32 %v4015_v22, 0.0  ;;  %v4019_v36 = vadd.f32 %v4018_v33, %v3346_v45  ;;  %3617 = vmatprep.mubr.bf16.mxu1 %v10200_v8  ;;  %4290 = vmatprep.mubr.bf16.mxu0 %v10201_v24 }
 0x3a8   :  { %v4781_v26 = vmul.f32 %v8554_v59, %v4513_v20  ;;  %v4515_v47 = vmax.f32 %v4017_v53, 0.0  ;;  %5474 = vst.msk [vmem:[%s9872_s7 + $0x48] sm:$0xff] %vm5464_vm2, %v5345_v57  ;;  %5081 = vadd.xlane.f32.xlu1 %v5080_v1 }
 0x3a9   :  { %v4782_v31 = vmul.f32 %v8558_v10, %v4514_v54  ;;  %v4516_v25 = vmax.f32 %v4019_v36, 0.0  ;;  %v3349_v7 = vpop.f32.mrb[96].mxu1  ;;  %v4022_v3 = vpop.f32.mrb[96].mxu0 }
 0x3aa   :  { %v4783_v11 = vmul.f32 %v8554_v59, %v4515_v47  ;;  %v3350_v34 = vadd.f32 %v3349_v7, %v8532_v19  ;;  %v3351_v63 = vpop.f32.mrb[97].mxu1  ;;  %v4024_v9 = vpop.f32.mrb[97].mxu0  ;;  %v10207_v7 = vld [vmem:[#allocation30_spill] sm:$0xff] }
 0x3ab   :  { %v4784_v51 = vmul.f32 %v8558_v10, %v4516_v25  ;;  %v3352_v42 = vadd.f32 %v3351_v63, %v8537_v40  ;;  %v4977_v5 = vpop.xlane.xlu0 %4976  ;;  %v3353_v17 = vpop.f32.mrb[98].mxu1  ;;  %v5083_v23 = vadd.f32 %v4782_v31, %v4781_v26  ;;  %v10206_v25 = vld [vmem:[#allocation29_spill] sm:$0xff]  ;;  %v10209_v63 = vld [vmem:[#allocation115_spill] sm:$0xff] }
 0x3ac   :  { %v4023_v15 = vadd.f32 %v4022_v3, %v3350_v34  ;;  %v5346_v49 = vadd.f32 %v8785_v32, %v4977_v5  ;;  %v3354_v18 = vadd.f32 %v3353_v17, %v8532_v19  ;;  %v4026_v16 = vpop.f32.mrb[98].mxu0  ;;  %v3355_v0 = vpop.f32.mrb[99].mxu1  ;;  %v10208_v34 = vld [vmem:[#allocation39_spill] sm:$0xff] }
 0x3ad   :  { %v4025_v4 = vadd.f32 %v4024_v9, %v3352_v42  ;;  %v3356_v41 = vadd.f32 %v3355_v0, %v8537_v40  ;;  %v4028_v48 = vpop.f32.mrb[99].mxu0  ;;  %v4980_v13 = vpop.xlane.xlu1 %4979  ;;  %5084 = vadd.xlane.f32.xlu0 %v5083_v23  ;;  %v5086_v38 = vadd.f32 %v4784_v51, %v4783_v11 }
 0x3ae   :  { %v4517_v12 = vmax.f32 %v4023_v15, 0.0  ;;  %5475 = vst.msk [vmem:[%s9872_s7 + $0x50] sm:$0xff] %vm5464_vm2, %v5346_v49  ;;  %v4027_v62 = vadd.f32 %v4026_v16, %v3354_v18  ;;  %v5347_v35 = vadd.f32 %v8785_v32, %v4980_v13  ;;  %3618 = vmatmul.mubr.bf16.gmra.mrb[204].mxu1 %v10202_v52  ;;  %4291 = vmatmul.mubr.bf16.gmra.mrb[204].mxu0 %v10203_v56 }
 0x3af   :  { %v4518_v6 = vmax.f32 %v4025_v4, 0.0  ;;  %v4029_v30 = vadd.f32 %v4028_v48, %v3356_v41  ;;  %3627 = vmatprep.mubr.bf16.mxu1 %v10204_v28  ;;  %4300 = vmatprep.mubr.bf16.mxu0 %v10205_v46 }
 0x3b0   :  { %v4785_v14 = vmul.f32 %v8554_v59, %v4517_v12  ;;  %v4519_v43 = vmax.f32 %v4027_v62, 0.0  ;;  %5476 = vst.msk [vmem:[%s9872_s7 + $0x58] sm:$0xff] %vm5464_vm2, %v5347_v35  ;;  %5087 = vadd.xlane.f32.xlu1 %v5086_v38 }
 0x3b1   :  { %v4786_v60 = vmul.f32 %v8558_v10, %v4518_v6  ;;  %v4520_v55 = vmax.f32 %v4029_v30, 0.0  ;;  %v3359_v50 = vpop.f32.mrb[100].mxu1  ;;  %v4032_v58 = vpop.f32.mrb[100].mxu0 }
 0x3b2   :  { %v4787_v21 = vmul.f32 %v8554_v59, %v4519_v43  ;;  %v3360_v44 = vadd.f32 %v3359_v50, %v8532_v19  ;;  %v3361_v39 = vpop.f32.mrb[101].mxu1  ;;  %v4034_v27 = vpop.f32.mrb[101].mxu0  ;;  %v10211_v50 = vld [vmem:[#allocation34_spill] sm:$0xff] }
 0x3b3   :  { %v4788_v37 = vmul.f32 %v8558_v10, %v4520_v55  ;;  %v3362_v22 = vadd.f32 %v3361_v39, %v8537_v40  ;;  %v4983_v45 = vpop.xlane.xlu0 %4982  ;;  %v3363_v33 = vpop.f32.mrb[102].mxu1  ;;  %v5089_v29 = vadd.f32 %v4786_v60, %v4785_v14  ;;  %v10210_v55 = vld [vmem:[#allocation33_spill] sm:$0xff]  ;;  %v10213_v39 = vld [vmem:[#allocation43_spill] sm:$0xff] }
 0x3b4   :  { %v4033_v1 = vadd.f32 %v4032_v58, %v3360_v44  ;;  %v5348_v20 = vadd.f32 %v8785_v32, %v4983_v45  ;;  %v3364_v53 = vadd.f32 %v3363_v33, %v8532_v19  ;;  %v4036_v57 = vpop.f32.mrb[102].mxu0  ;;  %v3365_v2 = vpop.f32.mrb[103].mxu1  ;;  %v10212_v44 = vld [vmem:[#allocation42_spill] sm:$0xff] }
 0x3b5   :  { %v4035_v61 = vadd.f32 %v4034_v27, %v3362_v22  ;;  %v3366_v54 = vadd.f32 %v3365_v2, %v8537_v40  ;;  %v4038_v36 = vpop.f32.mrb[103].mxu0  ;;  %v4986_v8 = vpop.xlane.xlu1 %4985  ;;  %5090 = vadd.xlane.f32.xlu0 %v5089_v29  ;;  %v5092_v24 = vadd.f32 %v4788_v37, %v4787_v21 }
 0x3b6   :  { %v4521_v26 = vmax.f32 %v4033_v1, 0.0  ;;  %5477 = vst.msk [vmem:[%s9872_s7 + $0x60] sm:$0xff] %vm5464_vm2, %v5348_v20  ;;  %v4037_v47 = vadd.f32 %v4036_v57, %v3364_v53  ;;  %v5349_v31 = vadd.f32 %v8785_v32, %v4986_v8  ;;  %3628 = vmatmul.mubr.bf16.gmra.mrb[208].mxu1 %v10206_v25  ;;  %4301 = vmatmul.mubr.bf16.gmra.mrb[208].mxu0 %v10207_v7 }
 0x3b7   :  { %v4522_v3 = vmax.f32 %v4035_v61, 0.0  ;;  %v4039_v11 = vadd.f32 %v4038_v36, %v3366_v54  ;;  %3637 = vmatprep.mubr.bf16.mxu1 %v10208_v34  ;;  %4310 = vmatprep.mubr.bf16.mxu0 %v10209_v63 }
 0x3b8   :  { %v4789_v9 = vmul.f32 %v8554_v59, %v4521_v26  ;;  %v4523_v51 = vmax.f32 %v4037_v47, 0.0  ;;  %5478 = vst.msk [vmem:[%s9872_s7 + $0x68] sm:$0xff] %vm5464_vm2, %v5349_v31  ;;  %5093 = vadd.xlane.f32.xlu1 %v5092_v24 }
 0x3b9   :  { %v4790_v42 = vmul.f32 %v8558_v10, %v4522_v3  ;;  %v4524_v5 = vmax.f32 %v4039_v11, 0.0  ;;  %v3369_v17 = vpop.f32.mrb[104].mxu1  ;;  %v4042_v23 = vpop.f32.mrb[104].mxu0 }
 0x3ba   :  { %v4791_v15 = vmul.f32 %v8554_v59, %v4523_v51  ;;  %v3370_v49 = vadd.f32 %v3369_v17, %v8532_v19  ;;  %v3371_v18 = vpop.f32.mrb[105].mxu1  ;;  %v4044_v16 = vpop.f32.mrb[105].mxu0  ;;  %v10215_v17 = vld [vmem:[#allocation38_spill] sm:$0xff] }
 0x3bb   :  { %v4792_v0 = vmul.f32 %v8558_v10, %v4524_v5  ;;  %v3372_v4 = vadd.f32 %v3371_v18, %v8537_v40  ;;  %v4989_v41 = vpop.xlane.xlu0 %4988  ;;  %v3373_v48 = vpop.f32.mrb[106].mxu1  ;;  %v5095_v13 = vadd.f32 %v4790_v42, %v4789_v9  ;;  %v10214_v5 = vld [vmem:[#allocation37_spill] sm:$0xff]  ;;  %v10217_v18 = vld [vmem:[#allocation47_spill] sm:$0xff] }
 0x3bc   :  { %v4043_v38 = vadd.f32 %v4042_v23, %v3370_v49  ;;  %v5350_v12 = vadd.f32 %v8785_v32, %v4989_v41  ;;  %v3374_v62 = vadd.f32 %v3373_v48, %v8532_v19  ;;  %v4046_v35 = vpop.f32.mrb[106].mxu0  ;;  %v3375_v52 = vpop.f32.mrb[107].mxu1  ;;  %v10216_v49 = vld [vmem:[#allocation46_spill] sm:$0xff] }
 0x3bd   :  { %v4045_v56 = vadd.f32 %v4044_v16, %v3372_v4  ;;  %v3376_v6 = vadd.f32 %v3375_v52, %v8537_v40  ;;  %v4048_v30 = vpop.f32.mrb[107].mxu0  ;;  %v4992_v28 = vpop.xlane.xlu1 %4991  ;;  %5096 = vadd.xlane.f32.xlu0 %v5095_v13  ;;  %v5098_v46 = vadd.f32 %v4792_v0, %v4791_v15 }
 0x3be   :  { %v4525_v14 = vmax.f32 %v4043_v38, 0.0  ;;  %5479 = vst.msk [vmem:[%s9872_s7 + $0x70] sm:$0xff] %vm5464_vm2, %v5350_v12  ;;  %v4047_v43 = vadd.f32 %v4046_v35, %v3374_v62  ;;  %v5351_v60 = vadd.f32 %v8785_v32, %v4992_v28  ;;  %3638 = vmatmul.mubr.bf16.gmra.mrb[212].mxu1 %v10210_v55  ;;  %4311 = vmatmul.mubr.bf16.gmra.mrb[212].mxu0 %v10211_v50 }
 0x3bf   :  { %v4526_v58 = vmax.f32 %v4045_v56, 0.0  ;;  %v4049_v21 = vadd.f32 %v4048_v30, %v3376_v6  ;;  %3647 = vmatprep.mubr.bf16.mxu1 %v10212_v44  ;;  %4320 = vmatprep.mubr.bf16.mxu0 %v10213_v39 }
 0x3c0   :  { %v4793_v27 = vmul.f32 %v8554_v59, %v4525_v14  ;;  %v4527_v37 = vmax.f32 %v4047_v43, 0.0  ;;  %5480 = vst.msk [vmem:[%s9872_s7 + $0x78] sm:$0xff] %vm5464_vm2, %v5351_v60  ;;  %5099 = vadd.xlane.f32.xlu1 %v5098_v46 }
 0x3c1   :  { %v4794_v22 = vmul.f32 %v8558_v10, %v4526_v58  ;;  %v4528_v45 = vmax.f32 %v4049_v21, 0.0  ;;  %v3379_v33 = vpop.f32.mrb[108].mxu1  ;;  %v4052_v29 = vpop.f32.mrb[108].mxu0 }
 0x3c2   :  { %v4795_v1 = vmul.f32 %v8554_v59, %v4527_v37  ;;  %v3380_v20 = vadd.f32 %v3379_v33, %v8532_v19  ;;  %v3381_v53 = vpop.f32.mrb[109].mxu1  ;;  %v4054_v57 = vpop.f32.mrb[109].mxu0  ;;  %v10219_v33 = vld [vmem:[#allocation41_spill] sm:$0xff] }
 0x3c3   :  { %v4796_v2 = vmul.f32 %v8558_v10, %v4528_v45  ;;  %v3382_v61 = vadd.f32 %v3381_v53, %v8537_v40  ;;  %v4995_v54 = vpop.xlane.xlu0 %4994  ;;  %v3383_v36 = vpop.f32.mrb[110].mxu1  ;;  %v5101_v8 = vadd.f32 %v4794_v22, %v4793_v27  ;;  %v10218_v45 = vld [vmem:[#allocation40_spill] sm:$0xff]  ;;  %v10221_v53 = vld [vmem:[#allocation51_spill] sm:$0xff] }
 0x3c4   :  { %v4053_v24 = vadd.f32 %v4052_v29, %v3380_v20  ;;  %v5352_v26 = vadd.f32 %v8785_v32, %v4995_v54  ;;  %v3384_v47 = vadd.f32 %v3383_v36, %v8532_v19  ;;  %v4056_v31 = vpop.f32.mrb[110].mxu0  ;;  %v3385_v25 = vpop.f32.mrb[111].mxu1  ;;  %v10220_v20 = vld [vmem:[#allocation50_spill] sm:$0xff] }
 0x3c5   :  { %v4055_v7 = vadd.f32 %v4054_v57, %v3382_v61  ;;  %v3386_v3 = vadd.f32 %v3385_v25, %v8537_v40  ;;  %v4058_v11 = vpop.f32.mrb[111].mxu0  ;;  %v4998_v34 = vpop.xlane.xlu1 %4997  ;;  %5102 = vadd.xlane.f32.xlu0 %v5101_v8  ;;  %v5104_v63 = vadd.f32 %v4796_v2, %v4795_v1 }
 0x3c6   :  { %v4529_v9 = vmax.f32 %v4053_v24, 0.0  ;;  %5481 = vst.msk [vmem:[%s9872_s7 + $0x80] sm:$0xff] %vm5464_vm2, %v5352_v26  ;;  %v4057_v51 = vadd.f32 %v4056_v31, %v3384_v47  ;;  %v5353_v42 = vadd.f32 %v8785_v32, %v4998_v34  ;;  %3648 = vmatmul.mubr.bf16.gmra.mrb[216].mxu1 %v10214_v5  ;;  %4321 = vmatmul.mubr.bf16.gmra.mrb[216].mxu0 %v10215_v17 }
 0x3c7   :  { %v4530_v23 = vmax.f32 %v4055_v7, 0.0  ;;  %v4059_v15 = vadd.f32 %v4058_v11, %v3386_v3  ;;  %3657 = vmatprep.mubr.bf16.mxu1 %v10216_v49  ;;  %4330 = vmatprep.mubr.bf16.mxu0 %v10217_v18 }
 0x3c8   :  { %v4797_v16 = vmul.f32 %v8554_v59, %v4529_v9  ;;  %v4531_v0 = vmax.f32 %v4057_v51, 0.0  ;;  %5482 = vst.msk [vmem:[%s9872_s7 + $0x88] sm:$0xff] %vm5464_vm2, %v5353_v42  ;;  %5105 = vadd.xlane.f32.xlu1 %v5104_v63 }
 0x3c9   :  { %v4798_v4 = vmul.f32 %v8558_v10, %v4530_v23  ;;  %v4532_v41 = vmax.f32 %v4059_v15, 0.0  ;;  %v3389_v48 = vpop.f32.mrb[112].mxu1  ;;  %v4062_v13 = vpop.f32.mrb[112].mxu0 }
 0x3ca   :  { %v4799_v38 = vmul.f32 %v8554_v59, %v4531_v0  ;;  %v3390_v12 = vadd.f32 %v3389_v48, %v8532_v19  ;;  %v3391_v62 = vpop.f32.mrb[113].mxu1  ;;  %v4064_v35 = vpop.f32.mrb[113].mxu0  ;;  %v10223_v48 = vld [vmem:[#allocation45_spill] sm:$0xff] }
 0x3cb   :  { %v4800_v52 = vmul.f32 %v8558_v10, %v4532_v41  ;;  %v3392_v56 = vadd.f32 %v3391_v62, %v8537_v40  ;;  %v5001_v6 = vpop.xlane.xlu0 %5000  ;;  %v3393_v30 = vpop.f32.mrb[114].mxu1  ;;  %v5107_v28 = vadd.f32 %v4798_v4, %v4797_v16  ;;  %v10222_v41 = vld [vmem:[#allocation44_spill] sm:$0xff]  ;;  %v10225_v62 = vld [vmem:[#allocation55_spill] sm:$0xff] }
 0x3cc   :  { %v4063_v46 = vadd.f32 %v4062_v13, %v3390_v12  ;;  %v5354_v14 = vadd.f32 %v8785_v32, %v5001_v6  ;;  %v3394_v43 = vadd.f32 %v3393_v30, %v8532_v19  ;;  %v4066_v60 = vpop.f32.mrb[114].mxu0  ;;  %v3395_v55 = vpop.f32.mrb[115].mxu1  ;;  %v10224_v12 = vld [vmem:[#allocation54_spill] sm:$0xff] }
 0x3cd   :  { %v4065_v50 = vadd.f32 %v4064_v35, %v3392_v56  ;;  %v3396_v58 = vadd.f32 %v3395_v55, %v8537_v40  ;;  %v4068_v21 = vpop.f32.mrb[115].mxu0  ;;  %v5004_v44 = vpop.xlane.xlu1 %5003  ;;  %5108 = vadd.xlane.f32.xlu0 %v5107_v28  ;;  %v5110_v39 = vadd.f32 %v4800_v52, %v4799_v38 }
 0x3ce   :  { %v4533_v27 = vmax.f32 %v4063_v46, 0.0  ;;  %5483 = vst.msk [vmem:[%s9872_s7 + $0x90] sm:$0xff] %vm5464_vm2, %v5354_v14  ;;  %v4067_v37 = vadd.f32 %v4066_v60, %v3394_v43  ;;  %v5355_v22 = vadd.f32 %v8785_v32, %v5004_v44  ;;  %3658 = vmatmul.mubr.bf16.gmra.mrb[220].mxu1 %v10218_v45  ;;  %4331 = vmatmul.mubr.bf16.gmra.mrb[220].mxu0 %v10219_v33 }
 0x3cf   :  { %v4534_v29 = vmax.f32 %v4065_v50, 0.0  ;;  %v4069_v1 = vadd.f32 %v4068_v21, %v3396_v58  ;;  %3667 = vmatprep.mubr.bf16.mxu1 %v10220_v20  ;;  %4340 = vmatprep.mubr.bf16.mxu0 %v10221_v53 }
 0x3d0   :  { %v4801_v57 = vmul.f32 %v8554_v59, %v4533_v27  ;;  %v4535_v2 = vmax.f32 %v4067_v37, 0.0  ;;  %5484 = vst.msk [vmem:[%s9872_s7 + $0x98] sm:$0xff] %vm5464_vm2, %v5355_v22  ;;  %5111 = vadd.xlane.f32.xlu1 %v5110_v39 }
 0x3d1   :  { %v4802_v61 = vmul.f32 %v8558_v10, %v4534_v29  ;;  %v4536_v54 = vmax.f32 %v4069_v1, 0.0  ;;  %v3399_v36 = vpop.f32.mrb[116].mxu1  ;;  %v4072_v8 = vpop.f32.mrb[116].mxu0 }
 0x3d2   :  { %v4803_v24 = vmul.f32 %v8554_v59, %v4535_v2  ;;  %v3400_v26 = vadd.f32 %v3399_v36, %v8532_v19  ;;  %v3401_v47 = vpop.f32.mrb[117].mxu1  ;;  %v4074_v31 = vpop.f32.mrb[117].mxu0  ;;  %v10227_v36 = vld [vmem:[#allocation49_spill] sm:$0xff] }
 0x3d3   :  { %v4804_v25 = vmul.f32 %v8558_v10, %v4536_v54  ;;  %v3402_v7 = vadd.f32 %v3401_v47, %v8537_v40  ;;  %v5007_v3 = vpop.xlane.xlu0 %5006  ;;  %v3403_v11 = vpop.f32.mrb[118].mxu1  ;;  %v5113_v34 = vadd.f32 %v4802_v61, %v4801_v57  ;;  %v10226_v54 = vld [vmem:[#allocation48_spill] sm:$0xff]  ;;  %v10229_v47 = vld [vmem:[#allocation59_spill] sm:$0xff] }
 0x3d4   :  { %v4073_v63 = vadd.f32 %v4072_v8, %v3400_v26  ;;  %v5356_v9 = vadd.f32 %v8785_v32, %v5007_v3  ;;  %v3404_v51 = vadd.f32 %v3403_v11, %v8532_v19  ;;  %v4076_v42 = vpop.f32.mrb[118].mxu0  ;;  %v3405_v5 = vpop.f32.mrb[119].mxu1  ;;  %v10228_v26 = vld [vmem:[#allocation58_spill] sm:$0xff] }
 0x3d5   :  { %v4075_v17 = vadd.f32 %v4074_v31, %v3402_v7  ;;  %v3406_v23 = vadd.f32 %v3405_v5, %v8537_v40  ;;  %v4078_v15 = vpop.f32.mrb[119].mxu0  ;;  %v5010_v49 = vpop.xlane.xlu1 %5009  ;;  %5114 = vadd.xlane.f32.xlu0 %v5113_v34  ;;  %v5116_v18 = vadd.f32 %v4804_v25, %v4803_v24 }
 0x3d6   :  { %v4537_v16 = vmax.f32 %v4073_v63, 0.0  ;;  %5485 = vst.msk [vmem:[%s9872_s7 + $0xa0] sm:$0xff] %vm5464_vm2, %v5356_v9  ;;  %v4077_v0 = vadd.f32 %v4076_v42, %v3404_v51  ;;  %v5357_v4 = vadd.f32 %v8785_v32, %v5010_v49  ;;  %3668 = vmatmul.mubr.bf16.gmra.mrb[224].mxu1 %v10222_v41  ;;  %4341 = vmatmul.mubr.bf16.gmra.mrb[224].mxu0 %v10223_v48 }
 0x3d7   :  { %v4538_v13 = vmax.f32 %v4075_v17, 0.0  ;;  %v4079_v38 = vadd.f32 %v4078_v15, %v3406_v23  ;;  %3677 = vmatprep.mubr.bf16.mxu1 %v10224_v12  ;;  %4350 = vmatprep.mubr.bf16.mxu0 %v10225_v62 }
 0x3d8   :  { %v4805_v35 = vmul.f32 %v8554_v59, %v4537_v16  ;;  %v4539_v52 = vmax.f32 %v4077_v0, 0.0  ;;  %5486 = vst.msk [vmem:[%s9872_s7 + $0xa8] sm:$0xff] %vm5464_vm2, %v5357_v4  ;;  %5117 = vadd.xlane.f32.xlu1 %v5116_v18 }
 0x3d9   :  { %v4806_v56 = vmul.f32 %v8558_v10, %v4538_v13  ;;  %v4540_v6 = vmax.f32 %v4079_v38, 0.0  ;;  %v3409_v30 = vpop.f32.mrb[120].mxu1  ;;  %v4082_v28 = vpop.f32.mrb[120].mxu0 }
 0x3da   :  { %v4807_v46 = vmul.f32 %v8554_v59, %v4539_v52  ;;  %v3410_v14 = vadd.f32 %v3409_v30, %v8532_v19  ;;  %v3411_v43 = vpop.f32.mrb[121].mxu1  ;;  %v4084_v60 = vpop.f32.mrb[121].mxu0  ;;  %v10231_v30 = vld [vmem:[#allocation53_spill] sm:$0xff] }
 0x3db   :  { %v4808_v55 = vmul.f32 %v8558_v10, %v4540_v6  ;;  %v3412_v50 = vadd.f32 %v3411_v43, %v8537_v40  ;;  %v5013_v58 = vpop.xlane.xlu0 %5012  ;;  %v3413_v21 = vpop.f32.mrb[122].mxu1  ;;  %v5119_v44 = vadd.f32 %v4806_v56, %v4805_v35  ;;  %v10230_v6 = vld [vmem:[#allocation52_spill] sm:$0xff]  ;;  %v10233_v43 = vld [vmem:[#allocation63_spill] sm:$0xff] }
 0x3dc   :  { %v4083_v39 = vadd.f32 %v4082_v28, %v3410_v14  ;;  %v5358_v27 = vadd.f32 %v8785_v32, %v5013_v58  ;;  %v3414_v37 = vadd.f32 %v3413_v21, %v8532_v19  ;;  %v4086_v22 = vpop.f32.mrb[122].mxu0  ;;  %v3415_v45 = vpop.f32.mrb[123].mxu1  ;;  %v10232_v14 = vld [vmem:[#allocation62_spill] sm:$0xff] }
 0x3dd   :  { %v4085_v33 = vadd.f32 %v4084_v60, %v3412_v50  ;;  %v3416_v29 = vadd.f32 %v3415_v45, %v8537_v40  ;;  %v4088_v1 = vpop.f32.mrb[123].mxu0  ;;  %v5016_v20 = vpop.xlane.xlu1 %5015  ;;  %5120 = vadd.xlane.f32.xlu0 %v5119_v44  ;;  %v5122_v53 = vadd.f32 %v4808_v55, %v4807_v46 }
 0x3de   :  { %v4541_v57 = vmax.f32 %v4083_v39, 0.0  ;;  %5487 = vst.msk [vmem:[%s9872_s7 + $0xb0] sm:$0xff] %vm5464_vm2, %v5358_v27  ;;  %v4087_v2 = vadd.f32 %v4086_v22, %v3414_v37  ;;  %v5359_v61 = vadd.f32 %v8785_v32, %v5016_v20  ;;  %3678 = vmatmul.mubr.bf16.gmra.mrb[228].mxu1 %v10226_v54  ;;  %4351 = vmatmul.mubr.bf16.gmra.mrb[228].mxu0 %v10227_v36 }
 0x3df   :  { %v4542_v8 = vmax.f32 %v4085_v33, 0.0  ;;  %v4089_v24 = vadd.f32 %v4088_v1, %v3416_v29  ;;  %3687 = vmatprep.mubr.bf16.mxu1 %v10228_v26  ;;  %4360 = vmatprep.mubr.bf16.mxu0 %v10229_v47 }
 0x3e0   :  { %v4809_v31 = vmul.f32 %v8554_v59, %v4541_v57  ;;  %v4543_v25 = vmax.f32 %v4087_v2, 0.0  ;;  %5488 = vst.msk [vmem:[%s9872_s7 + $0xb8] sm:$0xff] %vm5464_vm2, %v5359_v61  ;;  %5123 = vadd.xlane.f32.xlu1 %v5122_v53 }
 0x3e1   :  { %v4810_v7 = vmul.f32 %v8558_v10, %v4542_v8  ;;  %v4544_v3 = vmax.f32 %v4089_v24, 0.0  ;;  %v3419_v11 = vpop.f32.mrb[124].mxu1  ;;  %v4092_v34 = vpop.f32.mrb[124].mxu0 }
 0x3e2   :  { %v4811_v63 = vmul.f32 %v8554_v59, %v4543_v25  ;;  %v3420_v9 = vadd.f32 %v3419_v11, %v8532_v19  ;;  %v3421_v51 = vpop.f32.mrb[125].mxu1  ;;  %v4094_v42 = vpop.f32.mrb[125].mxu0  ;;  %v10235_v11 = vld [vmem:[#allocation57_spill] sm:$0xff] }
 0x3e3   :  { %v4812_v5 = vmul.f32 %v8558_v10, %v4544_v3  ;;  %v3422_v17 = vadd.f32 %v3421_v51, %v8537_v40  ;;  %v5019_v23 = vpop.xlane.xlu0 %5018  ;;  %v3423_v15 = vpop.f32.mrb[126].mxu1  ;;  %v5125_v49 = vadd.f32 %v4810_v7, %v4809_v31  ;;  %v9084_v7 = vld [vmem:[#allocation2] ss:$0 sm:$0xff]  ;;  %v10234_v3 = vld [vmem:[#allocation56_spill] sm:$0xff]  ;;  %v10237_v51 = vld [vmem:[#allocation67_spill] sm:$0xff] }
 0x3e4   :  { %v4093_v18 = vadd.f32 %v4092_v34, %v3420_v9  ;;  %v5360_v16 = vadd.f32 %v8785_v32, %v5019_v23  ;;  %v3424_v0 = vadd.f32 %v3423_v15, %v8532_v19  ;;  %v4096_v4 = vpop.f32.mrb[126].mxu0  ;;  %v3425_v41 = vpop.f32.mrb[127].mxu1  ;;  %v10236_v9 = vld [vmem:[#allocation66_spill] sm:$0xff] }
 0x3e5   :  { %v4095_v48 = vadd.f32 %v4094_v42, %v3422_v17  ;;  %v3426_v13 = vadd.f32 %v3425_v41, %v8537_v40  ;;  %v4098_v38 = vpop.f32.mrb[127].mxu0  ;;  %v5022_v12 = vpop.xlane.xlu1 %5021  ;;  %5126 = vadd.xlane.f32.xlu0 %v5125_v49  ;;  %v5128_v62 = vadd.f32 %v4812_v5, %v4811_v63 }
 0x3e6   :  { %v4545_v35 = vmax.f32 %v4093_v18, 0.0  ;;  %5489 = vst.msk [vmem:[%s9872_s7 + $0xc0] sm:$0xff] %vm5464_vm2, %v5360_v16  ;;  %v4097_v52 = vadd.f32 %v4096_v4, %v3424_v0  ;;  %v5361_v56 = vadd.f32 %v8785_v32, %v5022_v12  ;;  %3688 = vmatmul.mubr.bf16.gmra.mrb[232].mxu1 %v10230_v6  ;;  %4361 = vmatmul.mubr.bf16.gmra.mrb[232].mxu0 %v10231_v30 }
 0x3e7   :  { %v4546_v28 = vmax.f32 %v4095_v48, 0.0  ;;  %v4099_v46 = vadd.f32 %v4098_v38, %v3426_v13  ;;  %3697 = vmatprep.mubr.bf16.mxu1 %v10232_v14  ;;  %4370 = vmatprep.mubr.bf16.mxu0 %v10233_v43 }
 0x3e8   :  { %v4813_v60 = vmul.f32 %v8554_v59, %v4545_v35  ;;  %v4547_v55 = vmax.f32 %v4097_v52, 0.0  ;;  %5490 = vst.msk [vmem:[%s9872_s7 + $0xc8] sm:$0xff] %vm5464_vm2, %v5361_v56  ;;  %5129 = vadd.xlane.f32.xlu1 %v5128_v62 }
 0x3e9   :  { %v4814_v50 = vmul.f32 %v8558_v10, %v4546_v28  ;;  %v4548_v58 = vmax.f32 %v4099_v46, 0.0  ;;  %v3429_v21 = vpop.f32.mrb[128].mxu1  ;;  %v4102_v44 = vpop.f32.mrb[128].mxu0 }
 0x3ea   :  { %v4815_v39 = vmul.f32 %v8554_v59, %v4547_v55  ;;  %v3430_v27 = vadd.f32 %v3429_v21, %v8532_v19  ;;  %v3431_v37 = vpop.f32.mrb[129].mxu1  ;;  %v4104_v22 = vpop.f32.mrb[129].mxu0  ;;  %v10239_v21 = vld [vmem:[#allocation61_spill] sm:$0xff] }
 0x3eb   :  { %v4816_v45 = vmul.f32 %v8558_v10, %v4548_v58  ;;  %v3432_v33 = vadd.f32 %v3431_v37, %v8537_v40  ;;  %v5025_v29 = vpop.xlane.xlu0 %5024  ;;  %v3433_v1 = vpop.f32.mrb[130].mxu1  ;;  %v5131_v20 = vadd.f32 %v4814_v50, %v4813_v60  ;;  %v10238_v58 = vld [vmem:[#allocation60_spill] sm:$0xff]  ;;  %v10241_v37 = vld [vmem:[#allocation71_spill] sm:$0xff] }
 0x3ec   :  { %v4103_v53 = vadd.f32 %v4102_v44, %v3430_v27  ;;  %v5362_v57 = vadd.f32 %v8785_v32, %v5025_v29  ;;  %v3434_v2 = vadd.f32 %v3433_v1, %v8532_v19  ;;  %v4106_v61 = vpop.f32.mrb[130].mxu0  ;;  %v3435_v54 = vpop.f32.mrb[131].mxu1  ;;  %v10240_v27 = vld [vmem:[#allocation70_spill] sm:$0xff] }
 0x3ed   :  { %v4105_v36 = vadd.f32 %v4104_v22, %v3432_v33  ;;  %v3436_v8 = vadd.f32 %v3435_v54, %v8537_v40  ;;  %v4108_v24 = vpop.f32.mrb[131].mxu0  ;;  %v5028_v26 = vpop.xlane.xlu1 %5027  ;;  %5132 = vadd.xlane.f32.xlu0 %v5131_v20  ;;  %v5134_v47 = vadd.f32 %v4816_v45, %v4815_v39 }
 0x3ee   :  { %v4549_v31 = vmax.f32 %v4103_v53, 0.0  ;;  %5491 = vst.msk [vmem:[%s9872_s7 + $0xd0] sm:$0xff] %vm5464_vm2, %v5362_v57  ;;  %v4107_v25 = vadd.f32 %v4106_v61, %v3434_v2  ;;  %v5363_v32 = vadd.f32 %v9084_v7, %v5028_v26  ;;  %3698 = vmatmul.mubr.bf16.gmra.mrb[236].mxu1 %v10234_v3  ;;  %4371 = vmatmul.mubr.bf16.gmra.mrb[236].mxu0 %v10235_v11 }
 0x3ef   :  { %v4550_v34 = vmax.f32 %v4105_v36, 0.0  ;;  %v4109_v63 = vadd.f32 %v4108_v24, %v3436_v8  ;;  %3707 = vmatprep.mubr.bf16.mxu1 %v10236_v9  ;;  %4380 = vmatprep.mubr.bf16.mxu0 %v10237_v51 }
 0x3f0   :  { %v4817_v42 = vmul.f32 %v8554_v59, %v4549_v31  ;;  %v4551_v5 = vmax.f32 %v4107_v25, 0.0  ;;  %5492 = vst.msk [vmem:[%s9872_s7 + $0xd8] sm:$0xff] %vm5464_vm2, %v5363_v32  ;;  %5135 = vadd.xlane.f32.xlu1 %v5134_v47 }
 0x3f1   :  { %v4818_v17 = vmul.f32 %v8558_v10, %v4550_v34  ;;  %v4552_v23 = vmax.f32 %v4109_v63, 0.0  ;;  %v3439_v15 = vpop.f32.mrb[132].mxu1  ;;  %v4112_v49 = vpop.f32.mrb[132].mxu0 }
 0x3f2   :  { %v4819_v18 = vmul.f32 %v8554_v59, %v4551_v5  ;;  %v3440_v16 = vadd.f32 %v3439_v15, %v8532_v19  ;;  %v3441_v0 = vpop.f32.mrb[133].mxu1  ;;  %v4114_v4 = vpop.f32.mrb[133].mxu0  ;;  %v10243_v15 = vld [vmem:[#allocation65_spill] sm:$0xff] }
 0x3f3   :  { %v4820_v41 = vmul.f32 %v8558_v10, %v4552_v23  ;;  %v3442_v48 = vadd.f32 %v3441_v0, %v8537_v40  ;;  %v5031_v13 = vpop.xlane.xlu0 %5030  ;;  %v3443_v38 = vpop.f32.mrb[134].mxu1  ;;  %v5137_v12 = vadd.f32 %v4818_v17, %v4817_v42  ;;  %v10242_v23 = vld [vmem:[#allocation64_spill] sm:$0xff]  ;;  %v10245_v0 = vld [vmem:[#allocation75_spill] sm:$0xff] }
 0x3f4   :  { %v4113_v62 = vadd.f32 %v4112_v49, %v3440_v16  ;;  %v5364_v35 = vadd.f32 %v9084_v7, %v5031_v13  ;;  %v3444_v52 = vadd.f32 %v3443_v38, %v8532_v19  ;;  %v4116_v56 = vpop.f32.mrb[134].mxu0  ;;  %v3445_v6 = vpop.f32.mrb[135].mxu1  ;;  %v10244_v16 = vld [vmem:[#allocation74_spill] sm:$0xff] }
 0x3f5   :  { %v4115_v30 = vadd.f32 %v4114_v4, %v3442_v48  ;;  %v3446_v28 = vadd.f32 %v3445_v6, %v8537_v40  ;;  %v4118_v46 = vpop.f32.mrb[135].mxu0  ;;  %v5034_v14 = vpop.xlane.xlu1 %5033  ;;  %5138 = vadd.xlane.f32.xlu0 %v5137_v12  ;;  %v5140_v43 = vadd.f32 %v4820_v41, %v4819_v18 }
 0x3f6   :  { %v4553_v60 = vmax.f32 %v4113_v62, 0.0  ;;  %5493 = vst.msk [vmem:[%s9872_s7 + $0xe0] sm:$0xff] %vm5464_vm2, %v5364_v35  ;;  %v4117_v55 = vadd.f32 %v4116_v56, %v3444_v52  ;;  %v5365_v50 = vadd.f32 %v9084_v7, %v5034_v14  ;;  %3708 = vmatmul.mubr.bf16.gmra.mrb[240].mxu1 %v10238_v58  ;;  %4381 = vmatmul.mubr.bf16.gmra.mrb[240].mxu0 %v10239_v21 }
 0x3f7   :  { %v4554_v44 = vmax.f32 %v4115_v30, 0.0  ;;  %v4119_v39 = vadd.f32 %v4118_v46, %v3446_v28  ;;  %3717 = vmatprep.mubr.bf16.mxu1 %v10240_v27  ;;  %4390 = vmatprep.mubr.bf16.mxu0 %v10241_v37 }
 0x3f8   :  { %v4821_v22 = vmul.f32 %v8554_v59, %v4553_v60  ;;  %v4555_v45 = vmax.f32 %v4117_v55, 0.0  ;;  %5494 = vst.msk [vmem:[%s9872_s7 + $0xe8] sm:$0xff] %vm5464_vm2, %v5365_v50  ;;  %5141 = vadd.xlane.f32.xlu1 %v5140_v43 }
 0x3f9   :  { %v4822_v33 = vmul.f32 %v8558_v10, %v4554_v44  ;;  %v4556_v29 = vmax.f32 %v4119_v39, 0.0  ;;  %v3449_v1 = vpop.f32.mrb[136].mxu1  ;;  %v4122_v20 = vpop.f32.mrb[136].mxu0 }
 0x3fa   :  { %v4823_v53 = vmul.f32 %v8554_v59, %v4555_v45  ;;  %v3450_v57 = vadd.f32 %v3449_v1, %v8532_v19  ;;  %v3451_v2 = vpop.f32.mrb[137].mxu1  ;;  %v4124_v61 = vpop.f32.mrb[137].mxu0  ;;  %v10247_v1 = vld [vmem:[#allocation69_spill] sm:$0xff] }
 0x3fb   :  { %v4824_v54 = vmul.f32 %v8558_v10, %v4556_v29  ;;  %v3452_v36 = vadd.f32 %v3451_v2, %v8537_v40  ;;  %v5037_v8 = vpop.xlane.xlu0 %5036  ;;  %v3453_v24 = vpop.f32.mrb[138].mxu1  ;;  %v5143_v26 = vadd.f32 %v4822_v33, %v4821_v22  ;;  %v10246_v29 = vld [vmem:[#allocation68_spill] sm:$0xff]  ;;  %v10249_v2 = vld [vmem:[#allocation78_spill] sm:$0xff] }
 0x3fc   :  { %v4123_v47 = vadd.f32 %v4122_v20, %v3450_v57  ;;  %v5366_v31 = vadd.f32 %v9084_v7, %v5037_v8  ;;  %v3454_v25 = vadd.f32 %v3453_v24, %v8532_v19  ;;  %v4126_v32 = vpop.f32.mrb[138].mxu0  ;;  %v3455_v3 = vpop.f32.mrb[139].mxu1  ;;  %v10248_v57 = vld [vmem:[#allocation3_spill] sm:$0xff] }
 0x3fd   :  { %v4125_v11 = vadd.f32 %v4124_v61, %v3452_v36  ;;  %v3456_v34 = vadd.f32 %v3455_v3, %v8537_v40  ;;  %v4128_v63 = vpop.f32.mrb[139].mxu0  ;;  %v5040_v9 = vpop.xlane.xlu1 %5039  ;;  %5144 = vadd.xlane.f32.xlu0 %v5143_v26  ;;  %v5146_v51 = vadd.f32 %v4824_v54, %v4823_v53 }
 0x3fe   :  { %v4557_v42 = vmax.f32 %v4123_v47, 0.0  ;;  %5495 = vst.msk [vmem:[%s9872_s7 + $0xf0] sm:$0xff] %vm5464_vm2, %v5366_v31  ;;  %v4127_v5 = vadd.f32 %v4126_v32, %v3454_v25  ;;  %v5367_v17 = vadd.f32 %v9084_v7, %v5040_v9  ;;  %3718 = vmatmul.mubr.bf16.gmra.mrb[244].mxu1 %v10242_v23  ;;  %4391 = vmatmul.mubr.bf16.gmra.mrb[244].mxu0 %v10243_v15 }
 0x3ff   :  { %v4558_v49 = vmax.f32 %v4125_v11, 0.0  ;;  %v4129_v18 = vadd.f32 %v4128_v63, %v3456_v34  ;;  %3727 = vmatprep.mubr.bf16.mxu1 %v10244_v16  ;;  %4400 = vmatprep.mubr.bf16.mxu0 %v10245_v0 }
 0x400   :  { %v4825_v4 = vmul.f32 %v8554_v59, %v4557_v42  ;;  %v4559_v41 = vmax.f32 %v4127_v5, 0.0  ;;  %5496 = vst.msk [vmem:[%s9872_s7 + $0xf8] sm:$0xff] %vm5464_vm2, %v5367_v17  ;;  %5147 = vadd.xlane.f32.xlu1 %v5146_v51 }
 0x401   :  { %v4826_v48 = vmul.f32 %v8558_v10, %v4558_v49  ;;  %v4560_v13 = vmax.f32 %v4129_v18, 0.0  ;;  %v3459_v38 = vpop.f32.mrb[140].mxu1  ;;  %v4132_v12 = vpop.f32.mrb[140].mxu0 }
 0x402   :  { %v4827_v62 = vmul.f32 %v8554_v59, %v4559_v41  ;;  %v3460_v35 = vadd.f32 %v3459_v38, %v8532_v19  ;;  %v3461_v52 = vpop.f32.mrb[141].mxu1  ;;  %v4134_v56 = vpop.f32.mrb[141].mxu0  ;;  %v10251_v38 = vld [vmem:[#allocation73_spill] sm:$0xff] }
 0x403   :  { %v4828_v6 = vmul.f32 %v8558_v10, %v4560_v13  ;;  %v3462_v30 = vadd.f32 %v3461_v52, %v8537_v40  ;;  %v5043_v28 = vpop.xlane.xlu0 %5042  ;;  %v3463_v46 = vpop.f32.mrb[142].mxu1  ;;  %v5149_v14 = vadd.f32 %v4826_v48, %v4825_v4  ;;  %v10250_v13 = vld [vmem:[#allocation72_spill] sm:$0xff] }
 0x404   :  { %v4133_v43 = vadd.f32 %v4132_v12, %v3460_v35  ;;  %v5368_v60 = vadd.f32 %v9084_v7, %v5043_v28  ;;  %v3464_v55 = vadd.f32 %v3463_v46, %v8532_v19  ;;  %v4136_v50 = vpop.f32.mrb[142].mxu0  ;;  %v3465_v58 = vpop.f32.mrb[143].mxu1 }
 0x405   :  { %v4135_v21 = vadd.f32 %v4134_v56, %v3462_v30  ;;  %v3466_v44 = vadd.f32 %v3465_v58, %v8537_v40  ;;  %v4138_v39 = vpop.f32.mrb[143].mxu0  ;;  %v5046_v27 = vpop.xlane.xlu1 %5045  ;;  %5150 = vadd.xlane.f32.xlu0 %v5149_v14  ;;  %v5152_v37 = vadd.f32 %v4828_v6, %v4827_v62 }
 0x406   :  { %v4561_v22 = vmax.f32 %v4133_v43, 0.0  ;;  %5497 = vst.msk [vmem:[%s9872_s7 + $0x100] sm:$0xff] %vm5464_vm2, %v5368_v60  ;;  %v4137_v45 = vadd.f32 %v4136_v50, %v3464_v55  ;;  %v5369_v33 = vadd.f32 %v9084_v7, %v5046_v27  ;;  %3728 = vmatmul.mubr.bf16.gmra.mrb[248].mxu1 %v10246_v29  ;;  %4401 = vmatmul.mubr.bf16.gmra.mrb[248].mxu0 %v10247_v1 }
 0x407   :  { %v4562_v20 = vmax.f32 %v4135_v21, 0.0  ;;  %v4139_v53 = vadd.f32 %v4138_v39, %v3466_v44  ;;  %3737 = vmatprep.mubr.bf16.mxu1 %v10248_v57  ;;  %4410 = vmatprep.mubr.bf16.mxu0 %v10249_v2 }
 0x408   :  { %v4829_v61 = vmul.f32 %v8554_v59, %v4561_v22  ;;  %v4563_v54 = vmax.f32 %v4137_v45, 0.0  ;;  %5498 = vst.msk [vmem:[%s9872_s7 + $0x108] sm:$0xff] %vm5464_vm2, %v5369_v33  ;;  %5153 = vadd.xlane.f32.xlu1 %v5152_v37 }
 0x409   :  { %v4830_v36 = vmul.f32 %v8558_v10, %v4562_v20  ;;  %v4564_v8 = vmax.f32 %v4139_v53, 0.0  ;;  %v3469_v24 = vpop.f32.mrb[144].mxu1  ;;  %v4142_v26 = vpop.f32.mrb[144].mxu0 }
 0x40a   :  { %v4831_v47 = vmul.f32 %v8554_v59, %v4563_v54  ;;  %v3470_v31 = vadd.f32 %v3469_v24, %v8532_v19  ;;  %v3471_v25 = vpop.f32.mrb[145].mxu1  ;;  %v4144_v32 = vpop.f32.mrb[145].mxu0 }
 0x40b   :  { %v4832_v3 = vmul.f32 %v8558_v10, %v4564_v8  ;;  %v3472_v11 = vadd.f32 %v3471_v25, %v8537_v40  ;;  %v5049_v34 = vpop.xlane.xlu0 %5048  ;;  %v3473_v63 = vpop.f32.mrb[146].mxu1  ;;  %v5155_v9 = vadd.f32 %v4830_v36, %v4829_v61 }
 0x40c   :  { %v4143_v51 = vadd.f32 %v4142_v26, %v3470_v31  ;;  %v5370_v42 = vadd.f32 %v9084_v7, %v5049_v34  ;;  %v3474_v5 = vadd.f32 %v3473_v63, %v8532_v19  ;;  %v4146_v17 = vpop.f32.mrb[146].mxu0  ;;  %v3475_v23 = vpop.f32.mrb[147].mxu1 }
 0x40d   :  { %v4145_v15 = vadd.f32 %v4144_v32, %v3472_v11  ;;  %v3476_v49 = vadd.f32 %v3475_v23, %v8537_v40  ;;  %v4148_v18 = vpop.f32.mrb[147].mxu0  ;;  %v5052_v16 = vpop.xlane.xlu1 %5051  ;;  %5156 = vadd.xlane.f32.xlu0 %v5155_v9  ;;  %v5158_v0 = vadd.f32 %v4832_v3, %v4831_v47 }
 0x40e   :  { %v4565_v4 = vmax.f32 %v4143_v51, 0.0  ;;  %5499 = vst.msk [vmem:[%s9872_s7 + $0x110] sm:$0xff] %vm5464_vm2, %v5370_v42  ;;  %v4147_v41 = vadd.f32 %v4146_v17, %v3474_v5  ;;  %v5371_v48 = vadd.f32 %v9084_v7, %v5052_v16  ;;  %3738 = vmatmul.mubr.bf16.gmra.mrb[252].mxu1 %v10250_v13  ;;  %4411 = vmatmul.mubr.bf16.gmra.mrb[252].mxu0 %v10251_v38 }
 0x40f   :  { %v4566_v12 = vmax.f32 %v4145_v15, 0.0  ;;  %v4149_v62 = vadd.f32 %v4148_v18, %v3476_v49  ;;  %5159 = vadd.xlane.f32.xlu1 %v5158_v0 }
 0x410   :  { %v4833_v35 = vmul.f32 %v8554_v59, %v4565_v4  ;;  %v4567_v52 = vmax.f32 %v4147_v41, 0.0  ;;  %5500 = vst.msk [vmem:[%s9872_s7 + $0x118] sm:$0xff] %vm5464_vm2, %v5371_v48 }
 0x411   :  { %v4834_v56 = vmul.f32 %v8558_v10, %v4566_v12  ;;  %v4568_v6 = vmax.f32 %v4149_v62, 0.0  ;;  %v3479_v30 = vpop.f32.mrb[148].mxu1  ;;  %v4152_v28 = vpop.f32.mrb[148].mxu0 }
 0x412   :  { %v4835_v46 = vmul.f32 %v8554_v59, %v4567_v52  ;;  %v3480_v14 = vadd.f32 %v3479_v30, %v8532_v19  ;;  %v3481_v43 = vpop.f32.mrb[149].mxu1  ;;  %v4154_v60 = vpop.f32.mrb[149].mxu0 }
 0x413   :  { %v4836_v55 = vmul.f32 %v8558_v10, %v4568_v6  ;;  %v3482_v50 = vadd.f32 %v3481_v43, %v8537_v40  ;;  %v5055_v58 = vpop.xlane.xlu0 %5054  ;;  %v3483_v21 = vpop.f32.mrb[150].mxu1  ;;  %v5161_v44 = vadd.f32 %v4834_v56, %v4833_v35 }
 0x414   :  { %v4153_v39 = vadd.f32 %v4152_v28, %v3480_v14  ;;  %v5372_v27 = vadd.f32 %v9084_v7, %v5055_v58  ;;  %v3484_v37 = vadd.f32 %v3483_v21, %v8532_v19  ;;  %v4156_v22 = vpop.f32.mrb[150].mxu0  ;;  %v3485_v45 = vpop.f32.mrb[151].mxu1 }
 0x415   :  { %v4155_v33 = vadd.f32 %v4154_v60, %v3482_v50  ;;  %v3486_v29 = vadd.f32 %v3485_v45, %v8537_v40  ;;  %v4158_v1 = vpop.f32.mrb[151].mxu0  ;;  %v5058_v20 = vpop.xlane.xlu1 %5057  ;;  %5162 = vadd.xlane.f32.xlu0 %v5161_v44  ;;  %v5164_v53 = vadd.f32 %v4836_v55, %v4835_v46 }
 0x416   :  { %v4569_v57 = vmax.f32 %v4153_v39, 0.0  ;;  %5501 = vst.msk [vmem:[%s9872_s7 + $0x120] sm:$0xff] %vm5464_vm2, %v5372_v27  ;;  %v4157_v2 = vadd.f32 %v4156_v22, %v3484_v37  ;;  %v5373_v61 = vadd.f32 %v9084_v7, %v5058_v20 }
 0x417   :  { %v4570_v54 = vmax.f32 %v4155_v33, 0.0  ;;  %v4159_v36 = vadd.f32 %v4158_v1, %v3486_v29  ;;  %5165 = vadd.xlane.f32.xlu1 %v5164_v53 }
 0x418   :  { %v4837_v8 = vmul.f32 %v8554_v59, %v4569_v57  ;;  %v4571_v24 = vmax.f32 %v4157_v2, 0.0  ;;  %5502 = vst.msk [vmem:[%s9872_s7 + $0x128] sm:$0xff] %vm5464_vm2, %v5373_v61 }
 0x419   :  { %v4838_v26 = vmul.f32 %v8558_v10, %v4570_v54  ;;  %v4572_v47 = vmax.f32 %v4159_v36, 0.0  ;;  %v3489_v31 = vpop.f32.mrb[152].mxu1  ;;  %v4162_v25 = vpop.f32.mrb[152].mxu0 }
 0x41a   :  { %v4839_v32 = vmul.f32 %v8554_v59, %v4571_v24  ;;  %v3490_v3 = vadd.f32 %v3489_v31, %v8532_v19  ;;  %v3491_v11 = vpop.f32.mrb[153].mxu1  ;;  %v4164_v34 = vpop.f32.mrb[153].mxu0 }
 0x41b   :  { %v4840_v63 = vmul.f32 %v8558_v10, %v4572_v47  ;;  %v3492_v9 = vadd.f32 %v3491_v11, %v8537_v40  ;;  %v5061_v51 = vpop.xlane.xlu0 %5060  ;;  %v3493_v42 = vpop.f32.mrb[154].mxu1  ;;  %v5167_v5 = vadd.f32 %v4838_v26, %v4837_v8 }
 0x41c   :  { %v4163_v17 = vadd.f32 %v4162_v25, %v3490_v3  ;;  %v5374_v23 = vadd.f32 %v9084_v7, %v5061_v51  ;;  %v3494_v15 = vadd.f32 %v3493_v42, %v8532_v19  ;;  %v4166_v49 = vpop.f32.mrb[154].mxu0  ;;  %v3495_v18 = vpop.f32.mrb[155].mxu1 }
 0x41d   :  { %v4165_v16 = vadd.f32 %v4164_v34, %v3492_v9  ;;  %v3496_v0 = vadd.f32 %v3495_v18, %v8537_v40  ;;  %v4168_v4 = vpop.f32.mrb[155].mxu0  ;;  %v5064_v41 = vpop.xlane.xlu1 %5063  ;;  %5168 = vadd.xlane.f32.xlu0 %v5167_v5  ;;  %v5170_v48 = vadd.f32 %v4840_v63, %v4839_v32 }
 0x41e   :  { %v4573_v13 = vmax.f32 %v4163_v17, 0.0  ;;  %5503 = vst.msk [vmem:[%s9872_s7 + $0x130] sm:$0xff] %vm5464_vm2, %v5374_v23  ;;  %v4167_v38 = vadd.f32 %v4166_v49, %v3494_v15  ;;  %v5375_v12 = vadd.f32 %v9084_v7, %v5064_v41 }
 0x41f   :  { %v4574_v62 = vmax.f32 %v4165_v16, 0.0  ;;  %v4169_v35 = vadd.f32 %v4168_v4, %v3496_v0  ;;  %5171 = vadd.xlane.f32.xlu1 %v5170_v48 }
 0x420   :  { %v4841_v52 = vmul.f32 %v8554_v59, %v4573_v13  ;;  %v4575_v56 = vmax.f32 %v4167_v38, 0.0  ;;  %5504 = vst.msk [vmem:[%s9872_s7 + $0x138] sm:$0xff] %vm5464_vm2, %v5375_v12 }
 0x421   :  { %v4842_v6 = vmul.f32 %v8558_v10, %v4574_v62  ;;  %v4576_v30 = vmax.f32 %v4169_v35, 0.0  ;;  %v3499_v28 = vpop.f32.mrb[156].mxu1  ;;  %v4172_v46 = vpop.f32.mrb[156].mxu0 }
 0x422   :  { %v4843_v14 = vmul.f32 %v8554_v59, %v4575_v56  ;;  %v3500_v43 = vadd.f32 %v3499_v28, %v8532_v19  ;;  %v3501_v60 = vpop.f32.mrb[157].mxu1  ;;  %v4174_v55 = vpop.f32.mrb[157].mxu0 }
 0x423   :  { %v4844_v50 = vmul.f32 %v8558_v10, %v4576_v30  ;;  %v3502_v58 = vadd.f32 %v3501_v60, %v8537_v40  ;;  %v5067_v21 = vpop.xlane.xlu0 %5066  ;;  %v3503_v44 = vpop.f32.mrb[158].mxu1  ;;  %v5173_v39 = vadd.f32 %v4842_v6, %v4841_v52 }
 0x424   :  { %v4173_v27 = vadd.f32 %v4172_v46, %v3500_v43  ;;  %v5376_v37 = vadd.f32 %v9084_v7, %v5067_v21  ;;  %v3504_v22 = vadd.f32 %v3503_v44, %v8532_v19  ;;  %v4176_v45 = vpop.f32.mrb[158].mxu0  ;;  %v3505_v33 = vpop.f32.mrb[159].mxu1 }
 0x425   :  { %v4175_v29 = vadd.f32 %v4174_v55, %v3502_v58  ;;  %v3506_v1 = vadd.f32 %v3505_v33, %v8537_v40  ;;  %v4178_v20 = vpop.f32.mrb[159].mxu0  ;;  %v5070_v53 = vpop.xlane.xlu1 %5069  ;;  %5174 = vadd.xlane.f32.xlu0 %v5173_v39  ;;  %v5176_v57 = vadd.f32 %v4844_v50, %v4843_v14 }
 0x426   :  { %v4577_v2 = vmax.f32 %v4173_v27, 0.0  ;;  %5505 = vst.msk [vmem:[%s9872_s7 + $0x140] sm:$0xff] %vm5464_vm2, %v5376_v37  ;;  %v4177_v61 = vadd.f32 %v4176_v45, %v3504_v22  ;;  %v5377_v54 = vadd.f32 %v9084_v7, %v5070_v53 }
 0x427   :  { %v4578_v36 = vmax.f32 %v4175_v29, 0.0  ;;  %v4179_v8 = vadd.f32 %v4178_v20, %v3506_v1  ;;  %5177 = vadd.xlane.f32.xlu1 %v5176_v57 }
 0x428   :  { %v4845_v24 = vmul.f32 %v8554_v59, %v4577_v2  ;;  %v4579_v26 = vmax.f32 %v4177_v61, 0.0  ;;  %5506 = vst.msk [vmem:[%s9872_s7 + $0x148] sm:$0xff] %vm5464_vm2, %v5377_v54 }
 0x429   :  { %v4846_v47 = vmul.f32 %v8558_v10, %v4578_v36  ;;  %v4580_v31 = vmax.f32 %v4179_v8, 0.0  ;;  %v3509_v25 = vpop.f32.mrb[160].mxu1  ;;  %v4182_v32 = vpop.f32.mrb[160].mxu0 }
 0x42a   :  { %v4847_v3 = vmul.f32 %v8554_v59, %v4579_v26  ;;  %v3510_v11 = vadd.f32 %v3509_v25, %v8532_v19  ;;  %v3511_v34 = vpop.f32.mrb[161].mxu1  ;;  %v4184_v63 = vpop.f32.mrb[161].mxu0 }
 0x42b   :  { %v4848_v9 = vmul.f32 %v8558_v10, %v4580_v31  ;;  %v3512_v51 = vadd.f32 %v3511_v34, %v8537_v40  ;;  %v5073_v42 = vpop.xlane.xlu0 %5072  ;;  %v3513_v5 = vpop.f32.mrb[162].mxu1  ;;  %v5179_v17 = vadd.f32 %v4846_v47, %v4845_v24 }
 0x42c   :  { %v4183_v23 = vadd.f32 %v4182_v32, %v3510_v11  ;;  %v5378_v15 = vadd.f32 %v9084_v7, %v5073_v42  ;;  %v3514_v49 = vadd.f32 %v3513_v5, %v8532_v19  ;;  %v4186_v18 = vpop.f32.mrb[162].mxu0  ;;  %v3515_v16 = vpop.f32.mrb[163].mxu1 }
 0x42d   :  { %v4185_v0 = vadd.f32 %v4184_v63, %v3512_v51  ;;  %v3516_v4 = vadd.f32 %v3515_v16, %v8537_v40  ;;  %v4188_v41 = vpop.f32.mrb[163].mxu0  ;;  %v5076_v48 = vpop.xlane.xlu1 %5075  ;;  %5180 = vadd.xlane.f32.xlu0 %v5179_v17  ;;  %v5182_v13 = vadd.f32 %v4848_v9, %v4847_v3 }
 0x42e   :  { %v4581_v38 = vmax.f32 %v4183_v23, 0.0  ;;  %5507 = vst.msk [vmem:[%s9872_s7 + $0x150] sm:$0xff] %vm5464_vm2, %v5378_v15  ;;  %v4187_v12 = vadd.f32 %v4186_v18, %v3514_v49  ;;  %v5379_v62 = vadd.f32 %v9084_v7, %v5076_v48 }
 0x42f   :  { %v4582_v35 = vmax.f32 %v4185_v0, 0.0  ;;  %v4189_v52 = vadd.f32 %v4188_v41, %v3516_v4  ;;  %5183 = vadd.xlane.f32.xlu1 %v5182_v13 }
 0x430   :  { %v4849_v56 = vmul.f32 %v8554_v59, %v4581_v38  ;;  %v4583_v6 = vmax.f32 %v4187_v12, 0.0  ;;  %5508 = vst.msk [vmem:[%s9872_s7 + $0x158] sm:$0xff] %vm5464_vm2, %v5379_v62 }
 0x431   :  { %v4850_v30 = vmul.f32 %v8558_v10, %v4582_v35  ;;  %v4584_v28 = vmax.f32 %v4189_v52, 0.0  ;;  %v3519_v46 = vpop.f32.mrb[164].mxu1  ;;  %v4192_v14 = vpop.f32.mrb[164].mxu0 }
 0x432   :  { %v4851_v43 = vmul.f32 %v8554_v59, %v4583_v6  ;;  %v3520_v60 = vadd.f32 %v3519_v46, %v8532_v19  ;;  %v3521_v55 = vpop.f32.mrb[165].mxu1  ;;  %v4194_v50 = vpop.f32.mrb[165].mxu0 }
 0x433   :  { %v4852_v58 = vmul.f32 %v8558_v10, %v4584_v28  ;;  %v3522_v21 = vadd.f32 %v3521_v55, %v8537_v40  ;;  %v5079_v44 = vpop.xlane.xlu0 %5078  ;;  %v3523_v39 = vpop.f32.mrb[166].mxu1  ;;  %v5185_v27 = vadd.f32 %v4850_v30, %v4849_v56 }
 0x434   :  { %v4193_v37 = vadd.f32 %v4192_v14, %v3520_v60  ;;  %v5380_v22 = vadd.f32 %v9084_v7, %v5079_v44  ;;  %v3524_v45 = vadd.f32 %v3523_v39, %v8532_v19  ;;  %v4196_v33 = vpop.f32.mrb[166].mxu0  ;;  %v3525_v29 = vpop.f32.mrb[167].mxu1 }
 0x435   :  { %v4195_v1 = vadd.f32 %v4194_v50, %v3522_v21  ;;  %v3526_v20 = vadd.f32 %v3525_v29, %v8537_v40  ;;  %v4198_v53 = vpop.f32.mrb[167].mxu0  ;;  %v5082_v57 = vpop.xlane.xlu1 %5081  ;;  %5186 = vadd.xlane.f32.xlu0 %v5185_v27  ;;  %v5188_v2 = vadd.f32 %v4852_v58, %v4851_v43 }
 0x436   :  { %v4585_v61 = vmax.f32 %v4193_v37, 0.0  ;;  %5509 = vst.msk [vmem:[%s9872_s7 + $0x160] sm:$0xff] %vm5464_vm2, %v5380_v22  ;;  %v4197_v54 = vadd.f32 %v4196_v33, %v3524_v45  ;;  %v5381_v36 = vadd.f32 %v9084_v7, %v5082_v57 }
 0x437   :  { %v4586_v8 = vmax.f32 %v4195_v1, 0.0  ;;  %v4199_v24 = vadd.f32 %v4198_v53, %v3526_v20  ;;  %5189 = vadd.xlane.f32.xlu1 %v5188_v2 }
 0x438   :  { %v4853_v26 = vmul.f32 %v8554_v59, %v4585_v61  ;;  %v4587_v47 = vmax.f32 %v4197_v54, 0.0  ;;  %5510 = vst.msk [vmem:[%s9872_s7 + $0x168] sm:$0xff] %vm5464_vm2, %v5381_v36 }
 0x439   :  { %v4854_v31 = vmul.f32 %v8558_v10, %v4586_v8  ;;  %v4588_v25 = vmax.f32 %v4199_v24, 0.0  ;;  %v3529_v32 = vpop.f32.mrb[168].mxu1  ;;  %v4202_v3 = vpop.f32.mrb[168].mxu0 }
 0x43a   :  { %v4855_v11 = vmul.f32 %v8554_v59, %v4587_v47  ;;  %v3530_v34 = vadd.f32 %v3529_v32, %v8532_v19  ;;  %v3531_v63 = vpop.f32.mrb[169].mxu1  ;;  %v4204_v9 = vpop.f32.mrb[169].mxu0 }
 0x43b   :  { %v4856_v51 = vmul.f32 %v8558_v10, %v4588_v25  ;;  %v3532_v42 = vadd.f32 %v3531_v63, %v8537_v40  ;;  %v5085_v5 = vpop.xlane.xlu0 %5084  ;;  %v3533_v17 = vpop.f32.mrb[170].mxu1  ;;  %v5191_v23 = vadd.f32 %v4854_v31, %v4853_v26 }
 0x43c   :  { %v4203_v15 = vadd.f32 %v4202_v3, %v3530_v34  ;;  %v5382_v49 = vadd.f32 %v9084_v7, %v5085_v5  ;;  %v3534_v18 = vadd.f32 %v3533_v17, %v8532_v19  ;;  %v4206_v16 = vpop.f32.mrb[170].mxu0  ;;  %v3535_v0 = vpop.f32.mrb[171].mxu1 }
 0x43d   :  { %v4205_v4 = vadd.f32 %v4204_v9, %v3532_v42  ;;  %v3536_v41 = vadd.f32 %v3535_v0, %v8537_v40  ;;  %v4208_v48 = vpop.f32.mrb[171].mxu0  ;;  %v5088_v13 = vpop.xlane.xlu1 %5087  ;;  %5192 = vadd.xlane.f32.xlu0 %v5191_v23  ;;  %v5194_v38 = vadd.f32 %v4856_v51, %v4855_v11 }
 0x43e   :  { %v4589_v12 = vmax.f32 %v4203_v15, 0.0  ;;  %5511 = vst.msk [vmem:[%s9872_s7 + $0x170] sm:$0xff] %vm5464_vm2, %v5382_v49  ;;  %v4207_v62 = vadd.f32 %v4206_v16, %v3534_v18  ;;  %v5383_v35 = vadd.f32 %v9084_v7, %v5088_v13 }
 0x43f   :  { %v4590_v52 = vmax.f32 %v4205_v4, 0.0  ;;  %v4209_v56 = vadd.f32 %v4208_v48, %v3536_v41  ;;  %5195 = vadd.xlane.f32.xlu1 %v5194_v38 }
 0x440   :  { %v4857_v6 = vmul.f32 %v8554_v59, %v4589_v12  ;;  %v4591_v30 = vmax.f32 %v4207_v62, 0.0  ;;  %5512 = vst.msk [vmem:[%s9872_s7 + $0x178] sm:$0xff] %vm5464_vm2, %v5383_v35 }
 0x441   :  { %v4858_v28 = vmul.f32 %v8558_v10, %v4590_v52  ;;  %v4592_v46 = vmax.f32 %v4209_v56, 0.0  ;;  %v3539_v14 = vpop.f32.mrb[172].mxu1  ;;  %v4212_v43 = vpop.f32.mrb[172].mxu0 }
 0x442   :  { %v4859_v60 = vmul.f32 %v8554_v59, %v4591_v30  ;;  %v3540_v55 = vadd.f32 %v3539_v14, %v8532_v19  ;;  %v3541_v50 = vpop.f32.mrb[173].mxu1  ;;  %v4214_v58 = vpop.f32.mrb[173].mxu0 }
 0x443   :  { %v4860_v21 = vmul.f32 %v8558_v10, %v4592_v46  ;;  %v3542_v44 = vadd.f32 %v3541_v50, %v8537_v40  ;;  %v5091_v39 = vpop.xlane.xlu0 %5090  ;;  %v3543_v27 = vpop.f32.mrb[174].mxu1  ;;  %v5197_v37 = vadd.f32 %v4858_v28, %v4857_v6 }
 0x444   :  { %v4213_v22 = vadd.f32 %v4212_v43, %v3540_v55  ;;  %v5384_v45 = vadd.f32 %v9084_v7, %v5091_v39  ;;  %v3544_v33 = vadd.f32 %v3543_v27, %v8532_v19  ;;  %v4216_v29 = vpop.f32.mrb[174].mxu0  ;;  %v3545_v1 = vpop.f32.mrb[175].mxu1 }
 0x445   :  { %v4215_v20 = vadd.f32 %v4214_v58, %v3542_v44  ;;  %v3546_v53 = vadd.f32 %v3545_v1, %v8537_v40  ;;  %v4218_v57 = vpop.f32.mrb[175].mxu0  ;;  %v5094_v2 = vpop.xlane.xlu1 %5093  ;;  %5198 = vadd.xlane.f32.xlu0 %v5197_v37  ;;  %v5200_v61 = vadd.f32 %v4860_v21, %v4859_v60 }
 0x446   :  { %v4593_v54 = vmax.f32 %v4213_v22, 0.0  ;;  %5513 = vst.msk [vmem:[%s9872_s7 + $0x180] sm:$0xff] %vm5464_vm2, %v5384_v45  ;;  %v4217_v36 = vadd.f32 %v4216_v29, %v3544_v33  ;;  %v5385_v8 = vadd.f32 %v9084_v7, %v5094_v2 }
 0x447   :  { %v4594_v24 = vmax.f32 %v4215_v20, 0.0  ;;  %v4219_v26 = vadd.f32 %v4218_v57, %v3546_v53  ;;  %5201 = vadd.xlane.f32.xlu1 %v5200_v61 }
 0x448   :  { %v4861_v47 = vmul.f32 %v8554_v59, %v4593_v54  ;;  %v4595_v31 = vmax.f32 %v4217_v36, 0.0  ;;  %5514 = vst.msk [vmem:[%s9872_s7 + $0x188] sm:$0xff] %vm5464_vm2, %v5385_v8 }
 0x449   :  { %v4862_v25 = vmul.f32 %v8558_v10, %v4594_v24  ;;  %v4596_v32 = vmax.f32 %v4219_v26, 0.0  ;;  %v3549_v3 = vpop.f32.mrb[176].mxu1  ;;  %v4222_v11 = vpop.f32.mrb[176].mxu0 }
 0x44a   :  { %v4863_v34 = vmul.f32 %v8554_v59, %v4595_v31  ;;  %v3550_v63 = vadd.f32 %v3549_v3, %v8532_v19  ;;  %v3551_v9 = vpop.f32.mrb[177].mxu1  ;;  %v4224_v51 = vpop.f32.mrb[177].mxu0 }
 0x44b   :  { %v4864_v42 = vmul.f32 %v8558_v10, %v4596_v32  ;;  %v3552_v5 = vadd.f32 %v3551_v9, %v8537_v40  ;;  %v5097_v17 = vpop.xlane.xlu0 %5096  ;;  %v3553_v23 = vpop.f32.mrb[178].mxu1  ;;  %v5203_v15 = vadd.f32 %v4862_v25, %v4861_v47 }
 0x44c   :  { %v4223_v49 = vadd.f32 %v4222_v11, %v3550_v63  ;;  %v5386_v18 = vadd.f32 %v9084_v7, %v5097_v17  ;;  %v3554_v16 = vadd.f32 %v3553_v23, %v8532_v19  ;;  %v4226_v0 = vpop.f32.mrb[178].mxu0  ;;  %v3555_v4 = vpop.f32.mrb[179].mxu1 }
 0x44d   :  { %v4225_v41 = vadd.f32 %v4224_v51, %v3552_v5  ;;  %v3556_v48 = vadd.f32 %v3555_v4, %v8537_v40  ;;  %v4228_v13 = vpop.f32.mrb[179].mxu0  ;;  %v5100_v38 = vpop.xlane.xlu1 %5099  ;;  %5204 = vadd.xlane.f32.xlu0 %v5203_v15  ;;  %v5206_v12 = vadd.f32 %v4864_v42, %v4863_v34 }
 0x44e   :  { %v4597_v62 = vmax.f32 %v4223_v49, 0.0  ;;  %5515 = vst.msk [vmem:[%s9872_s7 + $0x190] sm:$0xff] %vm5464_vm2, %v5386_v18  ;;  %v4227_v35 = vadd.f32 %v4226_v0, %v3554_v16  ;;  %v5387_v52 = vadd.f32 %v9084_v7, %v5100_v38 }
 0x44f   :  { %v4598_v56 = vmax.f32 %v4225_v41, 0.0  ;;  %v4229_v6 = vadd.f32 %v4228_v13, %v3556_v48  ;;  %5207 = vadd.xlane.f32.xlu1 %v5206_v12 }
 0x450   :  { %v4865_v30 = vmul.f32 %v8554_v59, %v4597_v62  ;;  %v4599_v28 = vmax.f32 %v4227_v35, 0.0  ;;  %5516 = vst.msk [vmem:[%s9872_s7 + $0x198] sm:$0xff] %vm5464_vm2, %v5387_v52 }
 0x451   :  { %v4866_v46 = vmul.f32 %v8558_v10, %v4598_v56  ;;  %v4600_v14 = vmax.f32 %v4229_v6, 0.0  ;;  %v3559_v43 = vpop.f32.mrb[180].mxu1  ;;  %v4232_v60 = vpop.f32.mrb[180].mxu0 }
 0x452   :  { %v4867_v55 = vmul.f32 %v8554_v59, %v4599_v28  ;;  %v3560_v50 = vadd.f32 %v3559_v43, %v8532_v19  ;;  %v3561_v58 = vpop.f32.mrb[181].mxu1  ;;  %v4234_v21 = vpop.f32.mrb[181].mxu0 }
 0x453   :  { %v4868_v44 = vmul.f32 %v8558_v10, %v4600_v14  ;;  %v3562_v39 = vadd.f32 %v3561_v58, %v8537_v40  ;;  %v5103_v27 = vpop.xlane.xlu0 %5102  ;;  %v3563_v37 = vpop.f32.mrb[182].mxu1  ;;  %v5209_v22 = vadd.f32 %v4866_v46, %v4865_v30 }
 0x454   :  { %v4233_v45 = vadd.f32 %v4232_v60, %v3560_v50  ;;  %v5388_v33 = vadd.f32 %v9084_v7, %v5103_v27  ;;  %v3564_v29 = vadd.f32 %v3563_v37, %v8532_v19  ;;  %v4236_v1 = vpop.f32.mrb[182].mxu0  ;;  %v3565_v20 = vpop.f32.mrb[183].mxu1 }
 0x455   :  { %v4235_v53 = vadd.f32 %v4234_v21, %v3562_v39  ;;  %v3566_v57 = vadd.f32 %v3565_v20, %v8537_v40  ;;  %v4238_v2 = vpop.f32.mrb[183].mxu0  ;;  %v5106_v61 = vpop.xlane.xlu1 %5105  ;;  %5210 = vadd.xlane.f32.xlu0 %v5209_v22  ;;  %v5212_v54 = vadd.f32 %v4868_v44, %v4867_v55 }
 0x456   :  { %v4601_v36 = vmax.f32 %v4233_v45, 0.0  ;;  %5517 = vst.msk [vmem:[%s9872_s7 + $0x1a0] sm:$0xff] %vm5464_vm2, %v5388_v33  ;;  %v4237_v8 = vadd.f32 %v4236_v1, %v3564_v29  ;;  %v5389_v24 = vadd.f32 %v9084_v7, %v5106_v61  ;;  %v9367_v33 = vld [vmem:[#allocation2] ss:$0 sm:$0xff] }
 0x457   :  { %v4602_v26 = vmax.f32 %v4235_v53, 0.0  ;;  %v4239_v47 = vadd.f32 %v4238_v2, %v3566_v57  ;;  %5213 = vadd.xlane.f32.xlu1 %v5212_v54 }
 0x458   :  { %v4869_v31 = vmul.f32 %v8554_v59, %v4601_v36  ;;  %v4603_v25 = vmax.f32 %v4237_v8, 0.0  ;;  %5518 = vst.msk [vmem:[%s9872_s7 + $0x1a8] sm:$0xff] %vm5464_vm2, %v5389_v24 }
 0x459   :  { %v4870_v32 = vmul.f32 %v8558_v10, %v4602_v26  ;;  %v4604_v3 = vmax.f32 %v4239_v47, 0.0  ;;  %v3569_v11 = vpop.f32.mrb[184].mxu1  ;;  %v4242_v34 = vpop.f32.mrb[184].mxu0 }
 0x45a   :  { %v4871_v63 = vmul.f32 %v8554_v59, %v4603_v25  ;;  %v3570_v9 = vadd.f32 %v3569_v11, %v8532_v19  ;;  %v3571_v51 = vpop.f32.mrb[185].mxu1  ;;  %v4244_v42 = vpop.f32.mrb[185].mxu0 }
 0x45b   :  { %v4872_v5 = vmul.f32 %v8558_v10, %v4604_v3  ;;  %v3572_v17 = vadd.f32 %v3571_v51, %v8537_v40  ;;  %v5109_v23 = vpop.xlane.xlu0 %5108  ;;  %v3573_v15 = vpop.f32.mrb[186].mxu1  ;;  %v5215_v49 = vadd.f32 %v4870_v32, %v4869_v31 }
 0x45c   :  { %v4243_v18 = vadd.f32 %v4242_v34, %v3570_v9  ;;  %v5390_v16 = vadd.f32 %v9084_v7, %v5109_v23  ;;  %v3574_v0 = vadd.f32 %v3573_v15, %v8532_v19  ;;  %v4246_v4 = vpop.f32.mrb[186].mxu0  ;;  %v3575_v41 = vpop.f32.mrb[187].mxu1 }
 0x45d   :  { %v4245_v48 = vadd.f32 %v4244_v42, %v3572_v17  ;;  %v3576_v13 = vadd.f32 %v3575_v41, %v8537_v40  ;;  %v4248_v38 = vpop.f32.mrb[187].mxu0  ;;  %v5112_v12 = vpop.xlane.xlu1 %5111  ;;  %5216 = vadd.xlane.f32.xlu0 %v5215_v49  ;;  %v5218_v62 = vadd.f32 %v4872_v5, %v4871_v63 }
 0x45e   :  { %v4605_v35 = vmax.f32 %v4243_v18, 0.0  ;;  %5519 = vst.msk [vmem:[%s9872_s7 + $0x1b0] sm:$0xff] %vm5464_vm2, %v5390_v16  ;;  %v4247_v52 = vadd.f32 %v4246_v4, %v3574_v0  ;;  %v5391_v56 = vadd.f32 %v9084_v7, %v5112_v12 }
 0x45f   :  { %v4606_v6 = vmax.f32 %v4245_v48, 0.0  ;;  %v4249_v30 = vadd.f32 %v4248_v38, %v3576_v13  ;;  %5219 = vadd.xlane.f32.xlu1 %v5218_v62 }
 0x460   :  { %v4873_v28 = vmul.f32 %v8554_v59, %v4605_v35  ;;  %v4607_v46 = vmax.f32 %v4247_v52, 0.0  ;;  %5520 = vst.msk [vmem:[%s9872_s7 + $0x1b8] sm:$0xff] %vm5464_vm2, %v5391_v56 }
 0x461   :  { %v4874_v14 = vmul.f32 %v8558_v10, %v4606_v6  ;;  %v4608_v43 = vmax.f32 %v4249_v30, 0.0  ;;  %v3579_v60 = vpop.f32.mrb[188].mxu1  ;;  %v4252_v55 = vpop.f32.mrb[188].mxu0 }
 0x462   :  { %v4875_v50 = vmul.f32 %v8554_v59, %v4607_v46  ;;  %v3580_v7 = vadd.f32 %v3579_v60, %v8532_v19  ;;  %v3581_v58 = vpop.f32.mrb[189].mxu1  ;;  %v4254_v21 = vpop.f32.mrb[189].mxu0 }
 0x463   :  { %v4876_v44 = vmul.f32 %v8558_v10, %v4608_v43  ;;  %v3582_v39 = vadd.f32 %v3581_v58, %v8537_v40  ;;  %v5115_v27 = vpop.xlane.xlu0 %5114  ;;  %v3583_v37 = vpop.f32.mrb[190].mxu1  ;;  %v5221_v22 = vadd.f32 %v4874_v14, %v4873_v28 }
 0x464   :  { %v4253_v45 = vadd.f32 %v4252_v55, %v3580_v7  ;;  %v5392_v29 = vadd.f32 %v9367_v33, %v5115_v27  ;;  %v3584_v1 = vadd.f32 %v3583_v37, %v8532_v19  ;;  %v4256_v20 = vpop.f32.mrb[190].mxu0  ;;  %v3585_v53 = vpop.f32.mrb[191].mxu1 }
 0x465   :  { %v4255_v57 = vadd.f32 %v4254_v21, %v3582_v39  ;;  %v3586_v2 = vadd.f32 %v3585_v53, %v8537_v40  ;;  %v4258_v61 = vpop.f32.mrb[191].mxu0  ;;  %v5118_v54 = vpop.xlane.xlu1 %5117  ;;  %5222 = vadd.xlane.f32.xlu0 %v5221_v22  ;;  %v5224_v36 = vadd.f32 %v4876_v44, %v4875_v50 }
 0x466   :  { %v4609_v8 = vmax.f32 %v4253_v45, 0.0  ;;  %5521 = vst.msk [vmem:[%s9872_s7 + $0x1c0] sm:$0xff] %vm5464_vm2, %v5392_v29  ;;  %v4257_v24 = vadd.f32 %v4256_v20, %v3584_v1  ;;  %v5393_v26 = vadd.f32 %v9367_v33, %v5118_v54 }
 0x467   :  { %v4610_v47 = vmax.f32 %v4255_v57, 0.0  ;;  %v4259_v31 = vadd.f32 %v4258_v61, %v3586_v2  ;;  %5225 = vadd.xlane.f32.xlu1 %v5224_v36 }
 0x468   :  { %v4877_v25 = vmul.f32 %v8554_v59, %v4609_v8  ;;  %v4611_v32 = vmax.f32 %v4257_v24, 0.0  ;;  %5522 = vst.msk [vmem:[%s9872_s7 + $0x1c8] sm:$0xff] %vm5464_vm2, %v5393_v26 }
 0x469   :  { %v4878_v3 = vmul.f32 %v8558_v10, %v4610_v47  ;;  %v4612_v11 = vmax.f32 %v4259_v31, 0.0  ;;  %v3589_v34 = vpop.f32.mrb[192].mxu1  ;;  %v4262_v63 = vpop.f32.mrb[192].mxu0 }
 0x46a   :  { %v4879_v9 = vmul.f32 %v8554_v59, %v4611_v32  ;;  %v3590_v51 = vadd.f32 %v3589_v34, %v8532_v19  ;;  %v3591_v42 = vpop.f32.mrb[193].mxu1  ;;  %v4264_v5 = vpop.f32.mrb[193].mxu0 }
 0x46b   :  { %v4880_v17 = vmul.f32 %v8558_v10, %v4612_v11  ;;  %v3592_v23 = vadd.f32 %v3591_v42, %v8537_v40  ;;  %v5121_v15 = vpop.xlane.xlu0 %5120  ;;  %v3593_v49 = vpop.f32.mrb[194].mxu1  ;;  %v5227_v18 = vadd.f32 %v4878_v3, %v4877_v25 }
 0x46c   :  { %v4263_v16 = vadd.f32 %v4262_v63, %v3590_v51  ;;  %v5394_v0 = vadd.f32 %v9367_v33, %v5121_v15  ;;  %v3594_v4 = vadd.f32 %v3593_v49, %v8532_v19  ;;  %v4266_v41 = vpop.f32.mrb[194].mxu0  ;;  %v3595_v48 = vpop.f32.mrb[195].mxu1 }
 0x46d   :  { %v4265_v13 = vadd.f32 %v4264_v5, %v3592_v23  ;;  %v3596_v38 = vadd.f32 %v3595_v48, %v8537_v40  ;;  %v4268_v12 = vpop.f32.mrb[195].mxu0  ;;  %v5124_v62 = vpop.xlane.xlu1 %5123  ;;  %5228 = vadd.xlane.f32.xlu0 %v5227_v18  ;;  %v5230_v35 = vadd.f32 %v4880_v17, %v4879_v9 }
 0x46e   :  { %v4613_v52 = vmax.f32 %v4263_v16, 0.0  ;;  %5523 = vst.msk [vmem:[%s9872_s7 + $0x1d0] sm:$0xff] %vm5464_vm2, %v5394_v0  ;;  %v4267_v56 = vadd.f32 %v4266_v41, %v3594_v4  ;;  %v5395_v6 = vadd.f32 %v9367_v33, %v5124_v62 }
 0x46f   :  { %v4614_v30 = vmax.f32 %v4265_v13, 0.0  ;;  %v4269_v28 = vadd.f32 %v4268_v12, %v3596_v38  ;;  %5231 = vadd.xlane.f32.xlu1 %v5230_v35 }
 0x470   :  { %v4881_v46 = vmul.f32 %v8554_v59, %v4613_v52  ;;  %v4615_v14 = vmax.f32 %v4267_v56, 0.0  ;;  %5524 = vst.msk [vmem:[%s9872_s7 + $0x1d8] sm:$0xff] %vm5464_vm2, %v5395_v6 }
 0x471   :  { %v4882_v43 = vmul.f32 %v8558_v10, %v4614_v30  ;;  %v4616_v60 = vmax.f32 %v4269_v28, 0.0  ;;  %v3599_v55 = vpop.f32.mrb[196].mxu1  ;;  %v4272_v50 = vpop.f32.mrb[196].mxu0 }
 0x472   :  { %v4883_v7 = vmul.f32 %v8554_v59, %v4615_v14  ;;  %v3600_v58 = vadd.f32 %v3599_v55, %v8532_v19  ;;  %v3601_v21 = vpop.f32.mrb[197].mxu1  ;;  %v4274_v44 = vpop.f32.mrb[197].mxu0 }
 0x473   :  { %v4884_v39 = vmul.f32 %v8558_v10, %v4616_v60  ;;  %v3602_v27 = vadd.f32 %v3601_v21, %v8537_v40  ;;  %v5127_v37 = vpop.xlane.xlu0 %5126  ;;  %v3603_v22 = vpop.f32.mrb[198].mxu1  ;;  %v5233_v45 = vadd.f32 %v4882_v43, %v4881_v46 }
 0x474   :  { %v4273_v29 = vadd.f32 %v4272_v50, %v3600_v58  ;;  %v5396_v1 = vadd.f32 %v9367_v33, %v5127_v37  ;;  %v3604_v20 = vadd.f32 %v3603_v22, %v8532_v19  ;;  %v4276_v53 = vpop.f32.mrb[198].mxu0  ;;  %v3605_v57 = vpop.f32.mrb[199].mxu1 }
 0x475   :  { %v4275_v2 = vadd.f32 %v4274_v44, %v3602_v27  ;;  %v3606_v61 = vadd.f32 %v3605_v57, %v8537_v40  ;;  %v4278_v54 = vpop.f32.mrb[199].mxu0  ;;  %v5130_v36 = vpop.xlane.xlu1 %5129  ;;  %5234 = vadd.xlane.f32.xlu0 %v5233_v45  ;;  %v5236_v8 = vadd.f32 %v4884_v39, %v4883_v7 }
 0x476   :  { %v4617_v24 = vmax.f32 %v4273_v29, 0.0  ;;  %5525 = vst.msk [vmem:[%s9872_s7 + $0x1e0] sm:$0xff] %vm5464_vm2, %v5396_v1  ;;  %v4277_v26 = vadd.f32 %v4276_v53, %v3604_v20  ;;  %v5397_v47 = vadd.f32 %v9367_v33, %v5130_v36 }
 0x477   :  { %v4618_v31 = vmax.f32 %v4275_v2, 0.0  ;;  %v4279_v25 = vadd.f32 %v4278_v54, %v3606_v61  ;;  %5237 = vadd.xlane.f32.xlu1 %v5236_v8 }
 0x478   :  { %v4885_v32 = vmul.f32 %v8554_v59, %v4617_v24  ;;  %v4619_v3 = vmax.f32 %v4277_v26, 0.0  ;;  %5526 = vst.msk [vmem:[%s9872_s7 + $0x1e8] sm:$0xff] %vm5464_vm2, %v5397_v47 }
 0x479   :  { %v4886_v11 = vmul.f32 %v8558_v10, %v4618_v31  ;;  %v4620_v34 = vmax.f32 %v4279_v25, 0.0  ;;  %v3609_v63 = vpop.f32.mrb[200].mxu1  ;;  %v4282_v9 = vpop.f32.mrb[200].mxu0 }
 0x47a   :  { %v4887_v51 = vmul.f32 %v8554_v59, %v4619_v3  ;;  %v3610_v42 = vadd.f32 %v3609_v63, %v8532_v19  ;;  %v3611_v5 = vpop.f32.mrb[201].mxu1  ;;  %v4284_v17 = vpop.f32.mrb[201].mxu0 }
 0x47b   :  { %v4888_v23 = vmul.f32 %v8558_v10, %v4620_v34  ;;  %v3612_v15 = vadd.f32 %v3611_v5, %v8537_v40  ;;  %v5133_v49 = vpop.xlane.xlu0 %5132  ;;  %v3613_v18 = vpop.f32.mrb[202].mxu1  ;;  %v5239_v16 = vadd.f32 %v4886_v11, %v4885_v32 }
 0x47c   :  { %v4283_v0 = vadd.f32 %v4282_v9, %v3610_v42  ;;  %v5398_v4 = vadd.f32 %v9367_v33, %v5133_v49  ;;  %v3614_v41 = vadd.f32 %v3613_v18, %v8532_v19  ;;  %v4286_v48 = vpop.f32.mrb[202].mxu0  ;;  %v3615_v13 = vpop.f32.mrb[203].mxu1 }
 0x47d   :  { %v4285_v38 = vadd.f32 %v4284_v17, %v3612_v15  ;;  %v3616_v12 = vadd.f32 %v3615_v13, %v8537_v40  ;;  %v4288_v62 = vpop.f32.mrb[203].mxu0  ;;  %v5136_v35 = vpop.xlane.xlu1 %5135  ;;  %5240 = vadd.xlane.f32.xlu0 %v5239_v16  ;;  %v5242_v52 = vadd.f32 %v4888_v23, %v4887_v51 }
 0x47e   :  { %v4621_v56 = vmax.f32 %v4283_v0, 0.0  ;;  %5527 = vst.msk [vmem:[%s9872_s7 + $0x1f0] sm:$0xff] %vm5464_vm2, %v5398_v4  ;;  %v4287_v6 = vadd.f32 %v4286_v48, %v3614_v41  ;;  %v5399_v30 = vadd.f32 %v9367_v33, %v5136_v35 }
 0x47f   :  { %v4622_v28 = vmax.f32 %v4285_v38, 0.0  ;;  %v4289_v46 = vadd.f32 %v4288_v62, %v3616_v12  ;;  %5243 = vadd.xlane.f32.xlu1 %v5242_v52 }
 0x480   :  { %v4889_v14 = vmul.f32 %v8554_v59, %v4621_v56  ;;  %v4623_v43 = vmax.f32 %v4287_v6, 0.0  ;;  %5528 = vst.msk [vmem:[%s9872_s7 + $0x1f8] sm:$0xff] %vm5464_vm2, %v5399_v30 }
 0x481   :  { %v4890_v60 = vmul.f32 %v8558_v10, %v4622_v28  ;;  %v4624_v55 = vmax.f32 %v4289_v46, 0.0  ;;  %v3619_v50 = vpop.f32.mrb[204].mxu1  ;;  %v4292_v7 = vpop.f32.mrb[204].mxu0 }
 0x482   :  { %v4891_v58 = vmul.f32 %v8554_v59, %v4623_v43  ;;  %v3620_v21 = vadd.f32 %v3619_v50, %v8532_v19  ;;  %v3621_v44 = vpop.f32.mrb[205].mxu1  ;;  %v4294_v39 = vpop.f32.mrb[205].mxu0 }
 0x483   :  { %v4892_v27 = vmul.f32 %v8558_v10, %v4624_v55  ;;  %v3622_v37 = vadd.f32 %v3621_v44, %v8537_v40  ;;  %v5139_v22 = vpop.xlane.xlu0 %5138  ;;  %v3623_v45 = vpop.f32.mrb[206].mxu1  ;;  %v5245_v29 = vadd.f32 %v4890_v60, %v4889_v14 }
 0x484   :  { %v4293_v1 = vadd.f32 %v4292_v7, %v3620_v21  ;;  %v5400_v20 = vadd.f32 %v9367_v33, %v5139_v22  ;;  %v3624_v53 = vadd.f32 %v3623_v45, %v8532_v19  ;;  %v4296_v57 = vpop.f32.mrb[206].mxu0  ;;  %v3625_v2 = vpop.f32.mrb[207].mxu1 }
 0x485   :  { %v4295_v61 = vadd.f32 %v4294_v39, %v3622_v37  ;;  %v3626_v54 = vadd.f32 %v3625_v2, %v8537_v40  ;;  %v4298_v36 = vpop.f32.mrb[207].mxu0  ;;  %v5142_v8 = vpop.xlane.xlu1 %5141  ;;  %5246 = vadd.xlane.f32.xlu0 %v5245_v29  ;;  %v5248_v24 = vadd.f32 %v4892_v27, %v4891_v58 }
 0x486   :  { %v4625_v26 = vmax.f32 %v4293_v1, 0.0  ;;  %5529 = vst.msk [vmem:[%s9872_s7 + $0x200] sm:$0xff] %vm5464_vm2, %v5400_v20  ;;  %v4297_v47 = vadd.f32 %v4296_v57, %v3624_v53  ;;  %v5401_v31 = vadd.f32 %v9367_v33, %v5142_v8 }
 0x487   :  { %v4626_v25 = vmax.f32 %v4295_v61, 0.0  ;;  %v4299_v32 = vadd.f32 %v4298_v36, %v3626_v54  ;;  %5249 = vadd.xlane.f32.xlu1 %v5248_v24 }
 0x488   :  { %v4893_v3 = vmul.f32 %v8554_v59, %v4625_v26  ;;  %v4627_v11 = vmax.f32 %v4297_v47, 0.0  ;;  %5530 = vst.msk [vmem:[%s9872_s7 + $0x208] sm:$0xff] %vm5464_vm2, %v5401_v31 }
 0x489   :  { %v4894_v34 = vmul.f32 %v8558_v10, %v4626_v25  ;;  %v4628_v63 = vmax.f32 %v4299_v32, 0.0  ;;  %v3629_v9 = vpop.f32.mrb[208].mxu1  ;;  %v4302_v51 = vpop.f32.mrb[208].mxu0 }
 0x48a   :  { %v4895_v42 = vmul.f32 %v8554_v59, %v4627_v11  ;;  %v3630_v5 = vadd.f32 %v3629_v9, %v8532_v19  ;;  %v3631_v17 = vpop.f32.mrb[209].mxu1  ;;  %v4304_v23 = vpop.f32.mrb[209].mxu0 }
 0x48b   :  { %v4896_v15 = vmul.f32 %v8558_v10, %v4628_v63  ;;  %v3632_v49 = vadd.f32 %v3631_v17, %v8537_v40  ;;  %v5145_v18 = vpop.xlane.xlu0 %5144  ;;  %v3633_v16 = vpop.f32.mrb[210].mxu1  ;;  %v5251_v0 = vadd.f32 %v4894_v34, %v4893_v3 }
 0x48c   :  { %v4303_v4 = vadd.f32 %v4302_v51, %v3630_v5  ;;  %v5402_v41 = vadd.f32 %v9367_v33, %v5145_v18  ;;  %v3634_v48 = vadd.f32 %v3633_v16, %v8532_v19  ;;  %v4306_v13 = vpop.f32.mrb[210].mxu0  ;;  %v3635_v38 = vpop.f32.mrb[211].mxu1 }
 0x48d   :  { %v4305_v12 = vadd.f32 %v4304_v23, %v3632_v49  ;;  %v3636_v62 = vadd.f32 %v3635_v38, %v8537_v40  ;;  %v4308_v35 = vpop.f32.mrb[211].mxu0  ;;  %v5148_v52 = vpop.xlane.xlu1 %5147  ;;  %5252 = vadd.xlane.f32.xlu0 %v5251_v0  ;;  %v5254_v56 = vadd.f32 %v4896_v15, %v4895_v42 }
 0x48e   :  { %v4629_v6 = vmax.f32 %v4303_v4, 0.0  ;;  %5531 = vst.msk [vmem:[%s9872_s7 + $0x210] sm:$0xff] %vm5464_vm2, %v5402_v41  ;;  %v4307_v30 = vadd.f32 %v4306_v13, %v3634_v48  ;;  %v5403_v28 = vadd.f32 %v9367_v33, %v5148_v52 }
 0x48f   :  { %v4630_v46 = vmax.f32 %v4305_v12, 0.0  ;;  %v4309_v14 = vadd.f32 %v4308_v35, %v3636_v62  ;;  %5255 = vadd.xlane.f32.xlu1 %v5254_v56 }
 0x490   :  { %v4897_v43 = vmul.f32 %v8554_v59, %v4629_v6  ;;  %v4631_v60 = vmax.f32 %v4307_v30, 0.0  ;;  %5532 = vst.msk [vmem:[%s9872_s7 + $0x218] sm:$0xff] %vm5464_vm2, %v5403_v28 }
 0x491   :  { %v4898_v55 = vmul.f32 %v8558_v10, %v4630_v46  ;;  %v4632_v50 = vmax.f32 %v4309_v14, 0.0  ;;  %v3639_v7 = vpop.f32.mrb[212].mxu1  ;;  %v4312_v58 = vpop.f32.mrb[212].mxu0 }
 0x492   :  { %v4899_v21 = vmul.f32 %v8554_v59, %v4631_v60  ;;  %v3640_v44 = vadd.f32 %v3639_v7, %v8532_v19  ;;  %v3641_v39 = vpop.f32.mrb[213].mxu1  ;;  %v4314_v27 = vpop.f32.mrb[213].mxu0 }
 0x493   :  { %v4900_v37 = vmul.f32 %v8558_v10, %v4632_v50  ;;  %v3642_v22 = vadd.f32 %v3641_v39, %v8537_v40  ;;  %v5151_v45 = vpop.xlane.xlu0 %5150  ;;  %v3643_v29 = vpop.f32.mrb[214].mxu1  ;;  %v5257_v1 = vadd.f32 %v4898_v55, %v4897_v43 }
 0x494   :  { %v4313_v20 = vadd.f32 %v4312_v58, %v3640_v44  ;;  %v5404_v53 = vadd.f32 %v9367_v33, %v5151_v45  ;;  %v3644_v57 = vadd.f32 %v3643_v29, %v8532_v19  ;;  %v4316_v2 = vpop.f32.mrb[214].mxu0  ;;  %v3645_v61 = vpop.f32.mrb[215].mxu1 }
 0x495   :  { %v4315_v54 = vadd.f32 %v4314_v27, %v3642_v22  ;;  %v3646_v36 = vadd.f32 %v3645_v61, %v8537_v40  ;;  %v4318_v8 = vpop.f32.mrb[215].mxu0  ;;  %v5154_v24 = vpop.xlane.xlu1 %5153  ;;  %5258 = vadd.xlane.f32.xlu0 %v5257_v1  ;;  %v5260_v26 = vadd.f32 %v4900_v37, %v4899_v21 }
 0x496   :  { %v4633_v47 = vmax.f32 %v4313_v20, 0.0  ;;  %5533 = vst.msk [vmem:[%s9872_s7 + $0x220] sm:$0xff] %vm5464_vm2, %v5404_v53  ;;  %v4317_v31 = vadd.f32 %v4316_v2, %v3644_v57  ;;  %v5405_v25 = vadd.f32 %v9367_v33, %v5154_v24 }
 0x497   :  { %v4634_v32 = vmax.f32 %v4315_v54, 0.0  ;;  %v4319_v3 = vadd.f32 %v4318_v8, %v3646_v36  ;;  %5261 = vadd.xlane.f32.xlu1 %v5260_v26 }
 0x498   :  { %v4901_v11 = vmul.f32 %v8554_v59, %v4633_v47  ;;  %v4635_v34 = vmax.f32 %v4317_v31, 0.0  ;;  %5534 = vst.msk [vmem:[%s9872_s7 + $0x228] sm:$0xff] %vm5464_vm2, %v5405_v25 }
 0x499   :  { %v4902_v63 = vmul.f32 %v8558_v10, %v4634_v32  ;;  %v4636_v9 = vmax.f32 %v4319_v3, 0.0  ;;  %v3649_v51 = vpop.f32.mrb[216].mxu1  ;;  %v4322_v42 = vpop.f32.mrb[216].mxu0 }
 0x49a   :  { %v4903_v5 = vmul.f32 %v8554_v59, %v4635_v34  ;;  %v3650_v17 = vadd.f32 %v3649_v51, %v8532_v19  ;;  %v3651_v23 = vpop.f32.mrb[217].mxu1  ;;  %v4324_v15 = vpop.f32.mrb[217].mxu0 }
 0x49b   :  { %v4904_v49 = vmul.f32 %v8558_v10, %v4636_v9  ;;  %v3652_v18 = vadd.f32 %v3651_v23, %v8537_v40  ;;  %v5157_v16 = vpop.xlane.xlu0 %5156  ;;  %v3653_v0 = vpop.f32.mrb[218].mxu1  ;;  %v5263_v4 = vadd.f32 %v4902_v63, %v4901_v11 }
 0x49c   :  { %v4323_v41 = vadd.f32 %v4322_v42, %v3650_v17  ;;  %v5406_v48 = vadd.f32 %v9367_v33, %v5157_v16  ;;  %v3654_v13 = vadd.f32 %v3653_v0, %v8532_v19  ;;  %v4326_v38 = vpop.f32.mrb[218].mxu0  ;;  %v3655_v12 = vpop.f32.mrb[219].mxu1 }
 0x49d   :  { %v4325_v62 = vadd.f32 %v4324_v15, %v3652_v18  ;;  %v3656_v35 = vadd.f32 %v3655_v12, %v8537_v40  ;;  %v4328_v52 = vpop.f32.mrb[219].mxu0  ;;  %v5160_v56 = vpop.xlane.xlu1 %5159  ;;  %5264 = vadd.xlane.f32.xlu0 %v5263_v4  ;;  %v5266_v6 = vadd.f32 %v4904_v49, %v4903_v5 }
 0x49e   :  { %v4637_v30 = vmax.f32 %v4323_v41, 0.0  ;;  %5535 = vst.msk [vmem:[%s9872_s7 + $0x230] sm:$0xff] %vm5464_vm2, %v5406_v48  ;;  %v4327_v28 = vadd.f32 %v4326_v38, %v3654_v13  ;;  %v5407_v46 = vadd.f32 %v9367_v33, %v5160_v56 }
 0x49f   :  { %v4638_v14 = vmax.f32 %v4325_v62, 0.0  ;;  %v4329_v43 = vadd.f32 %v4328_v52, %v3656_v35  ;;  %5267 = vadd.xlane.f32.xlu1 %v5266_v6 }
 0x4a0   :  { %v4905_v60 = vmul.f32 %v8554_v59, %v4637_v30  ;;  %v4639_v55 = vmax.f32 %v4327_v28, 0.0  ;;  %5536 = vst.msk [vmem:[%s9872_s7 + $0x238] sm:$0xff] %vm5464_vm2, %v5407_v46 }
 0x4a1   :  { %v4906_v50 = vmul.f32 %v8558_v10, %v4638_v14  ;;  %v4640_v7 = vmax.f32 %v4329_v43, 0.0  ;;  %v3659_v58 = vpop.f32.mrb[220].mxu1  ;;  %v4332_v21 = vpop.f32.mrb[220].mxu0 }
 0x4a2   :  { %v4907_v44 = vmul.f32 %v8554_v59, %v4639_v55  ;;  %v3660_v39 = vadd.f32 %v3659_v58, %v8532_v19  ;;  %v3661_v27 = vpop.f32.mrb[221].mxu1  ;;  %v4334_v37 = vpop.f32.mrb[221].mxu0 }
 0x4a3   :  { %v4908_v22 = vmul.f32 %v8558_v10, %v4640_v7  ;;  %v3662_v45 = vadd.f32 %v3661_v27, %v8537_v40  ;;  %v5163_v29 = vpop.xlane.xlu0 %5162  ;;  %v3663_v1 = vpop.f32.mrb[222].mxu1  ;;  %v5269_v20 = vadd.f32 %v4906_v50, %v4905_v60 }
 0x4a4   :  { %v4333_v53 = vadd.f32 %v4332_v21, %v3660_v39  ;;  %v5408_v57 = vadd.f32 %v9367_v33, %v5163_v29  ;;  %v3664_v2 = vadd.f32 %v3663_v1, %v8532_v19  ;;  %v4336_v61 = vpop.f32.mrb[222].mxu0  ;;  %v3665_v54 = vpop.f32.mrb[223].mxu1 }
 0x4a5   :  { %v4335_v36 = vadd.f32 %v4334_v37, %v3662_v45  ;;  %v3666_v8 = vadd.f32 %v3665_v54, %v8537_v40  ;;  %v4338_v24 = vpop.f32.mrb[223].mxu0  ;;  %v5166_v26 = vpop.xlane.xlu1 %5165  ;;  %5270 = vadd.xlane.f32.xlu0 %v5269_v20  ;;  %v5272_v47 = vadd.f32 %v4908_v22, %v4907_v44 }
 0x4a6   :  { %v4641_v31 = vmax.f32 %v4333_v53, 0.0  ;;  %5537 = vst.msk [vmem:[%s9872_s7 + $0x240] sm:$0xff] %vm5464_vm2, %v5408_v57  ;;  %v4337_v25 = vadd.f32 %v4336_v61, %v3664_v2  ;;  %v5409_v32 = vadd.f32 %v9367_v33, %v5166_v26 }
 0x4a7   :  { %v4642_v3 = vmax.f32 %v4335_v36, 0.0  ;;  %v4339_v11 = vadd.f32 %v4338_v24, %v3666_v8  ;;  %5273 = vadd.xlane.f32.xlu1 %v5272_v47 }
 0x4a8   :  { %v4909_v34 = vmul.f32 %v8554_v59, %v4641_v31  ;;  %v4643_v63 = vmax.f32 %v4337_v25, 0.0  ;;  %5538 = vst.msk [vmem:[%s9872_s7 + $0x248] sm:$0xff] %vm5464_vm2, %v5409_v32 }
 0x4a9   :  { %v4910_v9 = vmul.f32 %v8558_v10, %v4642_v3  ;;  %v4644_v51 = vmax.f32 %v4339_v11, 0.0  ;;  %v3669_v42 = vpop.f32.mrb[224].mxu1  ;;  %v4342_v5 = vpop.f32.mrb[224].mxu0 }
 0x4aa   :  { %v4911_v17 = vmul.f32 %v8554_v59, %v4643_v63  ;;  %v3670_v23 = vadd.f32 %v3669_v42, %v8532_v19  ;;  %v3671_v15 = vpop.f32.mrb[225].mxu1  ;;  %v4344_v49 = vpop.f32.mrb[225].mxu0 }
 0x4ab   :  { %v4912_v18 = vmul.f32 %v8558_v10, %v4644_v51  ;;  %v3672_v16 = vadd.f32 %v3671_v15, %v8537_v40  ;;  %v5169_v0 = vpop.xlane.xlu0 %5168  ;;  %v3673_v4 = vpop.f32.mrb[226].mxu1  ;;  %v5275_v41 = vadd.f32 %v4910_v9, %v4909_v34 }
 0x4ac   :  { %v4343_v48 = vadd.f32 %v4342_v5, %v3670_v23  ;;  %v5410_v13 = vadd.f32 %v9367_v33, %v5169_v0  ;;  %v3674_v38 = vadd.f32 %v3673_v4, %v8532_v19  ;;  %v4346_v12 = vpop.f32.mrb[226].mxu0  ;;  %v3675_v62 = vpop.f32.mrb[227].mxu1 }
 0x4ad   :  { %v4345_v35 = vadd.f32 %v4344_v49, %v3672_v16  ;;  %v3676_v52 = vadd.f32 %v3675_v62, %v8537_v40  ;;  %v4348_v56 = vpop.f32.mrb[227].mxu0  ;;  %v5172_v6 = vpop.xlane.xlu1 %5171  ;;  %5276 = vadd.xlane.f32.xlu0 %v5275_v41  ;;  %v5278_v30 = vadd.f32 %v4912_v18, %v4911_v17 }
 0x4ae   :  { %v4645_v28 = vmax.f32 %v4343_v48, 0.0  ;;  %5539 = vst.msk [vmem:[%s9872_s7 + $0x250] sm:$0xff] %vm5464_vm2, %v5410_v13  ;;  %v4347_v46 = vadd.f32 %v4346_v12, %v3674_v38  ;;  %v5411_v14 = vadd.f32 %v9367_v33, %v5172_v6 }
 0x4af   :  { %v4646_v43 = vmax.f32 %v4345_v35, 0.0  ;;  %v4349_v60 = vadd.f32 %v4348_v56, %v3676_v52  ;;  %5279 = vadd.xlane.f32.xlu1 %v5278_v30 }
 0x4b0   :  { %v4913_v55 = vmul.f32 %v8554_v59, %v4645_v28  ;;  %v4647_v50 = vmax.f32 %v4347_v46, 0.0  ;;  %5540 = vst.msk [vmem:[%s9872_s7 + $0x258] sm:$0xff] %vm5464_vm2, %v5411_v14 }
 0x4b1   :  { %v4914_v7 = vmul.f32 %v8558_v10, %v4646_v43  ;;  %v4648_v58 = vmax.f32 %v4349_v60, 0.0  ;;  %v3679_v21 = vpop.f32.mrb[228].mxu1  ;;  %v4352_v44 = vpop.f32.mrb[228].mxu0 }
 0x4b2   :  { %v4915_v39 = vmul.f32 %v8554_v59, %v4647_v50  ;;  %v3680_v27 = vadd.f32 %v3679_v21, %v8532_v19  ;;  %v3681_v37 = vpop.f32.mrb[229].mxu1  ;;  %v4354_v22 = vpop.f32.mrb[229].mxu0 }
 0x4b3   :  { %v4916_v45 = vmul.f32 %v8558_v10, %v4648_v58  ;;  %v3682_v29 = vadd.f32 %v3681_v37, %v8537_v40  ;;  %v5175_v1 = vpop.xlane.xlu0 %5174  ;;  %v3683_v20 = vpop.f32.mrb[230].mxu1  ;;  %v5281_v53 = vadd.f32 %v4914_v7, %v4913_v55 }
 0x4b4   :  { %v4353_v57 = vadd.f32 %v4352_v44, %v3680_v27  ;;  %v5412_v2 = vadd.f32 %v9367_v33, %v5175_v1  ;;  %v3684_v61 = vadd.f32 %v3683_v20, %v8532_v19  ;;  %v4356_v54 = vpop.f32.mrb[230].mxu0  ;;  %v3685_v36 = vpop.f32.mrb[231].mxu1 }
 0x4b5   :  { %v4355_v8 = vadd.f32 %v4354_v22, %v3682_v29  ;;  %v3686_v24 = vadd.f32 %v3685_v36, %v8537_v40  ;;  %v4358_v26 = vpop.f32.mrb[231].mxu0  ;;  %v5178_v47 = vpop.xlane.xlu1 %5177  ;;  %5282 = vadd.xlane.f32.xlu0 %v5281_v53  ;;  %v5284_v31 = vadd.f32 %v4916_v45, %v4915_v39 }
 0x4b6   :  { %v4649_v25 = vmax.f32 %v4353_v57, 0.0  ;;  %5541 = vst.msk [vmem:[%s9872_s7 + $0x260] sm:$0xff] %vm5464_vm2, %v5412_v2  ;;  %v4357_v32 = vadd.f32 %v4356_v54, %v3684_v61  ;;  %v5413_v3 = vadd.f32 %v9367_v33, %v5178_v47 }
 0x4b7   :  { %v4650_v11 = vmax.f32 %v4355_v8, 0.0  ;;  %v4359_v34 = vadd.f32 %v4358_v26, %v3686_v24  ;;  %5285 = vadd.xlane.f32.xlu1 %v5284_v31 }
 0x4b8   :  { %v4917_v63 = vmul.f32 %v8554_v59, %v4649_v25  ;;  %v4651_v9 = vmax.f32 %v4357_v32, 0.0  ;;  %5542 = vst.msk [vmem:[%s9872_s7 + $0x268] sm:$0xff] %vm5464_vm2, %v5413_v3 }
 0x4b9   :  { %v4918_v51 = vmul.f32 %v8558_v10, %v4650_v11  ;;  %v4652_v42 = vmax.f32 %v4359_v34, 0.0  ;;  %v3689_v5 = vpop.f32.mrb[232].mxu1  ;;  %v4362_v17 = vpop.f32.mrb[232].mxu0 }
 0x4ba   :  { %v4919_v23 = vmul.f32 %v8554_v59, %v4651_v9  ;;  %v3690_v15 = vadd.f32 %v3689_v5, %v8532_v19  ;;  %v3691_v49 = vpop.f32.mrb[233].mxu1  ;;  %v4364_v18 = vpop.f32.mrb[233].mxu0 }
 0x4bb   :  { %v4920_v16 = vmul.f32 %v8558_v10, %v4652_v42  ;;  %v3692_v0 = vadd.f32 %v3691_v49, %v8537_v40  ;;  %v5181_v4 = vpop.xlane.xlu0 %5180  ;;  %v3693_v41 = vpop.f32.mrb[234].mxu1  ;;  %v5287_v48 = vadd.f32 %v4918_v51, %v4917_v63 }
 0x4bc   :  { %v4363_v13 = vadd.f32 %v4362_v17, %v3690_v15  ;;  %v5414_v38 = vadd.f32 %v9367_v33, %v5181_v4  ;;  %v3694_v12 = vadd.f32 %v3693_v41, %v8532_v19  ;;  %v4366_v62 = vpop.f32.mrb[234].mxu0  ;;  %v3695_v35 = vpop.f32.mrb[235].mxu1 }
 0x4bd   :  { %v4365_v52 = vadd.f32 %v4364_v18, %v3692_v0  ;;  %v3696_v56 = vadd.f32 %v3695_v35, %v8537_v40  ;;  %v4368_v6 = vpop.f32.mrb[235].mxu0  ;;  %v5184_v30 = vpop.xlane.xlu1 %5183  ;;  %5288 = vadd.xlane.f32.xlu0 %v5287_v48  ;;  %v5290_v28 = vadd.f32 %v4920_v16, %v4919_v23 }
 0x4be   :  { %v4653_v46 = vmax.f32 %v4363_v13, 0.0  ;;  %5543 = vst.msk [vmem:[%s9872_s7 + $0x270] sm:$0xff] %vm5464_vm2, %v5414_v38  ;;  %v4367_v14 = vadd.f32 %v4366_v62, %v3694_v12  ;;  %v5415_v43 = vadd.f32 %v9367_v33, %v5184_v30 }
 0x4bf   :  { %v4654_v60 = vmax.f32 %v4365_v52, 0.0  ;;  %v4369_v55 = vadd.f32 %v4368_v6, %v3696_v56  ;;  %5291 = vadd.xlane.f32.xlu1 %v5290_v28 }
 0x4c0   :  { %v4921_v50 = vmul.f32 %v8554_v59, %v4653_v46  ;;  %v4655_v7 = vmax.f32 %v4367_v14, 0.0  ;;  %5544 = vst.msk [vmem:[%s9872_s7 + $0x278] sm:$0xff] %vm5464_vm2, %v5415_v43 }
 0x4c1   :  { %v4922_v58 = vmul.f32 %v8558_v10, %v4654_v60  ;;  %v4656_v21 = vmax.f32 %v4369_v55, 0.0  ;;  %v3699_v44 = vpop.f32.mrb[236].mxu1  ;;  %v4372_v39 = vpop.f32.mrb[236].mxu0 }
 0x4c2   :  { %v4923_v27 = vmul.f32 %v8554_v59, %v4655_v7  ;;  %v3700_v37 = vadd.f32 %v3699_v44, %v8532_v19  ;;  %v3701_v22 = vpop.f32.mrb[237].mxu1  ;;  %v4374_v45 = vpop.f32.mrb[237].mxu0 }
 0x4c3   :  { %v4924_v29 = vmul.f32 %v8558_v10, %v4656_v21  ;;  %v3702_v1 = vadd.f32 %v3701_v22, %v8537_v40  ;;  %v5187_v20 = vpop.xlane.xlu0 %5186  ;;  %v3703_v53 = vpop.f32.mrb[238].mxu1  ;;  %v5293_v57 = vadd.f32 %v4922_v58, %v4921_v50 }
 0x4c4   :  { %v4373_v2 = vadd.f32 %v4372_v39, %v3700_v37  ;;  %v5416_v61 = vadd.f32 %v9367_v33, %v5187_v20  ;;  %v3704_v54 = vadd.f32 %v3703_v53, %v8532_v19  ;;  %v4376_v36 = vpop.f32.mrb[238].mxu0  ;;  %v3705_v8 = vpop.f32.mrb[239].mxu1 }
 0x4c5   :  { %v4375_v24 = vadd.f32 %v4374_v45, %v3702_v1  ;;  %v3706_v26 = vadd.f32 %v3705_v8, %v8537_v40  ;;  %v4378_v47 = vpop.f32.mrb[239].mxu0  ;;  %v5190_v31 = vpop.xlane.xlu1 %5189  ;;  %5294 = vadd.xlane.f32.xlu0 %v5293_v57  ;;  %v5296_v25 = vadd.f32 %v4924_v29, %v4923_v27 }
 0x4c6   :  { %v4657_v32 = vmax.f32 %v4373_v2, 0.0  ;;  %5545 = vst.msk [vmem:[%s9872_s7 + $0x280] sm:$0xff] %vm5464_vm2, %v5416_v61  ;;  %v4377_v3 = vadd.f32 %v4376_v36, %v3704_v54  ;;  %v5417_v11 = vadd.f32 %v9367_v33, %v5190_v31 }
 0x4c7   :  { %v4658_v34 = vmax.f32 %v4375_v24, 0.0  ;;  %v4379_v63 = vadd.f32 %v4378_v47, %v3706_v26  ;;  %5297 = vadd.xlane.f32.xlu1 %v5296_v25 }
 0x4c8   :  { %v4925_v9 = vmul.f32 %v8554_v59, %v4657_v32  ;;  %v4659_v51 = vmax.f32 %v4377_v3, 0.0  ;;  %5546 = vst.msk [vmem:[%s9872_s7 + $0x288] sm:$0xff] %vm5464_vm2, %v5417_v11 }
 0x4c9   :  { %v4926_v42 = vmul.f32 %v8558_v10, %v4658_v34  ;;  %v4660_v5 = vmax.f32 %v4379_v63, 0.0  ;;  %v3709_v17 = vpop.f32.mrb[240].mxu1  ;;  %v4382_v23 = vpop.f32.mrb[240].mxu0 }
 0x4ca   :  { %v4927_v15 = vmul.f32 %v8554_v59, %v4659_v51  ;;  %v3710_v49 = vadd.f32 %v3709_v17, %v8532_v19  ;;  %v3711_v18 = vpop.f32.mrb[241].mxu1  ;;  %v4384_v16 = vpop.f32.mrb[241].mxu0 }
 0x4cb   :  { %v4928_v0 = vmul.f32 %v8558_v10, %v4660_v5  ;;  %v3712_v4 = vadd.f32 %v3711_v18, %v8537_v40  ;;  %v5193_v41 = vpop.xlane.xlu0 %5192  ;;  %v3713_v48 = vpop.f32.mrb[242].mxu1  ;;  %v5299_v13 = vadd.f32 %v4926_v42, %v4925_v9 }
 0x4cc   :  { %v4383_v38 = vadd.f32 %v4382_v23, %v3710_v49  ;;  %v5418_v12 = vadd.f32 %v9367_v33, %v5193_v41  ;;  %v3714_v62 = vadd.f32 %v3713_v48, %v8532_v19  ;;  %v4386_v35 = vpop.f32.mrb[242].mxu0  ;;  %v3715_v52 = vpop.f32.mrb[243].mxu1 }
 0x4cd   :  { %v4385_v56 = vadd.f32 %v4384_v16, %v3712_v4  ;;  %v3716_v6 = vadd.f32 %v3715_v52, %v8537_v40  ;;  %v4388_v30 = vpop.f32.mrb[243].mxu0  ;;  %v5196_v28 = vpop.xlane.xlu1 %5195  ;;  %5300 = vadd.xlane.f32.xlu0 %v5299_v13  ;;  %v5302_v46 = vadd.f32 %v4928_v0, %v4927_v15 }
 0x4ce   :  { %v4661_v14 = vmax.f32 %v4383_v38, 0.0  ;;  %5547 = vst.msk [vmem:[%s9872_s7 + $0x290] sm:$0xff] %vm5464_vm2, %v5418_v12  ;;  %v4387_v43 = vadd.f32 %v4386_v35, %v3714_v62  ;;  %v5419_v60 = vadd.f32 %v9367_v33, %v5196_v28 }
 0x4cf   :  { %v4662_v55 = vmax.f32 %v4385_v56, 0.0  ;;  %v4389_v50 = vadd.f32 %v4388_v30, %v3716_v6  ;;  %5303 = vadd.xlane.f32.xlu1 %v5302_v46 }
 0x4d0   :  { %v4929_v7 = vmul.f32 %v8554_v59, %v4661_v14  ;;  %v4663_v58 = vmax.f32 %v4387_v43, 0.0  ;;  %5548 = vst.msk [vmem:[%s9872_s7 + $0x298] sm:$0xff] %vm5464_vm2, %v5419_v60 }
 0x4d1   :  { %v4930_v21 = vmul.f32 %v8558_v10, %v4662_v55  ;;  %v4664_v44 = vmax.f32 %v4389_v50, 0.0  ;;  %v3719_v39 = vpop.f32.mrb[244].mxu1  ;;  %v4392_v27 = vpop.f32.mrb[244].mxu0  ;;  %v9646_v55 = vld [vmem:[#allocation2] ss:$0 sm:$0xff] }
 0x4d2   :  { %v4931_v37 = vmul.f32 %v8554_v59, %v4663_v58  ;;  %v3720_v22 = vadd.f32 %v3719_v39, %v8532_v19  ;;  %v3721_v45 = vpop.f32.mrb[245].mxu1  ;;  %v4394_v29 = vpop.f32.mrb[245].mxu0 }
 0x4d3   :  { %v4932_v1 = vmul.f32 %v8558_v10, %v4664_v44  ;;  %v3722_v20 = vadd.f32 %v3721_v45, %v8537_v40  ;;  %v5199_v53 = vpop.xlane.xlu0 %5198  ;;  %v3723_v57 = vpop.f32.mrb[246].mxu1  ;;  %v5305_v2 = vadd.f32 %v4930_v21, %v4929_v7 }
 0x4d4   :  { %v4393_v61 = vadd.f32 %v4392_v27, %v3720_v22  ;;  %v5420_v54 = vadd.f32 %v9367_v33, %v5199_v53  ;;  %v3724_v36 = vadd.f32 %v3723_v57, %v8532_v19  ;;  %v4396_v8 = vpop.f32.mrb[246].mxu0  ;;  %v3725_v24 = vpop.f32.mrb[247].mxu1 }
 0x4d5   :  { %v4395_v26 = vadd.f32 %v4394_v29, %v3722_v20  ;;  %v3726_v47 = vadd.f32 %v3725_v24, %v8537_v40  ;;  %v4398_v31 = vpop.f32.mrb[247].mxu0  ;;  %v5202_v25 = vpop.xlane.xlu1 %5201  ;;  %5306 = vadd.xlane.f32.xlu0 %v5305_v2  ;;  %v5308_v32 = vadd.f32 %v4932_v1, %v4931_v37 }
 0x4d6   :  { %v4665_v3 = vmax.f32 %v4393_v61, 0.0  ;;  %5549 = vst.msk [vmem:[%s9872_s7 + $0x2a0] sm:$0xff] %vm5464_vm2, %v5420_v54  ;;  %v4397_v11 = vadd.f32 %v4396_v8, %v3724_v36  ;;  %v5421_v34 = vadd.f32 %v9367_v33, %v5202_v25 }
 0x4d7   :  { %v4666_v63 = vmax.f32 %v4395_v26, 0.0  ;;  %v4399_v9 = vadd.f32 %v4398_v31, %v3726_v47  ;;  %5309 = vadd.xlane.f32.xlu1 %v5308_v32 }
 0x4d8   :  { %v4933_v51 = vmul.f32 %v8554_v59, %v4665_v3  ;;  %v4667_v42 = vmax.f32 %v4397_v11, 0.0  ;;  %5550 = vst.msk [vmem:[%s9872_s7 + $0x2a8] sm:$0xff] %vm5464_vm2, %v5421_v34 }
 0x4d9   :  { %v4934_v5 = vmul.f32 %v8558_v10, %v4666_v63  ;;  %v4668_v17 = vmax.f32 %v4399_v9, 0.0  ;;  %v3729_v23 = vpop.f32.mrb[248].mxu1  ;;  %v4402_v15 = vpop.f32.mrb[248].mxu0 }
 0x4da   :  { %v4935_v49 = vmul.f32 %v8554_v59, %v4667_v42  ;;  %v3730_v18 = vadd.f32 %v3729_v23, %v8532_v19  ;;  %v3731_v16 = vpop.f32.mrb[249].mxu1  ;;  %v4404_v0 = vpop.f32.mrb[249].mxu0 }
 0x4db   :  { %v4936_v4 = vmul.f32 %v8558_v10, %v4668_v17  ;;  %v3732_v41 = vadd.f32 %v3731_v16, %v8537_v40  ;;  %v5205_v48 = vpop.xlane.xlu0 %5204  ;;  %v3733_v13 = vpop.f32.mrb[250].mxu1  ;;  %v5311_v38 = vadd.f32 %v4934_v5, %v4933_v51 }
 0x4dc   :  { %v4403_v12 = vadd.f32 %v4402_v15, %v3730_v18  ;;  %v5422_v62 = vadd.f32 %v9367_v33, %v5205_v48  ;;  %v3734_v35 = vadd.f32 %v3733_v13, %v8532_v19  ;;  %v4406_v52 = vpop.f32.mrb[250].mxu0  ;;  %v3735_v56 = vpop.f32.mrb[251].mxu1 }
 0x4dd   :  { %v4405_v6 = vadd.f32 %v4404_v0, %v3732_v41  ;;  %v3736_v30 = vadd.f32 %v3735_v56, %v8537_v40  ;;  %v4408_v28 = vpop.f32.mrb[251].mxu0  ;;  %v5208_v46 = vpop.xlane.xlu1 %5207  ;;  %5312 = vadd.xlane.f32.xlu0 %v5311_v38  ;;  %v5314_v14 = vadd.f32 %v4936_v4, %v4935_v49 }
 0x4de   :  { %v4669_v43 = vmax.f32 %v4403_v12, 0.0  ;;  %5551 = vst.msk [vmem:[%s9872_s7 + $0x2b0] sm:$0xff] %vm5464_vm2, %v5422_v62  ;;  %v4407_v60 = vadd.f32 %v4406_v52, %v3734_v35  ;;  %v5423_v33 = vadd.f32 %v9646_v55, %v5208_v46 }
 0x4df   :  { %v4670_v50 = vmax.f32 %v4405_v6, 0.0  ;;  %v4409_v7 = vadd.f32 %v4408_v28, %v3736_v30  ;;  %5315 = vadd.xlane.f32.xlu1 %v5314_v14 }
 0x4e0   :  { %v4937_v58 = vmul.f32 %v8554_v59, %v4669_v43  ;;  %v4671_v21 = vmax.f32 %v4407_v60, 0.0  ;;  %5552 = vst.msk [vmem:[%s9872_s7 + $0x2b8] sm:$0xff] %vm5464_vm2, %v5423_v33 }
 0x4e1   :  { %v4938_v44 = vmul.f32 %v8558_v10, %v4670_v50  ;;  %v4672_v39 = vmax.f32 %v4409_v7, 0.0  ;;  %v3739_v27 = vpop.f32.mrb[252].mxu1  ;;  %v4412_v37 = vpop.f32.mrb[252].mxu0 }
 0x4e2   :  { %v4939_v22 = vmul.f32 %v8554_v59, %v4671_v21  ;;  %v3740_v45 = vadd.f32 %v3739_v27, %v8532_v19  ;;  %v3741_v29 = vpop.f32.mrb[253].mxu1  ;;  %v4414_v1 = vpop.f32.mrb[253].mxu0 }
 0x4e3   :  { %v4940_v20 = vmul.f32 %v8558_v10, %v4672_v39  ;;  %v3742_v53 = vadd.f32 %v3741_v29, %v8537_v40  ;;  %v5211_v57 = vpop.xlane.xlu0 %5210  ;;  %v3743_v2 = vpop.f32.mrb[254].mxu1  ;;  %v5317_v61 = vadd.f32 %v4938_v44, %v4937_v58 }
 0x4e4   :  { %v4413_v54 = vadd.f32 %v4412_v37, %v3740_v45  ;;  %v5424_v36 = vadd.f32 %v9646_v55, %v5211_v57  ;;  %v3744_v8 = vadd.f32 %v3743_v2, %v8532_v19  ;;  %v4416_v24 = vpop.f32.mrb[254].mxu0  ;;  %v3745_v26 = vpop.f32.mrb[255].mxu1 }
 0x4e5   :  { %v4415_v47 = vadd.f32 %v4414_v1, %v3742_v53  ;;  %v3746_v31 = vadd.f32 %v3745_v26, %v8537_v40  ;;  %v4418_v25 = vpop.f32.mrb[255].mxu0  ;;  %v5214_v32 = vpop.xlane.xlu1 %5213  ;;  %5318 = vadd.xlane.f32.xlu0 %v5317_v61  ;;  %v5320_v3 = vadd.f32 %v4940_v20, %v4939_v22 }
 0x4e6   :  { %v4673_v11 = vmax.f32 %v4413_v54, 0.0  ;;  %5553 = vst.msk [vmem:[%s9872_s7 + $0x2c0] sm:$0xff] %vm5464_vm2, %v5424_v36  ;;  %v4417_v34 = vadd.f32 %v4416_v24, %v3744_v8  ;;  %v5425_v63 = vadd.f32 %v9646_v55, %v5214_v32 }
 0x4e7   :  { %v4674_v9 = vmax.f32 %v4415_v47, 0.0  ;;  %v4419_v19 = vadd.f32 %v4418_v25, %v3746_v31  ;;  %5321 = vadd.xlane.f32.xlu1 %v5320_v3 }
 0x4e8   :  { %v4941_v51 = vmul.f32 %v8554_v59, %v4673_v11  ;;  %v4675_v42 = vmax.f32 %v4417_v34, 0.0  ;;  %5554 = vst.msk [vmem:[%s9872_s7 + $0x2c8] sm:$0xff] %vm5464_vm2, %v5425_v63 }
 0x4e9   :  { %v4942_v40 = vmul.f32 %v8558_v10, %v4674_v9  ;;  %v4676_v5 = vmax.f32 %v4419_v19, 0.0 }
 0x4ea   :  { %v4943_v17 = vmul.f32 %v8554_v59, %v4675_v42  ;;  %v5217_v23 = vpop.xlane.xlu0 %5216 }
 0x4eb   :  { %v4944_v15 = vmul.f32 %v8558_v10, %v4676_v5  ;;  %v5426_v49 = vadd.f32 %v9646_v55, %v5217_v23  ;;  %v5323_v18 = vadd.f32 %v4942_v40, %v4941_v51 }
 0x4ec   :  { %v5220_v16 = vpop.xlane.xlu1 %5219 }
 0x4ed   :  { %5555 = vst.msk [vmem:[%s9872_s7 + $0x2d0] sm:$0xff] %vm5464_vm2, %v5426_v49  ;;  %v5427_v0 = vadd.f32 %v9646_v55, %v5220_v16  ;;  %5324 = vadd.xlane.f32.xlu0 %v5323_v18  ;;  %v5326_v4 = vadd.f32 %v4944_v15, %v4943_v17 }
 0x4ef   :  { %5556 = vst.msk [vmem:[%s9872_s7 + $0x2d8] sm:$0xff] %vm5464_vm2, %v5427_v0  ;;  %5327 = vadd.xlane.f32.xlu1 %v5326_v4 }
 0x4f2   :  { %v5223_v59 = vpop.xlane.xlu0 %5222 }
 0x4f3   :  { %v5428_v10 = vadd.f32 %v9646_v55, %v5223_v59 }
 0x4f4   :  { %v5226_v41 = vpop.xlane.xlu1 %5225 }
 0x4f5   :  { %5557 = vst.msk [vmem:[%s9872_s7 + $0x2e0] sm:$0xff] %vm5464_vm2, %v5428_v10  ;;  %v5429_v48 = vadd.f32 %v9646_v55, %v5226_v41 }
 0x4f7   :  { %5558 = vst.msk [vmem:[%s9872_s7 + $0x2e8] sm:$0xff] %vm5464_vm2, %v5429_v48 }
 0x4fa   :  { %v5229_v13 = vpop.xlane.xlu0 %5228 }
 0x4fb   :  { %v5430_v38 = vadd.f32 %v9646_v55, %v5229_v13 }
 0x4fc   :  { %v5232_v12 = vpop.xlane.xlu1 %5231 }
 0x4fd   :  { %5559 = vst.msk [vmem:[%s9872_s7 + $0x2f0] sm:$0xff] %vm5464_vm2, %v5430_v38  ;;  %v5431_v62 = vadd.f32 %v9646_v55, %v5232_v12 }
 0x4ff   :  { %5560 = vst.msk [vmem:[%s9872_s7 + $0x2f8] sm:$0xff] %vm5464_vm2, %v5431_v62 }
 0x502   :  { %v5235_v35 = vpop.xlane.xlu0 %5234 }
 0x503   :  { %v5432_v52 = vadd.f32 %v9646_v55, %v5235_v35 }
 0x504   :  { %v5238_v56 = vpop.xlane.xlu1 %5237 }
 0x505   :  { %5561 = vst.msk [vmem:[%s9872_s7 + $0x300] sm:$0xff] %vm5464_vm2, %v5432_v52  ;;  %v5433_v6 = vadd.f32 %v9646_v55, %v5238_v56 }
 0x507   :  { %5562 = vst.msk [vmem:[%s9872_s7 + $0x308] sm:$0xff] %vm5464_vm2, %v5433_v6 }
 0x50a   :  { %v5241_v30 = vpop.xlane.xlu0 %5240 }
 0x50b   :  { %v5434_v28 = vadd.f32 %v9646_v55, %v5241_v30 }
 0x50c   :  { %v5244_v46 = vpop.xlane.xlu1 %5243 }
 0x50d   :  { %5563 = vst.msk [vmem:[%s9872_s7 + $0x310] sm:$0xff] %vm5464_vm2, %v5434_v28  ;;  %v5435_v14 = vadd.f32 %v9646_v55, %v5244_v46 }
 0x50f   :  { %5564 = vst.msk [vmem:[%s9872_s7 + $0x318] sm:$0xff] %vm5464_vm2, %v5435_v14 }
 0x512   :  { %v5247_v43 = vpop.xlane.xlu0 %5246 }
 0x513   :  { %v5436_v60 = vadd.f32 %v9646_v55, %v5247_v43 }
 0x514   :  { %v5250_v33 = vpop.xlane.xlu1 %5249 }
 0x515   :  { %5565 = vst.msk [vmem:[%s9872_s7 + $0x320] sm:$0xff] %vm5464_vm2, %v5436_v60  ;;  %v5437_v50 = vadd.f32 %v9646_v55, %v5250_v33 }
 0x517   :  { %5566 = vst.msk [vmem:[%s9872_s7 + $0x328] sm:$0xff] %vm5464_vm2, %v5437_v50 }
 0x51a   :  { %v5253_v7 = vpop.xlane.xlu0 %5252 }
 0x51b   :  { %v5438_v58 = vadd.f32 %v9646_v55, %v5253_v7 }
 0x51c   :  { %v5256_v21 = vpop.xlane.xlu1 %5255 }
 0x51d   :  { %5567 = vst.msk [vmem:[%s9872_s7 + $0x330] sm:$0xff] %vm5464_vm2, %v5438_v58  ;;  %v5439_v44 = vadd.f32 %v9646_v55, %v5256_v21 }
 0x51f   :  { %5568 = vst.msk [vmem:[%s9872_s7 + $0x338] sm:$0xff] %vm5464_vm2, %v5439_v44 }
 0x522   :  { %v5259_v39 = vpop.xlane.xlu0 %5258 }
 0x523   :  { %v5440_v27 = vadd.f32 %v9646_v55, %v5259_v39 }
 0x524   :  { %v5262_v37 = vpop.xlane.xlu1 %5261 }
 0x525   :  { %5569 = vst.msk [vmem:[%s9872_s7 + $0x340] sm:$0xff] %vm5464_vm2, %v5440_v27  ;;  %v5441_v22 = vadd.f32 %v9646_v55, %v5262_v37 }
 0x527   :  { %5570 = vst.msk [vmem:[%s9872_s7 + $0x348] sm:$0xff] %vm5464_vm2, %v5441_v22 }
 0x52a   :  { %v5265_v45 = vpop.xlane.xlu0 %5264 }
 0x52b   :  { %v5442_v29 = vadd.f32 %v9646_v55, %v5265_v45 }
 0x52c   :  { %v5268_v1 = vpop.xlane.xlu1 %5267 }
 0x52d   :  { %5571 = vst.msk [vmem:[%s9872_s7 + $0x350] sm:$0xff] %vm5464_vm2, %v5442_v29  ;;  %v5443_v20 = vadd.f32 %v9646_v55, %v5268_v1 }
 0x52f   :  { %5572 = vst.msk [vmem:[%s9872_s7 + $0x358] sm:$0xff] %vm5464_vm2, %v5443_v20 }
 0x532   :  { %v5271_v53 = vpop.xlane.xlu0 %5270 }
 0x533   :  { %v5444_v57 = vadd.f32 %v9646_v55, %v5271_v53 }
 0x534   :  { %v5274_v2 = vpop.xlane.xlu1 %5273 }
 0x535   :  { %5573 = vst.msk [vmem:[%s9872_s7 + $0x360] sm:$0xff] %vm5464_vm2, %v5444_v57  ;;  %v5445_v61 = vadd.f32 %v9646_v55, %v5274_v2 }
 0x537   :  { %5574 = vst.msk [vmem:[%s9872_s7 + $0x368] sm:$0xff] %vm5464_vm2, %v5445_v61 }
 0x53a   :  { %v5277_v54 = vpop.xlane.xlu0 %5276 }
 0x53b   :  { %v5446_v36 = vadd.f32 %v9646_v55, %v5277_v54 }
 0x53c   :  { %v5280_v8 = vpop.xlane.xlu1 %5279 }
 0x53d   :  { %5575 = vst.msk [vmem:[%s9872_s7 + $0x370] sm:$0xff] %vm5464_vm2, %v5446_v36  ;;  %v5447_v24 = vadd.f32 %v9646_v55, %v5280_v8 }
 0x53f   :  { %5576 = vst.msk [vmem:[%s9872_s7 + $0x378] sm:$0xff] %vm5464_vm2, %v5447_v24 }
 0x542   :  { %v5283_v26 = vpop.xlane.xlu0 %5282 }
 0x543   :  { %v5448_v47 = vadd.f32 %v9646_v55, %v5283_v26 }
 0x544   :  { %v5286_v31 = vpop.xlane.xlu1 %5285 }
 0x545   :  { %5577 = vst.msk [vmem:[%s9872_s7 + $0x380] sm:$0xff] %vm5464_vm2, %v5448_v47  ;;  %v5449_v25 = vadd.f32 %v9646_v55, %v5286_v31 }
 0x547   :  { %5578 = vst.msk [vmem:[%s9872_s7 + $0x388] sm:$0xff] %vm5464_vm2, %v5449_v25 }
 0x54a   :  { %v5289_v32 = vpop.xlane.xlu0 %5288 }
 0x54b   :  { %v5450_v3 = vadd.f32 %v9646_v55, %v5289_v32 }
 0x54c   :  { %v5292_v11 = vpop.xlane.xlu1 %5291 }
 0x54d   :  { %5579 = vst.msk [vmem:[%s9872_s7 + $0x390] sm:$0xff] %vm5464_vm2, %v5450_v3  ;;  %v5451_v34 = vadd.f32 %v9646_v55, %v5292_v11 }
 0x54f   :  { %5580 = vst.msk [vmem:[%s9872_s7 + $0x398] sm:$0xff] %vm5464_vm2, %v5451_v34 }
 0x552   :  { %v5295_v63 = vpop.xlane.xlu0 %5294 }
 0x553   :  { %v5452_v9 = vadd.f32 %v9646_v55, %v5295_v63 }
 0x554   :  { %v5298_v19 = vpop.xlane.xlu1 %5297 }
 0x555   :  { %5581 = vst.msk [vmem:[%s9872_s7 + $0x3a0] sm:$0xff] %vm5464_vm2, %v5452_v9  ;;  %v5453_v51 = vadd.f32 %v9646_v55, %v5298_v19 }
 0x557   :  { %5582 = vst.msk [vmem:[%s9872_s7 + $0x3a8] sm:$0xff] %vm5464_vm2, %v5453_v51 }
 0x55a   :  { %v5301_v42 = vpop.xlane.xlu0 %5300 }
 0x55b   :  { %v5454_v40 = vadd.f32 %v9646_v55, %v5301_v42 }
 0x55c   :  { %v5304_v5 = vpop.xlane.xlu1 %5303 }
 0x55d   :  { %5583 = vst.msk [vmem:[%s9872_s7 + $0x3b0] sm:$0xff] %vm5464_vm2, %v5454_v40  ;;  %v5455_v17 = vadd.f32 %v9646_v55, %v5304_v5 }
 0x55f   :  { %5584 = vst.msk [vmem:[%s9872_s7 + $0x3b8] sm:$0xff] %vm5464_vm2, %v5455_v17 }
 0x562   :  { %v5307_v23 = vpop.xlane.xlu0 %5306 }
 0x563   :  { %v5456_v15 = vadd.f32 %v9646_v55, %v5307_v23 }
 0x564   :  { %v5310_v49 = vpop.xlane.xlu1 %5309 }
 0x565   :  { %5585 = vst.msk [vmem:[%s9872_s7 + $0x3c0] sm:$0xff] %vm5464_vm2, %v5456_v15  ;;  %v5457_v18 = vadd.f32 %v9646_v55, %v5310_v49 }
 0x567   :  { %5586 = vst.msk [vmem:[%s9872_s7 + $0x3c8] sm:$0xff] %vm5464_vm2, %v5457_v18 }
 0x56a   :  { %v5313_v16 = vpop.xlane.xlu0 %5312 }
 0x56b   :  { %v5458_v0 = vadd.f32 %v9646_v55, %v5313_v16 }
 0x56c   :  { %v5316_v4 = vpop.xlane.xlu1 %5315 }
 0x56d   :  { %5587 = vst.msk [vmem:[%s9872_s7 + $0x3d0] sm:$0xff] %vm5464_vm2, %v5458_v0  ;;  %v5459_v59 = vadd.f32 %v9646_v55, %v5316_v4 }
 0x56f   :  { %5588 = vst.msk [vmem:[%s9872_s7 + $0x3d8] sm:$0xff] %vm5464_vm2, %v5459_v59 }
 0x572   :  { %v5319_v10 = vpop.xlane.xlu0 %5318 }
 0x573   :  { %v5460_v41 = vadd.f32 %v9646_v55, %v5319_v10 }
 0x574   :  { %v5322_v48 = vpop.xlane.xlu1 %5321 }
 0x575   :  { %5589 = vst.msk [vmem:[%s9872_s7 + $0x3e0] sm:$0xff] %vm5464_vm2, %v5460_v41  ;;  %v5461_v13 = vadd.f32 %v9646_v55, %v5322_v48 }
 0x577   :  { %5590 = vst.msk [vmem:[%s9872_s7 + $0x3e8] sm:$0xff] %vm5464_vm2, %v5461_v13 }
 0x57a   :  { %v5325_v38 = vpop.xlane.xlu0 %5324 }
 0x57b   :  { %v5462_v12 = vadd.f32 %v9646_v55, %v5325_v38 }
 0x57c   :  { %v5328_v62 = vpop.xlane.xlu1 %5327 }
 0x57d   :  { %5591 = vst.msk [vmem:[%s9872_s7 + $0x3f0] sm:$0xff] %vm5464_vm2, %v5462_v12  ;;  %v5463_v35 = vadd.f32 %v9646_v55, %v5328_v62 }
 0x57f   :  { %5592 = vst.msk [vmem:[%s9872_s7 + $0x3f8] sm:$0xff] %vm5464_vm2, %v5463_v35 }

</bundles_post_ra>
